<compile_context>
chip_gen: v5e
topology: v5e:2x2
jax: 0.10.0
libtpu: 0.0.40
codegen_flags: <defaults>
</compile_context>

<pallas_src>
import functools
import math

import numpy as np
import jax
import jax.numpy as jnp
from jax.experimental import pallas as pl
from jax.experimental.pallas import tpu as pltpu

# ----------------------------------------------------------------------------
# Model configuration (sensing_rate = 0.5 branch of MCFD.__init__)
# ----------------------------------------------------------------------------
SENSING_RATE = 0.5
M1, M2 = 2, 2
AMPLIFY = 0
BASE = 32 + AMPLIFY
NUM_LAYERS = 8
N_FEATS_DMCS = 64

VMEM_LIMIT = 32 * 1024 * 1024


def _round_up(x, m):
    return (x + m - 1) // m * m


# ----------------------------------------------------------------------------
# Pallas kernels
# ----------------------------------------------------------------------------
def _mm_bias_act_kernel(a_ref, b_ref, bias_ref, o_ref, *, act):
    acc = jnp.dot(a_ref[...], b_ref[...], preferred_element_type=jnp.float32)
    acc = acc + bias_ref[...]
    if act == "relu":
        acc = jnp.maximum(acc, 0.0)
    elif act == "sigmoid":
        acc = jax.nn.sigmoid(acc)
    o_ref[...] = acc.astype(o_ref.dtype)


def pallas_matmul(a, b, bias, act):
    """act(a @ b + bias): a (M,K) bf16, b (K,N) bf16, bias (N,) f32 -> (M,N) bf16.

    Single K pass (every conv in this model has K <= ~1.6K, which fits VMEM),
    f32 MXU accumulation, bias/activation fused in the epilogue.  b and bias use
    a constant block index so they stay resident in VMEM across all M tiles.
    """
    M, K = a.shape
    K2, N = b.shape
    assert K == K2
    Mp = _round_up(M, 128)
    if Mp != M:
        a = jnp.pad(a, ((0, Mp - M), (0, 0)))
    TM = 256 if Mp % 256 == 0 else 128

    out = pl.pallas_call(
        functools.partial(_mm_bias_act_kernel, act=act),
        out_shape=jax.ShapeDtypeStruct((Mp, N), jnp.bfloat16),
        grid=(Mp // TM,),
        in_specs=[
            pl.BlockSpec((TM, K), lambda i: (i, 0)),
            pl.BlockSpec((K, N), lambda i: (0, 0)),   # resident weights
            pl.BlockSpec((1, N), lambda i: (0, 0)),   # resident bias
        ],
        out_specs=pl.BlockSpec((TM, N), lambda i: (i, 0)),
        compiler_params=pltpu.CompilerParams(
            dimension_semantics=("parallel",),
            vmem_limit_bytes=VMEM_LIMIT),
    )(a, b, bias.reshape(1, N).astype(jnp.float32))
    return out[:M] if Mp != M else out


def _block_attention_kernel(q_ref, k_ref, v_ref, o_ref, *, scale):
    # One 8x8 window per grid step. Matches torch MulAttBlock:
    #   att = (x2 @ x1) * scale ; att = att.softmax(dim=1) ; out = x_flat @ att
    q = q_ref[0].astype(jnp.float32)      # (S, C), q[s, c]  (= torch x2)
    k = k_ref[0].astype(jnp.float32)      # (S, C), k[t, c]  (= torch x1^T)
    v = v_ref[0].astype(jnp.float32)      # (S, C), v[s, c]  (= torch x^T)
    # att_t[t, s] = sum_c k[t, c] * q[s, c]  (== att[s, t] of the torch code)
    att_t = jax.lax.dot_general(
        k, q, (((1,), (1,)), ((), ())),
        preferred_element_type=jnp.float32) * scale
    att_t = att_t - jnp.max(att_t, axis=1, keepdims=True)     # softmax over s
    e = jnp.exp(att_t)
    att_t = e / jnp.sum(e, axis=1, keepdims=True)
    o_ref[0] = jnp.dot(att_t, v,
                       preferred_element_type=jnp.float32).astype(o_ref.dtype)


def pallas_block_attention(q, k, v, scale):
    """Batched 8x8 window attention; q/k/v: (n, 64, C) -> (n, 64, C)."""
    n, S, C = q.shape
    spec = pl.BlockSpec((1, S, C), lambda i: (i, 0, 0))
    return pl.pallas_call(
        functools.partial(_block_attention_kernel, scale=scale),
        out_shape=jax.ShapeDtypeStruct((n, S, C), jnp.bfloat16),
        grid=(n,),
        in_specs=[spec, spec, spec],
        out_specs=spec,
        compiler_params=pltpu.CompilerParams(
            dimension_semantics=("parallel",),
            vmem_limit_bytes=VMEM_LIMIT),
    )(q.astype(jnp.bfloat16), k.astype(jnp.bfloat16), v.astype(jnp.bfloat16))


# ----------------------------------------------------------------------------
# Convolution = NHWC im2col (glue) + Pallas matmul (hot path)
# ----------------------------------------------------------------------------
def _im2col_nhwc(xp, kh, kw, stride, OH, OW, k_pad):
    """NHWC patches, tap-major / channel-minor.  K padding is folded into the
    same concatenate so no extra HBM pass is needed."""
    B = xp.shape[0]
    C = xp.shape[3]
    cols = []
    for i in range(kh):
        for j in range(kw):
            cols.append(xp[:, i:i + stride * (OH - 1) + 1:stride,
                              j:j + stride * (OW - 1) + 1:stride, :])
    if k_pad:
        cols.append(jnp.zeros((B, OH, OW, k_pad), xp.dtype))
    pat = jnp.concatenate(cols, axis=-1) if len(cols) > 1 else cols[0]
    return pat.reshape(B * OH * OW, kh * kw * C + k_pad)


def _build_weight_matrix(w, groups):
    """(Cout, Cin_g, kh, kw) torch weight -> (Kp, Cout) bf16 im2col matrix.
    Grouped convs become a block-diagonal matrix (zero cross-group entries),
    so a single dense, lane-dense matmul replaces the per-group loop+concat."""
    Cout, Cin_g, kh, kw = w.shape
    Cin = Cin_g * groups
    wr = jnp.transpose(w, (2, 3, 1, 0)).reshape(kh * kw, Cin_g, Cout)
    if groups == 1:
        wm = wr.reshape(kh * kw * Cin, Cout)
    else:
        Cout_g = Cout // groups
        wm_full = jnp.zeros((kh * kw, Cin, Cout), w.dtype)
        for g in range(groups):
            wm_full = wm_full.at[:, g * Cin_g:(g + 1) * Cin_g,
                                 g * Cout_g:(g + 1) * Cout_g].set(
                wr[:, :, g * Cout_g:(g + 1) * Cout_g])
        wm = wm_full.reshape(kh * kw * Cin, Cout)
    K = kh * kw * Cin
    Kp = _round_up(K, 16)
    if Kp != K:
        wm = jnp.pad(wm, ((0, Kp - K), (0, 0)))
    return wm.astype(jnp.bfloat16)


def conv(p, x, stride=1, padding=0, act="none"):
    """PyTorch-semantics Conv2d (groups baked into p['wm']) on an NHWC input."""
    B, H, W, Cin = x.shape
    Cout, _, kh, kw = p["w"].shape
    OH = (H + 2 * padding - kh) // stride + 1
    OW = (W + 2 * padding - kw) // stride + 1
    M = B * OH * OW
    wm = p["wm"]                                   # (Kp, Cout) bf16, prebuilt
    K = kh * kw * Cin
    Kp = wm.shape[0]
    bias = p["b"] if p["b"] is not None else jnp.zeros((Cout,), jnp.float32)

    xb = x.astype(jnp.bfloat16)
    if padding:
        xb = jnp.pad(xb, ((0, 0), (padding, padding), (padding, padding), (0, 0)))
    patches = _im2col_nhwc(xb, kh, kw, stride, OH, OW, Kp - K)    # (M, Kp) bf16

    if M >= 128 and Cout >= 16 and Cout % 8 == 0:
        out = pallas_matmul(patches, wm, bias, act)
    else:
        # Tiny matmuls (SE/CBAM gates, Cout<=4/2/1 convs, 4x4 feature maps):
        # a padded Pallas launch would be >90% waste; leave to XLA fusion.
        r = jnp.dot(patches, wm, preferred_element_type=jnp.float32) + bias
        if act == "relu":
            r = jnp.maximum(r, 0.0)
        elif act == "sigmoid":
            r = jax.nn.sigmoid(r)
        out = r.astype(jnp.bfloat16)
    return out.reshape(B, OH, OW, Cout)


# ----------------------------------------------------------------------------
# Pixel shuffle / pooling / resize / DWT glue (all NHWC)
# ----------------------------------------------------------------------------
def pixel_shuffle(x, r):
    B, H, W, C = x.shape
    Co = C // (r * r)
    x = x.reshape(B, H, W, Co, r, r).transpose(0, 1, 4, 2, 5, 3)
    return x.reshape(B, H * r, W * r, Co)


def _bins(insize, outsize):
    return [((o * insize) // outsize, -(-((o + 1) * insize) // outsize))
            for o in range(outsize)]


def _avg_pool_matrix(insize, outsize):
    m = np.zeros((outsize, insize), np.float32)
    for o, (s, e) in enumerate(_bins(insize, outsize)):
        m[o, s:e] = 1.0 / (e - s)
    return jnp.asarray(m)


def _bilinear_matrix(insize, outsize):
    # align_corners=True mapping, as in the torch F.interpolate call.
    m = np.zeros((outsize, insize), np.float32)
    for i in range(outsize):
        src = i * (insize - 1) / (outsize - 1) if outsize > 1 else 0.0
        i0 = int(math.floor(src))
        i1 = min(i0 + 1, insize - 1)
        frac = src - i0
        m[i, i0] += 1.0 - frac
        m[i, i1] += frac
    return jnp.asarray(m)


def _apply_sep_linear(x, mh, mw):
    """out[b,oh,ow,c] = sum_{h,w} mh[oh,h] * x[b,h,w,c] * mw[ow,w] (tiny -> XLA)."""
    t = jnp.einsum('bhwc,ph->bpwc', x.astype(jnp.float32), mh)
    t = jnp.einsum('bpwc,qw->bpqc', t, mw)
    return t.astype(jnp.bfloat16)


def adaptive_avg_pool2d(x, out_hw):
    H, W = x.shape[1], x.shape[2]
    return _apply_sep_linear(x, _avg_pool_matrix(H, out_hw[0]),
                             _avg_pool_matrix(W, out_hw[1]))


def adaptive_max_pool2d(x, out_hw):
    H, W = x.shape[1], x.shape[2]
    cols = jnp.stack([jnp.max(x[:, :, s:e, :], axis=2)
                      for s, e in _bins(W, out_hw[1])], axis=2)
    rows = jnp.stack([jnp.max(cols[:, s:e, :, :], axis=1)
                      for s, e in _bins(H, out_hw[0])], axis=1)
    return rows


def bilinear_resize(x, out_hw):
    H, W = x.shape[1], x.shape[2]
    return _apply_sep_linear(x, _bilinear_matrix(H, out_hw[0]),
                             _bilinear_matrix(W, out_hw[1]))


def dwt_haar(x):
    """Single-level 2D Haar DWT (zero mode, even sizes) on NHWC."""
    a = 1.0 / math.sqrt(2.0)
    x0 = x[:, :, 0::2, :]
    x1 = x[:, :, 1::2, :]
    lo_w = a * (x0 + x1)
    hi_w = a * (x0 - x1)
    cA = a * (lo_w[:, 0::2] + lo_w[:, 1::2])
    cH = a * (lo_w[:, 0::2] - lo_w[:, 1::2])
    cV = a * (hi_w[:, 0::2] + hi_w[:, 1::2])
    cD = a * (hi_w[:, 0::2] - hi_w[:, 1::2])
    return cA, cH, cV, cD


# ----------------------------------------------------------------------------
# Module forwards (all NHWC)
# ----------------------------------------------------------------------------
def spp_forward(p, x, mode):
    B, H, W, C = x.shape
    outs = []
    for level in (2, 3, 4):
        tgt = (H // level, W // level)
        pooled = adaptive_avg_pool2d(x, tgt) if mode == "avg" else adaptive_max_pool2d(x, tgt)
        outs.append(bilinear_resize(pooled, (H // 2, W // 2)))
    spp = jnp.concatenate(outs, axis=-1)
    a = conv(p["conv1"], spp)
    b = conv(p["conv2"][0], spp)
    b = conv(p["conv2"][1], b, padding=1)
    b = conv(p["conv2"][2], b)
    b = conv(p["conv2"][3], b, padding=1)
    return a * p["c1"] + b * p["c2"]


_DMCS_CONV1_SPECS = ((1, 0, 1), (3, 1, 1), (1, 0, 1), (3, 1, 1), (1, 0, 1), (3, 1, 2))
_DMCS_CONV2_SPECS = ((1, 0, 1), (2, 1, 1), (3, 0, 2))


def _se_gate(p, x, mode):
    g = (jnp.mean(x, axis=(1, 2), keepdims=True) if mode == "avg"
         else jnp.max(x, axis=(1, 2), keepdims=True))
    g = conv(p["fc1"], g, act="relu")
    g = conv(p["fc2"], g, act="sigmoid")
    return g


def dmcs_layer_forward(p, x):
    b1 = x
    for pp, (_, pad, st) in zip(p["conv1"], _DMCS_CONV1_SPECS):
        b1 = conv(pp, b1, stride=st, padding=pad, act="relu")
    b2 = x
    for pp, (_, pad, st) in zip(p["conv2"], _DMCS_CONV2_SPECS):
        b2 = conv(pp, b2, stride=st, padding=pad, act="relu")
    b3 = conv(p["conv3"], x, stride=2, padding=1)
    out = b1 * p["c1"] + b2 * p["c2"] + b3 * p["c3"]

    res_avg = spp_forward(p["avgpool"], x, "avg")
    res_max = spp_forward(p["maxpool"], x, "max")
    out1 = out + res_avg
    out2 = out + res_max
    out1 = out1 * _se_gate(p["avgattention"], out1, "avg")
    out2 = out2 * _se_gate(p["maxattention"], out2, "max")
    return p["o1"] * out1 + p["o2"] * out2


def dmcs_forward(p, x):
    h = conv(p["head"], x, padding=1)
    h = dmcs_layer_forward(p["layer0"], h)
    return conv(p["tail"], h)


def cbam_forward(p, x):
    avg = jnp.mean(x, axis=(1, 2), keepdims=True)
    mx = jnp.max(x, axis=(1, 2), keepdims=True)

    def mlp(v):
        return conv(p["fc2"], conv(p["fc1"], v, act="relu"))

    x = jax.nn.sigmoid(mlp(avg) + mlp(mx)) * x
    s_avg = jnp.mean(x, axis=3, keepdims=True)
    s_max = jnp.max(x, axis=3, keepdims=True)
    s = conv(p["sa"], jnp.concatenate([s_avg, s_max], axis=3),
             padding=3, act="sigmoid")
    return x * s


def resblock_forward(p, x):
    return x + conv(p, x, padding=1, act="relu")


def mulatt_forward(p, x_in):
    x = conv(p["r1a"], x_in, stride=2, padding=1)
    x = conv(p["r1b"], x, stride=2, padding=1)
    B, H, W, C = x.shape
    x = conv(p["conv1"], x, padding=3)
    # 8x8 window partition, same window ordering as the torch reshape/permute.
    xb = x.reshape(B, H // 8, 8, W // 8, 8, C).transpose(0, 1, 3, 2, 4, 5)
    xb = xb.reshape(-1, 8, 8, C)
    n = xb.shape[0]
    k = conv(p["conv2"], xb).reshape(n, 64, C)      # torch x1, transposed
    q = conv(p["conv3"], xb).reshape(n, 64, C)      # torch x2 (already transposed)
    v = xb.reshape(n, 64, C)
    o = pallas_block_attention(q, k, v, float(C) ** (-0.5))      # (n, 64, C)
    xo = conv(p["conv4"], o.reshape(n, 8, 8, C))
    x = xo.reshape(B, H // 8, W // 8, 8, 8, C).transpose(0, 1, 3, 2, 4, 5)
    x = x.reshape(B, H, W, C)
    x = pixel_shuffle(conv(p["r2a"], x, padding=1), 2)
    x = pixel_shuffle(conv(p["r2b"], x, padding=1), 2)
    return x_in + x


def fdrm_forward(p, x, y, has_att):
    def mix(mp, stride):
        t = conv(mp[0], y, act="relu")
        t = pixel_shuffle(t, M2)
        return conv(mp[1], t, stride=stride, padding=1, act="relu")

    y0 = mix(p["mix0"], 1)
    y1 = mix(p["mix1"], 2)
    y2 = mix(p["mix2"], 4)
    y3 = mix(p["mix3"], 8)

    f1 = conv(p["x_conv1"], x, stride=2, act="relu")
    f2 = conv(p["x_conv2"], f1, stride=2, act="relu")
    f3 = conv(p["x_conv3"], f2, stride=2, act="relu")

    f7 = conv(p["conv3"], jnp.concatenate([f3, y3], -1), padding=1, act="relu")
    f8 = pixel_shuffle(conv(p["conv4"], jnp.concatenate([f7, f3], -1), padding=1, act="relu"), 2)
    f9 = conv(p["conv5"], jnp.concatenate([f8, y2], -1), padding=1, act="relu")
    f10 = pixel_shuffle(conv(p["conv6"], jnp.concatenate([f9, f2], -1), padding=1, act="relu"), 2)
    f11 = conv(p["conv7"], jnp.concatenate([f10, y1], -1), padding=1, act="relu")
    f12 = pixel_shuffle(conv(p["conv8"], jnp.concatenate([f11, f1], -1), padding=1, act="relu"), 2)

    tmp12 = conv(p["conv2"], f12, padding=1)
    cA, cH, cV, cD = dwt_haar(tmp12)
    hf = pixel_shuffle(conv(p["high_conv"], jnp.concatenate([cH, cV, cD], -1),
                            padding=1, act="relu"), 2)
    lf = pixel_shuffle(conv(p["low_conv"], cA, padding=1, act="relu"), 2)
    hf = conv(p["high_conv_"], cbam_forward(p["ca1"], hf), padding=1, act="relu")
    lf = conv(p["low_conv_"], cbam_forward(p["ca2"], lf), padding=1, act="relu")
    cc = conv(p["cat_conv"][0], jnp.concatenate([hf, lf], -1), padding=1, act="relu")
    cc = conv(p["cat_conv"][1], cc, padding=1, act="relu")
    tmp12 = tmp12 + cc

    delta = dmcs_forward(p["dmcs"], tmp12) - y
    init_delta = pixel_shuffle(conv(p["init"], delta), M2)
    init_delta = conv(p["conv1"], init_delta, padding=1)
    f12 = f12 + resblock_forward(p["res"], init_delta)
    if has_att:
        f12 = mulatt_forward(p["att"], f12)

    f13 = conv(p["conv9"], jnp.concatenate([f12, y0], -1), padding=1, act="relu")
    f14 = conv(p["conv10"], jnp.concatenate([f13, x], -1), padding=1, act="relu")
    return f14


def _head(init_p, conv1_p, y):
    xi = conv(init_p, y)                      # (B,16,16,4) -- XLA path
    initial_img = pixel_shuffle(xi, M2)       # (B,32,32,1)
    out = conv(conv1_p, initial_img, padding=1, act="relu")
    return initial_img, out


def _tail(conv2_p, out, initial_img):
    out = conv(conv2_p, out, padding=1)
    return (out + initial_img).astype(jnp.float32), initial_img.astype(jnp.float32)


_dmcs_j = jax.jit(dmcs_forward)
_fdrm_j = jax.jit(fdrm_forward, static_argnums=(3,))
_head_j = jax.jit(_head)
_tail_j = jax.jit(_tail)


def mcfd_forward(params, x_nchw):
    x = jnp.transpose(x_nchw, (0, 2, 3, 1))   # NHWC inside the model
    y = _dmcs_j(params["dmcs"], x)
    initial_img, out = _head_j(params["initial"], params["conv1"], y)
    for i in range(NUM_LAYERS):
        out = _fdrm_j(params["fdrms"][i], out, y, (i + 1) % 4 == 0)
    out, initial_img = _tail_j(params["conv2"], out, initial_img)
    return (jnp.transpose(out, (0, 3, 1, 2)),
            jnp.transpose(initial_img, (0, 3, 1, 2)))


# ----------------------------------------------------------------------------
# Deterministic parameter construction (shapes from MCFD.__init__)
# ----------------------------------------------------------------------------
class ParamGen:
    def __init__(self, seed=0):
        self._key = jax.random.PRNGKey(seed)
        self._n = 0

    def _next(self):
        self._n += 1
        return jax.random.fold_in(self._key, self._n)

    def conv_p(self, cin, cout, k, bias=True, groups=1):
        w = 0.05 * jax.random.normal(self._next(), (cout, cin // groups, k, k), jnp.float32)
        b = 0.05 * jax.random.normal(self._next(), (cout,), jnp.float32) if bias else None
        wm = _build_weight_matrix(w, groups)   # prebuilt (Kp, Cout) bf16 matrix
        return {"w": w, "wm": wm, "b": b}


def make_spp_params(pg, dim):
    return {"conv1": pg.conv_p(dim * 3, dim, 1),
            "conv2": [pg.conv_p(dim * 3, dim, 1), pg.conv_p(dim, dim, 3),
                      pg.conv_p(dim, dim, 1), pg.conv_p(dim, dim, 3)],
            "c1": jnp.float32(0.5), "c2": jnp.float32(0.5)}


def make_dmcs_layer_params(pg, cin, cout):
    return {
        "conv1": [pg.conv_p(cin, cout, 1, bias=False), pg.conv_p(cout, cout, 3, bias=False),
                  pg.conv_p(cout, cout, 1, bias=False), pg.conv_p(cout, cout, 3, bias=False),
                  pg.conv_p(cout, cout, 1, bias=False), pg.conv_p(cout, cout, 3, bias=False)],
        "conv2": [pg.conv_p(cin, cout, 1, bias=False), pg.conv_p(cout, cout, 2, bias=False),
                  pg.conv_p(cout, cout, 3, bias=False)],
        "conv3": pg.conv_p(cin, cout, 3),
        "maxpool": make_spp_params(pg, cin),
        "avgpool": make_spp_params(pg, cin),
        "avgattention": {"fc1": pg.conv_p(cout, cout // 16, 1), "fc2": pg.conv_p(cout // 16, cout, 1)},
        "maxattention": {"fc1": pg.conv_p(cout, cout // 16, 1), "fc2": pg.conv_p(cout // 16, cout, 1)},
        "c1": jnp.float32(1 / 3.0), "c2": jnp.float32(1 / 3.0), "c3": jnp.float32(1 / 3.0),
        "o1": jnp.float32(0.5), "o2": jnp.float32(0.5)}


def make_dmcs_params(pg):  # sensing_rate == 0.5 variant
    return {"head": pg.conv_p(1, N_FEATS_DMCS, 3, bias=False),
            "layer0": make_dmcs_layer_params(pg, N_FEATS_DMCS, N_FEATS_DMCS),
            "tail": pg.conv_p(N_FEATS_DMCS, M1, 1, bias=False)}


def make_cbam_params(pg, ch, ratio=8):
    return {"fc1": pg.conv_p(ch, ch // ratio, 1, bias=False),
            "fc2": pg.conv_p(ch // ratio, ch, 1, bias=False),
            "sa": pg.conv_p(2, 1, 7, bias=False)}


def make_mulatt_params(pg, dim):
    return {"r1a": pg.conv_p(dim, dim, 3, groups=4),
            "r1b": pg.conv_p(dim, dim, 3, groups=4),
            "r2a": pg.conv_p(dim, dim * 4, 3, bias=False, groups=4),
            "r2b": pg.conv_p(dim, dim * 4, 3, bias=False, groups=4),
            "conv1": pg.conv_p(dim, dim, 7),
            "conv2": pg.conv_p(dim, dim, 1),
            "conv3": pg.conv_p(dim, dim, 1),
            "conv4": pg.conv_p(dim, dim, 1)}


def make_fdrm_params(pg, dim, dmcs_p, init_p, layer_idx):
    d = {"x_conv1": pg.conv_p(dim, dim, 2),
         "x_conv2": pg.conv_p(dim, dim, 2),
         "x_conv3": pg.conv_p(dim, dim, 1),
         "mix0": [pg.conv_p(M1, M2 ** 2, 1), pg.conv_p(1, dim, 3)],
         "mix1": [pg.conv_p(M1, M2 ** 2, 1), pg.conv_p(1, dim, 3)],
         "mix2": [pg.conv_p(M1, M2 ** 2, 1), pg.conv_p(1, dim, 3)],
         "mix3": [pg.conv_p(M1, M2 ** 2, 1), pg.conv_p(1, dim, 3)],
         "conv3": pg.conv_p(dim * 2, dim, 3, groups=2),
         "conv4": pg.conv_p(dim * 2, dim * 4, 3, groups=4),
         "conv5": pg.conv_p(dim * 2, dim, 3, groups=2),
         "conv6": pg.conv_p(dim * 2, dim * 4, 3, groups=4),
         "conv7": pg.conv_p(dim * 2, dim, 3),
         "conv8": pg.conv_p(dim * 2, dim * 4, 3, groups=4),
         "conv9": pg.conv_p(dim * 2, dim, 3),
         "conv10": pg.conv_p(dim * 2, dim, 3),
         "high_conv": pg.conv_p(3, dim * 4, 3),
         "low_conv": pg.conv_p(1, dim * 4, 3),
         "high_conv_": pg.conv_p(dim, 1, 3),
         "low_conv_": pg.conv_p(dim, 1, 3),
         "cat_conv": [pg.conv_p(2, dim, 3), pg.conv_p(dim, 1, 3)],
         "conv1": pg.conv_p(1, dim, 3),
         "conv2": pg.conv_p(dim, 1, 3),
         "ca1": make_cbam_params(pg, dim),
         "ca2": make_cbam_params(pg, dim),
         "res": pg.conv_p(dim, dim, 3),
         "dmcs": dmcs_p,
         "init": init_p}
    if (layer_idx + 1) % 4 == 0:
        d["att"] = make_mulatt_params(pg, dim)
    return d


def make_mcfd_params(seed=0):
    pg = ParamGen(seed)
    dmcs_p = make_dmcs_params(pg)
    init_p = pg.conv_p(M1, M2 ** 2, 1, bias=False)
    return {"dmcs": dmcs_p,
            "initial": init_p,
            "conv1": pg.conv_p(1, BASE, 3),
            "conv2": pg.conv_p(BASE, 1, 3),
            "fdrms": [make_fdrm_params(pg, BASE, dmcs_p, init_p, i) for i in range(NUM_LAYERS)]}


# ----------------------------------------------------------------------------
if __name__ == "__main__":
    params = make_mcfd_params(seed=0)
    key = jax.random.PRNGKey(0)
    # blocksize = 32 -> spatial dims must be multiples of 32 (MulAttBlock needs H/4 % 8 == 0)
    x = jax.random.uniform(key, (2, 1, 32, 32), jnp.float32)

    out, initial_img = mcfd_forward(params, x)
    out = jax.block_until_ready(out)
    initial_img = jax.block_until_ready(initial_img)

    assert out.shape == (2, 1, 32, 32) and initial_img.shape == (2, 1, 32, 32)
    assert bool(jnp.all(jnp.isfinite(out))) and bool(jnp.all(jnp.isfinite(initial_img)))
    print("KERNEL_OK")
</pallas_src>

<mosaic_0001>
module attributes {stable_mosaic.version = 11 : i64} {
  func.func @_mm_bias_act_kernel(%arg0: i32, %arg1: memref<256x16xbf16, #tpu.memory_space<vmem>>, %arg2: memref<16x64xbf16, #tpu.memory_space<vmem>>, %arg3: memref<1x64xf32, #tpu.memory_space<vmem>>, %arg4: memref<256x64xbf16, #tpu.memory_space<vmem>>) attributes {dimension_semantics = [#tpu.dimension_semantics<parallel>], iteration_bounds = array<i64: 8>, scalar_prefetch = 0 : i64, scratch_operands = 0 : i64, tpu.core_type = #tpu.core_type<tc>, window_params = [{transform_indices = @transform_0, window_bounds = array<i64: 256, 16>}, {pipeline_mode = #tpu.pipeline_mode<synchronous>, transform_indices = @transform_1, window_bounds = array<i64: 16, 64>}, {pipeline_mode = #tpu.pipeline_mode<synchronous>, transform_indices = @transform_2, window_bounds = array<i64: 1, 64>}, {transform_indices = @transform_3, window_bounds = array<i64: 256, 64>}]} {
    %c0 = arith.constant 0 : index
    %c0_0 = arith.constant 0 : index
    %0 = vector.load %arg1[%c0, %c0_0] : memref<256x16xbf16, #tpu.memory_space<vmem>>, vector<256x16xbf16>
    %c0_1 = arith.constant 0 : index
    %c0_2 = arith.constant 0 : index
    %1 = vector.load %arg2[%c0_1, %c0_2] : memref<16x64xbf16, #tpu.memory_space<vmem>>, vector<16x64xbf16>
    %cst = arith.constant dense<0.000000e+00> : vector<256x64xf32>
    %2 = tpu.matmul %0, %1, %cst {dimension_numbers = #tpu.dot_dimension_numbers<[1], [0], [0], [1], [0, 0, 1, 1], [], []>} : vector<256x16xbf16>, vector<16x64xbf16>, vector<256x64xf32> -> vector<256x64xf32>
    %c0_3 = arith.constant 0 : index
    %c0_4 = arith.constant 0 : index
    %3 = vector.load %arg3[%c0_3, %c0_4] : memref<1x64xf32, #tpu.memory_space<vmem>>, vector<1x64xf32>
    %4 = vector.broadcast %3 : vector<1x64xf32> to vector<256x64xf32>
    %5 = arith.addf %2, %4 : vector<256x64xf32>
    %6 = arith.truncf %5 : vector<256x64xf32> to vector<256x64xbf16>
    %c0_5 = arith.constant 0 : index
    %c0_6 = arith.constant 0 : index
    %7 = vector.load %arg4[%c0_5, %c0_6] : memref<256x64xbf16, #tpu.memory_space<vmem>>, vector<256x64xbf16>
    tpu.vector_store %arg4[%c0_5, %c0_6], %6 {strides = array<i32>} : memref<256x64xbf16, #tpu.memory_space<vmem>>, vector<256x64xbf16>,
    return
  }
  func.func @transform_0(%arg0: i32) -> (i32, i32) {
    %c0_i32 = arith.constant 0 : i32
    %c0_i32_0 = arith.constant 0 : i32
    return %arg0, %c0_i32 : i32, i32
  }
  func.func @transform_1(%arg0: i32) -> (i32, i32) {
    %c0_i32 = arith.constant 0 : i32
    %c0_i32_0 = arith.constant 0 : i32
    %c0_i32_1 = arith.constant 0 : i32
    return %c0_i32, %c0_i32_0 : i32, i32
  }
  func.func @transform_2(%arg0: i32) -> (i32, i32) {
    %c0_i32 = arith.constant 0 : i32
    %c0_i32_0 = arith.constant 0 : i32
    %c0_i32_1 = arith.constant 0 : i32
    return %c0_i32, %c0_i32_0 : i32, i32
  }
  func.func @transform_3(%arg0: i32) -> (i32, i32) {
    %c0_i32 = arith.constant 0 : i32
    %c0_i32_0 = arith.constant 0 : i32
    return %arg0, %c0_i32 : i32, i32
  }
}

module attributes {stable_mosaic.version = 11 : i64} {
  func.func @_mm_bias_act_kernel(%arg0: i32, %arg1: memref<256x192xbf16, #tpu.memory_space<vmem>>, %arg2: memref<192x64xbf16, #tpu.memory_space<vmem>>, %arg3: memref<1x64xf32, #tpu.memory_space<vmem>>, %arg4: memref<256x64xbf16, #tpu.memory_space<vmem>>) attributes {dimension_semantics = [#tpu.dimension_semantics<parallel>], iteration_bounds = array<i64: 2>, scalar_prefetch = 0 : i64, scratch_operands = 0 : i64, tpu.core_type = #tpu.core_type<tc>, window_params = [{transform_indices = @transform_0, window_bounds = array<i64: 256, 192>}, {pipeline_mode = #tpu.pipeline_mode<synchronous>, transform_indices = @transform_1, window_bounds = array<i64: 192, 64>}, {pipeline_mode = #tpu.pipeline_mode<synchronous>, transform_indices = @transform_2, window_bounds = array<i64: 1, 64>}, {transform_indices = @transform_3, window_bounds = array<i64: 256, 64>}]} {
    %c0 = arith.constant 0 : index
    %c0_0 = arith.constant 0 : index
    %0 = vector.load %arg1[%c0, %c0_0] : memref<256x192xbf16, #tpu.memory_space<vmem>>, vector<256x192xbf16>
    %c0_1 = arith.constant 0 : index
    %c0_2 = arith.constant 0 : index
    %1 = vector.load %arg2[%c0_1, %c0_2] : memref<192x64xbf16, #tpu.memory_space<vmem>>, vector<192x64xbf16>
    %cst = arith.constant dense<0.000000e+00> : vector<256x64xf32>
    %2 = tpu.matmul %0, %1, %cst {dimension_numbers = #tpu.dot_dimension_numbers<[1], [0], [0], [1], [0, 0, 1, 1], [], []>} : vector<256x192xbf16>, vector<192x64xbf16>, vector<256x64xf32> -> vector<256x64xf32>
    %c0_3 = arith.constant 0 : index
    %c0_4 = arith.constant 0 : index
    %3 = vector.load %arg3[%c0_3, %c0_4] : memref<1x64xf32, #tpu.memory_space<vmem>>, vector<1x64xf32>
    %4 = vector.broadcast %3 : vector<1x64xf32> to vector<256x64xf32>
    %5 = arith.addf %2, %4 : vector<256x64xf32>
    %6 = arith.truncf %5 : vector<256x64xf32> to vector<256x64xbf16>
    %c0_5 = arith.constant 0 : index
    %c0_6 = arith.constant 0 : index
    %7 = vector.load %arg4[%c0_5, %c0_6] : memref<256x64xbf16, #tpu.memory_space<vmem>>, vector<256x64xbf16>
    tpu.vector_store %arg4[%c0_5, %c0_6], %6 {strides = array<i32>} : memref<256x64xbf16, #tpu.memory_space<vmem>>, vector<256x64xbf16>,
    return
  }
  func.func @transform_0(%arg0: i32) -> (i32, i32) {
    %c0_i32 = arith.constant 0 : i32
    %c0_i32_0 = arith.constant 0 : i32
    return %arg0, %c0_i32 : i32, i32
  }
  func.func @transform_1(%arg0: i32) -> (i32, i32) {
    %c0_i32 = arith.constant 0 : i32
    %c0_i32_0 = arith.constant 0 : i32
    %c0_i32_1 = arith.constant 0 : i32
    return %c0_i32, %c0_i32_0 : i32, i32
  }
  func.func @transform_2(%arg0: i32) -> (i32, i32) {
    %c0_i32 = arith.constant 0 : i32
    %c0_i32_0 = arith.constant 0 : i32
    %c0_i32_1 = arith.constant 0 : i32
    return %c0_i32, %c0_i32_0 : i32, i32
  }
  func.func @transform_3(%arg0: i32) -> (i32, i32) {
    %c0_i32 = arith.constant 0 : i32
    %c0_i32_0 = arith.constant 0 : i32
    return %arg0, %c0_i32 : i32, i32
  }
}

module attributes {stable_mosaic.version = 11 : i64} {
  func.func @_mm_bias_act_kernel(%arg0: i32, %arg1: memref<256x576xbf16, #tpu.memory_space<vmem>>, %arg2: memref<576x64xbf16, #tpu.memory_space<vmem>>, %arg3: memref<1x64xf32, #tpu.memory_space<vmem>>, %arg4: memref<256x64xbf16, #tpu.memory_space<vmem>>) attributes {dimension_semantics = [#tpu.dimension_semantics<parallel>], iteration_bounds = array<i64: 2>, scalar_prefetch = 0 : i64, scratch_operands = 0 : i64, tpu.core_type = #tpu.core_type<tc>, window_params = [{transform_indices = @transform_0, window_bounds = array<i64: 256, 576>}, {pipeline_mode = #tpu.pipeline_mode<synchronous>, transform_indices = @transform_1, window_bounds = array<i64: 576, 64>}, {pipeline_mode = #tpu.pipeline_mode<synchronous>, transform_indices = @transform_2, window_bounds = array<i64: 1, 64>}, {transform_indices = @transform_3, window_bounds = array<i64: 256, 64>}]} {
    %c0 = arith.constant 0 : index
    %c0_0 = arith.constant 0 : index
    %0 = vector.load %arg1[%c0, %c0_0] : memref<256x576xbf16, #tpu.memory_space<vmem>>, vector<256x576xbf16>
    %c0_1 = arith.constant 0 : index
    %c0_2 = arith.constant 0 : index
    %1 = vector.load %arg2[%c0_1, %c0_2] : memref<576x64xbf16, #tpu.memory_space<vmem>>, vector<576x64xbf16>
    %cst = arith.constant dense<0.000000e+00> : vector<256x64xf32>
    %2 = tpu.matmul %0, %1, %cst {dimension_numbers = #tpu.dot_dimension_numbers<[1], [0], [0], [1], [0, 0, 1, 1], [], []>} : vector<256x576xbf16>, vector<576x64xbf16>, vector<256x64xf32> -> vector<256x64xf32>
    %c0_3 = arith.constant 0 : index
    %c0_4 = arith.constant 0 : index
    %3 = vector.load %arg3[%c0_3, %c0_4] : memref<1x64xf32, #tpu.memory_space<vmem>>, vector<1x64xf32>
    %4 = vector.broadcast %3 : vector<1x64xf32> to vector<256x64xf32>
    %5 = arith.addf %2, %4 : vector<256x64xf32>
    %6 = arith.truncf %5 : vector<256x64xf32> to vector<256x64xbf16>
    %c0_5 = arith.constant 0 : index
    %c0_6 = arith.constant 0 : index
    %7 = vector.load %arg4[%c0_5, %c0_6] : memref<256x64xbf16, #tpu.memory_space<vmem>>, vector<256x64xbf16>
    tpu.vector_store %arg4[%c0_5, %c0_6], %6 {strides = array<i32>} : memref<256x64xbf16, #tpu.memory_space<vmem>>, vector<256x64xbf16>,
    return
  }
  func.func @transform_0(%arg0: i32) -> (i32, i32) {
    %c0_i32 = arith.constant 0 : i32
    %c0_i32_0 = arith.constant 0 : i32
    return %arg0, %c0_i32 : i32, i32
  }
  func.func @transform_1(%arg0: i32) -> (i32, i32) {
    %c0_i32 = arith.constant 0 : i32
    %c0_i32_0 = arith.constant 0 : i32
    %c0_i32_1 = arith.constant 0 : i32
    return %c0_i32, %c0_i32_0 : i32, i32
  }
  func.func @transform_2(%arg0: i32) -> (i32, i32) {
    %c0_i32 = arith.constant 0 : i32
    %c0_i32_0 = arith.constant 0 : i32
    %c0_i32_1 = arith.constant 0 : i32
    return %c0_i32, %c0_i32_0 : i32, i32
  }
  func.func @transform_3(%arg0: i32) -> (i32, i32) {
    %c0_i32 = arith.constant 0 : i32
    %c0_i32_0 = arith.constant 0 : i32
    return %arg0, %c0_i32 : i32, i32
  }
}

module attributes {stable_mosaic.version = 11 : i64} {
  func.func @_mm_bias_act_kernel(%arg0: i32, %arg1: memref<256x64xbf16, #tpu.memory_space<vmem>>, %arg2: memref<64x64xbf16, #tpu.memory_space<vmem>>, %arg3: memref<1x64xf32, #tpu.memory_space<vmem>>, %arg4: memref<256x64xbf16, #tpu.memory_space<vmem>>) attributes {dimension_semantics = [#tpu.dimension_semantics<parallel>], iteration_bounds = array<i64: 2>, scalar_prefetch = 0 : i64, scratch_operands = 0 : i64, tpu.core_type = #tpu.core_type<tc>, window_params = [{transform_indices = @transform_0, window_bounds = array<i64: 256, 64>}, {pipeline_mode = #tpu.pipeline_mode<synchronous>, transform_indices = @transform_1, window_bounds = array<i64: 64, 64>}, {pipeline_mode = #tpu.pipeline_mode<synchronous>, transform_indices = @transform_2, window_bounds = array<i64: 1, 64>}, {transform_indices = @transform_3, window_bounds = array<i64: 256, 64>}]} {
    %c0 = arith.constant 0 : index
    %c0_0 = arith.constant 0 : index
    %0 = vector.load %arg1[%c0, %c0_0] : memref<256x64xbf16, #tpu.memory_space<vmem>>, vector<256x64xbf16>
    %c0_1 = arith.constant 0 : index
    %c0_2 = arith.constant 0 : index
    %1 = vector.load %arg2[%c0_1, %c0_2] : memref<64x64xbf16, #tpu.memory_space<vmem>>, vector<64x64xbf16>
    %cst = arith.constant dense<0.000000e+00> : vector<256x64xf32>
    %2 = tpu.matmul %0, %1, %cst {dimension_numbers = #tpu.dot_dimension_numbers<[1], [0], [0], [1], [0, 0, 1, 1], [], []>} : vector<256x64xbf16>, vector<64x64xbf16>, vector<256x64xf32> -> vector<256x64xf32>
    %c0_3 = arith.constant 0 : index
    %c0_4 = arith.constant 0 : index
    %3 = vector.load %arg3[%c0_3, %c0_4] : memref<1x64xf32, #tpu.memory_space<vmem>>, vector<1x64xf32>
    %4 = vector.broadcast %3 : vector<1x64xf32> to vector<256x64xf32>
    %5 = arith.addf %2, %4 : vector<256x64xf32>
    %6 = arith.truncf %5 : vector<256x64xf32> to vector<256x64xbf16>
    %c0_5 = arith.constant 0 : index
    %c0_6 = arith.constant 0 : index
    %7 = vector.load %arg4[%c0_5, %c0_6] : memref<256x64xbf16, #tpu.memory_space<vmem>>, vector<256x64xbf16>
    tpu.vector_store %arg4[%c0_5, %c0_6], %6 {strides = array<i32>} : memref<256x64xbf16, #tpu.memory_space<vmem>>, vector<256x64xbf16>,
    return
  }
  func.func @transform_0(%arg0: i32) -> (i32, i32) {
    %c0_i32 = arith.constant 0 : i32
    %c0_i32_0 = arith.constant 0 : i32
    return %arg0, %c0_i32 : i32, i32
  }
  func.func @transform_1(%arg0: i32) -> (i32, i32) {
    %c0_i32 = arith.constant 0 : i32
    %c0_i32_0 = arith.constant 0 : i32
    %c0_i32_1 = arith.constant 0 : i32
    return %c0_i32, %c0_i32_0 : i32, i32
  }
  func.func @transform_2(%arg0: i32) -> (i32, i32) {
    %c0_i32 = arith.constant 0 : i32
    %c0_i32_0 = arith.constant 0 : i32
    %c0_i32_1 = arith.constant 0 : i32
    return %c0_i32, %c0_i32_0 : i32, i32
  }
  func.func @transform_3(%arg0: i32) -> (i32, i32) {
    %c0_i32 = arith.constant 0 : i32
    %c0_i32_0 = arith.constant 0 : i32
    return %arg0, %c0_i32 : i32, i32
  }
}

module attributes {stable_mosaic.version = 11 : i64} {
  func.func @_mm_bias_act_kernel(%arg0: i32, %arg1: memref<256x64xbf16, #tpu.memory_space<vmem>>, %arg2: memref<64x64xbf16, #tpu.memory_space<vmem>>, %arg3: memref<1x64xf32, #tpu.memory_space<vmem>>, %arg4: memref<256x64xbf16, #tpu.memory_space<vmem>>) attributes {dimension_semantics = [#tpu.dimension_semantics<parallel>], iteration_bounds = array<i64: 8>, scalar_prefetch = 0 : i64, scratch_operands = 0 : i64, tpu.core_type = #tpu.core_type<tc>, window_params = [{transform_indices = @transform_0, window_bounds = array<i64: 256, 64>}, {pipeline_mode = #tpu.pipeline_mode<synchronous>, transform_indices = @transform_1, window_bounds = array<i64: 64, 64>}, {pipeline_mode = #tpu.pipeline_mode<synchronous>, transform_indices = @transform_2, window_bounds = array<i64: 1, 64>}, {transform_indices = @transform_3, window_bounds = array<i64: 256, 64>}]} {
    %c0 = arith.constant 0 : index
    %c0_0 = arith.constant 0 : index
    %0 = vector.load %arg1[%c0, %c0_0] : memref<256x64xbf16, #tpu.memory_space<vmem>>, vector<256x64xbf16>
    %c0_1 = arith.constant 0 : index
    %c0_2 = arith.constant 0 : index
    %1 = vector.load %arg2[%c0_1, %c0_2] : memref<64x64xbf16, #tpu.memory_space<vmem>>, vector<64x64xbf16>
    %cst = arith.constant dense<0.000000e+00> : vector<256x64xf32>
    %2 = tpu.matmul %0, %1, %cst {dimension_numbers = #tpu.dot_dimension_numbers<[1], [0], [0], [1], [0, 0, 1, 1], [], []>} : vector<256x64xbf16>, vector<64x64xbf16>, vector<256x64xf32> -> vector<256x64xf32>
    %c0_3 = arith.constant 0 : index
    %c0_4 = arith.constant 0 : index
    %3 = vector.load %arg3[%c0_3, %c0_4] : memref<1x64xf32, #tpu.memory_space<vmem>>, vector<1x64xf32>
    %4 = vector.broadcast %3 : vector<1x64xf32> to vector<256x64xf32>
    %5 = arith.addf %2, %4 : vector<256x64xf32>
    %cst_5 = arith.constant 0.000000e+00 : f32
    %6 = vector.broadcast %cst_5 : f32 to vector<256x64xf32>
    %7 = arith.maximumf %5, %6 : vector<256x64xf32>
    %8 = arith.truncf %7 : vector<256x64xf32> to vector<256x64xbf16>
    %c0_6 = arith.constant 0 : index
    %c0_7 = arith.constant 0 : index
    %9 = vector.load %arg4[%c0_6, %c0_7] : memref<256x64xbf16, #tpu.memory_space<vmem>>, vector<256x64xbf16>
    tpu.vector_store %arg4[%c0_6, %c0_7], %8 {strides = array<i32>} : memref<256x64xbf16, #tpu.memory_space<vmem>>, vector<256x64xbf16>,
    return
  }
  func.func @transform_0(%arg0: i32) -> (i32, i32) {
    %c0_i32 = arith.constant 0 : i32
    %c0_i32_0 = arith.constant 0 : i32
    return %arg0, %c0_i32 : i32, i32
  }
  func.func @transform_1(%arg0: i32) -> (i32, i32) {
    %c0_i32 = arith.constant 0 : i32
    %c0_i32_0 = arith.constant 0 : i32
    %c0_i32_1 = arith.constant 0 : i32
    return %c0_i32, %c0_i32_0 : i32, i32
  }
  func.func @transform_2(%arg0: i32) -> (i32, i32) {
    %c0_i32 = arith.constant 0 : i32
    %c0_i32_0 = arith.constant 0 : i32
    %c0_i32_1 = arith.constant 0 : i32
    return %c0_i32, %c0_i32_0 : i32, i32
  }
  func.func @transform_3(%arg0: i32) -> (i32, i32) {
    %c0_i32 = arith.constant 0 : i32
    %c0_i32_0 = arith.constant 0 : i32
    return %arg0, %c0_i32 : i32, i32
  }
}

module attributes {stable_mosaic.version = 11 : i64} {
  func.func @_mm_bias_act_kernel(%arg0: i32, %arg1: memref<256x576xbf16, #tpu.memory_space<vmem>>, %arg2: memref<576x64xbf16, #tpu.memory_space<vmem>>, %arg3: memref<1x64xf32, #tpu.memory_space<vmem>>, %arg4: memref<256x64xbf16, #tpu.memory_space<vmem>>) attributes {dimension_semantics = [#tpu.dimension_semantics<parallel>], iteration_bounds = array<i64: 8>, scalar_prefetch = 0 : i64, scratch_operands = 0 : i64, tpu.core_type = #tpu.core_type<tc>, window_params = [{transform_indices = @transform_0, window_bounds = array<i64: 256, 576>}, {pipeline_mode = #tpu.pipeline_mode<synchronous>, transform_indices = @transform_1, window_bounds = array<i64: 576, 64>}, {pipeline_mode = #tpu.pipeline_mode<synchronous>, transform_indices = @transform_2, window_bounds = array<i64: 1, 64>}, {transform_indices = @transform_3, window_bounds = array<i64: 256, 64>}]} {
    %c0 = arith.constant 0 : index
    %c0_0 = arith.constant 0 : index
    %0 = vector.load %arg1[%c0, %c0_0] : memref<256x576xbf16, #tpu.memory_space<vmem>>, vector<256x576xbf16>
    %c0_1 = arith.constant 0 : index
    %c0_2 = arith.constant 0 : index
    %1 = vector.load %arg2[%c0_1, %c0_2] : memref<576x64xbf16, #tpu.memory_space<vmem>>, vector<576x64xbf16>
    %cst = arith.constant dense<0.000000e+00> : vector<256x64xf32>
    %2 = tpu.matmul %0, %1, %cst {dimension_numbers = #tpu.dot_dimension_numbers<[1], [0], [0], [1], [0, 0, 1, 1], [], []>} : vector<256x576xbf16>, vector<576x64xbf16>, vector<256x64xf32> -> vector<256x64xf32>
    %c0_3 = arith.constant 0 : index
    %c0_4 = arith.constant 0 : index
    %3 = vector.load %arg3[%c0_3, %c0_4] : memref<1x64xf32, #tpu.memory_space<vmem>>, vector<1x64xf32>
    %4 = vector.broadcast %3 : vector<1x64xf32> to vector<256x64xf32>
    %5 = arith.addf %2, %4 : vector<256x64xf32>
    %cst_5 = arith.constant 0.000000e+00 : f32
    %6 = vector.broadcast %cst_5 : f32 to vector<256x64xf32>
    %7 = arith.maximumf %5, %6 : vector<256x64xf32>
    %8 = arith.truncf %7 : vector<256x64xf32> to vector<256x64xbf16>
    %c0_6 = arith.constant 0 : index
    %c0_7 = arith.constant 0 : index
    %9 = vector.load %arg4[%c0_6, %c0_7] : memref<256x64xbf16, #tpu.memory_space<vmem>>, vector<256x64xbf16>
    tpu.vector_store %arg4[%c0_6, %c0_7], %8 {strides = array<i32>} : memref<256x64xbf16, #tpu.memory_space<vmem>>, vector<256x64xbf16>,
    return
  }
  func.func @transform_0(%arg0: i32) -> (i32, i32) {
    %c0_i32 = arith.constant 0 : i32
    %c0_i32_0 = arith.constant 0 : i32
    return %arg0, %c0_i32 : i32, i32
  }
  func.func @transform_1(%arg0: i32) -> (i32, i32) {
    %c0_i32 = arith.constant 0 : i32
    %c0_i32_0 = arith.constant 0 : i32
    %c0_i32_1 = arith.constant 0 : i32
    return %c0_i32, %c0_i32_0 : i32, i32
  }
  func.func @transform_2(%arg0: i32) -> (i32, i32) {
    %c0_i32 = arith.constant 0 : i32
    %c0_i32_0 = arith.constant 0 : i32
    %c0_i32_1 = arith.constant 0 : i32
    return %c0_i32, %c0_i32_0 : i32, i32
  }
  func.func @transform_3(%arg0: i32) -> (i32, i32) {
    %c0_i32 = arith.constant 0 : i32
    %c0_i32_0 = arith.constant 0 : i32
    return %arg0, %c0_i32 : i32, i32
  }
}

module attributes {stable_mosaic.version = 11 : i64} {
  func.func @_mm_bias_act_kernel(%arg0: i32, %arg1: memref<256x576xbf16, #tpu.memory_space<vmem>>, %arg2: memref<576x64xbf16, #tpu.memory_space<vmem>>, %arg3: memref<1x64xf32, #tpu.memory_space<vmem>>, %arg4: memref<256x64xbf16, #tpu.memory_space<vmem>>) attributes {dimension_semantics = [#tpu.dimension_semantics<parallel>], iteration_bounds = array<i64: 2>, scalar_prefetch = 0 : i64, scratch_operands = 0 : i64, tpu.core_type = #tpu.core_type<tc>, window_params = [{transform_indices = @transform_0, window_bounds = array<i64: 256, 576>}, {pipeline_mode = #tpu.pipeline_mode<synchronous>, transform_indices = @transform_1, window_bounds = array<i64: 576, 64>}, {pipeline_mode = #tpu.pipeline_mode<synchronous>, transform_indices = @transform_2, window_bounds = array<i64: 1, 64>}, {transform_indices = @transform_3, window_bounds = array<i64: 256, 64>}]} {
    %c0 = arith.constant 0 : index
    %c0_0 = arith.constant 0 : index
    %0 = vector.load %arg1[%c0, %c0_0] : memref<256x576xbf16, #tpu.memory_space<vmem>>, vector<256x576xbf16>
    %c0_1 = arith.constant 0 : index
    %c0_2 = arith.constant 0 : index
    %1 = vector.load %arg2[%c0_1, %c0_2] : memref<576x64xbf16, #tpu.memory_space<vmem>>, vector<576x64xbf16>
    %cst = arith.constant dense<0.000000e+00> : vector<256x64xf32>
    %2 = tpu.matmul %0, %1, %cst {dimension_numbers = #tpu.dot_dimension_numbers<[1], [0], [0], [1], [0, 0, 1, 1], [], []>} : vector<256x576xbf16>, vector<576x64xbf16>, vector<256x64xf32> -> vector<256x64xf32>
    %c0_3 = arith.constant 0 : index
    %c0_4 = arith.constant 0 : index
    %3 = vector.load %arg3[%c0_3, %c0_4] : memref<1x64xf32, #tpu.memory_space<vmem>>, vector<1x64xf32>
    %4 = vector.broadcast %3 : vector<1x64xf32> to vector<256x64xf32>
    %5 = arith.addf %2, %4 : vector<256x64xf32>
    %cst_5 = arith.constant 0.000000e+00 : f32
    %6 = vector.broadcast %cst_5 : f32 to vector<256x64xf32>
    %7 = arith.maximumf %5, %6 : vector<256x64xf32>
    %8 = arith.truncf %7 : vector<256x64xf32> to vector<256x64xbf16>
    %c0_6 = arith.constant 0 : index
    %c0_7 = arith.constant 0 : index
    %9 = vector.load %arg4[%c0_6, %c0_7] : memref<256x64xbf16, #tpu.memory_space<vmem>>, vector<256x64xbf16>
    tpu.vector_store %arg4[%c0_6, %c0_7], %8 {strides = array<i32>} : memref<256x64xbf16, #tpu.memory_space<vmem>>, vector<256x64xbf16>,
    return
  }
  func.func @transform_0(%arg0: i32) -> (i32, i32) {
    %c0_i32 = arith.constant 0 : i32
    %c0_i32_0 = arith.constant 0 : i32
    return %arg0, %c0_i32 : i32, i32
  }
  func.func @transform_1(%arg0: i32) -> (i32, i32) {
    %c0_i32 = arith.constant 0 : i32
    %c0_i32_0 = arith.constant 0 : i32
    %c0_i32_1 = arith.constant 0 : i32
    return %c0_i32, %c0_i32_0 : i32, i32
  }
  func.func @transform_2(%arg0: i32) -> (i32, i32) {
    %c0_i32 = arith.constant 0 : i32
    %c0_i32_0 = arith.constant 0 : i32
    %c0_i32_1 = arith.constant 0 : i32
    return %c0_i32, %c0_i32_0 : i32, i32
  }
  func.func @transform_3(%arg0: i32) -> (i32, i32) {
    %c0_i32 = arith.constant 0 : i32
    %c0_i32_0 = arith.constant 0 : i32
    return %arg0, %c0_i32 : i32, i32
  }
}

module attributes {stable_mosaic.version = 11 : i64} {
  func.func @_mm_bias_act_kernel(%arg0: i32, %arg1: memref<256x256xbf16, #tpu.memory_space<vmem>>, %arg2: memref<256x64xbf16, #tpu.memory_space<vmem>>, %arg3: memref<1x64xf32, #tpu.memory_space<vmem>>, %arg4: memref<256x64xbf16, #tpu.memory_space<vmem>>) attributes {dimension_semantics = [#tpu.dimension_semantics<parallel>], iteration_bounds = array<i64: 9>, scalar_prefetch = 0 : i64, scratch_operands = 0 : i64, tpu.core_type = #tpu.core_type<tc>, window_params = [{transform_indices = @transform_0, window_bounds = array<i64: 256, 256>}, {pipeline_mode = #tpu.pipeline_mode<synchronous>, transform_indices = @transform_1, window_bounds = array<i64: 256, 64>}, {pipeline_mode = #tpu.pipeline_mode<synchronous>, transform_indices = @transform_2, window_bounds = array<i64: 1, 64>}, {transform_indices = @transform_3, window_bounds = array<i64: 256, 64>}]} {
    %c0 = arith.constant 0 : index
    %c0_0 = arith.constant 0 : index
    %0 = vector.load %arg1[%c0, %c0_0] : memref<256x256xbf16, #tpu.memory_space<vmem>>, vector<256x256xbf16>
    %c0_1 = arith.constant 0 : index
    %c0_2 = arith.constant 0 : index
    %1 = vector.load %arg2[%c0_1, %c0_2] : memref<256x64xbf16, #tpu.memory_space<vmem>>, vector<256x64xbf16>
    %cst = arith.constant dense<0.000000e+00> : vector<256x64xf32>
    %2 = tpu.matmul %0, %1, %cst {dimension_numbers = #tpu.dot_dimension_numbers<[1], [0], [0], [1], [0, 0, 1, 1], [], []>} : vector<256x256xbf16>, vector<256x64xbf16>, vector<256x64xf32> -> vector<256x64xf32>
    %c0_3 = arith.constant 0 : index
    %c0_4 = arith.constant 0 : index
    %3 = vector.load %arg3[%c0_3, %c0_4] : memref<1x64xf32, #tpu.memory_space<vmem>>, vector<1x64xf32>
    %4 = vector.broadcast %3 : vector<1x64xf32> to vector<256x64xf32>
    %5 = arith.addf %2, %4 : vector<256x64xf32>
    %cst_5 = arith.constant 0.000000e+00 : f32
    %6 = vector.broadcast %cst_5 : f32 to vector<256x64xf32>
    %7 = arith.maximumf %5, %6 : vector<256x64xf32>
    %8 = arith.truncf %7 : vector<256x64xf32> to vector<256x64xbf16>
    %c0_6 = arith.constant 0 : index
    %c0_7 = arith.constant 0 : index
    %9 = vector.load %arg4[%c0_6, %c0_7] : memref<256x64xbf16, #tpu.memory_space<vmem>>, vector<256x64xbf16>
    tpu.vector_store %arg4[%c0_6, %c0_7], %8 {strides = array<i32>} : memref<256x64xbf16, #tpu.memory_space<vmem>>, vector<256x64xbf16>,
    return
  }
  func.func @transform_0(%arg0: i32) -> (i32, i32) {
    %c0_i32 = arith.constant 0 : i32
    %c0_i32_0 = arith.constant 0 : i32
    return %arg0, %c0_i32 : i32, i32
  }
  func.func @transform_1(%arg0: i32) -> (i32, i32) {
    %c0_i32 = arith.constant 0 : i32
    %c0_i32_0 = arith.constant 0 : i32
    %c0_i32_1 = arith.constant 0 : i32
    return %c0_i32, %c0_i32_0 : i32, i32
  }
  func.func @transform_2(%arg0: i32) -> (i32, i32) {
    %c0_i32 = arith.constant 0 : i32
    %c0_i32_0 = arith.constant 0 : i32
    %c0_i32_1 = arith.constant 0 : i32
    return %c0_i32, %c0_i32_0 : i32, i32
  }
  func.func @transform_3(%arg0: i32) -> (i32, i32) {
    %c0_i32 = arith.constant 0 : i32
    %c0_i32_0 = arith.constant 0 : i32
    return %arg0, %c0_i32 : i32, i32
  }
}

</mosaic_0001>

<bundles_post_ra>
// kernel: dmcs_forward.21
= control target key start
LH: loop header
LB: loop body
LE: loop exit
PB: predicated region body
PF: predicated region fallthrough
CT: control target
= control target key end

     0   :  { %s710_s12 = smov 0   ;;  %s856_s0 = inlined_call_operand.vmem [shape: bf16[2048,16], index: 0, kind: input, shape index: {}]   ;;  %s857_s1 = inlined_call_operand.vmem [shape: bf16[16,64], index: 1, kind: input, shape index: {}]   ;;  %s858_s2 = inlined_call_operand.vmem [shape: f32[1,64], index: 2, kind: input, shape index: {}]   ;;  %s859_s3 = inlined_call_operand.vmem [shape: bf16[2048,64], index: 3, kind: output, shape index: {}]  }
   0x1 LB: > { %s558_s13 = sadd.s32 4294967295, %s688_s12   ;;  %p562_p0 = scmp.ge.s32.totalorder %s688_s12, 1  ;;  %s688_s12 = sphi %s710_s12, %s13_s12  }
   0x2   : > { %p138_p1 = scmp.lt.s32.totalorder %s688_s12, 9 }
   0x4   : > { %p139_p2 = pnand %p562_p0, %p138_p1 }
   0x5   : > { %s563_s16 = sshll.u32 (!%p139_p2), %s558_s13, 5 }
   0x6   : > { %142 = sbr.rel (%p139_p2) target bundleno = 211 (0xd3), region = 32  ;;  %p163_p3 = scmp.lt.s32.totalorder (!%p139_p2), %s563_s16, 255 }
   0xb   : > { %v669_v0 = vld [vmem:[%s857_s1] sm:$0xff]  ;;  %s861_s16 = smov (!%p163_p3, %s563_s16), 255  ;;  %vm299_vm0 = vcmask 130048   ;;  %vm469_vm1 = vcmask 519168  }
   0xc   : > { %355 = vmatpush.bf16.msra.mxu0 %v669_v0  ;;  %670 = vmatpush.bf16.msra.mxu1 %v669_v0  ;;  %s564_s17 = sshll.u32 %s861_s16, 2  ;;  %v748_v17 = vld [vmem:[%s858_s2] ss:$0 sm:$0xff] }
   0xd   : > { %671 = vmatpush.bf16.msra.mxu2 %v669_v0  ;;  %672 = vmatpush.bf16.msra.mxu3 %v669_v0  ;;  %s166_s20 = scalar_lea.vmem %s856_s0, %s564_s17  ;;  %s757_s25 = scalar_lea.vmem %s859_s3, %s564_s17 }
   0xe   : > { %v653_v1 = vld [vmem:[%s166_s20] sm:$0xff]  ;;  %v654_v5 = vld [vmem:[%s166_s20 + $0x8] sm:$0xff]  ;;  %v655_v9 = vld [vmem:[%s166_s20 + $0x10] sm:$0xff] }
   0xf   : > { %v657_v2 = vld [vmem:[%s166_s20 + $0x20] sm:$0xff]  ;;  %635 = vmatmul.msk.bf16.vlgmr.msra.gmra.mxu0 %vm299_vm0, %v653_v1  ;;  %v658_v6 = vld [vmem:[%s166_s20 + $0x28] sm:$0xff]  ;;  %v659_v10 = vld [vmem:[%s166_s20 + $0x30] sm:$0xff] }
  0x10   : > { %v661_v3 = vld [vmem:[%s166_s20 + $0x40] sm:$0xff]  ;;  %639 = vmatmul.msk.bf16.vlgmr.msra.gmra.mxu1 %vm299_vm0, %v657_v2  ;;  %v662_v7 = vld [vmem:[%s166_s20 + $0x48] sm:$0xff]  ;;  %v663_v11 = vld [vmem:[%s166_s20 + $0x50] sm:$0xff] }
  0x11   : > { %v665_v4 = vld [vmem:[%s166_s20 + $0x60] sm:$0xff]  ;;  %643 = vmatmul.msk.bf16.vlgmr.msra.gmra.mxu2 %vm299_vm0, %v661_v3  ;;  %v666_v8 = vld [vmem:[%s166_s20 + $0x68] sm:$0xff]  ;;  %v667_v12 = vld [vmem:[%s166_s20 + $0x70] sm:$0xff] }
  0x12   : > { %647 = vmatmul.msk.bf16.vlgmr.msra.gmra.mxu3 %vm299_vm0, %v665_v4  ;;  %v656_v13 = vld [vmem:[%s166_s20 + $0x18] sm:$0xff] }
  0x13   : > { %v660_v14 = vld [vmem:[%s166_s20 + $0x38] sm:$0xff] }
  0x14   : > { %v664_v15 = vld [vmem:[%s166_s20 + $0x58] sm:$0xff] }
  0x15   : > { %v668_v16 = vld [vmem:[%s166_s20 + $0x78] sm:$0xff] }
  0x1f   : > { %636 = vmatmul.msk.bf16.gmra.mxu0 %vm299_vm0, %v654_v5 }
  0x20   : > { %640 = vmatmul.msk.bf16.gmra.mxu1 %vm299_vm0, %v658_v6 }
  0x21   : > { %644 = vmatmul.msk.bf16.gmra.mxu2 %vm299_vm0, %v662_v7 }
  0x22   : > { %648 = vmatmul.msk.bf16.gmra.mxu3 %vm299_vm0, %v666_v8 }
  0x2f   : > { %637 = vmatmul.msk.bf16.gmra.mxu0 %vm299_vm0, %v655_v9 }
  0x30   : > { %641 = vmatmul.msk.bf16.gmra.mxu1 %vm299_vm0, %v659_v10 }
  0x31   : > { %645 = vmatmul.msk.bf16.gmra.mxu2 %vm299_vm0, %v663_v11 }
  0x32   : > { %649 = vmatmul.msk.bf16.gmra.mxu3 %vm299_vm0, %v667_v12 }
  0x3f   : > { %638 = vmatmul.msk.bf16.gmra.mxu0 %vm299_vm0, %v656_v13 }
  0x40   : > { %642 = vmatmul.msk.bf16.gmra.mxu1 %vm299_vm0, %v660_v14 }
  0x41   : > { %646 = vmatmul.msk.bf16.gmra.mxu2 %vm299_vm0, %v664_v15 }
  0x42   : > { %650 = vmatmul.msk.bf16.gmra.mxu3 %vm299_vm0, %v668_v16 }
  0x8c   : > { %v357_v18 = vpop.f32.mrf.mxu0 }
  0x8d   : > { %v377_v19 = vpop.f32.mrf.mxu1  ;;  %v358_v20 = vadd.f32 %v748_v17, %v357_v18 }
  0x8e   : > { %v378_v21 = vadd.f32 %v748_v17, %v377_v19 }
  0x8f   : > { %v437_v22 = vpack.c.bf16 %v358_v20, %v358_v20 }
  0x90   : > { %v445_v23 = vpack.c.bf16 %v378_v21, %v378_v21 }
  0x91   : > { %470 = vst.msk [vmem:[%s757_s25] sm:$0xf] %vm469_vm1, %v437_v22 }
  0x92   : > { %478 = vst.msk [vmem:[%s757_s25 + $0x20] sm:$0xf] %vm469_vm1, %v445_v23 }
  0x94   : > { %v397_v24 = vpop.f32.mrf.mxu2  ;;  %v359_v28 = vpop.f32.mrf.mxu0 }
  0x95   : > { %v417_v25 = vpop.f32.mrf.mxu3  ;;  %v398_v26 = vadd.f32 %v748_v17, %v397_v24  ;;  %v379_v29 = vpop.f32.mrf.mxu1  ;;  %v360_v30 = vadd.f32 %v748_v17, %v359_v28 }
  0x96   : > { %v418_v27 = vadd.f32 %v748_v17, %v417_v25  ;;  %v380_v31 = vadd.f32 %v748_v17, %v379_v29 }
  0x97   : > { %v453_v32 = vpack.c.bf16 %v398_v26, %v398_v26  ;;  %v438_v34 = vpack.c.bf16 %v360_v30, %v360_v30 }
  0x98   : > { %v461_v33 = vpack.c.bf16 %v418_v27, %v418_v27  ;;  %v446_v35 = vpack.c.bf16 %v380_v31, %v380_v31 }
  0x99   : > { %486 = vst.msk [vmem:[%s757_s25 + $0x40] sm:$0xf] %vm469_vm1, %v453_v32 }
  0x9a   : > { %494 = vst.msk [vmem:[%s757_s25 + $0x60] sm:$0xf] %vm469_vm1, %v461_v33 }
  0x9b   : > { %471 = vst.msk [vmem:[%s757_s25 + $0x4] sm:$0xf] %vm469_vm1, %v438_v34 }
  0x9c   : > { %479 = vst.msk [vmem:[%s757_s25 + $0x24] sm:$0xf] %vm469_vm1, %v446_v35  ;;  %v399_v36 = vpop.f32.mrf.mxu2  ;;  %v362_v40 = vpop.f32.mrf.mxu0 }
  0x9d   : > { %v419_v37 = vpop.f32.mrf.mxu3  ;;  %v400_v38 = vadd.f32 %v748_v17, %v399_v36  ;;  %v382_v41 = vpop.f32.mrf.mxu1  ;;  %v363_v42 = vadd.f32 %v748_v17, %v362_v40 }
  0x9e   : > { %v420_v39 = vadd.f32 %v748_v17, %v419_v37  ;;  %v383_v43 = vadd.f32 %v748_v17, %v382_v41 }
  0x9f   : > { %v454_v44 = vpack.c.bf16 %v400_v38, %v400_v38  ;;  %v439_v46 = vpack.c.bf16 %v363_v42, %v363_v42 }
  0xa0   : > { %v462_v45 = vpack.c.bf16 %v420_v39, %v420_v39  ;;  %v447_v47 = vpack.c.bf16 %v383_v43, %v383_v43 }
  0xa1   : > { %487 = vst.msk [vmem:[%s757_s25 + $0x44] sm:$0xf] %vm469_vm1, %v454_v44 }
  0xa2   : > { %495 = vst.msk [vmem:[%s757_s25 + $0x64] sm:$0xf] %vm469_vm1, %v462_v45 }
  0xa3   : > { %472 = vst.msk [vmem:[%s757_s25 + $0x8] sm:$0xf] %vm469_vm1, %v439_v46 }
  0xa4   : > { %480 = vst.msk [vmem:[%s757_s25 + $0x28] sm:$0xf] %vm469_vm1, %v447_v47  ;;  %v402_v48 = vpop.f32.mrf.mxu2  ;;  %v364_v52 = vpop.f32.mrf.mxu0 }
  0xa5   : > { %v422_v49 = vpop.f32.mrf.mxu3  ;;  %v403_v50 = vadd.f32 %v748_v17, %v402_v48  ;;  %v384_v53 = vpop.f32.mrf.mxu1  ;;  %v365_v54 = vadd.f32 %v748_v17, %v364_v52 }
  0xa6   : > { %v423_v51 = vadd.f32 %v748_v17, %v422_v49  ;;  %v385_v55 = vadd.f32 %v748_v17, %v384_v53 }
  0xa7   : > { %v455_v56 = vpack.c.bf16 %v403_v50, %v403_v50  ;;  %v440_v58 = vpack.c.bf16 %v365_v54, %v365_v54 }
  0xa8   : > { %v463_v57 = vpack.c.bf16 %v423_v51, %v423_v51  ;;  %v448_v59 = vpack.c.bf16 %v385_v55, %v385_v55 }
  0xa9   : > { %488 = vst.msk [vmem:[%s757_s25 + $0x48] sm:$0xf] %vm469_vm1, %v455_v56 }
  0xaa   : > { %496 = vst.msk [vmem:[%s757_s25 + $0x68] sm:$0xf] %vm469_vm1, %v463_v57 }
  0xab   : > { %473 = vst.msk [vmem:[%s757_s25 + $0xc] sm:$0xf] %vm469_vm1, %v440_v58 }
  0xac   : > { %481 = vst.msk [vmem:[%s757_s25 + $0x2c] sm:$0xf] %vm469_vm1, %v448_v59  ;;  %v404_v60 = vpop.f32.mrf.mxu2  ;;  %v367_v0 = vpop.f32.mrf.mxu0 }
  0xad   : > { %v424_v61 = vpop.f32.mrf.mxu3  ;;  %v405_v62 = vadd.f32 %v748_v17, %v404_v60  ;;  %v387_v1 = vpop.f32.mrf.mxu1  ;;  %v368_v2 = vadd.f32 %v748_v17, %v367_v0 }
  0xae   : > { %v425_v63 = vadd.f32 %v748_v17, %v424_v61  ;;  %v388_v3 = vadd.f32 %v748_v17, %v387_v1 }
  0xaf   : > { %v456_v4 = vpack.c.bf16 %v405_v62, %v405_v62  ;;  %v441_v6 = vpack.c.bf16 %v368_v2, %v368_v2 }
  0xb0   : > { %v464_v5 = vpack.c.bf16 %v425_v63, %v425_v63  ;;  %v449_v7 = vpack.c.bf16 %v388_v3, %v388_v3 }
  0xb1   : > { %489 = vst.msk [vmem:[%s757_s25 + $0x4c] sm:$0xf] %vm469_vm1, %v456_v4 }
  0xb2   : > { %497 = vst.msk [vmem:[%s757_s25 + $0x6c] sm:$0xf] %vm469_vm1, %v464_v5 }
  0xb3   : > { %474 = vst.msk [vmem:[%s757_s25 + $0x10] sm:$0xf] %vm469_vm1, %v441_v6 }
  0xb4   : > { %482 = vst.msk [vmem:[%s757_s25 + $0x30] sm:$0xf] %vm469_vm1, %v449_v7  ;;  %v407_v8 = vpop.f32.mrf.mxu2  ;;  %v369_v12 = vpop.f32.mrf.mxu0 }
  0xb5   : > { %v427_v9 = vpop.f32.mrf.mxu3  ;;  %v408_v10 = vadd.f32 %v748_v17, %v407_v8  ;;  %v389_v13 = vpop.f32.mrf.mxu1  ;;  %v370_v14 = vadd.f32 %v748_v17, %v369_v12 }
  0xb6   : > { %v428_v11 = vadd.f32 %v748_v17, %v427_v9  ;;  %v390_v15 = vadd.f32 %v748_v17, %v389_v13 }
  0xb7   : > { %v457_v16 = vpack.c.bf16 %v408_v10, %v408_v10  ;;  %v442_v19 = vpack.c.bf16 %v370_v14, %v370_v14 }
  0xb8   : > { %v465_v18 = vpack.c.bf16 %v428_v11, %v428_v11  ;;  %v450_v20 = vpack.c.bf16 %v390_v15, %v390_v15 }
  0xb9   : > { %490 = vst.msk [vmem:[%s757_s25 + $0x50] sm:$0xf] %vm469_vm1, %v457_v16 }
  0xba   : > { %498 = vst.msk [vmem:[%s757_s25 + $0x70] sm:$0xf] %vm469_vm1, %v465_v18 }
  0xbb   : > { %475 = vst.msk [vmem:[%s757_s25 + $0x14] sm:$0xf] %vm469_vm1, %v442_v19 }
  0xbc   : > { %483 = vst.msk [vmem:[%s757_s25 + $0x34] sm:$0xf] %vm469_vm1, %v450_v20  ;;  %v409_v21 = vpop.f32.mrf.mxu2  ;;  %v372_v25 = vpop.f32.mrf.mxu0 }
  0xbd   : > { %v429_v22 = vpop.f32.mrf.mxu3  ;;  %v410_v23 = vadd.f32 %v748_v17, %v409_v21  ;;  %v392_v26 = vpop.f32.mrf.mxu1  ;;  %v373_v27 = vadd.f32 %v748_v17, %v372_v25 }
  0xbe   : > { %v430_v24 = vadd.f32 %v748_v17, %v429_v22  ;;  %v393_v28 = vadd.f32 %v748_v17, %v392_v26 }
  0xbf   : > { %v458_v29 = vpack.c.bf16 %v410_v23, %v410_v23  ;;  %v443_v31 = vpack.c.bf16 %v373_v27, %v373_v27 }
  0xc0   : > { %v466_v30 = vpack.c.bf16 %v430_v24, %v430_v24  ;;  %v451_v32 = vpack.c.bf16 %v393_v28, %v393_v28 }
  0xc1   : > { %491 = vst.msk [vmem:[%s757_s25 + $0x54] sm:$0xf] %vm469_vm1, %v458_v29 }
  0xc2   : > { %499 = vst.msk [vmem:[%s757_s25 + $0x74] sm:$0xf] %vm469_vm1, %v466_v30 }
  0xc3   : > { %476 = vst.msk [vmem:[%s757_s25 + $0x18] sm:$0xf] %vm469_vm1, %v443_v31 }
  0xc4   : > { %484 = vst.msk [vmem:[%s757_s25 + $0x38] sm:$0xf] %vm469_vm1, %v451_v32  ;;  %v412_v33 = vpop.f32.mrf.mxu2  ;;  %v374_v37 = vpop.f32.mrf.mxu0 }
  0xc5   : > { %v432_v34 = vpop.f32.mrf.mxu3  ;;  %v413_v35 = vadd.f32 %v748_v17, %v412_v33  ;;  %v394_v38 = vpop.f32.mrf.mxu1  ;;  %v375_v39 = vadd.f32 %v748_v17, %v374_v37 }
  0xc6   : > { %v433_v36 = vadd.f32 %v748_v17, %v432_v34  ;;  %v395_v40 = vadd.f32 %v748_v17, %v394_v38 }
  0xc7   : > { %v459_v41 = vpack.c.bf16 %v413_v35, %v413_v35  ;;  %v444_v43 = vpack.c.bf16 %v375_v39, %v375_v39 }
  0xc8   : > { %v467_v42 = vpack.c.bf16 %v433_v36, %v433_v36  ;;  %v452_v44 = vpack.c.bf16 %v395_v40, %v395_v40 }
  0xc9   : > { %492 = vst.msk [vmem:[%s757_s25 + $0x58] sm:$0xf] %vm469_vm1, %v459_v41 }
  0xca   : > { %500 = vst.msk [vmem:[%s757_s25 + $0x78] sm:$0xf] %vm469_vm1, %v467_v42 }
  0xcb   : > { %477 = vst.msk [vmem:[%s757_s25 + $0x1c] sm:$0xf] %vm469_vm1, %v444_v43 }
  0xcc   : > { %485 = vst.msk [vmem:[%s757_s25 + $0x3c] sm:$0xf] %vm469_vm1, %v452_v44  ;;  %v414_v45 = vpop.f32.mrf.mxu2 }
  0xcd   : > { %v434_v46 = vpop.f32.mrf.mxu3  ;;  %v415_v47 = vadd.f32 %v748_v17, %v414_v45 }
  0xce   : > { %v435_v48 = vadd.f32 %v748_v17, %v434_v46 }
  0xcf   : > { %v460_v49 = vpack.c.bf16 %v415_v47, %v415_v47 }
  0xd0   : > { %v468_v50 = vpack.c.bf16 %v435_v48, %v435_v48 }
  0xd1   : > { %493 = vst.msk [vmem:[%s757_s25 + $0x5c] sm:$0xf] %vm469_vm1, %v460_v49 }
  0xd2   : > { %501 = vst.msk [vmem:[%s757_s25 + $0x7c] sm:$0xf] %vm469_vm1, %v468_v50 }
  0xd3 PF: > { %s13_s12 = sadd.s32 1, %s688_s12  }
  0xd4   : > { %p10_p4 = scmp.ge.s32.totalorder %s13_s12, 10  }
  0xd6   :  { %12 = sbr.rel (!%p10_p4) target bundleno = 1 (0x1), region = 62 }

// kernel: dmcs_forward.38
= control target key start
LH: loop header
LB: loop body
LE: loop exit
PB: predicated region body
PF: predicated region fallthrough
CT: control target
= control target key end

     0   :  { %s1100_s12 = smov 0   ;;  %s1348_s0 = inlined_call_operand.vmem [shape: bf16[512,192], index: 0, kind: input, shape index: {}]   ;;  %s1349_s1 = inlined_call_operand.vmem [shape: bf16[192,64], index: 1, kind: input, shape index: {}]   ;;  %s1350_s2 = inlined_call_operand.vmem [shape: f32[1,64], index: 2, kind: input, shape index: {}]   ;;  %s1351_s3 = inlined_call_operand.vmem [shape: bf16[512,64], index: 3, kind: output, shape index: {}]  }
   0x1 LB: > { %s802_s13 = sadd.s32 4294967295, %s1078_s12   ;;  %p806_p0 = scmp.ge.s32.totalorder %s1078_s12, 1  ;;  %s1078_s12 = sphi %s1100_s12, %s13_s12  }
   0x2   : > { %p139_p1 = scmp.lt.s32.totalorder %s1078_s12, 3 }
   0x4   : > { %p140_p2 = pnand %p806_p0, %p139_p1 }
   0x5   : > { %s807_s18 = sshll.u32 (!%p140_p2), %s802_s13, 5 }
   0x6   : > { %143 = sbr.rel (%p140_p2) target bundleno = 303 (0x12f), region = 32  ;;  %p165_p3 = scmp.lt.s32.totalorder (!%p140_p2), %s807_s18, 63 }
   0xb   : > { %v1046_v0 = vld [vmem:[%s1349_s1 + $0x38] sm:$0xff]  ;;  %v1045_v2 = vld [vmem:[%s1349_s1 + $0x30] sm:$0xff]  ;;  %s1353_s18 = smov (!%p165_p3, %s807_s18), 63  ;;  %v1044_v4 = vld [vmem:[%s1349_s1 + $0x28] sm:$0xff]  ;;  %vm454_vm0 = vcmask 523264   ;;  %vm713_vm1 = vcmask 519168  }
   0xc   : > { %v1050_v1 = vld [vmem:[%s1349_s1 + $0x58] sm:$0xff]  ;;  %503 = vmatpush.bf16.msra.mxu0 %v1046_v0  ;;  %1051 = vmatpush.bf16.msra.mxu2 %v1046_v0  ;;  %v1049_v3 = vld [vmem:[%s1349_s1 + $0x50] sm:$0xff]  ;;  %s1006_s23 = sshll.u32 %s1353_s18, 3  ;;  %v1048_v5 = vld [vmem:[%s1349_s1 + $0x48] sm:$0xff]  ;;  %s811_s20 = sshll.u32 %s1353_s18, 2 }
   0xd   : > { %596 = vmatpush.bf16.msra.mxu1 %v1050_v1  ;;  %1059 = vmatpush.bf16.msra.mxu3 %v1050_v1  ;;  %s1132_s30 = scalar_lea.vmem %s1348_s0, %s1006_s23  ;;  %v1043_v6 = vld [vmem:[%s1349_s1 + $0x20] sm:$0xff]  ;;  %v1042_v13 = vld [vmem:[%s1349_s1 + $0x18] sm:$0xff]  ;;  %v1041_v15 = vld [vmem:[%s1349_s1 + $0x10] sm:$0xff]  ;;  %s1242_s23 = scalar_lea.vmem %s1351_s3, %s811_s20 }
   0xe   : > { %v1047_v7 = vld [vmem:[%s1349_s1 + $0x40] sm:$0xff]  ;;  %v816_v9 = vld [vmem:[%s1132_s30 + $0x8] sm:$0xf0]  ;;  %v1025_v10 = vld [vmem:[%s1132_s30 + $0x94] sm:$0xf] }
   0xf   : > { %v1007_v8 = vld [vmem:[%s1132_s30 + $0x4] sm:$0xf]  ;;  %v888_v11 = vld [vmem:[%s1132_s30 + $0x98] sm:$0xf0]  ;;  %v1040_v16 = vld [vmem:[%s1349_s1 + $0x8] sm:$0xff] }
  0x10   : > { %504 = vmatpush.bf16.msra.mxu0 %v1045_v2  ;;  %1052 = vmatpush.bf16.msra.mxu2 %v1045_v2  ;;  %v819_v12 = vor.u32 %v1007_v8, %v816_v9  ;;  %v891_v14 = vor.u32 %v1025_v10, %v888_v11  ;;  %v1039_v17 = vld [vmem:[%s1349_s1] sm:$0xff]  ;;  %v1008_v19 = vld [vmem:[%s1132_s30 + $0x4] sm:$0xf0]  ;;  %v1009_v22 = vld [vmem:[%s1132_s30 + $0x14] sm:$0xf] }
  0x11   : > { %597 = vmatpush.bf16.msra.mxu1 %v1049_v3  ;;  %1060 = vmatpush.bf16.msra.mxu3 %v1049_v3  ;;  %v814_v18 = vld [vmem:[%s1132_s30] sm:$0xf]  ;;  %v1024_v21 = vld [vmem:[%s1132_s30 + $0x84] sm:$0xf0]  ;;  %v824_v23 = vld [vmem:[%s1132_s30 + $0x18] sm:$0xf0] }
  0x12   : > { %v878_v20 = vld [vmem:[%s1132_s30 + $0x80] sm:$0xf]  ;;  %v1027_v24 = vld [vmem:[%s1132_s30 + $0xa4] sm:$0xf]  ;;  %v896_v25 = vld [vmem:[%s1132_s30 + $0xa8] sm:$0xf0]  ;;  %v815_v26 = vor.u32 %v1008_v19, %v814_v18  ;;  %v827_v28 = vor.u32 %v1009_v22, %v824_v23 }
  0x13   : > { %v879_v27 = vor.u32 %v1024_v21, %v878_v20  ;;  %v899_v29 = vor.u32 %v1027_v24, %v896_v25  ;;  %v822_v30 = vld [vmem:[%s1132_s30 + $0x10] sm:$0xf]  ;;  %v1010_v31 = vld [vmem:[%s1132_s30 + $0x14] sm:$0xf0]  ;;  %v1011_v34 = vld [vmem:[%s1132_s30 + $0x24] sm:$0xf] }
  0x14   : > { %505 = vmatpush.bf16.msra.mxu0 %v1044_v4  ;;  %1053 = vmatpush.bf16.msra.mxu2 %v1044_v4  ;;  %v886_v32 = vld [vmem:[%s1132_s30 + $0x90] sm:$0xf]  ;;  %v1026_v33 = vld [vmem:[%s1132_s30 + $0x94] sm:$0xf0]  ;;  %v832_v35 = vld [vmem:[%s1132_s30 + $0x28] sm:$0xf0]  ;;  %v823_v38 = vor.u32 %v1010_v31, %v822_v30 }
  0x15   : > { %598 = vmatpush.bf16.msra.mxu1 %v1048_v5  ;;  %1061 = vmatpush.bf16.msra.mxu3 %v1048_v5  ;;  %v1029_v36 = vld [vmem:[%s1132_s30 + $0xb4] sm:$0xf]  ;;  %v904_v37 = vld [vmem:[%s1132_s30 + $0xb8] sm:$0xf0]  ;;  %v887_v39 = vor.u32 %v1026_v33, %v886_v32  ;;  %v835_v40 = vor.u32 %v1011_v34, %v832_v35  ;;  %v830_v42 = vld [vmem:[%s1132_s30 + $0x20] sm:$0xf] }
  0x16   : > { %v907_v41 = vor.u32 %v1029_v36, %v904_v37  ;;  %v1012_v43 = vld [vmem:[%s1132_s30 + $0x24] sm:$0xf0]  ;;  %v894_v44 = vld [vmem:[%s1132_s30 + $0xa0] sm:$0xf]  ;;  %v1013_v46 = vld [vmem:[%s1132_s30 + $0x34] sm:$0xf] }
  0x17   : > { %v1028_v45 = vld [vmem:[%s1132_s30 + $0xa4] sm:$0xf0]  ;;  %v840_v47 = vld [vmem:[%s1132_s30 + $0x38] sm:$0xf0]  ;;  %v1031_v48 = vld [vmem:[%s1132_s30 + $0xc4] sm:$0xf]  ;;  %v831_v50 = vor.u32 %v1012_v43, %v830_v42 }
  0x18   : > { %506 = vmatpush.bf16.msra.mxu0 %v1043_v6  ;;  %1054 = vmatpush.bf16.msra.mxu2 %v1043_v6  ;;  %v912_v49 = vld [vmem:[%s1132_s30 + $0xc8] sm:$0xf0]  ;;  %v895_v51 = vor.u32 %v1028_v45, %v894_v44  ;;  %v843_v52 = vor.u32 %v1013_v46, %v840_v47  ;;  %v838_v54 = vld [vmem:[%s1132_s30 + $0x30] sm:$0xf]  ;;  %v1014_v55 = vld [vmem:[%s1132_s30 + $0x34] sm:$0xf0] }
  0x19   : > { %599 = vmatpush.bf16.msra.mxu1 %v1047_v7  ;;  %1062 = vmatpush.bf16.msra.mxu3 %v1047_v7  ;;  %v915_v53 = vor.u32 %v1031_v48, %v912_v49  ;;  %v902_v56 = vld [vmem:[%s1132_s30 + $0xb0] sm:$0xf]  ;;  %v1030_v57 = vld [vmem:[%s1132_s30 + $0xb4] sm:$0xf0]  ;;  %v1015_v58 = vld [vmem:[%s1132_s30 + $0x44] sm:$0xf]  ;;  %v839_v62 = vor.u32 %v1014_v55, %v838_v54 }
  0x1a   : > { %v848_v59 = vld [vmem:[%s1132_s30 + $0x48] sm:$0xf0]  ;;  %v1033_v60 = vld [vmem:[%s1132_s30 + $0xd4] sm:$0xf]  ;;  %v920_v61 = vld [vmem:[%s1132_s30 + $0xd8] sm:$0xf0]  ;;  %v903_v63 = vor.u32 %v1030_v57, %v902_v56 }
  0x1b   : > { %v851_v0 = vor.u32 %v1015_v58, %v848_v59  ;;  %v923_v1 = vor.u32 %v1033_v60, %v920_v61  ;;  %v846_v2 = vld [vmem:[%s1132_s30 + $0x40] sm:$0xf]  ;;  %v1016_v3 = vld [vmem:[%s1132_s30 + $0x44] sm:$0xf0]  ;;  %v1017_v6 = vld [vmem:[%s1132_s30 + $0x54] sm:$0xf] }
  0x1c   : > { %988 = vmatmul.msk.bf16.vlgmr.msra.gmra.mxu1 %vm454_vm0, %v819_v12  ;;  %507 = vmatpush.bf16.msra.mxu0 %v1042_v13  ;;  %v910_v4 = vld [vmem:[%s1132_s30 + $0xc0] sm:$0xf]  ;;  %v1032_v5 = vld [vmem:[%s1132_s30 + $0xc4] sm:$0xf0]  ;;  %v856_v7 = vld [vmem:[%s1132_s30 + $0x58] sm:$0xf0]  ;;  %v847_v10 = vor.u32 %v1016_v3, %v846_v2 }
  0x1d   : > { %1055 = vmatpush.bf16.msra.mxu2 %v1042_v13  ;;  %997 = vmatmul.msk.bf16.vlgmr.msra.gmra.mxu3 %vm454_vm0, %v891_v14  ;;  %v1035_v8 = vld [vmem:[%s1132_s30 + $0xe4] sm:$0xf]  ;;  %v928_v9 = vld [vmem:[%s1132_s30 + $0xe8] sm:$0xf0]  ;;  %v911_v11 = vor.u32 %v1032_v5, %v910_v4  ;;  %v859_v12 = vor.u32 %v1017_v6, %v856_v7  ;;  %v854_v14 = vld [vmem:[%s1132_s30 + $0x50] sm:$0xf] }
  0x1e   : > { %v931_v13 = vor.u32 %v1035_v8, %v928_v9  ;;  %v1019_v18 = vld [vmem:[%s1132_s30 + $0x64] sm:$0xf]  ;;  %v864_v19 = vld [vmem:[%s1132_s30 + $0x68] sm:$0xf0]  ;;  %v1037_v20 = vld [vmem:[%s1132_s30 + $0xf4] sm:$0xf] }
  0x1f   : > { %v936_v21 = vld [vmem:[%s1132_s30 + $0xf8] sm:$0xf0]  ;;  %v867_v24 = vor.u32 %v1019_v18, %v864_v19  ;;  %v1021_v30 = vld [vmem:[%s1132_s30 + $0x74] sm:$0xf]  ;;  %v870_v35 = vld [vmem:[%s1132_s30 + $0x70] sm:$0xf] }
  0x20   : > { %508 = vmatpush.bf16.msra.mxu0 %v1041_v15  ;;  %v939_v25 = vor.u32 %v1037_v20, %v936_v21  ;;  %v872_v31 = vld [vmem:[%s1132_s30 + $0x78] sm:$0xf0]  ;;  %v1022_v36 = vld [vmem:[%s1132_s30 + $0x74] sm:$0xf0]  ;;  %v934_v37 = vld [vmem:[%s1132_s30 + $0xf0] sm:$0xf] }
  0x21   : > { %1056 = vmatpush.bf16.msra.mxu2 %v1041_v15  ;;  %v1018_v15 = vld [vmem:[%s1132_s30 + $0x54] sm:$0xf0]  ;;  %v875_v34 = vor.u32 %v1021_v30, %v872_v31  ;;  %v1235_v46 = vld [vmem:[%s1350_s2] ss:$0 sm:$0xff] }
  0x22   : > { %v855_v22 = vor.u32 %v1018_v15, %v854_v14 }
  0x24   : > { %509 = vmatpush.bf16.msra.mxu0 %v1040_v16 }
  0x25   : > { %1057 = vmatpush.bf16.msra.mxu2 %v1040_v16  ;;  %v918_v16 = vld [vmem:[%s1132_s30 + $0xd0] sm:$0xf] }
  0x28   : > { %510 = vmatpush.bf16.msra.mxu0 %v1039_v17 }
  0x29   : > { %1058 = vmatpush.bf16.msra.mxu2 %v1039_v17  ;;  %v1034_v17 = vld [vmem:[%s1132_s30 + $0xd4] sm:$0xf0] }
  0x2a   : > { %v919_v23 = vor.u32 %v1034_v17, %v918_v16 }
  0x2b   : > { %511 = vmatmul.bf16.vlgmr.msra.gmra.mxu0 %v815_v26  ;;  %v862_v26 = vld [vmem:[%s1132_s30 + $0x60] sm:$0xf] }
  0x2c   : > { %551 = vmatmul.bf16.vlgmr.msra.gmra.mxu2 %v879_v27  ;;  %989 = vmatmul.msk.bf16.gmra.mxu1 %vm454_vm0, %v827_v28  ;;  %v1020_v27 = vld [vmem:[%s1132_s30 + $0x64] sm:$0xf0]  ;;  %v926_v28 = vld [vmem:[%s1132_s30 + $0xe0] sm:$0xf] }
  0x2d   : > { %998 = vmatmul.msk.bf16.gmra.mxu3 %vm454_vm0, %v899_v29  ;;  %v1036_v29 = vld [vmem:[%s1132_s30 + $0xe4] sm:$0xf0]  ;;  %v863_v32 = vor.u32 %v1020_v27, %v862_v26 }
  0x2e   : > { %v927_v33 = vor.u32 %v1036_v29, %v926_v28 }
  0x3b   : > { %516 = vmatmul.bf16.gmra.mxu0 %v823_v38  ;;  %v1038_v38 = vld [vmem:[%s1132_s30 + $0xf4] sm:$0xf0] }
  0x3c   : > { %556 = vmatmul.bf16.gmra.mxu2 %v887_v39  ;;  %990 = vmatmul.msk.bf16.gmra.mxu1 %vm454_vm0, %v835_v40  ;;  %v1023_v39 = vld [vmem:[%s1132_s30 + $0x84] sm:$0xf]  ;;  %v880_v40 = vld [vmem:[%s1132_s30 + $0x88] sm:$0xf0]  ;;  %v935_v42 = vor.u32 %v1038_v38, %v934_v37 }
  0x3d   : > { %999 = vmatmul.msk.bf16.gmra.mxu3 %vm454_vm0, %v907_v41  ;;  %v871_v41 = vor.u32 %v1022_v36, %v870_v35  ;;  %v883_v43 = vor.u32 %v1023_v39, %v880_v40 }
  0x4b   : > { %521 = vmatmul.bf16.gmra.mxu0 %v831_v50 }
  0x4c   : > { %561 = vmatmul.bf16.gmra.mxu2 %v895_v51  ;;  %991 = vmatmul.msk.bf16.gmra.mxu1 %vm454_vm0, %v843_v52 }
  0x4d   : > { %1000 = vmatmul.msk.bf16.gmra.mxu3 %vm454_vm0, %v915_v53 }
  0x5b   : > { %526 = vmatmul.bf16.gmra.mxu0 %v839_v62 }
  0x5c   : > { %566 = vmatmul.bf16.gmra.mxu2 %v903_v63  ;;  %992 = vmatmul.msk.bf16.gmra.mxu1 %vm454_vm0, %v851_v0 }
  0x5d   : > { %1001 = vmatmul.msk.bf16.gmra.mxu3 %vm454_vm0, %v923_v1 }
  0x6b   : > { %531 = vmatmul.bf16.gmra.mxu0 %v847_v10 }
  0x6c   : > { %571 = vmatmul.bf16.gmra.mxu2 %v911_v11  ;;  %993 = vmatmul.msk.bf16.gmra.mxu1 %vm454_vm0, %v859_v12 }
  0x6d   : > { %1002 = vmatmul.msk.bf16.gmra.mxu3 %vm454_vm0, %v931_v13 }
  0x7b   : > { %536 = vmatmul.bf16.gmra.mxu0 %v855_v22 }
  0x7c   : > { %576 = vmatmul.bf16.gmra.mxu2 %v919_v23  ;;  %994 = vmatmul.msk.bf16.gmra.mxu1 %vm454_vm0, %v867_v24 }
  0x7d   : > { %1003 = vmatmul.msk.bf16.gmra.mxu3 %vm454_vm0, %v939_v25 }
  0x8b   : > { %541 = vmatmul.bf16.gmra.mxu0 %v863_v32 }
  0x8c   : > { %581 = vmatmul.bf16.gmra.mxu2 %v927_v33  ;;  %995 = vmatmul.msk.bf16.gmra.mxu1 %vm454_vm0, %v875_v34 }
  0x99   : > { %v601_v44 = vpop.f32.mrf.mxu1 }
  0x9b   : > { %546 = vmatmul.bf16.gmra.mxu0 %v871_v41 }
  0x9c   : > { %586 = vmatmul.bf16.gmra.mxu2 %v935_v42  ;;  %996 = vmatmul.msk.bf16.gmra.mxu1 %vm454_vm0, %v883_v43 }
  0xa0   : > { %v646_v47 = vpop.f32.mrf.mxu3 }
  0xa1   : > { %v603_v45 = vpop.f32.mrf.mxu1 }
  0xa8   : > { %v512_v48 = vpop.f32.mrf.mxu0  ;;  %v648_v57 = vpop.f32.mrf.mxu3 }
  0xa9   : > { %v513_v49 = vadd.f32 %v1235_v46, %v512_v48  ;;  %v606_v50 = vpop.f32.mrf.mxu1 }
  0xab   : > { %v602_v51 = vadd.f32 %v601_v44, %v513_v49 }
  0xad   : > { %v681_v52 = vpack.c.bf16 %v602_v51, %v602_v51 }
  0xaf   : > { %714 = vst.msk [vmem:[%s1242_s23] sm:$0xf] %vm713_vm1, %v681_v52  ;;  %v1246_v53 = vpop.f32.mrf.mxu2 }
  0xb0   : > { %v514_v54 = vpop.f32.mrf.mxu0  ;;  %v651_v1 = vpop.f32.mrf.mxu3 }
  0xb1   : > { %v515_v55 = vadd.f32 %v1235_v46, %v514_v54  ;;  %v608_v56 = vpop.f32.mrf.mxu1 }
  0xb3   : > { %v604_v58 = vadd.f32 %v603_v45, %v515_v55 }
  0xb5   : > { %v682_v59 = vpack.c.bf16 %v604_v58, %v604_v58 }
  0xb7   : > { %715 = vst.msk [vmem:[%s1242_s23 + $0x4] sm:$0xf] %vm713_vm1, %v682_v59  ;;  %v1251_v60 = vpop.f32.mrf.mxu2 }
  0xb8   : > { %v517_v61 = vpop.f32.mrf.mxu0  ;;  %v653_v12 = vpop.f32.mrf.mxu3 }
  0xb9   : > { %v518_v62 = vadd.f32 %v1235_v46, %v517_v61  ;;  %v611_v63 = vpop.f32.mrf.mxu1 }
  0xbb   : > { %v607_v0 = vadd.f32 %v606_v50, %v518_v62 }
  0xbd   : > { %v683_v2 = vpack.c.bf16 %v607_v0, %v607_v0 }
  0xbf   : > { %716 = vst.msk [vmem:[%s1242_s23 + $0x8] sm:$0xf] %vm713_vm1, %v683_v2  ;;  %v557_v3 = vpop.f32.mrf.mxu2 }
  0xc0   : > { %v558_v4 = vadd.f32 %v1235_v46, %v557_v3  ;;  %v519_v5 = vpop.f32.mrf.mxu0  ;;  %v656_v23 = vpop.f32.mrf.mxu3 }
  0xc1   : > { %v520_v6 = vadd.f32 %v1235_v46, %v519_v5  ;;  %v613_v7 = vpop.f32.mrf.mxu1 }
  0xc2   : > { %v647_v8 = vadd.f32 %v646_v47, %v558_v4 }
  0xc3   : > { %v609_v9 = vadd.f32 %v608_v56, %v520_v6 }
  0xc4   : > { %v699_v10 = vpack.c.bf16 %v647_v8, %v647_v8 }
  0xc5   : > { %v684_v11 = vpack.c.bf16 %v609_v9, %v609_v9 }
  0xc6   : > { %732 = vst.msk [vmem:[%s1242_s23 + $0x48] sm:$0xf] %vm713_vm1, %v699_v10 }
  0xc7   : > { %717 = vst.msk [vmem:[%s1242_s23 + $0xc] sm:$0xf] %vm713_vm1, %v684_v11  ;;  %v559_v13 = vpop.f32.mrf.mxu2 }
  0xc8   : > { %v560_v14 = vadd.f32 %v1235_v46, %v559_v13  ;;  %v522_v15 = vpop.f32.mrf.mxu0  ;;  %v658_v37 = vpop.f32.mrf.mxu3 }
  0xc9   : > { %v523_v16 = vadd.f32 %v1235_v46, %v522_v15  ;;  %v616_v17 = vpop.f32.mrf.mxu1 }
  0xca   : > { %v649_v18 = vadd.f32 %v648_v57, %v560_v14 }
  0xcb   : > { %v612_v19 = vadd.f32 %v611_v63, %v523_v16 }
  0xcc   : > { %v700_v20 = vpack.c.bf16 %v649_v18, %v649_v18 }
  0xcd   : > { %v685_v21 = vpack.c.bf16 %v612_v19, %v612_v19 }
  0xce   : > { %733 = vst.msk [vmem:[%s1242_s23 + $0x4c] sm:$0xf] %vm713_vm1, %v700_v20 }
  0xcf   : > { %718 = vst.msk [vmem:[%s1242_s23 + $0x10] sm:$0xf] %vm713_vm1, %v685_v21  ;;  %v562_v22 = vpop.f32.mrf.mxu2 }
  0xd0   : > { %v563_v24 = vadd.f32 %v1235_v46, %v562_v22  ;;  %v524_v25 = vpop.f32.mrf.mxu0  ;;  %v661_v50 = vpop.f32.mrf.mxu3 }
  0xd1   : > { %v525_v26 = vadd.f32 %v1235_v46, %v524_v25  ;;  %v618_v27 = vpop.f32.mrf.mxu1 }
  0xd2   : > { %v652_v28 = vadd.f32 %v651_v1, %v563_v24 }
  0xd3   : > { %v614_v29 = vadd.f32 %v613_v7, %v525_v26 }
  0xd4   : > { %v701_v30 = vpack.c.bf16 %v652_v28, %v652_v28 }
  0xd5   : > { %v686_v31 = vpack.c.bf16 %v614_v29, %v614_v29 }
  0xd6   : > { %734 = vst.msk [vmem:[%s1242_s23 + $0x50] sm:$0xf] %vm713_vm1, %v701_v30 }
  0xd7   : > { %719 = vst.msk [vmem:[%s1242_s23 + $0x14] sm:$0xf] %vm713_vm1, %v686_v31  ;;  %v564_v32 = vpop.f32.mrf.mxu2 }
  0xd8   : > { %v565_v33 = vadd.f32 %v1235_v46, %v564_v32  ;;  %v527_v34 = vpop.f32.mrf.mxu0  ;;  %v663_v0 = vpop.f32.mrf.mxu3 }
  0xd9   : > { %v528_v35 = vadd.f32 %v1235_v46, %v527_v34  ;;  %v621_v36 = vpop.f32.mrf.mxu1 }
  0xda   : > { %v654_v38 = vadd.f32 %v653_v12, %v565_v33 }
  0xdb   : > { %v617_v39 = vadd.f32 %v616_v17, %v528_v35 }
  0xdc   : > { %v702_v40 = vpack.c.bf16 %v654_v38, %v654_v38 }
  0xdd   : > { %v687_v41 = vpack.c.bf16 %v617_v39, %v617_v39 }
  0xde   : > { %735 = vst.msk [vmem:[%s1242_s23 + $0x54] sm:$0xf] %vm713_vm1, %v702_v40 }
  0xdf   : > { %720 = vst.msk [vmem:[%s1242_s23 + $0x18] sm:$0xf] %vm713_vm1, %v687_v41  ;;  %v567_v42 = vpop.f32.mrf.mxu2 }
  0xe0   : > { %v568_v43 = vadd.f32 %v1235_v46, %v567_v42  ;;  %v529_v44 = vpop.f32.mrf.mxu0  ;;  %v666_v11 = vpop.f32.mrf.mxu3 }
  0xe1   : > { %v530_v45 = vadd.f32 %v1235_v46, %v529_v44  ;;  %v623_v47 = vpop.f32.mrf.mxu1 }
  0xe2   : > { %v657_v48 = vadd.f32 %v656_v23, %v568_v43 }
  0xe3   : > { %v619_v49 = vadd.f32 %v618_v27, %v530_v45 }
  0xe4   : > { %v703_v51 = vpack.c.bf16 %v657_v48, %v657_v48 }
  0xe5   : > { %v688_v52 = vpack.c.bf16 %v619_v49, %v619_v49 }
  0xe6   : > { %736 = vst.msk [vmem:[%s1242_s23 + $0x58] sm:$0xf] %vm713_vm1, %v703_v51 }
  0xe7   : > { %721 = vst.msk [vmem:[%s1242_s23 + $0x1c] sm:$0xf] %vm713_vm1, %v688_v52  ;;  %v569_v54 = vpop.f32.mrf.mxu2  ;;  %v553_v52 = vadd.f32 %v1235_v46, %v1246_v53 }
  0xe8   : > { %v570_v55 = vadd.f32 %v1235_v46, %v569_v54  ;;  %v532_v56 = vpop.f32.mrf.mxu0  ;;  %v668_v25 = vpop.f32.mrf.mxu3 }
  0xe9   : > { %v533_v57 = vadd.f32 %v1235_v46, %v532_v56  ;;  %v626_v58 = vpop.f32.mrf.mxu1 }
  0xea   : > { %v659_v59 = vadd.f32 %v658_v37, %v570_v55 }
  0xeb   : > { %v622_v61 = vadd.f32 %v621_v36, %v533_v57 }
  0xec   : > { %v704_v62 = vpack.c.bf16 %v659_v59, %v659_v59 }
  0xed   : > { %v689_v63 = vpack.c.bf16 %v622_v61, %v622_v61 }
  0xee   : > { %737 = vst.msk [vmem:[%s1242_s23 + $0x5c] sm:$0xf] %vm713_vm1, %v704_v62 }
  0xef   : > { %722 = vst.msk [vmem:[%s1242_s23 + $0x20] sm:$0xf] %vm713_vm1, %v689_v63  ;;  %v572_v1 = vpop.f32.mrf.mxu2 }
  0xf0   : > { %v573_v2 = vadd.f32 %v1235_v46, %v572_v1  ;;  %v534_v3 = vpop.f32.mrf.mxu0  ;;  %v671_v37 = vpop.f32.mrf.mxu3 }
  0xf1   : > { %v535_v4 = vadd.f32 %v1235_v46, %v534_v3  ;;  %v628_v5 = vpop.f32.mrf.mxu1 }
  0xf2   : > { %v662_v6 = vadd.f32 %v661_v50, %v573_v2  ;;  %v555_v2 = vadd.f32 %v1235_v46, %v1251_v60 }
  0xf3   : > { %v624_v7 = vadd.f32 %v623_v47, %v535_v4 }
  0xf4   : > { %v705_v8 = vpack.c.bf16 %v662_v6, %v662_v6 }
  0xf5   : > { %v690_v9 = vpack.c.bf16 %v624_v7, %v624_v7 }
  0xf6   : > { %738 = vst.msk [vmem:[%s1242_s23 + $0x60] sm:$0xf] %vm713_vm1, %v705_v8 }
  0xf7   : > { %723 = vst.msk [vmem:[%s1242_s23 + $0x24] sm:$0xf] %vm713_vm1, %v690_v9  ;;  %v574_v10 = vpop.f32.mrf.mxu2 }
  0xf8   : > { %v575_v12 = vadd.f32 %v1235_v46, %v574_v10  ;;  %v537_v13 = vpop.f32.mrf.mxu0  ;;  %v673_v50 = vpop.f32.mrf.mxu3 }
  0xf9   : > { %v538_v14 = vadd.f32 %v1235_v46, %v537_v13  ;;  %v631_v15 = vpop.f32.mrf.mxu1 }
  0xfa   : > { %v664_v16 = vadd.f32 %v663_v0, %v575_v12 }
  0xfb   : > { %v627_v17 = vadd.f32 %v626_v58, %v538_v14 }
  0xfc   : > { %v706_v18 = vpack.c.bf16 %v664_v16, %v664_v16 }
  0xfd   : > { %v691_v19 = vpack.c.bf16 %v627_v17, %v627_v17 }
  0xfe   : > { %739 = vst.msk [vmem:[%s1242_s23 + $0x64] sm:$0xf] %vm713_vm1, %v706_v18 }
  0xff   : > { %724 = vst.msk [vmem:[%s1242_s23 + $0x28] sm:$0xf] %vm713_vm1, %v691_v19  ;;  %v577_v20 = vpop.f32.mrf.mxu2 }
 0x100   : > { %v578_v21 = vadd.f32 %v1235_v46, %v577_v20  ;;  %v539_v22 = vpop.f32.mrf.mxu0  ;;  %v676_v53 = vpop.f32.mrf.mxu3 }
 0x101   : > { %v540_v23 = vadd.f32 %v1235_v46, %v539_v22  ;;  %v633_v24 = vpop.f32.mrf.mxu1 }
 0x102   : > { %v667_v26 = vadd.f32 %v666_v11, %v578_v21 }
 0x103   : > { %v629_v27 = vadd.f32 %v628_v5, %v540_v23 }
 0x104   : > { %v707_v28 = vpack.c.bf16 %v667_v26, %v667_v26 }
 0x105   : > { %v692_v29 = vpack.c.bf16 %v629_v27, %v629_v27 }
 0x106   : > { %740 = vst.msk [vmem:[%s1242_s23 + $0x68] sm:$0xf] %vm713_vm1, %v707_v28 }
 0x107   : > { %725 = vst.msk [vmem:[%s1242_s23 + $0x2c] sm:$0xf] %vm713_vm1, %v692_v29  ;;  %v579_v30 = vpop.f32.mrf.mxu2 }
 0x108   : > { %v580_v31 = vadd.f32 %v1235_v46, %v579_v30  ;;  %v542_v32 = vpop.f32.mrf.mxu0  ;;  %v678_v14 = vpop.f32.mrf.mxu3 }
 0x109   : > { %v543_v33 = vadd.f32 %v1235_v46, %v542_v32  ;;  %v636_v34 = vpop.f32.mrf.mxu1 }
 0x10a   : > { %v669_v35 = vadd.f32 %v668_v25, %v580_v31 }
 0x10b   : > { %v632_v36 = vadd.f32 %v631_v15, %v543_v33 }
 0x10c   : > { %v708_v38 = vpack.c.bf16 %v669_v35, %v669_v35 }
 0x10d   : > { %v693_v39 = vpack.c.bf16 %v632_v36, %v632_v36 }
 0x10e   : > { %741 = vst.msk [vmem:[%s1242_s23 + $0x6c] sm:$0xf] %vm713_vm1, %v708_v38 }
 0x10f   : > { %726 = vst.msk [vmem:[%s1242_s23 + $0x30] sm:$0xf] %vm713_vm1, %v693_v39  ;;  %v582_v40 = vpop.f32.mrf.mxu2 }
 0x110   : > { %v583_v41 = vadd.f32 %v1235_v46, %v582_v40  ;;  %v544_v42 = vpop.f32.mrf.mxu0 }
 0x111   : > { %v545_v43 = vadd.f32 %v1235_v46, %v544_v42  ;;  %v638_v44 = vpop.f32.mrf.mxu1 }
 0x112   : > { %v672_v45 = vadd.f32 %v671_v37, %v583_v41 }
 0x113   : > { %v634_v47 = vadd.f32 %v633_v24, %v545_v43 }
 0x114   : > { %v709_v48 = vpack.c.bf16 %v672_v45, %v672_v45 }
 0x115   : > { %v694_v49 = vpack.c.bf16 %v634_v47, %v634_v47 }
 0x116   : > { %742 = vst.msk [vmem:[%s1242_s23 + $0x70] sm:$0xf] %vm713_vm1, %v709_v48 }
 0x117   : > { %727 = vst.msk [vmem:[%s1242_s23 + $0x34] sm:$0xf] %vm713_vm1, %v694_v49  ;;  %v584_v51 = vpop.f32.mrf.mxu2 }
 0x118   : > { %v585_v54 = vadd.f32 %v1235_v46, %v584_v51  ;;  %v547_v55 = vpop.f32.mrf.mxu0 }
 0x119   : > { %v548_v56 = vadd.f32 %v1235_v46, %v547_v55  ;;  %v641_v57 = vpop.f32.mrf.mxu1 }
 0x11a   : > { %v674_v58 = vadd.f32 %v673_v50, %v585_v54  ;;  %v642_v59 = vadd.f32 %v641_v57, %v553_v52 }
 0x11b   : > { %v637_v61 = vadd.f32 %v636_v34, %v548_v56 }
 0x11c   : > { %v710_v62 = vpack.c.bf16 %v674_v58, %v674_v58  ;;  %v697_v63 = vpack.c.bf16 %v642_v59, %v642_v59 }
 0x11d   : > { %v695_v0 = vpack.c.bf16 %v637_v61, %v637_v61 }
 0x11e   : > { %743 = vst.msk [vmem:[%s1242_s23 + $0x74] sm:$0xf] %vm713_vm1, %v710_v62 }
 0x11f   : > { %728 = vst.msk [vmem:[%s1242_s23 + $0x38] sm:$0xf] %vm713_vm1, %v695_v0  ;;  %v587_v1 = vpop.f32.mrf.mxu2 }
 0x120   : > { %730 = vst.msk [vmem:[%s1242_s23 + $0x40] sm:$0xf] %vm713_vm1, %v697_v63  ;;  %v588_v3 = vadd.f32 %v1235_v46, %v587_v1  ;;  %v549_v4 = vpop.f32.mrf.mxu0 }
 0x121   : > { %v550_v5 = vadd.f32 %v1235_v46, %v549_v4  ;;  %v643_v6 = vpop.f32.mrf.mxu1 }
 0x122   : > { %v677_v7 = vadd.f32 %v676_v53, %v588_v3  ;;  %v644_v8 = vadd.f32 %v643_v6, %v555_v2 }
 0x123   : > { %v639_v9 = vadd.f32 %v638_v44, %v550_v5 }
 0x124   : > { %v711_v10 = vpack.c.bf16 %v677_v7, %v677_v7  ;;  %v698_v11 = vpack.c.bf16 %v644_v8, %v644_v8 }
 0x125   : > { %v696_v12 = vpack.c.bf16 %v639_v9, %v639_v9 }
 0x126   : > { %744 = vst.msk [vmem:[%s1242_s23 + $0x78] sm:$0xf] %vm713_vm1, %v711_v10 }
 0x127   : > { %729 = vst.msk [vmem:[%s1242_s23 + $0x3c] sm:$0xf] %vm713_vm1, %v696_v12  ;;  %v589_v60 = vpop.f32.mrf.mxu2 }
 0x128   : > { %731 = vst.msk [vmem:[%s1242_s23 + $0x44] sm:$0xf] %vm713_vm1, %v698_v11  ;;  %v590_v13 = vadd.f32 %v1235_v46, %v589_v60 }
 0x12a   : > { %v679_v15 = vadd.f32 %v678_v14, %v590_v13 }
 0x12c   : > { %v712_v16 = vpack.c.bf16 %v679_v15, %v679_v15 }
 0x12e   : > { %745 = vst.msk [vmem:[%s1242_s23 + $0x7c] sm:$0xf] %vm713_vm1, %v712_v16 }
 0x12f PF: > { %s13_s12 = sadd.s32 1, %s1078_s12  }
 0x130   : > { %p10_p4 = scmp.ge.s32.totalorder %s13_s12, 4  }
 0x132   :  { %12 = sbr.rel (!%p10_p4) target bundleno = 1 (0x1), region = 62 }

// kernel: dmcs_forward.39
= control target key start
LH: loop header
LB: loop body
LE: loop exit
PB: predicated region body
PF: predicated region fallthrough
CT: control target
= control target key end

     0   :  { %s2250_s12 = smov 0   ;;  %s2756_s0 = inlined_call_operand.vmem [shape: bf16[512,576], index: 0, kind: input, shape index: {}]   ;;  %s2757_s1 = inlined_call_operand.vmem [shape: bf16[576,64], index: 1, kind: input, shape index: {}]   ;;  %s2758_s2 = inlined_call_operand.vmem [shape: f32[1,64], index: 2, kind: input, shape index: {}]   ;;  %s2759_s3 = inlined_call_operand.vmem [shape: bf16[512,64], index: 3, kind: output, shape index: {}]  }
   0x1 LB: > { %s1581_s13 = sadd.s32 4294967295, %s2228_s12   ;;  %p1585_p0 = scmp.ge.s32.totalorder %s2228_s12, 1  ;;  %s2228_s12 = sphi %s2250_s12, %s13_s12  }
   0x2   : > { %p139_p1 = scmp.lt.s32.totalorder %s2228_s12, 3 }
   0x4   : > { %p140_p2 = pnand %p1585_p0, %p139_p1 }
   0x5   : > { %s1586_s20 = sshll.u32 (!%p140_p2), %s1581_s13, 5 }
   0x6   : > { %143 = sbr.rel (%p140_p2) target bundleno = 496 (0x1f0), region = 32  ;;  %p165_p3 = scmp.lt.s32.totalorder (!%p140_p2), %s1586_s20, 63 }
   0xb   : > { %v2159_v0 = vld [vmem:[%s2757_s1 + $0x38] sm:$0xff]  ;;  %v2158_v1 = vld [vmem:[%s2757_s1 + $0x30] sm:$0xff]  ;;  %v2157_v2 = vld [vmem:[%s2757_s1 + $0x28] sm:$0xff]  ;;  %s2761_s20 = smov (!%p165_p3, %s1586_s20), 63  ;;  %vm966_vm0 = vcmask 523264   ;;  %vm1492_vm1 = vcmask 519168  }
   0xc   : > { %2188 = vmatpush.bf16.msra.mxu1 %v2159_v0  ;;  %2189 = vmatpush.bf16.msra.mxu2 %v2159_v0  ;;  %v2156_v3 = vld [vmem:[%s2757_s1 + $0x20] sm:$0xff]  ;;  %v2155_v4 = vld [vmem:[%s2757_s1 + $0x18] sm:$0xff]  ;;  %v2154_v5 = vld [vmem:[%s2757_s1 + $0x10] sm:$0xff]  ;;  %s2212_s27 = smul.u32 20, %s2761_s20  ;;  %s1589_s19 = sshll.u32 %s2761_s20, 2 }
   0xd   : > { %2190 = vmatpush.bf16.msra.mxu3 %v2159_v0  ;;  %1015 = vmatpush.bf16.msra.mxu0 %v2159_v0  ;;  %v2153_v6 = vld [vmem:[%s2757_s1 + $0x8] sm:$0xff]  ;;  %v2152_v7 = vld [vmem:[%s2757_s1] sm:$0xff]  ;;  %v2175_v16 = vld [vmem:[%s2757_s1 + $0xb8] sm:$0xff]  ;;  %s2590_s23 = scalar_lea.vmem %s2759_s3, %s1589_s19 }
   0xe   : > { %s2285_s5 = scalar_lea.vmem %s2756_s0, %s2212_s27  ;;  %v2183_v17 = vld [vmem:[%s2757_s1 + $0xf8] sm:$0xff]  ;;  %v2174_v24 = vld [vmem:[%s2757_s1 + $0xb0] sm:$0xff]  ;;  %v2173_v28 = vld [vmem:[%s2757_s1 + $0xa8] sm:$0xff] }
   0xf   : > { %v1672_v8 = vld [vmem:[%s2285_s5 + $0xa0] sm:$0xf]  ;;  %v2094_v9 = vld [vmem:[%s2285_s5 + $0xb0] sm:$0xf0]  ;;  %v2167_v22 = vld [vmem:[%s2757_s1 + $0x78] sm:$0xff] }
  0x10   : > { %2191 = vmatpush.bf16.msra.mxu1 %v2158_v1  ;;  %2192 = vmatpush.bf16.msra.mxu2 %v2158_v1  ;;  %v1752_v10 = vld [vmem:[%s2285_s5 + $0x140] sm:$0xf]  ;;  %v2114_v11 = vld [vmem:[%s2285_s5 + $0x150] sm:$0xf0]  ;;  %v1673_v18 = vor.u32 %v2094_v9, %v1672_v8  ;;  %v2187_v23 = vld [vmem:[%s2757_s1 + $0x118] sm:$0xff] }
  0x11   : > { %2193 = vmatpush.bf16.msra.mxu3 %v2158_v1  ;;  %1016 = vmatpush.bf16.msra.mxu0 %v2158_v1  ;;  %v1832_v12 = vld [vmem:[%s2285_s5 + $0x1e0] sm:$0xf]  ;;  %v2134_v13 = vld [vmem:[%s2285_s5 + $0x1f0] sm:$0xf0]  ;;  %v1753_v19 = vor.u32 %v2114_v11, %v1752_v10  ;;  %v2181_v29 = vld [vmem:[%s2757_s1 + $0xe8] sm:$0xff] }
  0x12   : > { %v1592_v14 = vld [vmem:[%s2285_s5] sm:$0xf]  ;;  %v2074_v15 = vld [vmem:[%s2285_s5 + $0x10] sm:$0xf0]  ;;  %v1833_v20 = vor.u32 %v2134_v13, %v1832_v12  ;;  %v2165_v30 = vld [vmem:[%s2757_s1 + $0x68] sm:$0xff] }
  0x13   : > { %v1593_v21 = vor.u32 %v2074_v15, %v1592_v14  ;;  %v2182_v25 = vld [vmem:[%s2757_s1 + $0xf0] sm:$0xff]  ;;  %v2185_v31 = vld [vmem:[%s2757_s1 + $0x108] sm:$0xff]  ;;  %v2172_v32 = vld [vmem:[%s2757_s1 + $0xa0] sm:$0xff] }
  0x14   : > { %2194 = vmatpush.bf16.msra.mxu1 %v2157_v2  ;;  %2195 = vmatpush.bf16.msra.mxu2 %v2157_v2  ;;  %v2166_v26 = vld [vmem:[%s2757_s1 + $0x70] sm:$0xff]  ;;  %v2180_v33 = vld [vmem:[%s2757_s1 + $0xe0] sm:$0xff]  ;;  %v1692_v34 = vld [vmem:[%s2285_s5 + $0xc8] sm:$0xf] }
  0x15   : > { %2196 = vmatpush.bf16.msra.mxu3 %v2157_v2  ;;  %1017 = vmatpush.bf16.msra.mxu0 %v2157_v2  ;;  %v2186_v27 = vld [vmem:[%s2757_s1 + $0x110] sm:$0xff]  ;;  %v2099_v35 = vld [vmem:[%s2285_s5 + $0xd8] sm:$0xf0]  ;;  %v1772_v36 = vld [vmem:[%s2285_s5 + $0x168] sm:$0xf] }
  0x16   : > { %v2119_v37 = vld [vmem:[%s2285_s5 + $0x178] sm:$0xf0]  ;;  %v1852_v38 = vld [vmem:[%s2285_s5 + $0x208] sm:$0xf]  ;;  %v2164_v42 = vld [vmem:[%s2757_s1 + $0x60] sm:$0xff]  ;;  %v1693_v45 = vor.u32 %v2099_v35, %v1692_v34 }
  0x17   : > { %v2139_v39 = vld [vmem:[%s2285_s5 + $0x218] sm:$0xf0]  ;;  %v1612_v40 = vld [vmem:[%s2285_s5 + $0x28] sm:$0xf]  ;;  %v1773_v46 = vor.u32 %v2119_v37, %v1772_v36  ;;  %v2170_v50 = vld [vmem:[%s2757_s1 + $0x90] sm:$0xff] }
  0x18   : > { %2197 = vmatpush.bf16.msra.mxu1 %v2156_v3  ;;  %2198 = vmatpush.bf16.msra.mxu2 %v2156_v3  ;;  %v2079_v41 = vld [vmem:[%s2285_s5 + $0x38] sm:$0xf0]  ;;  %v1853_v47 = vor.u32 %v2139_v39, %v1852_v38  ;;  %v2178_v51 = vld [vmem:[%s2757_s1 + $0xd0] sm:$0xff]  ;;  %v2184_v53 = vld [vmem:[%s2757_s1 + $0x100] sm:$0xff] }
  0x19   : > { %2199 = vmatpush.bf16.msra.mxu3 %v2156_v3  ;;  %1018 = vmatpush.bf16.msra.mxu0 %v2156_v3  ;;  %v2171_v43 = vld [vmem:[%s2757_s1 + $0x98] sm:$0xff]  ;;  %v1613_v48 = vor.u32 %v2079_v41, %v1612_v40  ;;  %v2162_v52 = vld [vmem:[%s2757_s1 + $0x50] sm:$0xff]  ;;  %v2169_v54 = vld [vmem:[%s2757_s1 + $0x88] sm:$0xff] }
  0x1a   : > { %v2179_v44 = vld [vmem:[%s2757_s1 + $0xd8] sm:$0xff]  ;;  %v2177_v55 = vld [vmem:[%s2757_s1 + $0xc8] sm:$0xff]  ;;  %v2168_v57 = vld [vmem:[%s2757_s1 + $0x80] sm:$0xff] }
  0x1b   : > { %v2163_v49 = vld [vmem:[%s2757_s1 + $0x58] sm:$0xff]  ;;  %v2161_v56 = vld [vmem:[%s2757_s1 + $0x48] sm:$0xff]  ;;  %v2176_v58 = vld [vmem:[%s2757_s1 + $0xc0] sm:$0xff] }
  0x1c   : > { %2200 = vmatpush.bf16.msra.mxu1 %v2155_v4  ;;  %2201 = vmatpush.bf16.msra.mxu2 %v2155_v4  ;;  %v1712_v59 = vld [vmem:[%s2285_s5 + $0xf0] sm:$0xf]  ;;  %v2104_v60 = vld [vmem:[%s2285_s5 + $0x100] sm:$0xf0]  ;;  %v1732_v8 = vld [vmem:[%s2285_s5 + $0x118] sm:$0xf] }
  0x1d   : > { %2202 = vmatpush.bf16.msra.mxu3 %v2155_v4  ;;  %1019 = vmatpush.bf16.msra.mxu0 %v2155_v4  ;;  %v1792_v61 = vld [vmem:[%s2285_s5 + $0x190] sm:$0xf]  ;;  %v2124_v62 = vld [vmem:[%s2285_s5 + $0x1a0] sm:$0xf0]  ;;  %v1713_v4 = vor.u32 %v2104_v60, %v1712_v59  ;;  %v2109_v9 = vld [vmem:[%s2285_s5 + $0x128] sm:$0xf0] }
  0x1e   : > { %v1872_v63 = vld [vmem:[%s2285_s5 + $0x230] sm:$0xf]  ;;  %v2144_v0 = vld [vmem:[%s2285_s5 + $0x240] sm:$0xf0]  ;;  %v1812_v10 = vld [vmem:[%s2285_s5 + $0x1b8] sm:$0xf] }
  0x1f   : > { %v1632_v1 = vld [vmem:[%s2285_s5 + $0x50] sm:$0xf]  ;;  %v2084_v2 = vld [vmem:[%s2285_s5 + $0x60] sm:$0xf0]  ;;  %v2129_v11 = vld [vmem:[%s2285_s5 + $0x1c8] sm:$0xf0] }
  0x20   : > { %2203 = vmatpush.bf16.msra.mxu1 %v2154_v5  ;;  %2204 = vmatpush.bf16.msra.mxu2 %v2154_v5  ;;  %v2160_v3 = vld [vmem:[%s2757_s1 + $0x40] sm:$0xff]  ;;  %v1892_v12 = vld [vmem:[%s2285_s5 + $0x258] sm:$0xf]  ;;  %v2149_v13 = vld [vmem:[%s2285_s5 + $0x268] sm:$0xf0] }
  0x21   : > { %2205 = vmatpush.bf16.msra.mxu3 %v2154_v5  ;;  %1020 = vmatpush.bf16.msra.mxu0 %v2154_v5  ;;  %v1793_v5 = vor.u32 %v2124_v62, %v1792_v61  ;;  %v1652_v14 = vld [vmem:[%s2285_s5 + $0x78] sm:$0xf]  ;;  %v2089_v15 = vld [vmem:[%s2285_s5 + $0x88] sm:$0xf0]  ;;  %v1620_v34 = vld [vmem:[%s2285_s5 + $0x30] sm:$0xf] }
  0x22   : > { %v2080_v35 = vld [vmem:[%s2285_s5 + $0x40] sm:$0xf0]  ;;  %v2078_v36 = vld [vmem:[%s2285_s5 + $0x34] sm:$0xf]  ;;  %v1622_v37 = vld [vmem:[%s2285_s5 + $0x44] sm:$0xf0] }
  0x23   : > { %v1628_v38 = vld [vmem:[%s2285_s5 + $0x38] sm:$0xf]  ;;  %v2081_v39 = vld [vmem:[%s2285_s5 + $0x48] sm:$0xf0]  ;;  %v1621_v41 = vor.u32 %v2080_v35, %v1620_v34  ;;  %v2090_v59 = vld [vmem:[%s2285_s5 + $0x90] sm:$0xf0] }
  0x24   : > { %2206 = vmatpush.bf16.msra.mxu1 %v2153_v6  ;;  %2207 = vmatpush.bf16.msra.mxu2 %v2153_v6  ;;  %v2088_v60 = vld [vmem:[%s2285_s5 + $0x84] sm:$0xf]  ;;  %v1662_v61 = vld [vmem:[%s2285_s5 + $0x94] sm:$0xf0]  ;;  %v1668_v62 = vld [vmem:[%s2285_s5 + $0x88] sm:$0xf] }
  0x25   : > { %2208 = vmatpush.bf16.msra.mxu3 %v2153_v6  ;;  %1021 = vmatpush.bf16.msra.mxu0 %v2153_v6  ;;  %v1873_v6 = vor.u32 %v2144_v0, %v1872_v63  ;;  %v2091_v63 = vld [vmem:[%s2285_s5 + $0x98] sm:$0xf0]  ;;  %v2101_v34 = vld [vmem:[%s2285_s5 + $0xe8] sm:$0xf0] }
  0x28   : > { %2209 = vmatpush.bf16.msra.mxu1 %v2152_v7  ;;  %2210 = vmatpush.bf16.msra.mxu2 %v2152_v7 }
  0x29   : > { %2211 = vmatpush.bf16.msra.mxu3 %v2152_v7  ;;  %1022 = vmatpush.bf16.msra.mxu0 %v2152_v7  ;;  %v1633_v7 = vor.u32 %v2084_v2, %v1632_v1  ;;  %v1665_v2 = vor.u32 %v2088_v60, %v1662_v61  ;;  %v2106_v60 = vld [vmem:[%s2285_s5 + $0x110] sm:$0xf0] }
  0x2b   : > { %1043 = vmatmul.bf16.vlgmr.msra.gmra.mxu1 %v1673_v18  ;;  %1063 = vmatmul.bf16.vlgmr.msra.gmra.mxu2 %v1753_v19  ;;  %v1893_v18 = vor.u32 %v2149_v13, %v1892_v12  ;;  %v1653_v19 = vor.u32 %v2089_v15, %v1652_v14  ;;  %v2096_v12 = vld [vmem:[%s2285_s5 + $0xc0] sm:$0xf0] }
  0x2c   : > { %1193 = vmatpush.bf16.msrb.mxu2 %v2175_v16  ;;  %1083 = vmatmul.bf16.vlgmr.msra.gmra.mxu3 %v1833_v20  ;;  %v1733_v16 = vor.u32 %v2109_v9, %v1732_v8  ;;  %v2072_v20 = vld [vmem:[%s2285_s5 + $0x4] sm:$0xf]  ;;  %v2095_v8 = vld [vmem:[%s2285_s5 + $0xb8] sm:$0xf0]  ;;  %v2093_v9 = vld [vmem:[%s2285_s5 + $0xac] sm:$0xf] }
  0x2d   : > { %1282 = vmatpush.bf16.msrb.mxu3 %v2183_v17  ;;  %1023 = vmatmul.bf16.vlgmr.msra.gmra.mxu0 %v1593_v21  ;;  %v1813_v17 = vor.u32 %v2129_v11, %v1812_v10  ;;  %v1594_v21 = vld [vmem:[%s2285_s5 + $0x14] sm:$0xf0]  ;;  %v1682_v10 = vld [vmem:[%s2285_s5 + $0xbc] sm:$0xf0]  ;;  %v1688_v11 = vld [vmem:[%s2285_s5 + $0xb0] sm:$0xf] }
  0x2e   : > { %1104 = vmatpush.bf16.msrb.mxu1 %v2167_v22  ;;  %1375 = vmatpush.bf16.msrb.mxu0 %v2187_v23  ;;  %v1600_v22 = vld [vmem:[%s2285_s5 + $0x8] sm:$0xf]  ;;  %v2075_v23 = vld [vmem:[%s2285_s5 + $0x18] sm:$0xf0] }
  0x30   : > { %1194 = vmatpush.bf16.msrb.mxu2 %v2174_v24  ;;  %v2073_v24 = vld [vmem:[%s2285_s5 + $0xc] sm:$0xf] }
  0x31   : > { %1283 = vmatpush.bf16.msrb.mxu3 %v2182_v25  ;;  %v1602_v25 = vld [vmem:[%s2285_s5 + $0x1c] sm:$0xf0] }
  0x32   : > { %1105 = vmatpush.bf16.msrb.mxu1 %v2166_v26  ;;  %1376 = vmatpush.bf16.msrb.mxu0 %v2186_v27  ;;  %v1608_v26 = vld [vmem:[%s2285_s5 + $0x10] sm:$0xf]  ;;  %v2076_v27 = vld [vmem:[%s2285_s5 + $0x20] sm:$0xf0] }
  0x34   : > { %1195 = vmatpush.bf16.msrb.mxu2 %v2173_v28  ;;  %v1597_v28 = vor.u32 %v2072_v20, %v1594_v21 }
  0x35   : > { %1284 = vmatpush.bf16.msrb.mxu3 %v2181_v29  ;;  %v1601_v29 = vor.u32 %v2075_v23, %v1600_v22 }
  0x36   : > { %1106 = vmatpush.bf16.msrb.mxu1 %v2165_v30  ;;  %1377 = vmatpush.bf16.msrb.mxu0 %v2185_v31  ;;  %v1605_v30 = vor.u32 %v2073_v24, %v1602_v25  ;;  %v1609_v31 = vor.u32 %v2076_v27, %v1608_v26  ;;  %v2097_v27 = vld [vmem:[%s2285_s5 + $0xcc] sm:$0xf] }
  0x38   : > { %1196 = vmatpush.bf16.msrb.mxu2 %v2172_v32  ;;  %v2077_v32 = vld [vmem:[%s2285_s5 + $0x2c] sm:$0xf] }
  0x39   : > { %1285 = vmatpush.bf16.msrb.mxu3 %v2180_v33  ;;  %v1614_v33 = vld [vmem:[%s2285_s5 + $0x3c] sm:$0xf0] }
  0x3a   : > { %1107 = vmatpush.bf16.msrb.mxu1 %v2164_v42  ;;  %1378 = vmatpush.bf16.msrb.mxu0 %v2184_v53  ;;  %v1617_v40 = vor.u32 %v2077_v32, %v1614_v33  ;;  %v1625_v42 = vor.u32 %v2078_v36, %v1622_v37  ;;  %v1702_v32 = vld [vmem:[%s2285_s5 + $0xe4] sm:$0xf0]  ;;  %v1708_v33 = vld [vmem:[%s2285_s5 + $0xd8] sm:$0xf] }
  0x3b   : > { %1048 = vmatmul.bf16.gmra.mxu1 %v1693_v45  ;;  %1068 = vmatmul.bf16.gmra.mxu2 %v1773_v46  ;;  %v1634_v45 = vld [vmem:[%s2285_s5 + $0x64] sm:$0xf0]  ;;  %v1640_v46 = vld [vmem:[%s2285_s5 + $0x58] sm:$0xf] }
  0x3c   : > { %1197 = vmatpush.bf16.msrb.mxu2 %v2171_v43  ;;  %1088 = vmatmul.bf16.gmra.mxu3 %v1853_v47  ;;  %v1629_v43 = vor.u32 %v2081_v39, %v1628_v38  ;;  %v2085_v47 = vld [vmem:[%s2285_s5 + $0x68] sm:$0xf0] }
  0x3d   : > { %1286 = vmatpush.bf16.msrb.mxu3 %v2179_v44  ;;  %1028 = vmatmul.bf16.gmra.mxu0 %v1613_v48  ;;  %v2082_v44 = vld [vmem:[%s2285_s5 + $0x54] sm:$0xf]  ;;  %v2083_v48 = vld [vmem:[%s2285_s5 + $0x5c] sm:$0xf]  ;;  %v1641_v53 = vor.u32 %v2085_v47, %v1640_v46 }
  0x3e   : > { %1108 = vmatpush.bf16.msrb.mxu1 %v2163_v49  ;;  %v1642_v49 = vld [vmem:[%s2285_s5 + $0x6c] sm:$0xf0] }
  0x40   : > { %1198 = vmatpush.bf16.msrb.mxu2 %v2170_v50  ;;  %v1648_v50 = vld [vmem:[%s2285_s5 + $0x60] sm:$0xf] }
  0x41   : > { %1287 = vmatpush.bf16.msrb.mxu3 %v2178_v51  ;;  %v2086_v51 = vld [vmem:[%s2285_s5 + $0x70] sm:$0xf0] }
  0x42   : > { %1109 = vmatpush.bf16.msrb.mxu1 %v2162_v52  ;;  %v1637_v52 = vor.u32 %v2082_v44, %v1634_v45 }
  0x44   : > { %1199 = vmatpush.bf16.msrb.mxu2 %v2169_v54  ;;  %v1645_v54 = vor.u32 %v2083_v48, %v1642_v49 }
  0x45   : > { %1288 = vmatpush.bf16.msrb.mxu3 %v2177_v55  ;;  %v1649_v55 = vor.u32 %v2086_v51, %v1648_v50 }
  0x46   : > { %1110 = vmatpush.bf16.msrb.mxu1 %v2161_v56  ;;  %v2087_v56 = vld [vmem:[%s2285_s5 + $0x7c] sm:$0xf] }
  0x48   : > { %1200 = vmatpush.bf16.msrb.mxu2 %v2168_v57  ;;  %v1654_v57 = vld [vmem:[%s2285_s5 + $0x8c] sm:$0xf0] }
  0x49   : > { %1289 = vmatpush.bf16.msrb.mxu3 %v2176_v58  ;;  %v1660_v58 = vld [vmem:[%s2285_s5 + $0x80] sm:$0xf]  ;;  %v1657_v0 = vor.u32 %v2087_v56, %v1654_v57  ;;  %v2105_v56 = vld [vmem:[%s2285_s5 + $0x108] sm:$0xf0]  ;;  %v2103_v57 = vld [vmem:[%s2285_s5 + $0xfc] sm:$0xf] }
  0x4a   : > { %1111 = vmatpush.bf16.msrb.mxu1 %v2160_v3  ;;  %v1661_v1 = vor.u32 %v2090_v59, %v1660_v58  ;;  %v1669_v3 = vor.u32 %v2091_v63, %v1668_v62  ;;  %v1722_v58 = vld [vmem:[%s2285_s5 + $0x10c] sm:$0xf0]  ;;  %v1728_v59 = vld [vmem:[%s2285_s5 + $0x100] sm:$0xf] }
  0x4b   : > { %1053 = vmatmul.bf16.gmra.mxu1 %v1713_v4  ;;  %1073 = vmatmul.bf16.gmra.mxu2 %v1793_v5  ;;  %v2445_v4 = vld [vmem:[%s2758_s2] ss:$0 sm:$0xff]  ;;  %v2092_v5 = vld [vmem:[%s2285_s5 + $0xa4] sm:$0xf] }
  0x4c   : > { %1093 = vmatmul.bf16.gmra.mxu3 %v1873_v6  ;;  %v1674_v6 = vld [vmem:[%s2285_s5 + $0xb4] sm:$0xf0] }
  0x4d   : > { %1033 = vmatmul.bf16.gmra.mxu0 %v1633_v7  ;;  %v1680_v7 = vld [vmem:[%s2285_s5 + $0xa8] sm:$0xf]  ;;  %v1677_v13 = vor.u32 %v2092_v5, %v1674_v6  ;;  %v1725_v5 = vor.u32 %v2103_v57, %v1722_v58  ;;  %v1729_v6 = vor.u32 %v2106_v60, %v1728_v59  ;;  %v1754_v57 = vld [vmem:[%s2285_s5 + $0x154] sm:$0xf0]  ;;  %v2115_v59 = vld [vmem:[%s2285_s5 + $0x158] sm:$0xf0] }
  0x4e   : > { %v1681_v14 = vor.u32 %v2095_v8, %v1680_v7  ;;  %v1760_v58 = vld [vmem:[%s2285_s5 + $0x148] sm:$0xf]  ;;  %v2113_v60 = vld [vmem:[%s2285_s5 + $0x14c] sm:$0xf] }
  0x5b   : > { %1058 = vmatmul.bf16.gmra.mxu1 %v1733_v16  ;;  %1078 = vmatmul.bf16.gmra.mxu2 %v1813_v17  ;;  %v1685_v16 = vor.u32 %v2093_v9, %v1682_v10  ;;  %v1689_v17 = vor.u32 %v2096_v12, %v1688_v11 }
  0x5c   : > { %1098 = vmatmul.bf16.gmra.mxu3 %v1893_v18 }
  0x5d   : > { %1038 = vmatmul.bf16.gmra.mxu0 %v1653_v19 }
  0x6b   : > { %1112 = vmatmul.bf16.vlgmr.msrb.gmra.mxu1 %v1597_v28  ;;  %1201 = vmatmul.bf16.vlgmr.msrb.gmra.mxu2 %v1601_v29  ;;  %v1694_v28 = vld [vmem:[%s2285_s5 + $0xdc] sm:$0xf0]  ;;  %v1700_v29 = vld [vmem:[%s2285_s5 + $0xd0] sm:$0xf] }
  0x6c   : > { %1290 = vmatmul.bf16.vlgmr.msrb.gmra.mxu3 %v1605_v30  ;;  %v2100_v30 = vld [vmem:[%s2285_s5 + $0xe0] sm:$0xf0]  ;;  %v1697_v38 = vor.u32 %v2097_v27, %v1694_v28  ;;  %v1742_v27 = vld [vmem:[%s2285_s5 + $0x134] sm:$0xf0]  ;;  %v1748_v28 = vld [vmem:[%s2285_s5 + $0x128] sm:$0xf] }
  0x6d   : > { %2054 = vmatmul.msk.bf16.vlgmr.msrb.gmra.mxu0 %vm966_vm0, %v1609_v31  ;;  %v2098_v31 = vld [vmem:[%s2285_s5 + $0xd4] sm:$0xf]  ;;  %v1701_v39 = vor.u32 %v2100_v30, %v1700_v29  ;;  %v2111_v29 = vld [vmem:[%s2285_s5 + $0x138] sm:$0xf0] }
  0x7b   : > { %1117 = vmatmul.bf16.gmra.mxu1 %v1617_v40  ;;  %1206 = vmatmul.bf16.gmra.mxu2 %v1621_v41 }
  0x7c   : > { %1295 = vmatmul.bf16.gmra.mxu3 %v1625_v42  ;;  %v1705_v42 = vor.u32 %v2098_v31, %v1702_v32 }
  0x7d   : > { %2055 = vmatmul.msk.bf16.gmra.mxu0 %vm966_vm0, %v1629_v43  ;;  %v1709_v43 = vor.u32 %v2101_v34, %v1708_v33 }
  0x8b   : > { %1122 = vmatmul.bf16.gmra.mxu1 %v1637_v52  ;;  %1211 = vmatmul.bf16.gmra.mxu2 %v1641_v53  ;;  %v2102_v53 = vld [vmem:[%s2285_s5 + $0xf4] sm:$0xf] }
  0x8c   : > { %1300 = vmatmul.bf16.gmra.mxu3 %v1645_v54  ;;  %v1714_v54 = vld [vmem:[%s2285_s5 + $0x104] sm:$0xf0] }
  0x8d   : > { %2056 = vmatmul.msk.bf16.gmra.mxu0 %vm966_vm0, %v1649_v55  ;;  %v1720_v55 = vld [vmem:[%s2285_s5 + $0xf8] sm:$0xf] }
  0x9b   : > { %1127 = vmatmul.bf16.gmra.mxu1 %v1657_v0  ;;  %1216 = vmatmul.bf16.gmra.mxu2 %v1661_v1  ;;  %v1717_v0 = vor.u32 %v2102_v53, %v1714_v54  ;;  %v1721_v1 = vor.u32 %v2105_v56, %v1720_v55  ;;  %v2112_v56 = vld [vmem:[%s2285_s5 + $0x144] sm:$0xf] }
  0x9c   : > { %1305 = vmatmul.bf16.gmra.mxu3 %v1665_v2 }
  0x9d   : > { %2057 = vmatmul.msk.bf16.gmra.mxu0 %vm966_vm0, %v1669_v3 }
  0xa8   : > { %v1044_v15 = vpop.f32.mrf.mxu1 }
  0xa9   : > { %v2456_v18 = vadd.f32 %v2445_v4, %v1044_v15 }
  0xaa   : > { %v2458_v19 = vpop.f32.mrf.mxu0 }
  0xab   : > { %1132 = vmatmul.bf16.gmra.mxu1 %v1677_v13  ;;  %1221 = vmatmul.bf16.gmra.mxu2 %v1681_v14 }
  0xac   : > { %1310 = vmatmul.bf16.gmra.mxu3 %v1685_v16  ;;  %v2107_v16 = vld [vmem:[%s2285_s5 + $0x11c] sm:$0xf] }
  0xad   : > { %2058 = vmatmul.msk.bf16.gmra.mxu0 %vm966_vm0, %v1689_v17  ;;  %v1734_v17 = vld [vmem:[%s2285_s5 + $0x12c] sm:$0xf0] }
  0xae   : > { %v1064_v20 = vpop.f32.mrf.mxu2  ;;  %v1737_v33 = vor.u32 %v2107_v16, %v1734_v17 }
  0xaf   : > { %v2462_v21 = vadd.f32 %v2445_v4, %v1064_v20  ;;  %v1084_v22 = vpop.f32.mrf.mxu3  ;;  %v1740_v20 = vld [vmem:[%s2285_s5 + $0x120] sm:$0xf] }
  0xb0   : > { %v2465_v23 = vadd.f32 %v2445_v4, %v1084_v22  ;;  %v1046_v24 = vpop.f32.mrf.mxu1  ;;  %v2110_v22 = vld [vmem:[%s2285_s5 + $0x130] sm:$0xf0] }
  0xb1   : > { %v2468_v25 = vadd.f32 %v2445_v4, %v1046_v24  ;;  %v2108_v24 = vld [vmem:[%s2285_s5 + $0x124] sm:$0xf]  ;;  %v1741_v34 = vor.u32 %v2110_v22, %v1740_v20  ;;  %v1025_v22 = vadd.f32 %v2445_v4, %v2458_v19 }
  0xb2   : > { %v2470_v26 = vpop.f32.mrf.mxu0 }
  0xb6   : > { %v1066_v35 = vpop.f32.mrf.mxu2 }
  0xb7   : > { %v2481_v36 = vadd.f32 %v2445_v4, %v1066_v35  ;;  %v1086_v37 = vpop.f32.mrf.mxu3 }
  0xb8   : > { %v2484_v40 = vadd.f32 %v2445_v4, %v1086_v37  ;;  %v1049_v41 = vpop.f32.mrf.mxu1 }
  0xb9   : > { %v2487_v44 = vadd.f32 %v2445_v4, %v1049_v41 }
  0xba   : > { %v2489_v45 = vpop.f32.mrf.mxu0 }
  0xbb   : > { %1137 = vmatmul.bf16.gmra.mxu1 %v1697_v38  ;;  %1226 = vmatmul.bf16.gmra.mxu2 %v1701_v39  ;;  %v1745_v38 = vor.u32 %v2108_v24, %v1742_v27  ;;  %v1749_v39 = vor.u32 %v2111_v29, %v1748_v28 }
  0xbc   : > { %1315 = vmatmul.bf16.gmra.mxu3 %v1705_v42 }
  0xbd   : > { %2059 = vmatmul.msk.bf16.gmra.mxu0 %vm966_vm0, %v1709_v43 }
  0xbe   : > { %v1069_v46 = vpop.f32.mrf.mxu2 }
  0xbf   : > { %v2493_v47 = vadd.f32 %v2445_v4, %v1069_v46  ;;  %v1089_v48 = vpop.f32.mrf.mxu3 }
  0xc0   : > { %v2496_v49 = vadd.f32 %v2445_v4, %v1089_v48  ;;  %v1051_v50 = vpop.f32.mrf.mxu1 }
  0xc1   : > { %v2499_v51 = vadd.f32 %v2445_v4, %v1051_v50 }
  0xc2   : > { %v2501_v52 = vpop.f32.mrf.mxu0 }
  0xc6   : > { %v1071_v61 = vpop.f32.mrf.mxu2 }
  0xc7   : > { %v2512_v62 = vadd.f32 %v2445_v4, %v1071_v61  ;;  %v1091_v63 = vpop.f32.mrf.mxu3  ;;  %v1762_v61 = vld [vmem:[%s2285_s5 + $0x15c] sm:$0xf0] }
  0xc8   : > { %v2515_v2 = vadd.f32 %v2445_v4, %v1091_v63  ;;  %v1054_v3 = vpop.f32.mrf.mxu1  ;;  %v1768_v63 = vld [vmem:[%s2285_s5 + $0x150] sm:$0xf]  ;;  %v1765_v16 = vor.u32 %v2113_v60, %v1762_v61 }
  0xc9   : > { %v2518_v7 = vadd.f32 %v2445_v4, %v1054_v3 }
  0xca   : > { %v2520_v8 = vpop.f32.mrf.mxu0 }
  0xcb   : > { %1142 = vmatmul.bf16.gmra.mxu1 %v1717_v0  ;;  %1231 = vmatmul.bf16.gmra.mxu2 %v1721_v1  ;;  %v2116_v0 = vld [vmem:[%s2285_s5 + $0x160] sm:$0xf0] }
  0xcc   : > { %1320 = vmatmul.bf16.gmra.mxu3 %v1725_v5  ;;  %v1769_v17 = vor.u32 %v2116_v0, %v1768_v63 }
  0xcd   : > { %2060 = vmatmul.msk.bf16.gmra.mxu0 %vm966_vm0, %v1729_v6  ;;  %v1757_v6 = vor.u32 %v2112_v56, %v1754_v57  ;;  %v1782_v57 = vld [vmem:[%s2285_s5 + $0x184] sm:$0xf0] }
  0xce   : > { %v1074_v9 = vpop.f32.mrf.mxu2 }
  0xcf   : > { %v2524_v10 = vadd.f32 %v2445_v4, %v1074_v9  ;;  %v1094_v11 = vpop.f32.mrf.mxu3  ;;  %v1761_v9 = vor.u32 %v2115_v59, %v1760_v58  ;;  %v1788_v58 = vld [vmem:[%s2285_s5 + $0x178] sm:$0xf]  ;;  %v2121_v59 = vld [vmem:[%s2285_s5 + $0x188] sm:$0xf0] }
  0xd0   : > { %v2527_v12 = vadd.f32 %v2445_v4, %v1094_v11  ;;  %v1056_v13 = vpop.f32.mrf.mxu1 }
  0xd1   : > { %v2530_v14 = vadd.f32 %v2445_v4, %v1056_v13 }
  0xd2   : > { %v2532_v15 = vpop.f32.mrf.mxu0 }
  0xd6   : > { %v1076_v30 = vpop.f32.mrf.mxu2 }
  0xd7   : > { %v2543_v31 = vadd.f32 %v2445_v4, %v1076_v30  ;;  %v1096_v32 = vpop.f32.mrf.mxu3 }
  0xd8   : > { %v2546_v35 = vadd.f32 %v2445_v4, %v1096_v32  ;;  %v1059_v37 = vpop.f32.mrf.mxu1 }
  0xd9   : > { %v2549_v41 = vadd.f32 %v2445_v4, %v1059_v37  ;;  %v2117_v37 = vld [vmem:[%s2285_s5 + $0x16c] sm:$0xf] }
  0xda   : > { %v2551_v42 = vpop.f32.mrf.mxu0 }
  0xdb   : > { %1147 = vmatmul.bf16.gmra.mxu1 %v1737_v33  ;;  %1236 = vmatmul.bf16.gmra.mxu2 %v1741_v34  ;;  %v1027_v33 = vadd.f32 %v2445_v4, %v2470_v26 }
  0xdc   : > { %1325 = vmatmul.bf16.gmra.mxu3 %v1745_v38  ;;  %v1774_v38 = vld [vmem:[%s2285_s5 + $0x17c] sm:$0xf0] }
  0xdd   : > { %2061 = vmatmul.msk.bf16.gmra.mxu0 %vm966_vm0, %v1749_v39  ;;  %v1780_v39 = vld [vmem:[%s2285_s5 + $0x170] sm:$0xf]  ;;  %v1777_v63 = vor.u32 %v2117_v37, %v1774_v38  ;;  %v1800_v37 = vld [vmem:[%s2285_s5 + $0x198] sm:$0xf]  ;;  %v2125_v38 = vld [vmem:[%s2285_s5 + $0x1a8] sm:$0xf0] }
  0xde   : > { %v1079_v43 = vpop.f32.mrf.mxu2 }
  0xdf   : > { %v2555_v46 = vadd.f32 %v2445_v4, %v1079_v43  ;;  %v1099_v48 = vpop.f32.mrf.mxu3  ;;  %v2120_v43 = vld [vmem:[%s2285_s5 + $0x180] sm:$0xf0] }
  0xe0   : > { %v2558_v50 = vadd.f32 %v2445_v4, %v1099_v48  ;;  %v1061_v53 = vpop.f32.mrf.mxu1  ;;  %v2118_v48 = vld [vmem:[%s2285_s5 + $0x174] sm:$0xf]  ;;  %v1781_v0 = vor.u32 %v2120_v43, %v1780_v39  ;;  %v2123_v39 = vld [vmem:[%s2285_s5 + $0x19c] sm:$0xf] }
  0xe1   : > { %v2561_v54 = vadd.f32 %v2445_v4, %v1061_v53 }
  0xe2   : > { %v2563_v55 = vpop.f32.mrf.mxu0 }
  0xe6   : > { %v1081_v1 = vpop.f32.mrf.mxu2 }
  0xe7   : > { %v2574_v3 = vadd.f32 %v2445_v4, %v1081_v1  ;;  %v1101_v5 = vpop.f32.mrf.mxu3 }
  0xe8   : > { %v2577_v11 = vadd.f32 %v2445_v4, %v1101_v5  ;;  %v1113_v13 = vpop.f32.mrf.mxu1  ;;  %v1785_v5 = vor.u32 %v2118_v48, %v1782_v57  ;;  %v2126_v57 = vld [vmem:[%s2285_s5 + $0x1b0] sm:$0xf0] }
  0xe9   : > { %v1114_v24 = vadd.f32 %v1113_v13, %v1025_v22 }
  0xea   : > { %v1380_v20 = vpop.f32.mrf.mxu0 }
  0xeb   : > { %1152 = vmatmul.bf16.gmra.mxu1 %v1757_v6  ;;  %1241 = vmatmul.bf16.gmra.mxu2 %v1761_v9  ;;  %v1789_v6 = vor.u32 %v2121_v59, %v1788_v58 }
  0xec   : > { %1330 = vmatmul.bf16.gmra.mxu3 %v1765_v16  ;;  %v1030_v16 = vadd.f32 %v2445_v4, %v2489_v45 }
  0xed   : > { %2062 = vmatmul.msk.bf16.gmra.mxu0 %vm966_vm0, %v1769_v17 }
  0xee   : > { %v1202_v27 = vpop.f32.mrf.mxu2 }
  0xef   : > { %v1203_v28 = vadd.f32 %v1202_v27, %v1114_v24  ;;  %v1291_v29 = vpop.f32.mrf.mxu3 }
  0xf0   : > { %v1115_v30 = vpop.f32.mrf.mxu1 }
  0xf1   : > { %v1292_v19 = vadd.f32 %v1291_v29, %v1203_v28  ;;  %v1116_v56 = vadd.f32 %v1115_v30, %v1027_v33  ;;  %v2122_v33 = vld [vmem:[%s2285_s5 + $0x194] sm:$0xf] }
  0xf2   : > { %v1382_v32 = vpop.f32.mrf.mxu0 }
  0xf3   : > { %v1381_v34 = vadd.f32 %v1380_v20, %v1292_v19  ;;  %v1032_v19 = vadd.f32 %v2445_v4, %v2501_v52 }
  0xf5   : > { %v1460_v53 = vpack.c.bf16 %v1381_v34, %v1381_v34  ;;  %v1794_v34 = vld [vmem:[%s2285_s5 + $0x1a4] sm:$0xf0] }
  0xf6   : > { %v1204_v60 = vpop.f32.mrf.mxu2 }
  0xf7   : > { %1493 = vst.msk [vmem:[%s2590_s23] sm:$0xf] %vm1492_vm1, %v1460_v53  ;;  %v1205_v26 = vadd.f32 %v1204_v60, %v1116_v56  ;;  %v1293_v61 = vpop.f32.mrf.mxu3  ;;  %v1802_v53 = vld [vmem:[%s2285_s5 + $0x1ac] sm:$0xf0]  ;;  %v1808_v56 = vld [vmem:[%s2285_s5 + $0x1a0] sm:$0xf] }
  0xf8   : > { %v1118_v1 = vpop.f32.mrf.mxu1 }
  0xf9   : > { %v1294_v9 = vadd.f32 %v1293_v61, %v1205_v26  ;;  %v1119_v22 = vadd.f32 %v1118_v1, %v1030_v16  ;;  %v1797_v26 = vor.u32 %v2122_v33, %v1794_v34  ;;  %v1801_v61 = vor.u32 %v2125_v38, %v1800_v37  ;;  %v2128_v33 = vld [vmem:[%s2285_s5 + $0x1c4] sm:$0xf]  ;;  %v1822_v38 = vld [vmem:[%s2285_s5 + $0x1d4] sm:$0xf0] }
  0xfa   : > { %v1385_v13 = vpop.f32.mrf.mxu0 }
  0xfb   : > { %v1383_v17 = vadd.f32 %v1382_v32, %v1294_v9  ;;  %1157 = vmatmul.bf16.gmra.mxu1 %v1777_v63  ;;  %1246 = vmatmul.bf16.gmra.mxu2 %v1781_v0  ;;  %v1805_v63 = vor.u32 %v2123_v39, %v1802_v53  ;;  %v1809_v0 = vor.u32 %v2126_v57, %v1808_v56  ;;  %v1828_v39 = vld [vmem:[%s2285_s5 + $0x1c8] sm:$0xf] }
  0xfc   : > { %1335 = vmatmul.bf16.gmra.mxu3 %v1785_v5 }
  0xfd   : > { %2063 = vmatmul.msk.bf16.gmra.mxu0 %vm966_vm0, %v1789_v6  ;;  %v1461_v20 = vpack.c.bf16 %v1383_v17, %v1383_v17  ;;  %v1035_v6 = vadd.f32 %v2445_v4, %v2520_v8 }
  0xfe   : > { %v1207_v24 = vpop.f32.mrf.mxu2 }
  0xff   : > { %1494 = vst.msk [vmem:[%s2590_s23 + $0x4] sm:$0xf] %vm1492_vm1, %v1461_v20  ;;  %v1208_v27 = vadd.f32 %v1207_v24, %v1119_v22  ;;  %v1296_v45 = vpop.f32.mrf.mxu3 }
 0x100   : > { %v1120_v28 = vpop.f32.mrf.mxu1 }
 0x101   : > { %v1297_v29 = vadd.f32 %v1296_v45, %v1208_v27  ;;  %v1121_v48 = vadd.f32 %v1120_v28, %v1032_v19  ;;  %v1037_v45 = vadd.f32 %v2445_v4, %v2532_v15  ;;  %v1820_v19 = vld [vmem:[%s2285_s5 + $0x1c0] sm:$0xf] }
 0x102   : > { %v1387_v30 = vpop.f32.mrf.mxu0 }
 0x103   : > { %v1386_v32 = vadd.f32 %v1385_v13, %v1297_v29  ;;  %v2127_v29 = vld [vmem:[%s2285_s5 + $0x1bc] sm:$0xf] }
 0x105   : > { %v1462_v43 = vpack.c.bf16 %v1386_v32, %v1386_v32  ;;  %v2130_v32 = vld [vmem:[%s2285_s5 + $0x1d0] sm:$0xf0] }
 0x106   : > { %v1209_v58 = vpop.f32.mrf.mxu2 }
 0x107   : > { %1495 = vst.msk [vmem:[%s2590_s23 + $0x8] sm:$0xf] %vm1492_vm1, %v1462_v43  ;;  %v1210_v59 = vadd.f32 %v1209_v58, %v1121_v48  ;;  %v1298_v60 = vpop.f32.mrf.mxu3  ;;  %v2131_v43 = vld [vmem:[%s2285_s5 + $0x1d8] sm:$0xf0]  ;;  %v1821_v58 = vor.u32 %v2130_v32, %v1820_v19  ;;  %v1848_v19 = vld [vmem:[%s2285_s5 + $0x1f0] sm:$0xf] }
 0x108   : > { %v1123_v52 = vpop.f32.mrf.mxu1  ;;  %v2136_v32 = vld [vmem:[%s2285_s5 + $0x200] sm:$0xf0] }
 0x109   : > { %v1299_v1 = vadd.f32 %v1298_v60, %v1210_v59  ;;  %v1124_v16 = vadd.f32 %v1123_v52, %v1035_v6  ;;  %v1825_v59 = vor.u32 %v2128_v33, %v1822_v38  ;;  %v1829_v60 = vor.u32 %v2131_v43, %v1828_v39 }
 0x10a   : > { %v1390_v5 = vpop.f32.mrf.mxu0  ;;  %v1040_v52 = vadd.f32 %v2445_v4, %v2551_v42  ;;  %v1849_v43 = vor.u32 %v2136_v32, %v1848_v19 }
 0x10b   : > { %v1388_v9 = vadd.f32 %v1387_v30, %v1299_v1  ;;  %1162 = vmatmul.bf16.gmra.mxu1 %v1797_v26  ;;  %1251 = vmatmul.bf16.gmra.mxu2 %v1801_v61  ;;  %v1814_v30 = vld [vmem:[%s2285_s5 + $0x1cc] sm:$0xf0] }
 0x10c   : > { %1340 = vmatmul.bf16.gmra.mxu3 %v1805_v63  ;;  %v1817_v57 = vor.u32 %v2127_v29, %v1814_v30  ;;  %v1842_v30 = vld [vmem:[%s2285_s5 + $0x1fc] sm:$0xf0] }
 0x10d   : > { %2064 = vmatmul.msk.bf16.gmra.mxu0 %vm966_vm0, %v1809_v0  ;;  %v1463_v13 = vpack.c.bf16 %v1388_v9, %v1388_v9 }
 0x10e   : > { %v1212_v17 = vpop.f32.mrf.mxu2 }
 0x10f   : > { %1496 = vst.msk [vmem:[%s2590_s23 + $0xc] sm:$0xf] %vm1492_vm1, %v1463_v13  ;;  %v1213_v20 = vadd.f32 %v1212_v17, %v1124_v16  ;;  %v1301_v8 = vpop.f32.mrf.mxu3  ;;  %v1042_v17 = vadd.f32 %v2445_v4, %v2563_v55 }
 0x110   : > { %v1125_v22 = vpop.f32.mrf.mxu1 }
 0x111   : > { %v1302_v24 = vadd.f32 %v1301_v8, %v1213_v20  ;;  %v1126_v37 = vadd.f32 %v1125_v22, %v1037_v45  ;;  %v2132_v8 = vld [vmem:[%s2285_s5 + $0x1e4] sm:$0xf]  ;;  %v1834_v22 = vld [vmem:[%s2285_s5 + $0x1f4] sm:$0xf0]  ;;  %v2133_v45 = vld [vmem:[%s2285_s5 + $0x1ec] sm:$0xf] }
 0x112   : > { %v1392_v27 = vpop.f32.mrf.mxu0  ;;  %v1837_v38 = vor.u32 %v2132_v8, %v1834_v22  ;;  %v1845_v55 = vor.u32 %v2133_v45, %v1842_v30 }
 0x113   : > { %v1391_v28 = vadd.f32 %v1390_v5, %v1302_v24  ;;  %v1840_v24 = vld [vmem:[%s2285_s5 + $0x1e8] sm:$0xf] }
 0x115   : > { %v1464_v34 = vpack.c.bf16 %v1391_v28, %v1391_v28 }
 0x116   : > { %v1214_v48 = vpop.f32.mrf.mxu2 }
 0x117   : > { %1497 = vst.msk [vmem:[%s2590_s23 + $0x10] sm:$0xf] %vm1492_vm1, %v1464_v34  ;;  %v1215_v53 = vadd.f32 %v1214_v48, %v1126_v37  ;;  %v1303_v56 = vpop.f32.mrf.mxu3 }
 0x118   : > { %v1128_v15 = vpop.f32.mrf.mxu1 }
 0x119   : > { %v1304_v26 = vadd.f32 %v1303_v56, %v1215_v53  ;;  %v1129_v1 = vadd.f32 %v1128_v15, %v1040_v52 }
 0x11a   : > { %v1395_v61 = vpop.f32.mrf.mxu0 }
 0x11b   : > { %v1393_v63 = vadd.f32 %v1392_v27, %v1304_v26  ;;  %1167 = vmatmul.bf16.gmra.mxu1 %v1817_v57  ;;  %1256 = vmatmul.bf16.gmra.mxu2 %v1821_v58  ;;  %v2135_v27 = vld [vmem:[%s2285_s5 + $0x1f8] sm:$0xf0] }
 0x11c   : > { %1345 = vmatmul.bf16.gmra.mxu3 %v1825_v59  ;;  %v1841_v39 = vor.u32 %v2135_v27, %v1840_v24 }
 0x11d   : > { %2065 = vmatmul.msk.bf16.gmra.mxu0 %vm966_vm0, %v1829_v60  ;;  %v1465_v0 = vpack.c.bf16 %v1393_v63, %v1393_v63 }
 0x11e   : > { %v1217_v5 = vpop.f32.mrf.mxu2 }
 0x11f   : > { %1498 = vst.msk [vmem:[%s2590_s23 + $0x14] sm:$0xf] %vm1492_vm1, %v1465_v0  ;;  %v1218_v6 = vadd.f32 %v1217_v5, %v1129_v1  ;;  %v1306_v42 = vpop.f32.mrf.mxu3  ;;  %v2137_v0 = vld [vmem:[%s2285_s5 + $0x20c] sm:$0xf]  ;;  %v1854_v1 = vld [vmem:[%s2285_s5 + $0x21c] sm:$0xf0] }
 0x120   : > { %v1130_v9 = vpop.f32.mrf.mxu1  ;;  %v1860_v5 = vld [vmem:[%s2285_s5 + $0x210] sm:$0xf]  ;;  %v1857_v24 = vor.u32 %v2137_v0, %v1854_v1 }
 0x121   : > { %v1307_v13 = vadd.f32 %v1306_v42, %v1218_v6  ;;  %v1131_v29 = vadd.f32 %v1130_v9, %v1042_v17  ;;  %v2140_v6 = vld [vmem:[%s2285_s5 + $0x220] sm:$0xf0]  ;;  %v2138_v42 = vld [vmem:[%s2285_s5 + $0x214] sm:$0xf]  ;;  %v2141_v17 = vld [vmem:[%s2285_s5 + $0x228] sm:$0xf0] }
 0x122   : > { %v1397_v16 = vpop.f32.mrf.mxu0  ;;  %v1861_v27 = vor.u32 %v2140_v6, %v1860_v5 }
 0x123   : > { %v1396_v20 = vadd.f32 %v1395_v61, %v1307_v13  ;;  %v1862_v13 = vld [vmem:[%s2285_s5 + $0x224] sm:$0xf0] }
 0x125   : > { %v1466_v28 = vpack.c.bf16 %v1396_v20, %v1396_v20 }
 0x126   : > { %v1219_v33 = vpop.f32.mrf.mxu2 }
 0x127   : > { %1499 = vst.msk [vmem:[%s2590_s23 + $0x18] sm:$0xf] %vm1492_vm1, %v1466_v28  ;;  %v1220_v34 = vadd.f32 %v1219_v33, %v1131_v29  ;;  %v1308_v37 = vpop.f32.mrf.mxu3  ;;  %v1865_v28 = vor.u32 %v2138_v42, %v1862_v13 }
 0x128   : > { %v1133_v4 = vpop.f32.mrf.mxu1 }
 0x129   : > { %v1309_v48 = vadd.f32 %v1308_v37, %v1220_v34  ;;  %v1134_v58 = vadd.f32 %v1133_v4, %v2456_v18 }
 0x12a   : > { %v1400_v53 = vpop.f32.mrf.mxu0 }
 0x12b   : > { %v1398_v56 = vadd.f32 %v1397_v16, %v1309_v48  ;;  %1172 = vmatmul.bf16.gmra.mxu1 %v1837_v38  ;;  %1261 = vmatmul.bf16.gmra.mxu2 %v1841_v39  ;;  %v1868_v16 = vld [vmem:[%s2285_s5 + $0x218] sm:$0xf]  ;;  %v2142_v48 = vld [vmem:[%s2285_s5 + $0x234] sm:$0xf] }
 0x12c   : > { %1350 = vmatmul.bf16.gmra.mxu3 %v1845_v55  ;;  %v1869_v29 = vor.u32 %v2141_v17, %v1868_v16 }
 0x12d   : > { %2066 = vmatmul.msk.bf16.gmra.mxu0 %vm966_vm0, %v1849_v43  ;;  %v1467_v57 = vpack.c.bf16 %v1398_v56, %v1398_v56  ;;  %v1880_v56 = vld [vmem:[%s2285_s5 + $0x238] sm:$0xf] }
 0x12e   : > { %v1222_v15 = vpop.f32.mrf.mxu2 }
 0x12f   : > { %1500 = vst.msk [vmem:[%s2590_s23 + $0x1c] sm:$0xf] %vm1492_vm1, %v1467_v57  ;;  %v1223_v59 = vadd.f32 %v1222_v15, %v1134_v58  ;;  %v1311_v60 = vpop.f32.mrf.mxu3  ;;  %v2145_v57 = vld [vmem:[%s2285_s5 + $0x248] sm:$0xf0]  ;;  %v2143_v58 = vld [vmem:[%s2285_s5 + $0x23c] sm:$0xf] }
 0x130   : > { %v1135_v26 = vpop.f32.mrf.mxu1  ;;  %v1881_v1 = vor.u32 %v2145_v57, %v1880_v56 }
 0x131   : > { %v1312_v61 = vadd.f32 %v1311_v60, %v1223_v59  ;;  %v1136_v18 = vadd.f32 %v1135_v26, %v2468_v25  ;;  %v1882_v59 = vld [vmem:[%s2285_s5 + $0x24c] sm:$0xf0]  ;;  %v1888_v60 = vld [vmem:[%s2285_s5 + $0x240] sm:$0xf]  ;;  %v2146_v26 = vld [vmem:[%s2285_s5 + $0x250] sm:$0xf0] }
 0x132   : > { %v1402_v52 = vpop.f32.mrf.mxu0  ;;  %v1885_v6 = vor.u32 %v2143_v58, %v1882_v59  ;;  %v1889_v42 = vor.u32 %v2146_v26, %v1888_v60 }
 0x133   : > { %v1401_v63 = vadd.f32 %v1400_v53, %v1312_v61  ;;  %v1874_v53 = vld [vmem:[%s2285_s5 + $0x244] sm:$0xf0] }
 0x134   : > { %v1877_v0 = vor.u32 %v2142_v48, %v1874_v53 }
 0x135   : > { %v1468_v9 = vpack.c.bf16 %v1401_v63, %v1401_v63 }
 0x136   : > { %v1224_v20 = vpop.f32.mrf.mxu2 }
 0x137   : > { %1501 = vst.msk [vmem:[%s2590_s23 + $0x20] sm:$0xf] %vm1492_vm1, %v1468_v9  ;;  %v1225_v8 = vadd.f32 %v1224_v20, %v1136_v18  ;;  %v1313_v22 = vpop.f32.mrf.mxu3 }
 0x138   : > { %v1138_v45 = vpop.f32.mrf.mxu1 }
 0x139   : > { %v1314_v30 = vadd.f32 %v1313_v22, %v1225_v8  ;;  %v1139_v33 = vadd.f32 %v1138_v45, %v2487_v44 }
 0x13a   : > { %v1405_v19 = vpop.f32.mrf.mxu0 }
 0x13b   : > { %v1403_v32 = vadd.f32 %v1402_v52, %v1314_v30  ;;  %1177 = vmatmul.bf16.gmra.mxu1 %v1857_v24  ;;  %1266 = vmatmul.bf16.gmra.mxu2 %v1861_v27  ;;  %v1900_v30 = vld [vmem:[%s2285_s5 + $0x260] sm:$0xf] }
 0x13c   : > { %1355 = vmatmul.bf16.gmra.mxu3 %v1865_v28  ;;  %v2147_v28 = vld [vmem:[%s2285_s5 + $0x25c] sm:$0xf] }
 0x13d   : > { %2067 = vmatmul.msk.bf16.gmra.mxu0 %vm966_vm0, %v1869_v29  ;;  %v1469_v25 = vpack.c.bf16 %v1403_v32, %v1403_v32  ;;  %v1894_v29 = vld [vmem:[%s2285_s5 + $0x26c] sm:$0xf0]  ;;  %v2148_v32 = vld [vmem:[%s2285_s5 + $0x264] sm:$0xf] }
 0x13e   : > { %v1227_v34 = vpop.f32.mrf.mxu2 }
 0x13f   : > { %1502 = vst.msk [vmem:[%s2590_s23 + $0x24] sm:$0xf] %vm1492_vm1, %v1469_v25  ;;  %v1228_v37 = vadd.f32 %v1227_v34, %v1139_v33  ;;  %v1316_v38 = vpop.f32.mrf.mxu3  ;;  %v1902_v33 = vld [vmem:[%s2285_s5 + $0x274] sm:$0xf0]  ;;  %v1908_v34 = vld [vmem:[%s2285_s5 + $0x268] sm:$0xf] }
 0x140   : > { %v1140_v39 = vpop.f32.mrf.mxu1  ;;  %v1905_v53 = vor.u32 %v2148_v32, %v1902_v33 }
 0x141   : > { %v1317_v4 = vadd.f32 %v1316_v38, %v1228_v37  ;;  %v1141_v44 = vadd.f32 %v1140_v39, %v2499_v51  ;;  %v2151_v37 = vld [vmem:[%s2285_s5 + $0x278] sm:$0xf0] }
 0x142   : > { %v1407_v55 = vpop.f32.mrf.mxu0  ;;  %v1909_v56 = vor.u32 %v2151_v37, %v1908_v34 }
 0x143   : > { %v1406_v43 = vadd.f32 %v1405_v19, %v1317_v4  ;;  %v2150_v19 = vld [vmem:[%s2285_s5 + $0x270] sm:$0xf0] }
 0x145   : > { %v1470_v15 = vpack.c.bf16 %v1406_v43, %v1406_v43  ;;  %v1901_v43 = vor.u32 %v2150_v19, %v1900_v30 }
 0x146   : > { %v1229_v61 = vpop.f32.mrf.mxu2 }
 0x147   : > { %1503 = vst.msk [vmem:[%s2590_s23 + $0x28] sm:$0xf] %vm1492_vm1, %v1470_v15  ;;  %v1230_v52 = vadd.f32 %v1229_v61, %v1141_v44  ;;  %v1318_v63 = vpop.f32.mrf.mxu3 }
 0x148   : > { %v1143_v5 = vpop.f32.mrf.mxu1 }
 0x149   : > { %v1319_v9 = vadd.f32 %v1318_v63, %v1230_v52  ;;  %v1144_v16 = vadd.f32 %v1143_v5, %v2518_v7 }
 0x14a   : > { %v1410_v18 = vpop.f32.mrf.mxu0 }
 0x14b   : > { %v1408_v13 = vadd.f32 %v1407_v55, %v1319_v9  ;;  %1182 = vmatmul.bf16.gmra.mxu1 %v1877_v0  ;;  %1271 = vmatmul.bf16.gmra.mxu2 %v1881_v1  ;;  %v1897_v55 = vor.u32 %v2147_v28, %v1894_v29 }
 0x14c   : > { %1360 = vmatmul.bf16.gmra.mxu3 %v1885_v6 }
 0x14d   : > { %2068 = vmatmul.msk.bf16.gmra.mxu0 %vm966_vm0, %v1889_v42  ;;  %v1471_v51 = vpack.c.bf16 %v1408_v13, %v1408_v13 }
 0x14e   : > { %v1232_v17 = vpop.f32.mrf.mxu2 }
 0x14f   : > { %1504 = vst.msk [vmem:[%s2590_s23 + $0x2c] sm:$0xf] %vm1492_vm1, %v1471_v51  ;;  %v1233_v20 = vadd.f32 %v1232_v17, %v1144_v16  ;;  %v1321_v8 = vpop.f32.mrf.mxu3 }
 0x150   : > { %v1145_v22 = vpop.f32.mrf.mxu1 }
 0x151   : > { %v1322_v24 = vadd.f32 %v1321_v8, %v1233_v20  ;;  %v1146_v7 = vadd.f32 %v1145_v22, %v2530_v14 }
 0x152   : > { %v1412_v27 = vpop.f32.mrf.mxu0 }
 0x153   : > { %v1411_v45 = vadd.f32 %v1410_v18, %v1322_v24 }
 0x155   : > { %v1472_v25 = vpack.c.bf16 %v1411_v45, %v1411_v45 }
 0x156   : > { %v1234_v38 = vpop.f32.mrf.mxu2 }
 0x157   : > { %1505 = vst.msk [vmem:[%s2590_s23 + $0x30] sm:$0xf] %vm1492_vm1, %v1472_v25  ;;  %v1235_v39 = vadd.f32 %v1234_v38, %v1146_v7  ;;  %v1323_v4 = vpop.f32.mrf.mxu3 }
 0x158   : > { %v1148_v48 = vpop.f32.mrf.mxu1 }
 0x159   : > { %v1324_v57 = vadd.f32 %v1323_v4, %v1235_v39  ;;  %v1149_v44 = vadd.f32 %v1148_v48, %v2549_v41 }
 0x15a   : > { %v1415_v58 = vpop.f32.mrf.mxu0 }
 0x15b   : > { %v1413_v15 = vadd.f32 %v1412_v27, %v1324_v57  ;;  %1187 = vmatmul.bf16.gmra.mxu1 %v1897_v55  ;;  %1276 = vmatmul.bf16.gmra.mxu2 %v1901_v43 }
 0x15c   : > { %1365 = vmatmul.bf16.gmra.mxu3 %v1905_v53 }
 0x15d   : > { %2069 = vmatmul.msk.bf16.gmra.mxu0 %vm966_vm0, %v1909_v56  ;;  %v1473_v14 = vpack.c.bf16 %v1413_v15, %v1413_v15 }
 0x15e   : > { %v1237_v59 = vpop.f32.mrf.mxu2 }
 0x15f   : > { %1506 = vst.msk [vmem:[%s2590_s23 + $0x34] sm:$0xf] %vm1492_vm1, %v1473_v14  ;;  %v1238_v60 = vadd.f32 %v1237_v59, %v1149_v44  ;;  %v1326_v26 = vpop.f32.mrf.mxu3 }
 0x160   : > { %v1150_v61 = vpop.f32.mrf.mxu1 }
 0x161   : > { %v1327_v52 = vadd.f32 %v1326_v26, %v1238_v60  ;;  %v1151_v5 = vadd.f32 %v1150_v61, %v2561_v54 }
 0x162   : > { %v1417_v63 = vpop.f32.mrf.mxu0 }
 0x163   : > { %v1416_v0 = vadd.f32 %v1415_v58, %v1327_v52 }
 0x165   : > { %v1474_v1 = vpack.c.bf16 %v1416_v0, %v1416_v0 }
 0x166   : > { %v1239_v6 = vpop.f32.mrf.mxu2 }
 0x167   : > { %1507 = vst.msk [vmem:[%s2590_s23 + $0x38] sm:$0xf] %vm1492_vm1, %v1474_v1  ;;  %v1240_v42 = vadd.f32 %v1239_v6, %v1151_v5  ;;  %v1328_v9 = vpop.f32.mrf.mxu3 }
 0x168   : > { %v1153_v18 = vpop.f32.mrf.mxu1 }
 0x169   : > { %v1329_v41 = vadd.f32 %v1328_v9, %v1240_v42  ;;  %v1154_v17 = vadd.f32 %v1153_v18, %v2462_v21 }
 0x16a   : > { %v1420_v13 = vpop.f32.mrf.mxu0 }
 0x16b   : > { %v1418_v51 = vadd.f32 %v1417_v63, %v1329_v41 }
 0x16d   : > { %v1475_v16 = vpack.c.bf16 %v1418_v51, %v1418_v51 }
 0x16e   : > { %v1242_v20 = vpop.f32.mrf.mxu2 }
 0x16f   : > { %1508 = vst.msk [vmem:[%s2590_s23 + $0x3c] sm:$0xf] %vm1492_vm1, %v1475_v16  ;;  %v1243_v8 = vadd.f32 %v1242_v20, %v1154_v17  ;;  %v1331_v22 = vpop.f32.mrf.mxu3 }
 0x170   : > { %v1155_v24 = vpop.f32.mrf.mxu1 }
 0x171   : > { %v1332_v54 = vadd.f32 %v1331_v22, %v1243_v8  ;;  %v1156_v29 = vadd.f32 %v1155_v24, %v2481_v36 }
 0x172   : > { %v1422_v27 = vpop.f32.mrf.mxu0 }
 0x173   : > { %v1421_v45 = vadd.f32 %v1420_v13, %v1332_v54 }
 0x175   : > { %v1476_v28 = vpack.c.bf16 %v1421_v45, %v1421_v45 }
 0x176   : > { %v1244_v30 = vpop.f32.mrf.mxu2 }
 0x177   : > { %1509 = vst.msk [vmem:[%s2590_s23 + $0x40] sm:$0xf] %vm1492_vm1, %v1476_v28  ;;  %v1245_v19 = vadd.f32 %v1244_v30, %v1156_v29  ;;  %v1333_v32 = vpop.f32.mrf.mxu3 }
 0x178   : > { %v1158_v25 = vpop.f32.mrf.mxu1 }
 0x179   : > { %v1334_v21 = vadd.f32 %v1333_v32, %v1245_v19  ;;  %v1159_v37 = vadd.f32 %v1158_v25, %v2493_v47 }
 0x17a   : > { %v1425_v7 = vpop.f32.mrf.mxu0 }
 0x17b   : > { %v1423_v33 = vadd.f32 %v1422_v27, %v1334_v21 }
 0x17d   : > { %v1477_v34 = vpack.c.bf16 %v1423_v33, %v1423_v33 }
 0x17e   : > { %v1247_v38 = vpop.f32.mrf.mxu2 }
 0x17f   : > { %1510 = vst.msk [vmem:[%s2590_s23 + $0x44] sm:$0xf] %vm1492_vm1, %v1477_v34  ;;  %v1248_v39 = vadd.f32 %v1247_v38, %v1159_v37  ;;  %v1336_v4 = vpop.f32.mrf.mxu3 }
 0x180   : > { %v1160_v55 = vpop.f32.mrf.mxu1 }
 0x181   : > { %v1337_v36 = vadd.f32 %v1336_v4, %v1248_v39  ;;  %v1161_v56 = vadd.f32 %v1160_v55, %v2512_v62 }
 0x182   : > { %v1427_v43 = vpop.f32.mrf.mxu0 }
 0x183   : > { %v1426_v48 = vadd.f32 %v1425_v7, %v1337_v36 }
 0x185   : > { %v1478_v53 = vpack.c.bf16 %v1426_v48, %v1426_v48 }
 0x186   : > { %v1249_v57 = vpop.f32.mrf.mxu2 }
 0x187   : > { %1511 = vst.msk [vmem:[%s2590_s23 + $0x48] sm:$0xf] %vm1492_vm1, %v1478_v53  ;;  %v1250_v58 = vadd.f32 %v1249_v57, %v1161_v56  ;;  %v1338_v15 = vpop.f32.mrf.mxu3 }
 0x188   : > { %v1163_v14 = vpop.f32.mrf.mxu1 }
 0x189   : > { %v1339_v47 = vadd.f32 %v1338_v15, %v1250_v58  ;;  %v1164_v26 = vadd.f32 %v1163_v14, %v2524_v10 }
 0x18a   : > { %v1430_v44 = vpop.f32.mrf.mxu0 }
 0x18b   : > { %v1428_v59 = vadd.f32 %v1427_v43, %v1339_v47 }
 0x18d   : > { %v1479_v60 = vpack.c.bf16 %v1428_v59, %v1428_v59 }
 0x18e   : > { %v1252_v61 = vpop.f32.mrf.mxu2 }
 0x18f   : > { %1512 = vst.msk [vmem:[%s2590_s23 + $0x4c] sm:$0xf] %vm1492_vm1, %v1479_v60  ;;  %v1253_v52 = vadd.f32 %v1252_v61, %v1164_v26  ;;  %v1341_v63 = vpop.f32.mrf.mxu3 }
 0x190   : > { %v1165_v0 = vpop.f32.mrf.mxu1 }
 0x191   : > { %v1342_v62 = vadd.f32 %v1341_v63, %v1253_v52  ;;  %v1166_v42 = vadd.f32 %v1165_v0, %v2543_v31 }
 0x192   : > { %v1432_v1 = vpop.f32.mrf.mxu0 }
 0x193   : > { %v1431_v5 = vadd.f32 %v1430_v44, %v1342_v62 }
 0x195   : > { %v1480_v6 = vpack.c.bf16 %v1431_v5, %v1431_v5 }
 0x196   : > { %v1254_v9 = vpop.f32.mrf.mxu2 }
 0x197   : > { %1513 = vst.msk [vmem:[%s2590_s23 + $0x50] sm:$0xf] %vm1492_vm1, %v1480_v6  ;;  %v1255_v18 = vadd.f32 %v1254_v9, %v1166_v42  ;;  %v1343_v41 = vpop.f32.mrf.mxu3 }
 0x198   : > { %v1168_v13 = vpop.f32.mrf.mxu1 }
 0x199   : > { %v1344_v10 = vadd.f32 %v1343_v41, %v1255_v18  ;;  %v1169_v20 = vadd.f32 %v1168_v13, %v2555_v46 }
 0x19a   : > { %v1435_v51 = vpop.f32.mrf.mxu0 }
 0x19b   : > { %v1433_v16 = vadd.f32 %v1432_v1, %v1344_v10 }
 0x19d   : > { %v1481_v17 = vpack.c.bf16 %v1433_v16, %v1433_v16 }
 0x19e   : > { %v1257_v8 = vpop.f32.mrf.mxu2 }
 0x19f   : > { %1514 = vst.msk [vmem:[%s2590_s23 + $0x54] sm:$0xf] %vm1492_vm1, %v1481_v17  ;;  %v1258_v22 = vadd.f32 %v1257_v8, %v1169_v20  ;;  %v1346_v24 = vpop.f32.mrf.mxu3 }
 0x1a0   : > { %v1170_v54 = vpop.f32.mrf.mxu1 }
 0x1a1   : > { %v1347_v31 = vadd.f32 %v1346_v24, %v1258_v22  ;;  %v1171_v29 = vadd.f32 %v1170_v54, %v2574_v3 }
 0x1a2   : > { %v1437_v27 = vpop.f32.mrf.mxu0 }
 0x1a3   : > { %v1436_v45 = vadd.f32 %v1435_v51, %v1347_v31 }
 0x1a5   : > { %v1482_v28 = vpack.c.bf16 %v1436_v45, %v1436_v45 }
 0x1a6   : > { %v1259_v30 = vpop.f32.mrf.mxu2 }
 0x1a7   : > { %1515 = vst.msk [vmem:[%s2590_s23 + $0x58] sm:$0xf] %vm1492_vm1, %v1482_v28  ;;  %v1260_v19 = vadd.f32 %v1259_v30, %v1171_v29  ;;  %v1348_v32 = vpop.f32.mrf.mxu3 }
 0x1a8   : > { %v1173_v25 = vpop.f32.mrf.mxu1 }
 0x1a9   : > { %v1349_v46 = vadd.f32 %v1348_v32, %v1260_v19  ;;  %v1174_v34 = vadd.f32 %v1173_v25, %v2465_v23 }
 0x1aa   : > { %v1440_v21 = vpop.f32.mrf.mxu0 }
 0x1ab   : > { %v1438_v7 = vadd.f32 %v1437_v27, %v1349_v46 }
 0x1ad   : > { %v1483_v33 = vpack.c.bf16 %v1438_v7, %v1438_v7 }
 0x1ae   : > { %v1262_v37 = vpop.f32.mrf.mxu2 }
 0x1af   : > { %1516 = vst.msk [vmem:[%s2590_s23 + $0x5c] sm:$0xf] %vm1492_vm1, %v1483_v33  ;;  %v1263_v38 = vadd.f32 %v1262_v37, %v1174_v34  ;;  %v1351_v39 = vpop.f32.mrf.mxu3 }
 0x1b0   : > { %v1175_v4 = vpop.f32.mrf.mxu1 }
 0x1b1   : > { %v1352_v3 = vadd.f32 %v1351_v39, %v1263_v38  ;;  %v1176_v48 = vadd.f32 %v1175_v4, %v2484_v40 }
 0x1b2   : > { %v1442_v55 = vpop.f32.mrf.mxu0 }
 0x1b3   : > { %v1441_v36 = vadd.f32 %v1440_v21, %v1352_v3 }
 0x1b5   : > { %v1484_v43 = vpack.c.bf16 %v1441_v36, %v1441_v36 }
 0x1b6   : > { %v1264_v53 = vpop.f32.mrf.mxu2 }
 0x1b7   : > { %1517 = vst.msk [vmem:[%s2590_s23 + $0x60] sm:$0xf] %vm1492_vm1, %v1484_v43  ;;  %v1265_v56 = vadd.f32 %v1264_v53, %v1176_v48  ;;  %v1353_v57 = vpop.f32.mrf.mxu3 }
 0x1b8   : > { %v1178_v58 = vpop.f32.mrf.mxu1 }
 0x1b9   : > { %v1354_v23 = vadd.f32 %v1353_v57, %v1265_v56  ;;  %v1179_v44 = vadd.f32 %v1178_v58, %v2496_v49 }
 0x1ba   : > { %v1445_v15 = vpop.f32.mrf.mxu0 }
 0x1bb   : > { %v1443_v14 = vadd.f32 %v1442_v55, %v1354_v23 }
 0x1bd   : > { %v1485_v47 = vpack.c.bf16 %v1443_v14, %v1443_v14 }
 0x1be   : > { %v1267_v59 = vpop.f32.mrf.mxu2 }
 0x1bf   : > { %1518 = vst.msk [vmem:[%s2590_s23 + $0x64] sm:$0xf] %vm1492_vm1, %v1485_v47  ;;  %v1268_v60 = vadd.f32 %v1267_v59, %v1179_v44  ;;  %v1356_v26 = vpop.f32.mrf.mxu3 }
 0x1c0   : > { %v1180_v61 = vpop.f32.mrf.mxu1 }
 0x1c1   : > { %v1357_v40 = vadd.f32 %v1356_v26, %v1268_v60  ;;  %v1181_v62 = vadd.f32 %v1180_v61, %v2515_v2 }
 0x1c2   : > { %v1447_v52 = vpop.f32.mrf.mxu0 }
 0x1c3   : > { %v1446_v63 = vadd.f32 %v1445_v15, %v1357_v40 }
 0x1c5   : > { %v1486_v0 = vpack.c.bf16 %v1446_v63, %v1446_v63 }
 0x1c6   : > { %v1269_v1 = vpop.f32.mrf.mxu2 }
 0x1c7   : > { %1519 = vst.msk [vmem:[%s2590_s23 + $0x68] sm:$0xf] %vm1492_vm1, %v1486_v0  ;;  %v1270_v5 = vadd.f32 %v1269_v1, %v1181_v62  ;;  %v1358_v6 = vpop.f32.mrf.mxu3 }
 0x1c8   : > { %v1183_v42 = vpop.f32.mrf.mxu1 }
 0x1c9   : > { %v1359_v49 = vadd.f32 %v1358_v6, %v1270_v5  ;;  %v1184_v13 = vadd.f32 %v1183_v42, %v2527_v12 }
 0x1ca   : > { %v1450_v18 = vpop.f32.mrf.mxu0 }
 0x1cb   : > { %v1448_v9 = vadd.f32 %v1447_v52, %v1359_v49 }
 0x1cd   : > { %v1487_v41 = vpack.c.bf16 %v1448_v9, %v1448_v9 }
 0x1ce   : > { %v1272_v10 = vpop.f32.mrf.mxu2 }
 0x1cf   : > { %1520 = vst.msk [vmem:[%s2590_s23 + $0x6c] sm:$0xf] %vm1492_vm1, %v1487_v41  ;;  %v1273_v51 = vadd.f32 %v1272_v10, %v1184_v13  ;;  %v1361_v16 = vpop.f32.mrf.mxu3 }
 0x1d0   : > { %v1185_v17 = vpop.f32.mrf.mxu1 }
 0x1d1   : > { %v1362_v2 = vadd.f32 %v1361_v16, %v1273_v51  ;;  %v1186_v22 = vadd.f32 %v1185_v17, %v2546_v35 }
 0x1d2   : > { %v1452_v24 = vpop.f32.mrf.mxu0 }
 0x1d3   : > { %v1451_v20 = vadd.f32 %v1450_v18, %v1362_v2 }
 0x1d5   : > { %v1488_v8 = vpack.c.bf16 %v1451_v20, %v1451_v20 }
 0x1d6   : > { %v1274_v54 = vpop.f32.mrf.mxu2 }
 0x1d7   : > { %1521 = vst.msk [vmem:[%s2590_s23 + $0x70] sm:$0xf] %vm1492_vm1, %v1488_v8  ;;  %v1275_v31 = vadd.f32 %v1274_v54, %v1186_v22  ;;  %v1363_v27 = vpop.f32.mrf.mxu3 }
 0x1d8   : > { %v1188_v45 = vpop.f32.mrf.mxu1 }
 0x1d9   : > { %v1364_v12 = vadd.f32 %v1363_v27, %v1275_v31  ;;  %v1189_v30 = vadd.f32 %v1188_v45, %v2558_v50 }
 0x1da   : > { %v1455_v35 = vpop.f32.mrf.mxu0 }
 0x1db   : > { %v1453_v28 = vadd.f32 %v1452_v24, %v1364_v12 }
 0x1dd   : > { %v1489_v29 = vpack.c.bf16 %v1453_v28, %v1453_v28 }
 0x1de   : > { %v1277_v19 = vpop.f32.mrf.mxu2 }
 0x1df   : > { %1522 = vst.msk [vmem:[%s2590_s23 + $0x74] sm:$0xf] %vm1492_vm1, %v1489_v29  ;;  %v1278_v32 = vadd.f32 %v1277_v19, %v1189_v30  ;;  %v1366_v25 = vpop.f32.mrf.mxu3 }
 0x1e0   : > { %v1190_v21 = vpop.f32.mrf.mxu1 }
 0x1e1   : > { %v1367_v46 = vadd.f32 %v1366_v25, %v1278_v32  ;;  %v1191_v34 = vadd.f32 %v1190_v21, %v2577_v11 }
 0x1e2   : > { %v1457_v50 = vpop.f32.mrf.mxu0 }
 0x1e3   : > { %v1456_v7 = vadd.f32 %v1455_v35, %v1367_v46 }
 0x1e5   : > { %v1490_v33 = vpack.c.bf16 %v1456_v7, %v1456_v7 }
 0x1e6   : > { %v1279_v37 = vpop.f32.mrf.mxu2 }
 0x1e7   : > { %1523 = vst.msk [vmem:[%s2590_s23 + $0x78] sm:$0xf] %vm1492_vm1, %v1490_v33  ;;  %v1280_v38 = vadd.f32 %v1279_v37, %v1191_v34  ;;  %v1368_v39 = vpop.f32.mrf.mxu3 }
 0x1e9   : > { %v1369_v4 = vadd.f32 %v1368_v39, %v1280_v38 }
 0x1eb   : > { %v1458_v3 = vadd.f32 %v1457_v50, %v1369_v4 }
 0x1ed   : > { %v1491_v55 = vpack.c.bf16 %v1458_v3, %v1458_v3 }
 0x1ef   : > { %1524 = vst.msk [vmem:[%s2590_s23 + $0x7c] sm:$0xf] %vm1492_vm1, %v1491_v55 }
 0x1f0 PF: > { %s13_s12 = sadd.s32 1, %s2228_s12  }
 0x1f1   : > { %p10_p4 = scmp.ge.s32.totalorder %s13_s12, 4  }
 0x1f3   :  { %12 = sbr.rel (!%p10_p4) target bundleno = 1 (0x1), region = 62 }

// kernel: dmcs_forward.40
= control target key start
LH: loop header
LB: loop body
LE: loop exit
PB: predicated region body
PF: predicated region fallthrough
CT: control target
= control target key end

     0   :  { %s758_s12 = smov 0   ;;  %s931_s0 = inlined_call_operand.vmem [shape: bf16[512,64], index: 0, kind: input, shape index: {}]   ;;  %s932_s1 = inlined_call_operand.vmem [shape: bf16[64,64], index: 1, kind: input, shape index: {}]   ;;  %s933_s2 = inlined_call_operand.vmem [shape: f32[1,64], index: 2, kind: input, shape index: {}]   ;;  %s934_s3 = inlined_call_operand.vmem [shape: bf16[512,64], index: 3, kind: output, shape index: {}]  }
   0x1 LB: > { %s582_s13 = sadd.s32 4294967295, %s736_s12   ;;  %p586_p0 = scmp.ge.s32.totalorder %s736_s12, 1  ;;  %s736_s12 = sphi %s758_s12, %s13_s12  }
   0x2   : > { %p138_p1 = scmp.lt.s32.totalorder %s736_s12, 3 }
   0x4   : > { %p139_p2 = pnand %p586_p0, %p138_p1 }
   0x5   : > { %s587_s16 = sshll.u32 (!%p139_p2), %s582_s13, 5 }
   0x6   : > { %142 = sbr.rel (%p139_p2) target bundleno = 222 (0xde), region = 32  ;;  %p163_p3 = scmp.lt.s32.totalorder (!%p139_p2), %s587_s16, 63 }
   0xb   : > { %v708_v0 = vld [vmem:[%s932_s1 + $0x18] sm:$0xff]  ;;  %v707_v1 = vld [vmem:[%s932_s1 + $0x10] sm:$0xff]  ;;  %s936_s16 = smov (!%p163_p3, %s587_s16), 63  ;;  %v706_v2 = vld [vmem:[%s932_s1 + $0x8] sm:$0xff]  ;;  %vm323_vm0 = vcmask 523264   ;;  %vm493_vm1 = vcmask 519168  }
   0xc   : > { %376 = vmatpush.bf16.msra.mxu0 %v708_v0  ;;  %709 = vmatpush.bf16.msra.mxu1 %v708_v0  ;;  %s588_s21 = sshll.u32 %s936_s16, 2  ;;  %v705_v3 = vld [vmem:[%s932_s1] sm:$0xff] }
   0xd   : > { %710 = vmatpush.bf16.msra.mxu2 %v708_v0  ;;  %711 = vmatpush.bf16.msra.mxu3 %v708_v0  ;;  %s786_s26 = scalar_lea.vmem %s931_s0, %s588_s21  ;;  %v823_v20 = vld [vmem:[%s933_s2] ss:$0 sm:$0xff]  ;;  %s832_s4 = scalar_lea.vmem %s934_s3, %s588_s21 }
   0xe   : > { %v689_v4 = vld [vmem:[%s786_s26] sm:$0xff]  ;;  %v690_v8 = vld [vmem:[%s786_s26 + $0x8] sm:$0xff]  ;;  %v691_v12 = vld [vmem:[%s786_s26 + $0x10] sm:$0xff] }
   0xf   : > { %v693_v5 = vld [vmem:[%s786_s26 + $0x20] sm:$0xff]  ;;  %v694_v9 = vld [vmem:[%s786_s26 + $0x28] sm:$0xff]  ;;  %v695_v13 = vld [vmem:[%s786_s26 + $0x30] sm:$0xff] }
  0x10   : > { %377 = vmatpush.bf16.msra.mxu0 %v707_v1  ;;  %712 = vmatpush.bf16.msra.mxu1 %v707_v1  ;;  %v697_v6 = vld [vmem:[%s786_s26 + $0x40] sm:$0xff]  ;;  %v698_v10 = vld [vmem:[%s786_s26 + $0x48] sm:$0xff]  ;;  %v699_v14 = vld [vmem:[%s786_s26 + $0x50] sm:$0xff] }
  0x11   : > { %713 = vmatpush.bf16.msra.mxu2 %v707_v1  ;;  %714 = vmatpush.bf16.msra.mxu3 %v707_v1  ;;  %v701_v7 = vld [vmem:[%s786_s26 + $0x60] sm:$0xff]  ;;  %v702_v11 = vld [vmem:[%s786_s26 + $0x68] sm:$0xff]  ;;  %v703_v15 = vld [vmem:[%s786_s26 + $0x70] sm:$0xff] }
  0x12   : > { %v692_v16 = vld [vmem:[%s786_s26 + $0x18] sm:$0xff] }
  0x13   : > { %v696_v17 = vld [vmem:[%s786_s26 + $0x38] sm:$0xff] }
  0x14   : > { %378 = vmatpush.bf16.msra.mxu0 %v706_v2  ;;  %715 = vmatpush.bf16.msra.mxu1 %v706_v2  ;;  %v700_v18 = vld [vmem:[%s786_s26 + $0x58] sm:$0xff] }
  0x15   : > { %716 = vmatpush.bf16.msra.mxu2 %v706_v2  ;;  %717 = vmatpush.bf16.msra.mxu3 %v706_v2  ;;  %v704_v19 = vld [vmem:[%s786_s26 + $0x78] sm:$0xff] }
  0x18   : > { %379 = vmatpush.bf16.msra.mxu0 %v705_v3  ;;  %718 = vmatpush.bf16.msra.mxu1 %v705_v3 }
  0x19   : > { %719 = vmatpush.bf16.msra.mxu2 %v705_v3  ;;  %720 = vmatpush.bf16.msra.mxu3 %v705_v3 }
  0x1b   : > { %671 = vmatmul.msk.bf16.vlgmr.msra.gmra.mxu0 %vm323_vm0, %v689_v4  ;;  %675 = vmatmul.msk.bf16.vlgmr.msra.gmra.mxu1 %vm323_vm0, %v693_v5 }
  0x1c   : > { %679 = vmatmul.msk.bf16.vlgmr.msra.gmra.mxu2 %vm323_vm0, %v697_v6  ;;  %683 = vmatmul.msk.bf16.vlgmr.msra.gmra.mxu3 %vm323_vm0, %v701_v7 }
  0x2b   : > { %672 = vmatmul.msk.bf16.gmra.mxu0 %vm323_vm0, %v690_v8  ;;  %676 = vmatmul.msk.bf16.gmra.mxu1 %vm323_vm0, %v694_v9 }
  0x2c   : > { %680 = vmatmul.msk.bf16.gmra.mxu2 %vm323_vm0, %v698_v10  ;;  %684 = vmatmul.msk.bf16.gmra.mxu3 %vm323_vm0, %v702_v11 }
  0x3b   : > { %673 = vmatmul.msk.bf16.gmra.mxu0 %vm323_vm0, %v691_v12  ;;  %677 = vmatmul.msk.bf16.gmra.mxu1 %vm323_vm0, %v695_v13 }
  0x3c   : > { %681 = vmatmul.msk.bf16.gmra.mxu2 %vm323_vm0, %v699_v14  ;;  %685 = vmatmul.msk.bf16.gmra.mxu3 %vm323_vm0, %v703_v15 }
  0x4b   : > { %674 = vmatmul.msk.bf16.gmra.mxu0 %vm323_vm0, %v692_v16  ;;  %678 = vmatmul.msk.bf16.gmra.mxu1 %vm323_vm0, %v696_v17 }
  0x4c   : > { %682 = vmatmul.msk.bf16.gmra.mxu2 %vm323_vm0, %v700_v18  ;;  %686 = vmatmul.msk.bf16.gmra.mxu3 %vm323_vm0, %v704_v19 }
  0x98   : > { %v381_v21 = vpop.f32.mrf.mxu0  ;;  %v401_v22 = vpop.f32.mrf.mxu1 }
  0x99   : > { %v382_v23 = vadd.f32 %v823_v20, %v381_v21  ;;  %v402_v24 = vadd.f32 %v823_v20, %v401_v22 }
  0x9b   : > { %v461_v25 = vpack.c.bf16 %v382_v23, %v382_v23  ;;  %v469_v26 = vpack.c.bf16 %v402_v24, %v402_v24 }
  0x9d   : > { %494 = vst.msk [vmem:[%s832_s4] sm:$0xf] %vm493_vm1, %v461_v25 }
  0x9e   : > { %502 = vst.msk [vmem:[%s832_s4 + $0x20] sm:$0xf] %vm493_vm1, %v469_v26 }
  0x9f   : > { %v421_v27 = vpop.f32.mrf.mxu2  ;;  %v441_v28 = vpop.f32.mrf.mxu3 }
  0xa0   : > { %v422_v29 = vadd.f32 %v823_v20, %v421_v27  ;;  %v442_v30 = vadd.f32 %v823_v20, %v441_v28  ;;  %v383_v31 = vpop.f32.mrf.mxu0  ;;  %v403_v32 = vpop.f32.mrf.mxu1 }
  0xa1   : > { %v384_v33 = vadd.f32 %v823_v20, %v383_v31  ;;  %v404_v34 = vadd.f32 %v823_v20, %v403_v32 }
  0xa2   : > { %v477_v35 = vpack.c.bf16 %v422_v29, %v422_v29  ;;  %v485_v36 = vpack.c.bf16 %v442_v30, %v442_v30 }
  0xa3   : > { %v462_v37 = vpack.c.bf16 %v384_v33, %v384_v33  ;;  %v470_v38 = vpack.c.bf16 %v404_v34, %v404_v34 }
  0xa4   : > { %510 = vst.msk [vmem:[%s832_s4 + $0x40] sm:$0xf] %vm493_vm1, %v477_v35 }
  0xa5   : > { %518 = vst.msk [vmem:[%s832_s4 + $0x60] sm:$0xf] %vm493_vm1, %v485_v36 }
  0xa6   : > { %495 = vst.msk [vmem:[%s832_s4 + $0x4] sm:$0xf] %vm493_vm1, %v462_v37 }
  0xa7   : > { %503 = vst.msk [vmem:[%s832_s4 + $0x24] sm:$0xf] %vm493_vm1, %v470_v38  ;;  %v423_v39 = vpop.f32.mrf.mxu2  ;;  %v443_v40 = vpop.f32.mrf.mxu3 }
  0xa8   : > { %v424_v41 = vadd.f32 %v823_v20, %v423_v39  ;;  %v444_v42 = vadd.f32 %v823_v20, %v443_v40  ;;  %v386_v43 = vpop.f32.mrf.mxu0  ;;  %v406_v44 = vpop.f32.mrf.mxu1 }
  0xa9   : > { %v387_v45 = vadd.f32 %v823_v20, %v386_v43  ;;  %v407_v46 = vadd.f32 %v823_v20, %v406_v44 }
  0xaa   : > { %v478_v47 = vpack.c.bf16 %v424_v41, %v424_v41  ;;  %v486_v48 = vpack.c.bf16 %v444_v42, %v444_v42 }
  0xab   : > { %v463_v49 = vpack.c.bf16 %v387_v45, %v387_v45  ;;  %v471_v50 = vpack.c.bf16 %v407_v46, %v407_v46 }
  0xac   : > { %511 = vst.msk [vmem:[%s832_s4 + $0x44] sm:$0xf] %vm493_vm1, %v478_v47 }
  0xad   : > { %519 = vst.msk [vmem:[%s832_s4 + $0x64] sm:$0xf] %vm493_vm1, %v486_v48 }
  0xae   : > { %496 = vst.msk [vmem:[%s832_s4 + $0x8] sm:$0xf] %vm493_vm1, %v463_v49 }
  0xaf   : > { %504 = vst.msk [vmem:[%s832_s4 + $0x28] sm:$0xf] %vm493_vm1, %v471_v50  ;;  %v426_v51 = vpop.f32.mrf.mxu2  ;;  %v446_v52 = vpop.f32.mrf.mxu3 }
  0xb0   : > { %v427_v53 = vadd.f32 %v823_v20, %v426_v51  ;;  %v447_v54 = vadd.f32 %v823_v20, %v446_v52  ;;  %v388_v55 = vpop.f32.mrf.mxu0  ;;  %v408_v56 = vpop.f32.mrf.mxu1 }
  0xb1   : > { %v389_v57 = vadd.f32 %v823_v20, %v388_v55  ;;  %v409_v58 = vadd.f32 %v823_v20, %v408_v56 }
  0xb2   : > { %v479_v59 = vpack.c.bf16 %v427_v53, %v427_v53  ;;  %v487_v60 = vpack.c.bf16 %v447_v54, %v447_v54 }
  0xb3   : > { %v464_v61 = vpack.c.bf16 %v389_v57, %v389_v57  ;;  %v472_v62 = vpack.c.bf16 %v409_v58, %v409_v58 }
  0xb4   : > { %512 = vst.msk [vmem:[%s832_s4 + $0x48] sm:$0xf] %vm493_vm1, %v479_v59 }
  0xb5   : > { %520 = vst.msk [vmem:[%s832_s4 + $0x68] sm:$0xf] %vm493_vm1, %v487_v60 }
  0xb6   : > { %497 = vst.msk [vmem:[%s832_s4 + $0xc] sm:$0xf] %vm493_vm1, %v464_v61 }
  0xb7   : > { %505 = vst.msk [vmem:[%s832_s4 + $0x2c] sm:$0xf] %vm493_vm1, %v472_v62  ;;  %v428_v63 = vpop.f32.mrf.mxu2  ;;  %v448_v0 = vpop.f32.mrf.mxu3 }
  0xb8   : > { %v429_v1 = vadd.f32 %v823_v20, %v428_v63  ;;  %v449_v2 = vadd.f32 %v823_v20, %v448_v0  ;;  %v391_v3 = vpop.f32.mrf.mxu0  ;;  %v411_v4 = vpop.f32.mrf.mxu1 }
  0xb9   : > { %v392_v5 = vadd.f32 %v823_v20, %v391_v3  ;;  %v412_v6 = vadd.f32 %v823_v20, %v411_v4 }
  0xba   : > { %v480_v7 = vpack.c.bf16 %v429_v1, %v429_v1  ;;  %v488_v8 = vpack.c.bf16 %v449_v2, %v449_v2 }
  0xbb   : > { %v465_v9 = vpack.c.bf16 %v392_v5, %v392_v5  ;;  %v473_v10 = vpack.c.bf16 %v412_v6, %v412_v6 }
  0xbc   : > { %513 = vst.msk [vmem:[%s832_s4 + $0x4c] sm:$0xf] %vm493_vm1, %v480_v7 }
  0xbd   : > { %521 = vst.msk [vmem:[%s832_s4 + $0x6c] sm:$0xf] %vm493_vm1, %v488_v8 }
  0xbe   : > { %498 = vst.msk [vmem:[%s832_s4 + $0x10] sm:$0xf] %vm493_vm1, %v465_v9 }
  0xbf   : > { %506 = vst.msk [vmem:[%s832_s4 + $0x30] sm:$0xf] %vm493_vm1, %v473_v10  ;;  %v431_v11 = vpop.f32.mrf.mxu2  ;;  %v451_v12 = vpop.f32.mrf.mxu3 }
  0xc0   : > { %v432_v13 = vadd.f32 %v823_v20, %v431_v11  ;;  %v452_v14 = vadd.f32 %v823_v20, %v451_v12  ;;  %v393_v15 = vpop.f32.mrf.mxu0  ;;  %v413_v16 = vpop.f32.mrf.mxu1 }
  0xc1   : > { %v394_v17 = vadd.f32 %v823_v20, %v393_v15  ;;  %v414_v18 = vadd.f32 %v823_v20, %v413_v16 }
  0xc2   : > { %v481_v19 = vpack.c.bf16 %v432_v13, %v432_v13  ;;  %v489_v21 = vpack.c.bf16 %v452_v14, %v452_v14 }
  0xc3   : > { %v466_v22 = vpack.c.bf16 %v394_v17, %v394_v17  ;;  %v474_v23 = vpack.c.bf16 %v414_v18, %v414_v18 }
  0xc4   : > { %514 = vst.msk [vmem:[%s832_s4 + $0x50] sm:$0xf] %vm493_vm1, %v481_v19 }
  0xc5   : > { %522 = vst.msk [vmem:[%s832_s4 + $0x70] sm:$0xf] %vm493_vm1, %v489_v21 }
  0xc6   : > { %499 = vst.msk [vmem:[%s832_s4 + $0x14] sm:$0xf] %vm493_vm1, %v466_v22 }
  0xc7   : > { %507 = vst.msk [vmem:[%s832_s4 + $0x34] sm:$0xf] %vm493_vm1, %v474_v23  ;;  %v433_v24 = vpop.f32.mrf.mxu2  ;;  %v453_v25 = vpop.f32.mrf.mxu3 }
  0xc8   : > { %v434_v26 = vadd.f32 %v823_v20, %v433_v24  ;;  %v454_v27 = vadd.f32 %v823_v20, %v453_v25  ;;  %v396_v28 = vpop.f32.mrf.mxu0  ;;  %v416_v29 = vpop.f32.mrf.mxu1 }
  0xc9   : > { %v397_v30 = vadd.f32 %v823_v20, %v396_v28  ;;  %v417_v31 = vadd.f32 %v823_v20, %v416_v29 }
  0xca   : > { %v482_v32 = vpack.c.bf16 %v434_v26, %v434_v26  ;;  %v490_v33 = vpack.c.bf16 %v454_v27, %v454_v27 }
  0xcb   : > { %v467_v34 = vpack.c.bf16 %v397_v30, %v397_v30  ;;  %v475_v35 = vpack.c.bf16 %v417_v31, %v417_v31 }
  0xcc   : > { %515 = vst.msk [vmem:[%s832_s4 + $0x54] sm:$0xf] %vm493_vm1, %v482_v32 }
  0xcd   : > { %523 = vst.msk [vmem:[%s832_s4 + $0x74] sm:$0xf] %vm493_vm1, %v490_v33 }
  0xce   : > { %500 = vst.msk [vmem:[%s832_s4 + $0x18] sm:$0xf] %vm493_vm1, %v467_v34 }
  0xcf   : > { %508 = vst.msk [vmem:[%s832_s4 + $0x38] sm:$0xf] %vm493_vm1, %v475_v35  ;;  %v436_v36 = vpop.f32.mrf.mxu2  ;;  %v456_v37 = vpop.f32.mrf.mxu3 }
  0xd0   : > { %v437_v38 = vadd.f32 %v823_v20, %v436_v36  ;;  %v457_v39 = vadd.f32 %v823_v20, %v456_v37  ;;  %v398_v40 = vpop.f32.mrf.mxu0  ;;  %v418_v41 = vpop.f32.mrf.mxu1 }
  0xd1   : > { %v399_v42 = vadd.f32 %v823_v20, %v398_v40  ;;  %v419_v43 = vadd.f32 %v823_v20, %v418_v41 }
  0xd2   : > { %v483_v44 = vpack.c.bf16 %v437_v38, %v437_v38  ;;  %v491_v45 = vpack.c.bf16 %v457_v39, %v457_v39 }
  0xd3   : > { %v468_v46 = vpack.c.bf16 %v399_v42, %v399_v42  ;;  %v476_v47 = vpack.c.bf16 %v419_v43, %v419_v43 }
  0xd4   : > { %516 = vst.msk [vmem:[%s832_s4 + $0x58] sm:$0xf] %vm493_vm1, %v483_v44 }
  0xd5   : > { %524 = vst.msk [vmem:[%s832_s4 + $0x78] sm:$0xf] %vm493_vm1, %v491_v45 }
  0xd6   : > { %501 = vst.msk [vmem:[%s832_s4 + $0x1c] sm:$0xf] %vm493_vm1, %v468_v46 }
  0xd7   : > { %509 = vst.msk [vmem:[%s832_s4 + $0x3c] sm:$0xf] %vm493_vm1, %v476_v47  ;;  %v438_v48 = vpop.f32.mrf.mxu2  ;;  %v458_v49 = vpop.f32.mrf.mxu3 }
  0xd8   : > { %v439_v50 = vadd.f32 %v823_v20, %v438_v48  ;;  %v459_v51 = vadd.f32 %v823_v20, %v458_v49 }
  0xda   : > { %v484_v52 = vpack.c.bf16 %v439_v50, %v439_v50  ;;  %v492_v53 = vpack.c.bf16 %v459_v51, %v459_v51 }
  0xdc   : > { %517 = vst.msk [vmem:[%s832_s4 + $0x5c] sm:$0xf] %vm493_vm1, %v484_v52 }
  0xdd   : > { %525 = vst.msk [vmem:[%s832_s4 + $0x7c] sm:$0xf] %vm493_vm1, %v492_v53 }
  0xde PF: > { %s13_s12 = sadd.s32 1, %s736_s12  }
  0xdf   : > { %p10_p4 = scmp.ge.s32.totalorder %s13_s12, 4  }
  0xe1   :  { %12 = sbr.rel (!%p10_p4) target bundleno = 1 (0x1), region = 62 }

// kernel: dmcs_forward.22
= control target key start
LH: loop header
LB: loop body
LE: loop exit
PB: predicated region body
PF: predicated region fallthrough
CT: control target
= control target key end

     0   :  { %s790_s12 = smov 0   ;;  %s963_s0 = inlined_call_operand.vmem [shape: bf16[2048,64], index: 0, kind: input, shape index: {}]   ;;  %s964_s1 = inlined_call_operand.vmem [shape: bf16[64,64], index: 1, kind: input, shape index: {}]   ;;  %s965_s2 = inlined_call_operand.vmem [shape: f32[1,64], index: 2, kind: input, shape index: {}]   ;;  %s966_s3 = inlined_call_operand.vmem [shape: bf16[2048,64], index: 3, kind: output, shape index: {}]  }
   0x1 LB: > { %s614_s13 = sadd.s32 4294967295, %s768_s12   ;;  %p618_p0 = scmp.ge.s32.totalorder %s768_s12, 1  ;;  %s768_s12 = sphi %s790_s12, %s13_s12  }
   0x2   : > { %p138_p1 = scmp.lt.s32.totalorder %s768_s12, 9 }
   0x4   : > { %p139_p2 = pnand %p618_p0, %p138_p1 }
   0x5   : > { %s619_s16 = sshll.u32 (!%p139_p2), %s614_s13, 5 }
   0x6   : > { %142 = sbr.rel (%p139_p2) target bundleno = 224 (0xe0), region = 32  ;;  %p163_p3 = scmp.lt.s32.totalorder (!%p139_p2), %s619_s16, 255 }
   0xb   : > { %v740_v0 = vld [vmem:[%s964_s1 + $0x18] sm:$0xff]  ;;  %v739_v1 = vld [vmem:[%s964_s1 + $0x10] sm:$0xff]  ;;  %s968_s16 = smov (!%p163_p3, %s619_s16), 255  ;;  %v738_v2 = vld [vmem:[%s964_s1 + $0x8] sm:$0xff]  ;;  %vm323_vm0 = vcmask 523264   ;;  %vm525_vm1 = vcmask 519168  }
   0xc   : > { %376 = vmatpush.bf16.msra.mxu0 %v740_v0  ;;  %741 = vmatpush.bf16.msra.mxu1 %v740_v0  ;;  %s620_s21 = sshll.u32 %s968_s16, 2  ;;  %v737_v3 = vld [vmem:[%s964_s1] sm:$0xff] }
   0xd   : > { %742 = vmatpush.bf16.msra.mxu2 %v740_v0  ;;  %743 = vmatpush.bf16.msra.mxu3 %v740_v0  ;;  %s818_s26 = scalar_lea.vmem %s963_s0, %s620_s21  ;;  %v855_v20 = vld [vmem:[%s965_s2] ss:$0 sm:$0xff]  ;;  %s864_s4 = scalar_lea.vmem %s966_s3, %s620_s21 }
   0xe   : > { %v721_v4 = vld [vmem:[%s818_s26] sm:$0xff]  ;;  %v722_v8 = vld [vmem:[%s818_s26 + $0x8] sm:$0xff]  ;;  %v723_v12 = vld [vmem:[%s818_s26 + $0x10] sm:$0xff] }
   0xf   : > { %v725_v5 = vld [vmem:[%s818_s26 + $0x20] sm:$0xff]  ;;  %v726_v9 = vld [vmem:[%s818_s26 + $0x28] sm:$0xff]  ;;  %v727_v13 = vld [vmem:[%s818_s26 + $0x30] sm:$0xff] }
  0x10   : > { %377 = vmatpush.bf16.msra.mxu0 %v739_v1  ;;  %744 = vmatpush.bf16.msra.mxu1 %v739_v1  ;;  %v729_v6 = vld [vmem:[%s818_s26 + $0x40] sm:$0xff]  ;;  %v730_v10 = vld [vmem:[%s818_s26 + $0x48] sm:$0xff]  ;;  %v731_v14 = vld [vmem:[%s818_s26 + $0x50] sm:$0xff] }
  0x11   : > { %745 = vmatpush.bf16.msra.mxu2 %v739_v1  ;;  %746 = vmatpush.bf16.msra.mxu3 %v739_v1  ;;  %v733_v7 = vld [vmem:[%s818_s26 + $0x60] sm:$0xff]  ;;  %v734_v11 = vld [vmem:[%s818_s26 + $0x68] sm:$0xff]  ;;  %v735_v15 = vld [vmem:[%s818_s26 + $0x70] sm:$0xff] }
  0x12   : > { %v724_v16 = vld [vmem:[%s818_s26 + $0x18] sm:$0xff] }
  0x13   : > { %v728_v17 = vld [vmem:[%s818_s26 + $0x38] sm:$0xff] }
  0x14   : > { %378 = vmatpush.bf16.msra.mxu0 %v738_v2  ;;  %747 = vmatpush.bf16.msra.mxu1 %v738_v2  ;;  %v732_v18 = vld [vmem:[%s818_s26 + $0x58] sm:$0xff] }
  0x15   : > { %748 = vmatpush.bf16.msra.mxu2 %v738_v2  ;;  %749 = vmatpush.bf16.msra.mxu3 %v738_v2  ;;  %v736_v19 = vld [vmem:[%s818_s26 + $0x78] sm:$0xff] }
  0x18   : > { %379 = vmatpush.bf16.msra.mxu0 %v737_v3  ;;  %750 = vmatpush.bf16.msra.mxu1 %v737_v3 }
  0x19   : > { %751 = vmatpush.bf16.msra.mxu2 %v737_v3  ;;  %752 = vmatpush.bf16.msra.mxu3 %v737_v3 }
  0x1b   : > { %703 = vmatmul.msk.bf16.vlgmr.msra.gmra.mxu0 %vm323_vm0, %v721_v4  ;;  %707 = vmatmul.msk.bf16.vlgmr.msra.gmra.mxu1 %vm323_vm0, %v725_v5 }
  0x1c   : > { %711 = vmatmul.msk.bf16.vlgmr.msra.gmra.mxu2 %vm323_vm0, %v729_v6  ;;  %715 = vmatmul.msk.bf16.vlgmr.msra.gmra.mxu3 %vm323_vm0, %v733_v7 }
  0x2b   : > { %704 = vmatmul.msk.bf16.gmra.mxu0 %vm323_vm0, %v722_v8  ;;  %708 = vmatmul.msk.bf16.gmra.mxu1 %vm323_vm0, %v726_v9 }
  0x2c   : > { %712 = vmatmul.msk.bf16.gmra.mxu2 %vm323_vm0, %v730_v10  ;;  %716 = vmatmul.msk.bf16.gmra.mxu3 %vm323_vm0, %v734_v11 }
  0x3b   : > { %705 = vmatmul.msk.bf16.gmra.mxu0 %vm323_vm0, %v723_v12  ;;  %709 = vmatmul.msk.bf16.gmra.mxu1 %vm323_vm0, %v727_v13 }
  0x3c   : > { %713 = vmatmul.msk.bf16.gmra.mxu2 %vm323_vm0, %v731_v14  ;;  %717 = vmatmul.msk.bf16.gmra.mxu3 %vm323_vm0, %v735_v15 }
  0x4b   : > { %706 = vmatmul.msk.bf16.gmra.mxu0 %vm323_vm0, %v724_v16  ;;  %710 = vmatmul.msk.bf16.gmra.mxu1 %vm323_vm0, %v728_v17 }
  0x4c   : > { %714 = vmatmul.msk.bf16.gmra.mxu2 %vm323_vm0, %v732_v18  ;;  %718 = vmatmul.msk.bf16.gmra.mxu3 %vm323_vm0, %v736_v19 }
  0x98   : > { %v381_v21 = vpop.f32.mrf.mxu0  ;;  %v401_v22 = vpop.f32.mrf.mxu1 }
  0x99   : > { %v382_v23 = vadd.f32 %v855_v20, %v381_v21  ;;  %v402_v24 = vadd.f32 %v855_v20, %v401_v22 }
  0x9b   : > { %v461_v25 = vmax.f32 %v382_v23, 0.0  ;;  %v469_v26 = vmax.f32 %v402_v24, 0.0 }
  0x9d   : > { %v493_v27 = vpack.c.bf16 %v461_v25, %v461_v25  ;;  %v501_v28 = vpack.c.bf16 %v469_v26, %v469_v26 }
  0x9f   : > { %526 = vst.msk [vmem:[%s864_s4] sm:$0xf] %vm525_vm1, %v493_v27  ;;  %v421_v29 = vpop.f32.mrf.mxu2  ;;  %v441_v30 = vpop.f32.mrf.mxu3 }
  0xa0   : > { %534 = vst.msk [vmem:[%s864_s4 + $0x20] sm:$0xf] %vm525_vm1, %v501_v28  ;;  %v422_v31 = vadd.f32 %v855_v20, %v421_v29  ;;  %v442_v32 = vadd.f32 %v855_v20, %v441_v30  ;;  %v383_v33 = vpop.f32.mrf.mxu0  ;;  %v403_v34 = vpop.f32.mrf.mxu1 }
  0xa1   : > { %v384_v35 = vadd.f32 %v855_v20, %v383_v33  ;;  %v404_v36 = vadd.f32 %v855_v20, %v403_v34 }
  0xa2   : > { %v477_v37 = vmax.f32 %v422_v31, 0.0  ;;  %v485_v38 = vmax.f32 %v442_v32, 0.0 }
  0xa3   : > { %v462_v39 = vmax.f32 %v384_v35, 0.0  ;;  %v470_v40 = vmax.f32 %v404_v36, 0.0 }
  0xa4   : > { %v509_v41 = vpack.c.bf16 %v477_v37, %v477_v37  ;;  %v517_v42 = vpack.c.bf16 %v485_v38, %v485_v38 }
  0xa5   : > { %v494_v43 = vpack.c.bf16 %v462_v39, %v462_v39  ;;  %v502_v44 = vpack.c.bf16 %v470_v40, %v470_v40 }
  0xa6   : > { %542 = vst.msk [vmem:[%s864_s4 + $0x40] sm:$0xf] %vm525_vm1, %v509_v41 }
  0xa7   : > { %550 = vst.msk [vmem:[%s864_s4 + $0x60] sm:$0xf] %vm525_vm1, %v517_v42  ;;  %v423_v45 = vpop.f32.mrf.mxu2  ;;  %v443_v46 = vpop.f32.mrf.mxu3 }
  0xa8   : > { %527 = vst.msk [vmem:[%s864_s4 + $0x4] sm:$0xf] %vm525_vm1, %v494_v43  ;;  %v424_v47 = vadd.f32 %v855_v20, %v423_v45  ;;  %v444_v48 = vadd.f32 %v855_v20, %v443_v46  ;;  %v386_v49 = vpop.f32.mrf.mxu0  ;;  %v406_v50 = vpop.f32.mrf.mxu1 }
  0xa9   : > { %535 = vst.msk [vmem:[%s864_s4 + $0x24] sm:$0xf] %vm525_vm1, %v502_v44  ;;  %v387_v51 = vadd.f32 %v855_v20, %v386_v49  ;;  %v407_v52 = vadd.f32 %v855_v20, %v406_v50 }
  0xaa   : > { %v478_v53 = vmax.f32 %v424_v47, 0.0  ;;  %v486_v54 = vmax.f32 %v444_v48, 0.0 }
  0xab   : > { %v463_v55 = vmax.f32 %v387_v51, 0.0  ;;  %v471_v56 = vmax.f32 %v407_v52, 0.0 }
  0xac   : > { %v510_v57 = vpack.c.bf16 %v478_v53, %v478_v53  ;;  %v518_v58 = vpack.c.bf16 %v486_v54, %v486_v54 }
  0xad   : > { %v495_v59 = vpack.c.bf16 %v463_v55, %v463_v55  ;;  %v503_v60 = vpack.c.bf16 %v471_v56, %v471_v56 }
  0xae   : > { %543 = vst.msk [vmem:[%s864_s4 + $0x44] sm:$0xf] %vm525_vm1, %v510_v57 }
  0xaf   : > { %551 = vst.msk [vmem:[%s864_s4 + $0x64] sm:$0xf] %vm525_vm1, %v518_v58  ;;  %v426_v61 = vpop.f32.mrf.mxu2  ;;  %v446_v62 = vpop.f32.mrf.mxu3 }
  0xb0   : > { %528 = vst.msk [vmem:[%s864_s4 + $0x8] sm:$0xf] %vm525_vm1, %v495_v59  ;;  %v427_v63 = vadd.f32 %v855_v20, %v426_v61  ;;  %v447_v0 = vadd.f32 %v855_v20, %v446_v62  ;;  %v388_v1 = vpop.f32.mrf.mxu0  ;;  %v408_v2 = vpop.f32.mrf.mxu1 }
  0xb1   : > { %536 = vst.msk [vmem:[%s864_s4 + $0x28] sm:$0xf] %vm525_vm1, %v503_v60  ;;  %v389_v3 = vadd.f32 %v855_v20, %v388_v1  ;;  %v409_v4 = vadd.f32 %v855_v20, %v408_v2 }
  0xb2   : > { %v479_v5 = vmax.f32 %v427_v63, 0.0  ;;  %v487_v6 = vmax.f32 %v447_v0, 0.0 }
  0xb3   : > { %v464_v7 = vmax.f32 %v389_v3, 0.0  ;;  %v472_v8 = vmax.f32 %v409_v4, 0.0 }
  0xb4   : > { %v511_v9 = vpack.c.bf16 %v479_v5, %v479_v5  ;;  %v519_v10 = vpack.c.bf16 %v487_v6, %v487_v6 }
  0xb5   : > { %v496_v11 = vpack.c.bf16 %v464_v7, %v464_v7  ;;  %v504_v12 = vpack.c.bf16 %v472_v8, %v472_v8 }
  0xb6   : > { %544 = vst.msk [vmem:[%s864_s4 + $0x48] sm:$0xf] %vm525_vm1, %v511_v9 }
  0xb7   : > { %552 = vst.msk [vmem:[%s864_s4 + $0x68] sm:$0xf] %vm525_vm1, %v519_v10  ;;  %v428_v13 = vpop.f32.mrf.mxu2  ;;  %v448_v14 = vpop.f32.mrf.mxu3 }
  0xb8   : > { %529 = vst.msk [vmem:[%s864_s4 + $0xc] sm:$0xf] %vm525_vm1, %v496_v11  ;;  %v429_v15 = vadd.f32 %v855_v20, %v428_v13  ;;  %v449_v16 = vadd.f32 %v855_v20, %v448_v14  ;;  %v391_v17 = vpop.f32.mrf.mxu0  ;;  %v411_v18 = vpop.f32.mrf.mxu1 }
  0xb9   : > { %537 = vst.msk [vmem:[%s864_s4 + $0x2c] sm:$0xf] %vm525_vm1, %v504_v12  ;;  %v392_v19 = vadd.f32 %v855_v20, %v391_v17  ;;  %v412_v21 = vadd.f32 %v855_v20, %v411_v18 }
  0xba   : > { %v480_v22 = vmax.f32 %v429_v15, 0.0  ;;  %v488_v23 = vmax.f32 %v449_v16, 0.0 }
  0xbb   : > { %v465_v24 = vmax.f32 %v392_v19, 0.0  ;;  %v473_v25 = vmax.f32 %v412_v21, 0.0 }
  0xbc   : > { %v512_v26 = vpack.c.bf16 %v480_v22, %v480_v22  ;;  %v520_v27 = vpack.c.bf16 %v488_v23, %v488_v23 }
  0xbd   : > { %v497_v28 = vpack.c.bf16 %v465_v24, %v465_v24  ;;  %v505_v29 = vpack.c.bf16 %v473_v25, %v473_v25 }
  0xbe   : > { %545 = vst.msk [vmem:[%s864_s4 + $0x4c] sm:$0xf] %vm525_vm1, %v512_v26 }
  0xbf   : > { %553 = vst.msk [vmem:[%s864_s4 + $0x6c] sm:$0xf] %vm525_vm1, %v520_v27  ;;  %v431_v30 = vpop.f32.mrf.mxu2  ;;  %v451_v31 = vpop.f32.mrf.mxu3 }
  0xc0   : > { %530 = vst.msk [vmem:[%s864_s4 + $0x10] sm:$0xf] %vm525_vm1, %v497_v28  ;;  %v432_v32 = vadd.f32 %v855_v20, %v431_v30  ;;  %v452_v33 = vadd.f32 %v855_v20, %v451_v31  ;;  %v393_v34 = vpop.f32.mrf.mxu0  ;;  %v413_v35 = vpop.f32.mrf.mxu1 }
  0xc1   : > { %538 = vst.msk [vmem:[%s864_s4 + $0x30] sm:$0xf] %vm525_vm1, %v505_v29  ;;  %v394_v36 = vadd.f32 %v855_v20, %v393_v34  ;;  %v414_v37 = vadd.f32 %v855_v20, %v413_v35 }
  0xc2   : > { %v481_v38 = vmax.f32 %v432_v32, 0.0  ;;  %v489_v39 = vmax.f32 %v452_v33, 0.0 }
  0xc3   : > { %v466_v40 = vmax.f32 %v394_v36, 0.0  ;;  %v474_v41 = vmax.f32 %v414_v37, 0.0 }
  0xc4   : > { %v513_v42 = vpack.c.bf16 %v481_v38, %v481_v38  ;;  %v521_v43 = vpack.c.bf16 %v489_v39, %v489_v39 }
  0xc5   : > { %v498_v44 = vpack.c.bf16 %v466_v40, %v466_v40  ;;  %v506_v45 = vpack.c.bf16 %v474_v41, %v474_v41 }
  0xc6   : > { %546 = vst.msk [vmem:[%s864_s4 + $0x50] sm:$0xf] %vm525_vm1, %v513_v42 }
  0xc7   : > { %554 = vst.msk [vmem:[%s864_s4 + $0x70] sm:$0xf] %vm525_vm1, %v521_v43  ;;  %v433_v46 = vpop.f32.mrf.mxu2  ;;  %v453_v47 = vpop.f32.mrf.mxu3 }
  0xc8   : > { %531 = vst.msk [vmem:[%s864_s4 + $0x14] sm:$0xf] %vm525_vm1, %v498_v44  ;;  %v434_v48 = vadd.f32 %v855_v20, %v433_v46  ;;  %v454_v49 = vadd.f32 %v855_v20, %v453_v47  ;;  %v396_v50 = vpop.f32.mrf.mxu0  ;;  %v416_v51 = vpop.f32.mrf.mxu1 }
  0xc9   : > { %539 = vst.msk [vmem:[%s864_s4 + $0x34] sm:$0xf] %vm525_vm1, %v506_v45  ;;  %v397_v52 = vadd.f32 %v855_v20, %v396_v50  ;;  %v417_v53 = vadd.f32 %v855_v20, %v416_v51 }
  0xca   : > { %v482_v54 = vmax.f32 %v434_v48, 0.0  ;;  %v490_v55 = vmax.f32 %v454_v49, 0.0 }
  0xcb   : > { %v467_v56 = vmax.f32 %v397_v52, 0.0  ;;  %v475_v57 = vmax.f32 %v417_v53, 0.0 }
  0xcc   : > { %v514_v58 = vpack.c.bf16 %v482_v54, %v482_v54  ;;  %v522_v59 = vpack.c.bf16 %v490_v55, %v490_v55 }
  0xcd   : > { %v499_v60 = vpack.c.bf16 %v467_v56, %v467_v56  ;;  %v507_v61 = vpack.c.bf16 %v475_v57, %v475_v57 }
  0xce   : > { %547 = vst.msk [vmem:[%s864_s4 + $0x54] sm:$0xf] %vm525_vm1, %v514_v58 }
  0xcf   : > { %555 = vst.msk [vmem:[%s864_s4 + $0x74] sm:$0xf] %vm525_vm1, %v522_v59  ;;  %v436_v62 = vpop.f32.mrf.mxu2  ;;  %v456_v63 = vpop.f32.mrf.mxu3 }
  0xd0   : > { %532 = vst.msk [vmem:[%s864_s4 + $0x18] sm:$0xf] %vm525_vm1, %v499_v60  ;;  %v437_v0 = vadd.f32 %v855_v20, %v436_v62  ;;  %v457_v1 = vadd.f32 %v855_v20, %v456_v63  ;;  %v398_v2 = vpop.f32.mrf.mxu0  ;;  %v418_v3 = vpop.f32.mrf.mxu1 }
  0xd1   : > { %540 = vst.msk [vmem:[%s864_s4 + $0x38] sm:$0xf] %vm525_vm1, %v507_v61  ;;  %v399_v4 = vadd.f32 %v855_v20, %v398_v2  ;;  %v419_v5 = vadd.f32 %v855_v20, %v418_v3 }
  0xd2   : > { %v483_v6 = vmax.f32 %v437_v0, 0.0  ;;  %v491_v7 = vmax.f32 %v457_v1, 0.0 }
  0xd3   : > { %v468_v8 = vmax.f32 %v399_v4, 0.0  ;;  %v476_v9 = vmax.f32 %v419_v5, 0.0 }
  0xd4   : > { %v515_v10 = vpack.c.bf16 %v483_v6, %v483_v6  ;;  %v523_v11 = vpack.c.bf16 %v491_v7, %v491_v7 }
  0xd5   : > { %v500_v12 = vpack.c.bf16 %v468_v8, %v468_v8  ;;  %v508_v13 = vpack.c.bf16 %v476_v9, %v476_v9 }
  0xd6   : > { %548 = vst.msk [vmem:[%s864_s4 + $0x58] sm:$0xf] %vm525_vm1, %v515_v10 }
  0xd7   : > { %556 = vst.msk [vmem:[%s864_s4 + $0x78] sm:$0xf] %vm525_vm1, %v523_v11  ;;  %v438_v14 = vpop.f32.mrf.mxu2  ;;  %v458_v15 = vpop.f32.mrf.mxu3 }
  0xd8   : > { %533 = vst.msk [vmem:[%s864_s4 + $0x1c] sm:$0xf] %vm525_vm1, %v500_v12  ;;  %v439_v16 = vadd.f32 %v855_v20, %v438_v14  ;;  %v459_v17 = vadd.f32 %v855_v20, %v458_v15 }
  0xd9   : > { %541 = vst.msk [vmem:[%s864_s4 + $0x3c] sm:$0xf] %vm525_vm1, %v508_v13 }
  0xda   : > { %v484_v18 = vmax.f32 %v439_v16, 0.0  ;;  %v492_v19 = vmax.f32 %v459_v17, 0.0 }
  0xdc   : > { %v516_v21 = vpack.c.bf16 %v484_v18, %v484_v18  ;;  %v524_v22 = vpack.c.bf16 %v492_v19, %v492_v19 }
  0xde   : > { %549 = vst.msk [vmem:[%s864_s4 + $0x5c] sm:$0xf] %vm525_vm1, %v516_v21 }
  0xdf   : > { %557 = vst.msk [vmem:[%s864_s4 + $0x7c] sm:$0xf] %vm525_vm1, %v524_v22 }
  0xe0 PF: > { %s13_s12 = sadd.s32 1, %s768_s12  }
  0xe1   : > { %p10_p4 = scmp.ge.s32.totalorder %s13_s12, 10  }
  0xe3   :  { %12 = sbr.rel (!%p10_p4) target bundleno = 1 (0x1), region = 62 }

// kernel: dmcs_forward.23
= control target key start
LH: loop header
LB: loop body
LE: loop exit
PB: predicated region body
PF: predicated region fallthrough
CT: control target
= control target key end

     0   :  { %s2282_s12 = smov 0   ;;  %s2788_s0 = inlined_call_operand.vmem [shape: bf16[2048,576], index: 0, kind: input, shape index: {}]   ;;  %s2789_s1 = inlined_call_operand.vmem [shape: bf16[576,64], index: 1, kind: input, shape index: {}]   ;;  %s2790_s2 = inlined_call_operand.vmem [shape: f32[1,64], index: 2, kind: input, shape index: {}]   ;;  %s2791_s3 = inlined_call_operand.vmem [shape: bf16[2048,64], index: 3, kind: output, shape index: {}]  }
   0x1 LB: > { %s1613_s13 = sadd.s32 4294967295, %s2260_s12   ;;  %p1617_p0 = scmp.ge.s32.totalorder %s2260_s12, 1  ;;  %s2260_s12 = sphi %s2282_s12, %s13_s12  }
   0x2   : > { %p139_p1 = scmp.lt.s32.totalorder %s2260_s12, 9 }
   0x4   : > { %p140_p2 = pnand %p1617_p0, %p139_p1 }
   0x5   : > { %s1618_s20 = sshll.u32 (!%p140_p2), %s1613_s13, 5 }
   0x6   : > { %143 = sbr.rel (%p140_p2) target bundleno = 498 (0x1f2), region = 32  ;;  %p165_p3 = scmp.lt.s32.totalorder (!%p140_p2), %s1618_s20, 255 }
   0xb   : > { %v2191_v0 = vld [vmem:[%s2789_s1 + $0x38] sm:$0xff]  ;;  %v2190_v1 = vld [vmem:[%s2789_s1 + $0x30] sm:$0xff]  ;;  %v2189_v2 = vld [vmem:[%s2789_s1 + $0x28] sm:$0xff]  ;;  %s2793_s20 = smov (!%p165_p3, %s1618_s20), 255  ;;  %vm966_vm0 = vcmask 523264   ;;  %vm1524_vm1 = vcmask 519168  }
   0xc   : > { %2220 = vmatpush.bf16.msra.mxu1 %v2191_v0  ;;  %2221 = vmatpush.bf16.msra.mxu2 %v2191_v0  ;;  %v2188_v3 = vld [vmem:[%s2789_s1 + $0x20] sm:$0xff]  ;;  %v2187_v4 = vld [vmem:[%s2789_s1 + $0x18] sm:$0xff]  ;;  %v2186_v5 = vld [vmem:[%s2789_s1 + $0x10] sm:$0xff]  ;;  %s2244_s27 = smul.u32 20, %s2793_s20  ;;  %s1621_s19 = sshll.u32 %s2793_s20, 2 }
   0xd   : > { %2222 = vmatpush.bf16.msra.mxu3 %v2191_v0  ;;  %1015 = vmatpush.bf16.msra.mxu0 %v2191_v0  ;;  %v2185_v6 = vld [vmem:[%s2789_s1 + $0x8] sm:$0xff]  ;;  %v2184_v7 = vld [vmem:[%s2789_s1] sm:$0xff]  ;;  %v2207_v16 = vld [vmem:[%s2789_s1 + $0xb8] sm:$0xff]  ;;  %s2628_s23 = scalar_lea.vmem %s2791_s3, %s1621_s19 }
   0xe   : > { %s2317_s5 = scalar_lea.vmem %s2788_s0, %s2244_s27  ;;  %v2215_v17 = vld [vmem:[%s2789_s1 + $0xf8] sm:$0xff]  ;;  %v2206_v24 = vld [vmem:[%s2789_s1 + $0xb0] sm:$0xff]  ;;  %v2205_v28 = vld [vmem:[%s2789_s1 + $0xa8] sm:$0xff] }
   0xf   : > { %v1704_v8 = vld [vmem:[%s2317_s5 + $0xa0] sm:$0xf]  ;;  %v2126_v9 = vld [vmem:[%s2317_s5 + $0xb0] sm:$0xf0]  ;;  %v2199_v22 = vld [vmem:[%s2789_s1 + $0x78] sm:$0xff] }
  0x10   : > { %2223 = vmatpush.bf16.msra.mxu1 %v2190_v1  ;;  %2224 = vmatpush.bf16.msra.mxu2 %v2190_v1  ;;  %v1784_v10 = vld [vmem:[%s2317_s5 + $0x140] sm:$0xf]  ;;  %v2146_v11 = vld [vmem:[%s2317_s5 + $0x150] sm:$0xf0]  ;;  %v1705_v18 = vor.u32 %v2126_v9, %v1704_v8  ;;  %v2219_v23 = vld [vmem:[%s2789_s1 + $0x118] sm:$0xff] }
  0x11   : > { %2225 = vmatpush.bf16.msra.mxu3 %v2190_v1  ;;  %1016 = vmatpush.bf16.msra.mxu0 %v2190_v1  ;;  %v1864_v12 = vld [vmem:[%s2317_s5 + $0x1e0] sm:$0xf]  ;;  %v2166_v13 = vld [vmem:[%s2317_s5 + $0x1f0] sm:$0xf0]  ;;  %v1785_v19 = vor.u32 %v2146_v11, %v1784_v10  ;;  %v2213_v29 = vld [vmem:[%s2789_s1 + $0xe8] sm:$0xff] }
  0x12   : > { %v1624_v14 = vld [vmem:[%s2317_s5] sm:$0xf]  ;;  %v2106_v15 = vld [vmem:[%s2317_s5 + $0x10] sm:$0xf0]  ;;  %v1865_v20 = vor.u32 %v2166_v13, %v1864_v12  ;;  %v2197_v30 = vld [vmem:[%s2789_s1 + $0x68] sm:$0xff] }
  0x13   : > { %v1625_v21 = vor.u32 %v2106_v15, %v1624_v14  ;;  %v2214_v25 = vld [vmem:[%s2789_s1 + $0xf0] sm:$0xff]  ;;  %v2217_v31 = vld [vmem:[%s2789_s1 + $0x108] sm:$0xff]  ;;  %v2204_v32 = vld [vmem:[%s2789_s1 + $0xa0] sm:$0xff] }
  0x14   : > { %2226 = vmatpush.bf16.msra.mxu1 %v2189_v2  ;;  %2227 = vmatpush.bf16.msra.mxu2 %v2189_v2  ;;  %v2198_v26 = vld [vmem:[%s2789_s1 + $0x70] sm:$0xff]  ;;  %v2212_v33 = vld [vmem:[%s2789_s1 + $0xe0] sm:$0xff]  ;;  %v1724_v34 = vld [vmem:[%s2317_s5 + $0xc8] sm:$0xf] }
  0x15   : > { %2228 = vmatpush.bf16.msra.mxu3 %v2189_v2  ;;  %1017 = vmatpush.bf16.msra.mxu0 %v2189_v2  ;;  %v2218_v27 = vld [vmem:[%s2789_s1 + $0x110] sm:$0xff]  ;;  %v2131_v35 = vld [vmem:[%s2317_s5 + $0xd8] sm:$0xf0]  ;;  %v1804_v36 = vld [vmem:[%s2317_s5 + $0x168] sm:$0xf] }
  0x16   : > { %v2151_v37 = vld [vmem:[%s2317_s5 + $0x178] sm:$0xf0]  ;;  %v1884_v38 = vld [vmem:[%s2317_s5 + $0x208] sm:$0xf]  ;;  %v2196_v42 = vld [vmem:[%s2789_s1 + $0x60] sm:$0xff]  ;;  %v1725_v45 = vor.u32 %v2131_v35, %v1724_v34 }
  0x17   : > { %v2171_v39 = vld [vmem:[%s2317_s5 + $0x218] sm:$0xf0]  ;;  %v1644_v40 = vld [vmem:[%s2317_s5 + $0x28] sm:$0xf]  ;;  %v1805_v46 = vor.u32 %v2151_v37, %v1804_v36  ;;  %v2202_v50 = vld [vmem:[%s2789_s1 + $0x90] sm:$0xff] }
  0x18   : > { %2229 = vmatpush.bf16.msra.mxu1 %v2188_v3  ;;  %2230 = vmatpush.bf16.msra.mxu2 %v2188_v3  ;;  %v2111_v41 = vld [vmem:[%s2317_s5 + $0x38] sm:$0xf0]  ;;  %v1885_v47 = vor.u32 %v2171_v39, %v1884_v38  ;;  %v2210_v51 = vld [vmem:[%s2789_s1 + $0xd0] sm:$0xff]  ;;  %v2216_v53 = vld [vmem:[%s2789_s1 + $0x100] sm:$0xff] }
  0x19   : > { %2231 = vmatpush.bf16.msra.mxu3 %v2188_v3  ;;  %1018 = vmatpush.bf16.msra.mxu0 %v2188_v3  ;;  %v2203_v43 = vld [vmem:[%s2789_s1 + $0x98] sm:$0xff]  ;;  %v1645_v48 = vor.u32 %v2111_v41, %v1644_v40  ;;  %v2194_v52 = vld [vmem:[%s2789_s1 + $0x50] sm:$0xff]  ;;  %v2201_v54 = vld [vmem:[%s2789_s1 + $0x88] sm:$0xff] }
  0x1a   : > { %v2211_v44 = vld [vmem:[%s2789_s1 + $0xd8] sm:$0xff]  ;;  %v2209_v55 = vld [vmem:[%s2789_s1 + $0xc8] sm:$0xff]  ;;  %v2200_v57 = vld [vmem:[%s2789_s1 + $0x80] sm:$0xff] }
  0x1b   : > { %v2195_v49 = vld [vmem:[%s2789_s1 + $0x58] sm:$0xff]  ;;  %v2193_v56 = vld [vmem:[%s2789_s1 + $0x48] sm:$0xff]  ;;  %v2208_v58 = vld [vmem:[%s2789_s1 + $0xc0] sm:$0xff] }
  0x1c   : > { %2232 = vmatpush.bf16.msra.mxu1 %v2187_v4  ;;  %2233 = vmatpush.bf16.msra.mxu2 %v2187_v4  ;;  %v1744_v59 = vld [vmem:[%s2317_s5 + $0xf0] sm:$0xf]  ;;  %v2136_v60 = vld [vmem:[%s2317_s5 + $0x100] sm:$0xf0]  ;;  %v1764_v8 = vld [vmem:[%s2317_s5 + $0x118] sm:$0xf] }
  0x1d   : > { %2234 = vmatpush.bf16.msra.mxu3 %v2187_v4  ;;  %1019 = vmatpush.bf16.msra.mxu0 %v2187_v4  ;;  %v1824_v61 = vld [vmem:[%s2317_s5 + $0x190] sm:$0xf]  ;;  %v2156_v62 = vld [vmem:[%s2317_s5 + $0x1a0] sm:$0xf0]  ;;  %v1745_v4 = vor.u32 %v2136_v60, %v1744_v59  ;;  %v2141_v9 = vld [vmem:[%s2317_s5 + $0x128] sm:$0xf0] }
  0x1e   : > { %v1904_v63 = vld [vmem:[%s2317_s5 + $0x230] sm:$0xf]  ;;  %v2176_v0 = vld [vmem:[%s2317_s5 + $0x240] sm:$0xf0]  ;;  %v1844_v10 = vld [vmem:[%s2317_s5 + $0x1b8] sm:$0xf] }
  0x1f   : > { %v1664_v1 = vld [vmem:[%s2317_s5 + $0x50] sm:$0xf]  ;;  %v2116_v2 = vld [vmem:[%s2317_s5 + $0x60] sm:$0xf0]  ;;  %v2161_v11 = vld [vmem:[%s2317_s5 + $0x1c8] sm:$0xf0] }
  0x20   : > { %2235 = vmatpush.bf16.msra.mxu1 %v2186_v5  ;;  %2236 = vmatpush.bf16.msra.mxu2 %v2186_v5  ;;  %v2192_v3 = vld [vmem:[%s2789_s1 + $0x40] sm:$0xff]  ;;  %v1924_v12 = vld [vmem:[%s2317_s5 + $0x258] sm:$0xf]  ;;  %v2181_v13 = vld [vmem:[%s2317_s5 + $0x268] sm:$0xf0] }
  0x21   : > { %2237 = vmatpush.bf16.msra.mxu3 %v2186_v5  ;;  %1020 = vmatpush.bf16.msra.mxu0 %v2186_v5  ;;  %v1825_v5 = vor.u32 %v2156_v62, %v1824_v61  ;;  %v1684_v14 = vld [vmem:[%s2317_s5 + $0x78] sm:$0xf]  ;;  %v2121_v15 = vld [vmem:[%s2317_s5 + $0x88] sm:$0xf0]  ;;  %v1652_v34 = vld [vmem:[%s2317_s5 + $0x30] sm:$0xf] }
  0x22   : > { %v2112_v35 = vld [vmem:[%s2317_s5 + $0x40] sm:$0xf0]  ;;  %v2110_v36 = vld [vmem:[%s2317_s5 + $0x34] sm:$0xf]  ;;  %v1654_v37 = vld [vmem:[%s2317_s5 + $0x44] sm:$0xf0] }
  0x23   : > { %v1660_v38 = vld [vmem:[%s2317_s5 + $0x38] sm:$0xf]  ;;  %v2113_v39 = vld [vmem:[%s2317_s5 + $0x48] sm:$0xf0]  ;;  %v1653_v41 = vor.u32 %v2112_v35, %v1652_v34  ;;  %v2122_v59 = vld [vmem:[%s2317_s5 + $0x90] sm:$0xf0] }
  0x24   : > { %2238 = vmatpush.bf16.msra.mxu1 %v2185_v6  ;;  %2239 = vmatpush.bf16.msra.mxu2 %v2185_v6  ;;  %v2120_v60 = vld [vmem:[%s2317_s5 + $0x84] sm:$0xf]  ;;  %v1694_v61 = vld [vmem:[%s2317_s5 + $0x94] sm:$0xf0]  ;;  %v1700_v62 = vld [vmem:[%s2317_s5 + $0x88] sm:$0xf] }
  0x25   : > { %2240 = vmatpush.bf16.msra.mxu3 %v2185_v6  ;;  %1021 = vmatpush.bf16.msra.mxu0 %v2185_v6  ;;  %v1905_v6 = vor.u32 %v2176_v0, %v1904_v63  ;;  %v2123_v63 = vld [vmem:[%s2317_s5 + $0x98] sm:$0xf0]  ;;  %v2133_v34 = vld [vmem:[%s2317_s5 + $0xe8] sm:$0xf0] }
  0x28   : > { %2241 = vmatpush.bf16.msra.mxu1 %v2184_v7  ;;  %2242 = vmatpush.bf16.msra.mxu2 %v2184_v7 }
  0x29   : > { %2243 = vmatpush.bf16.msra.mxu3 %v2184_v7  ;;  %1022 = vmatpush.bf16.msra.mxu0 %v2184_v7  ;;  %v1665_v7 = vor.u32 %v2116_v2, %v1664_v1  ;;  %v1697_v2 = vor.u32 %v2120_v60, %v1694_v61  ;;  %v2138_v60 = vld [vmem:[%s2317_s5 + $0x110] sm:$0xf0] }
  0x2b   : > { %1043 = vmatmul.bf16.vlgmr.msra.gmra.mxu1 %v1705_v18  ;;  %1063 = vmatmul.bf16.vlgmr.msra.gmra.mxu2 %v1785_v19  ;;  %v1925_v18 = vor.u32 %v2181_v13, %v1924_v12  ;;  %v1685_v19 = vor.u32 %v2121_v15, %v1684_v14  ;;  %v2128_v12 = vld [vmem:[%s2317_s5 + $0xc0] sm:$0xf0] }
  0x2c   : > { %1193 = vmatpush.bf16.msrb.mxu2 %v2207_v16  ;;  %1083 = vmatmul.bf16.vlgmr.msra.gmra.mxu3 %v1865_v20  ;;  %v1765_v16 = vor.u32 %v2141_v9, %v1764_v8  ;;  %v2104_v20 = vld [vmem:[%s2317_s5 + $0x4] sm:$0xf]  ;;  %v2127_v8 = vld [vmem:[%s2317_s5 + $0xb8] sm:$0xf0]  ;;  %v2125_v9 = vld [vmem:[%s2317_s5 + $0xac] sm:$0xf] }
  0x2d   : > { %1282 = vmatpush.bf16.msrb.mxu3 %v2215_v17  ;;  %1023 = vmatmul.bf16.vlgmr.msra.gmra.mxu0 %v1625_v21  ;;  %v1845_v17 = vor.u32 %v2161_v11, %v1844_v10  ;;  %v1626_v21 = vld [vmem:[%s2317_s5 + $0x14] sm:$0xf0]  ;;  %v1714_v10 = vld [vmem:[%s2317_s5 + $0xbc] sm:$0xf0]  ;;  %v1720_v11 = vld [vmem:[%s2317_s5 + $0xb0] sm:$0xf] }
  0x2e   : > { %1104 = vmatpush.bf16.msrb.mxu1 %v2199_v22  ;;  %1375 = vmatpush.bf16.msrb.mxu0 %v2219_v23  ;;  %v1632_v22 = vld [vmem:[%s2317_s5 + $0x8] sm:$0xf]  ;;  %v2107_v23 = vld [vmem:[%s2317_s5 + $0x18] sm:$0xf0] }
  0x30   : > { %1194 = vmatpush.bf16.msrb.mxu2 %v2206_v24  ;;  %v2105_v24 = vld [vmem:[%s2317_s5 + $0xc] sm:$0xf] }
  0x31   : > { %1283 = vmatpush.bf16.msrb.mxu3 %v2214_v25  ;;  %v1634_v25 = vld [vmem:[%s2317_s5 + $0x1c] sm:$0xf0] }
  0x32   : > { %1105 = vmatpush.bf16.msrb.mxu1 %v2198_v26  ;;  %1376 = vmatpush.bf16.msrb.mxu0 %v2218_v27  ;;  %v1640_v26 = vld [vmem:[%s2317_s5 + $0x10] sm:$0xf]  ;;  %v2108_v27 = vld [vmem:[%s2317_s5 + $0x20] sm:$0xf0] }
  0x34   : > { %1195 = vmatpush.bf16.msrb.mxu2 %v2205_v28  ;;  %v1629_v28 = vor.u32 %v2104_v20, %v1626_v21 }
  0x35   : > { %1284 = vmatpush.bf16.msrb.mxu3 %v2213_v29  ;;  %v1633_v29 = vor.u32 %v2107_v23, %v1632_v22 }
  0x36   : > { %1106 = vmatpush.bf16.msrb.mxu1 %v2197_v30  ;;  %1377 = vmatpush.bf16.msrb.mxu0 %v2217_v31  ;;  %v1637_v30 = vor.u32 %v2105_v24, %v1634_v25  ;;  %v1641_v31 = vor.u32 %v2108_v27, %v1640_v26  ;;  %v2129_v27 = vld [vmem:[%s2317_s5 + $0xcc] sm:$0xf] }
  0x38   : > { %1196 = vmatpush.bf16.msrb.mxu2 %v2204_v32  ;;  %v2109_v32 = vld [vmem:[%s2317_s5 + $0x2c] sm:$0xf] }
  0x39   : > { %1285 = vmatpush.bf16.msrb.mxu3 %v2212_v33  ;;  %v1646_v33 = vld [vmem:[%s2317_s5 + $0x3c] sm:$0xf0] }
  0x3a   : > { %1107 = vmatpush.bf16.msrb.mxu1 %v2196_v42  ;;  %1378 = vmatpush.bf16.msrb.mxu0 %v2216_v53  ;;  %v1649_v40 = vor.u32 %v2109_v32, %v1646_v33  ;;  %v1657_v42 = vor.u32 %v2110_v36, %v1654_v37  ;;  %v1734_v32 = vld [vmem:[%s2317_s5 + $0xe4] sm:$0xf0]  ;;  %v1740_v33 = vld [vmem:[%s2317_s5 + $0xd8] sm:$0xf] }
  0x3b   : > { %1048 = vmatmul.bf16.gmra.mxu1 %v1725_v45  ;;  %1068 = vmatmul.bf16.gmra.mxu2 %v1805_v46  ;;  %v1666_v45 = vld [vmem:[%s2317_s5 + $0x64] sm:$0xf0]  ;;  %v1672_v46 = vld [vmem:[%s2317_s5 + $0x58] sm:$0xf] }
  0x3c   : > { %1197 = vmatpush.bf16.msrb.mxu2 %v2203_v43  ;;  %1088 = vmatmul.bf16.gmra.mxu3 %v1885_v47  ;;  %v1661_v43 = vor.u32 %v2113_v39, %v1660_v38  ;;  %v2117_v47 = vld [vmem:[%s2317_s5 + $0x68] sm:$0xf0] }
  0x3d   : > { %1286 = vmatpush.bf16.msrb.mxu3 %v2211_v44  ;;  %1028 = vmatmul.bf16.gmra.mxu0 %v1645_v48  ;;  %v2114_v44 = vld [vmem:[%s2317_s5 + $0x54] sm:$0xf]  ;;  %v2115_v48 = vld [vmem:[%s2317_s5 + $0x5c] sm:$0xf]  ;;  %v1673_v53 = vor.u32 %v2117_v47, %v1672_v46 }
  0x3e   : > { %1108 = vmatpush.bf16.msrb.mxu1 %v2195_v49  ;;  %v1674_v49 = vld [vmem:[%s2317_s5 + $0x6c] sm:$0xf0] }
  0x40   : > { %1198 = vmatpush.bf16.msrb.mxu2 %v2202_v50  ;;  %v1680_v50 = vld [vmem:[%s2317_s5 + $0x60] sm:$0xf] }
  0x41   : > { %1287 = vmatpush.bf16.msrb.mxu3 %v2210_v51  ;;  %v2118_v51 = vld [vmem:[%s2317_s5 + $0x70] sm:$0xf0] }
  0x42   : > { %1109 = vmatpush.bf16.msrb.mxu1 %v2194_v52  ;;  %v1669_v52 = vor.u32 %v2114_v44, %v1666_v45 }
  0x44   : > { %1199 = vmatpush.bf16.msrb.mxu2 %v2201_v54  ;;  %v1677_v54 = vor.u32 %v2115_v48, %v1674_v49 }
  0x45   : > { %1288 = vmatpush.bf16.msrb.mxu3 %v2209_v55  ;;  %v1681_v55 = vor.u32 %v2118_v51, %v1680_v50 }
  0x46   : > { %1110 = vmatpush.bf16.msrb.mxu1 %v2193_v56  ;;  %v2119_v56 = vld [vmem:[%s2317_s5 + $0x7c] sm:$0xf] }
  0x48   : > { %1200 = vmatpush.bf16.msrb.mxu2 %v2200_v57  ;;  %v1686_v57 = vld [vmem:[%s2317_s5 + $0x8c] sm:$0xf0] }
  0x49   : > { %1289 = vmatpush.bf16.msrb.mxu3 %v2208_v58  ;;  %v1692_v58 = vld [vmem:[%s2317_s5 + $0x80] sm:$0xf]  ;;  %v1689_v0 = vor.u32 %v2119_v56, %v1686_v57  ;;  %v2137_v56 = vld [vmem:[%s2317_s5 + $0x108] sm:$0xf0]  ;;  %v2135_v57 = vld [vmem:[%s2317_s5 + $0xfc] sm:$0xf] }
  0x4a   : > { %1111 = vmatpush.bf16.msrb.mxu1 %v2192_v3  ;;  %v1693_v1 = vor.u32 %v2122_v59, %v1692_v58  ;;  %v1701_v3 = vor.u32 %v2123_v63, %v1700_v62  ;;  %v1754_v58 = vld [vmem:[%s2317_s5 + $0x10c] sm:$0xf0]  ;;  %v1760_v59 = vld [vmem:[%s2317_s5 + $0x100] sm:$0xf] }
  0x4b   : > { %1053 = vmatmul.bf16.gmra.mxu1 %v1745_v4  ;;  %1073 = vmatmul.bf16.gmra.mxu2 %v1825_v5  ;;  %v2477_v4 = vld [vmem:[%s2790_s2] ss:$0 sm:$0xff]  ;;  %v2124_v5 = vld [vmem:[%s2317_s5 + $0xa4] sm:$0xf] }
  0x4c   : > { %1093 = vmatmul.bf16.gmra.mxu3 %v1905_v6  ;;  %v1706_v6 = vld [vmem:[%s2317_s5 + $0xb4] sm:$0xf0] }
  0x4d   : > { %1033 = vmatmul.bf16.gmra.mxu0 %v1665_v7  ;;  %v1712_v7 = vld [vmem:[%s2317_s5 + $0xa8] sm:$0xf]  ;;  %v1709_v13 = vor.u32 %v2124_v5, %v1706_v6  ;;  %v1757_v5 = vor.u32 %v2135_v57, %v1754_v58  ;;  %v1761_v6 = vor.u32 %v2138_v60, %v1760_v59  ;;  %v1786_v57 = vld [vmem:[%s2317_s5 + $0x154] sm:$0xf0]  ;;  %v2147_v59 = vld [vmem:[%s2317_s5 + $0x158] sm:$0xf0] }
  0x4e   : > { %v1713_v14 = vor.u32 %v2127_v8, %v1712_v7  ;;  %v1792_v58 = vld [vmem:[%s2317_s5 + $0x148] sm:$0xf]  ;;  %v2145_v60 = vld [vmem:[%s2317_s5 + $0x14c] sm:$0xf] }
  0x5b   : > { %1058 = vmatmul.bf16.gmra.mxu1 %v1765_v16  ;;  %1078 = vmatmul.bf16.gmra.mxu2 %v1845_v17  ;;  %v1717_v16 = vor.u32 %v2125_v9, %v1714_v10  ;;  %v1721_v17 = vor.u32 %v2128_v12, %v1720_v11 }
  0x5c   : > { %1098 = vmatmul.bf16.gmra.mxu3 %v1925_v18 }
  0x5d   : > { %1038 = vmatmul.bf16.gmra.mxu0 %v1685_v19 }
  0x6b   : > { %1112 = vmatmul.bf16.vlgmr.msrb.gmra.mxu1 %v1629_v28  ;;  %1201 = vmatmul.bf16.vlgmr.msrb.gmra.mxu2 %v1633_v29  ;;  %v1726_v28 = vld [vmem:[%s2317_s5 + $0xdc] sm:$0xf0]  ;;  %v1732_v29 = vld [vmem:[%s2317_s5 + $0xd0] sm:$0xf] }
  0x6c   : > { %1290 = vmatmul.bf16.vlgmr.msrb.gmra.mxu3 %v1637_v30  ;;  %v2132_v30 = vld [vmem:[%s2317_s5 + $0xe0] sm:$0xf0]  ;;  %v1729_v38 = vor.u32 %v2129_v27, %v1726_v28  ;;  %v1774_v27 = vld [vmem:[%s2317_s5 + $0x134] sm:$0xf0]  ;;  %v1780_v28 = vld [vmem:[%s2317_s5 + $0x128] sm:$0xf] }
  0x6d   : > { %2086 = vmatmul.msk.bf16.vlgmr.msrb.gmra.mxu0 %vm966_vm0, %v1641_v31  ;;  %v2130_v31 = vld [vmem:[%s2317_s5 + $0xd4] sm:$0xf]  ;;  %v1733_v39 = vor.u32 %v2132_v30, %v1732_v29  ;;  %v2143_v29 = vld [vmem:[%s2317_s5 + $0x138] sm:$0xf0] }
  0x7b   : > { %1117 = vmatmul.bf16.gmra.mxu1 %v1649_v40  ;;  %1206 = vmatmul.bf16.gmra.mxu2 %v1653_v41 }
  0x7c   : > { %1295 = vmatmul.bf16.gmra.mxu3 %v1657_v42  ;;  %v1737_v42 = vor.u32 %v2130_v31, %v1734_v32 }
  0x7d   : > { %2087 = vmatmul.msk.bf16.gmra.mxu0 %vm966_vm0, %v1661_v43  ;;  %v1741_v43 = vor.u32 %v2133_v34, %v1740_v33 }
  0x8b   : > { %1122 = vmatmul.bf16.gmra.mxu1 %v1669_v52  ;;  %1211 = vmatmul.bf16.gmra.mxu2 %v1673_v53  ;;  %v2134_v53 = vld [vmem:[%s2317_s5 + $0xf4] sm:$0xf] }
  0x8c   : > { %1300 = vmatmul.bf16.gmra.mxu3 %v1677_v54  ;;  %v1746_v54 = vld [vmem:[%s2317_s5 + $0x104] sm:$0xf0] }
  0x8d   : > { %2088 = vmatmul.msk.bf16.gmra.mxu0 %vm966_vm0, %v1681_v55  ;;  %v1752_v55 = vld [vmem:[%s2317_s5 + $0xf8] sm:$0xf] }
  0x9b   : > { %1127 = vmatmul.bf16.gmra.mxu1 %v1689_v0  ;;  %1216 = vmatmul.bf16.gmra.mxu2 %v1693_v1  ;;  %v1749_v0 = vor.u32 %v2134_v53, %v1746_v54  ;;  %v1753_v1 = vor.u32 %v2137_v56, %v1752_v55  ;;  %v2144_v56 = vld [vmem:[%s2317_s5 + $0x144] sm:$0xf] }
  0x9c   : > { %1305 = vmatmul.bf16.gmra.mxu3 %v1697_v2 }
  0x9d   : > { %2089 = vmatmul.msk.bf16.gmra.mxu0 %vm966_vm0, %v1701_v3 }
  0xa8   : > { %v1044_v15 = vpop.f32.mrf.mxu1 }
  0xa9   : > { %v2488_v18 = vadd.f32 %v2477_v4, %v1044_v15 }
  0xaa   : > { %v2490_v19 = vpop.f32.mrf.mxu0 }
  0xab   : > { %1132 = vmatmul.bf16.gmra.mxu1 %v1709_v13  ;;  %1221 = vmatmul.bf16.gmra.mxu2 %v1713_v14 }
  0xac   : > { %1310 = vmatmul.bf16.gmra.mxu3 %v1717_v16  ;;  %v2139_v16 = vld [vmem:[%s2317_s5 + $0x11c] sm:$0xf] }
  0xad   : > { %2090 = vmatmul.msk.bf16.gmra.mxu0 %vm966_vm0, %v1721_v17  ;;  %v1766_v17 = vld [vmem:[%s2317_s5 + $0x12c] sm:$0xf0] }
  0xae   : > { %v1064_v20 = vpop.f32.mrf.mxu2  ;;  %v1769_v33 = vor.u32 %v2139_v16, %v1766_v17 }
  0xaf   : > { %v2494_v21 = vadd.f32 %v2477_v4, %v1064_v20  ;;  %v1084_v22 = vpop.f32.mrf.mxu3  ;;  %v1772_v20 = vld [vmem:[%s2317_s5 + $0x120] sm:$0xf] }
  0xb0   : > { %v2497_v23 = vadd.f32 %v2477_v4, %v1084_v22  ;;  %v1046_v24 = vpop.f32.mrf.mxu1  ;;  %v2142_v22 = vld [vmem:[%s2317_s5 + $0x130] sm:$0xf0] }
  0xb1   : > { %v2500_v25 = vadd.f32 %v2477_v4, %v1046_v24  ;;  %v2140_v24 = vld [vmem:[%s2317_s5 + $0x124] sm:$0xf]  ;;  %v1773_v34 = vor.u32 %v2142_v22, %v1772_v20  ;;  %v1025_v22 = vadd.f32 %v2477_v4, %v2490_v19 }
  0xb2   : > { %v2502_v26 = vpop.f32.mrf.mxu0 }
  0xb3   : > { %v1027_v19 = vadd.f32 %v2477_v4, %v2502_v26 }
  0xb6   : > { %v1066_v35 = vpop.f32.mrf.mxu2 }
  0xb7   : > { %v2513_v36 = vadd.f32 %v2477_v4, %v1066_v35  ;;  %v1086_v37 = vpop.f32.mrf.mxu3 }
  0xb8   : > { %v2516_v40 = vadd.f32 %v2477_v4, %v1086_v37  ;;  %v1049_v41 = vpop.f32.mrf.mxu1 }
  0xb9   : > { %v2519_v44 = vadd.f32 %v2477_v4, %v1049_v41 }
  0xba   : > { %v2521_v45 = vpop.f32.mrf.mxu0 }
  0xbb   : > { %1137 = vmatmul.bf16.gmra.mxu1 %v1729_v38  ;;  %1226 = vmatmul.bf16.gmra.mxu2 %v1733_v39  ;;  %v1777_v38 = vor.u32 %v2140_v24, %v1774_v27  ;;  %v1781_v39 = vor.u32 %v2143_v29, %v1780_v28 }
  0xbc   : > { %1315 = vmatmul.bf16.gmra.mxu3 %v1737_v42 }
  0xbd   : > { %2091 = vmatmul.msk.bf16.gmra.mxu0 %vm966_vm0, %v1741_v43 }
  0xbe   : > { %v1069_v46 = vpop.f32.mrf.mxu2 }
  0xbf   : > { %v2525_v47 = vadd.f32 %v2477_v4, %v1069_v46  ;;  %v1089_v48 = vpop.f32.mrf.mxu3 }
  0xc0   : > { %v2528_v49 = vadd.f32 %v2477_v4, %v1089_v48  ;;  %v1051_v50 = vpop.f32.mrf.mxu1 }
  0xc1   : > { %v2531_v51 = vadd.f32 %v2477_v4, %v1051_v50 }
  0xc2   : > { %v2533_v52 = vpop.f32.mrf.mxu0 }
  0xc6   : > { %v1071_v61 = vpop.f32.mrf.mxu2 }
  0xc7   : > { %v2544_v62 = vadd.f32 %v2477_v4, %v1071_v61  ;;  %v1091_v63 = vpop.f32.mrf.mxu3  ;;  %v1794_v61 = vld [vmem:[%s2317_s5 + $0x15c] sm:$0xf0] }
  0xc8   : > { %v2547_v2 = vadd.f32 %v2477_v4, %v1091_v63  ;;  %v1054_v3 = vpop.f32.mrf.mxu1  ;;  %v1800_v63 = vld [vmem:[%s2317_s5 + $0x150] sm:$0xf]  ;;  %v1797_v16 = vor.u32 %v2145_v60, %v1794_v61 }
  0xc9   : > { %v2550_v7 = vadd.f32 %v2477_v4, %v1054_v3 }
  0xca   : > { %v2552_v8 = vpop.f32.mrf.mxu0 }
  0xcb   : > { %1142 = vmatmul.bf16.gmra.mxu1 %v1749_v0  ;;  %1231 = vmatmul.bf16.gmra.mxu2 %v1753_v1  ;;  %v2148_v0 = vld [vmem:[%s2317_s5 + $0x160] sm:$0xf0] }
  0xcc   : > { %1320 = vmatmul.bf16.gmra.mxu3 %v1757_v5  ;;  %v1801_v17 = vor.u32 %v2148_v0, %v1800_v63 }
  0xcd   : > { %2092 = vmatmul.msk.bf16.gmra.mxu0 %vm966_vm0, %v1761_v6  ;;  %v1789_v6 = vor.u32 %v2144_v56, %v1786_v57 }
  0xce   : > { %v1074_v9 = vpop.f32.mrf.mxu2 }
  0xcf   : > { %v2556_v10 = vadd.f32 %v2477_v4, %v1074_v9  ;;  %v1094_v11 = vpop.f32.mrf.mxu3  ;;  %v1793_v9 = vor.u32 %v2147_v59, %v1792_v58  ;;  %v1820_v58 = vld [vmem:[%s2317_s5 + $0x178] sm:$0xf]  ;;  %v2153_v59 = vld [vmem:[%s2317_s5 + $0x188] sm:$0xf0] }
  0xd0   : > { %v2559_v12 = vadd.f32 %v2477_v4, %v1094_v11  ;;  %v1056_v13 = vpop.f32.mrf.mxu1 }
  0xd1   : > { %v2562_v14 = vadd.f32 %v2477_v4, %v1056_v13 }
  0xd2   : > { %v2564_v15 = vpop.f32.mrf.mxu0 }
  0xd6   : > { %v1076_v30 = vpop.f32.mrf.mxu2 }
  0xd7   : > { %v2575_v31 = vadd.f32 %v2477_v4, %v1076_v30  ;;  %v1096_v32 = vpop.f32.mrf.mxu3 }
  0xd8   : > { %v2578_v35 = vadd.f32 %v2477_v4, %v1096_v32  ;;  %v1059_v37 = vpop.f32.mrf.mxu1 }
  0xd9   : > { %v2581_v41 = vadd.f32 %v2477_v4, %v1059_v37  ;;  %v2149_v37 = vld [vmem:[%s2317_s5 + $0x16c] sm:$0xf] }
  0xda   : > { %v2583_v42 = vpop.f32.mrf.mxu0 }
  0xdb   : > { %1147 = vmatmul.bf16.gmra.mxu1 %v1769_v33  ;;  %1236 = vmatmul.bf16.gmra.mxu2 %v1773_v34 }
  0xdc   : > { %1325 = vmatmul.bf16.gmra.mxu3 %v1777_v38  ;;  %v1806_v38 = vld [vmem:[%s2317_s5 + $0x17c] sm:$0xf0] }
  0xdd   : > { %2093 = vmatmul.msk.bf16.gmra.mxu0 %vm966_vm0, %v1781_v39  ;;  %v1812_v39 = vld [vmem:[%s2317_s5 + $0x170] sm:$0xf]  ;;  %v1809_v0 = vor.u32 %v2149_v37, %v1806_v38  ;;  %v2154_v37 = vld [vmem:[%s2317_s5 + $0x194] sm:$0xf]  ;;  %v1826_v38 = vld [vmem:[%s2317_s5 + $0x1a4] sm:$0xf0] }
  0xde   : > { %v1079_v43 = vpop.f32.mrf.mxu2 }
  0xdf   : > { %v2587_v46 = vadd.f32 %v2477_v4, %v1079_v43  ;;  %v1099_v48 = vpop.f32.mrf.mxu3  ;;  %v2152_v43 = vld [vmem:[%s2317_s5 + $0x180] sm:$0xf0] }
  0xe0   : > { %v2590_v50 = vadd.f32 %v2477_v4, %v1099_v48  ;;  %v1061_v53 = vpop.f32.mrf.mxu1  ;;  %v2150_v48 = vld [vmem:[%s2317_s5 + $0x174] sm:$0xf] }
  0xe1   : > { %v2593_v54 = vadd.f32 %v2477_v4, %v1061_v53  ;;  %v1814_v53 = vld [vmem:[%s2317_s5 + $0x184] sm:$0xf0] }
  0xe2   : > { %v2595_v55 = vpop.f32.mrf.mxu0 }
  0xe6   : > { %v1081_v1 = vpop.f32.mrf.mxu2 }
  0xe7   : > { %v2606_v3 = vadd.f32 %v2477_v4, %v1081_v1  ;;  %v1101_v5 = vpop.f32.mrf.mxu3  ;;  %v1813_v1 = vor.u32 %v2152_v43, %v1812_v39  ;;  %v1832_v39 = vld [vmem:[%s2317_s5 + $0x198] sm:$0xf]  ;;  %v2157_v43 = vld [vmem:[%s2317_s5 + $0x1a8] sm:$0xf0] }
  0xe8   : > { %v2609_v11 = vadd.f32 %v2477_v4, %v1101_v5  ;;  %v1113_v13 = vpop.f32.mrf.mxu1 }
  0xe9   : > { %v1114_v24 = vadd.f32 %v1113_v13, %v1025_v22 }
  0xea   : > { %v1380_v20 = vpop.f32.mrf.mxu0 }
  0xeb   : > { %1152 = vmatmul.bf16.gmra.mxu1 %v1789_v6  ;;  %1241 = vmatmul.bf16.gmra.mxu2 %v1793_v9  ;;  %v1817_v6 = vor.u32 %v2150_v48, %v1814_v53  ;;  %v1821_v9 = vor.u32 %v2153_v59, %v1820_v58  ;;  %v2155_v48 = vld [vmem:[%s2317_s5 + $0x19c] sm:$0xf]  ;;  %v1834_v53 = vld [vmem:[%s2317_s5 + $0x1ac] sm:$0xf0]  ;;  %v1840_v58 = vld [vmem:[%s2317_s5 + $0x1a0] sm:$0xf] }
  0xec   : > { %1330 = vmatmul.bf16.gmra.mxu3 %v1797_v16  ;;  %v2158_v59 = vld [vmem:[%s2317_s5 + $0x1b0] sm:$0xf0] }
  0xed   : > { %2094 = vmatmul.msk.bf16.gmra.mxu0 %vm966_vm0, %v1801_v17  ;;  %v1030_v17 = vadd.f32 %v2477_v4, %v2521_v45 }
  0xee   : > { %v1202_v27 = vpop.f32.mrf.mxu2 }
  0xef   : > { %v1203_v28 = vadd.f32 %v1202_v27, %v1114_v24  ;;  %v1291_v29 = vpop.f32.mrf.mxu3 }
  0xf0   : > { %v1115_v30 = vpop.f32.mrf.mxu1 }
  0xf1   : > { %v1292_v32 = vadd.f32 %v1291_v29, %v1203_v28  ;;  %v1116_v57 = vadd.f32 %v1115_v30, %v1027_v19  ;;  %v1032_v19 = vadd.f32 %v2477_v4, %v2533_v52  ;;  %v1837_v52 = vor.u32 %v2155_v48, %v1834_v53 }
  0xf2   : > { %v1382_v33 = vpop.f32.mrf.mxu0 }
  0xf3   : > { %v1381_v34 = vadd.f32 %v1380_v20, %v1292_v32 }
  0xf5   : > { %v1460_v56 = vmax.f32 %v1381_v34, 0.0 }
  0xf6   : > { %v1204_v60 = vpop.f32.mrf.mxu2 }
  0xf7   : > { %v1492_v26 = vpack.c.bf16 %v1460_v56, %v1460_v56  ;;  %v1205_v61 = vadd.f32 %v1204_v60, %v1116_v57  ;;  %v1293_v63 = vpop.f32.mrf.mxu3 }
  0xf8   : > { %v1118_v5 = vpop.f32.mrf.mxu1 }
  0xf9   : > { %1525 = vst.msk [vmem:[%s2628_s23] sm:$0xf] %vm1524_vm1, %v1492_v26  ;;  %v1294_v13 = vadd.f32 %v1293_v63, %v1205_v61  ;;  %v1119_v24 = vadd.f32 %v1118_v5, %v1030_v17 }
  0xfa   : > { %v1385_v16 = vpop.f32.mrf.mxu0 }
  0xfb   : > { %v1383_v20 = vadd.f32 %v1382_v33, %v1294_v13  ;;  %1157 = vmatmul.bf16.gmra.mxu1 %v1809_v0  ;;  %1246 = vmatmul.bf16.gmra.mxu2 %v1813_v1  ;;  %v1829_v0 = vor.u32 %v2154_v37, %v1826_v38  ;;  %v1833_v1 = vor.u32 %v2157_v43, %v1832_v39  ;;  %v1852_v37 = vld [vmem:[%s2317_s5 + $0x1c0] sm:$0xf]  ;;  %v2162_v38 = vld [vmem:[%s2317_s5 + $0x1d0] sm:$0xf0]  ;;  %v2160_v39 = vld [vmem:[%s2317_s5 + $0x1c4] sm:$0xf] }
  0xfc   : > { %1335 = vmatmul.bf16.gmra.mxu3 %v1817_v6  ;;  %v1841_v6 = vor.u32 %v2158_v59, %v1840_v58  ;;  %v1854_v43 = vld [vmem:[%s2317_s5 + $0x1d4] sm:$0xf0] }
  0xfd   : > { %2095 = vmatmul.msk.bf16.gmra.mxu0 %vm966_vm0, %v1821_v9  ;;  %v1461_v22 = vmax.f32 %v1383_v20, 0.0 }
  0xfe   : > { %v1207_v27 = vpop.f32.mrf.mxu2 }
  0xff   : > { %v1493_v28 = vpack.c.bf16 %v1461_v22, %v1461_v22  ;;  %v1208_v29 = vadd.f32 %v1207_v27, %v1119_v24  ;;  %v1296_v30 = vpop.f32.mrf.mxu3 }
 0x100   : > { %v1120_v45 = vpop.f32.mrf.mxu1 }
 0x101   : > { %1526 = vst.msk [vmem:[%s2628_s23 + $0x4] sm:$0xf] %vm1524_vm1, %v1493_v28  ;;  %v1297_v32 = vadd.f32 %v1296_v30, %v1208_v29  ;;  %v1121_v57 = vadd.f32 %v1120_v45, %v1032_v19  ;;  %v2159_v19 = vld [vmem:[%s2317_s5 + $0x1bc] sm:$0xf] }
 0x102   : > { %v1387_v33 = vpop.f32.mrf.mxu0 }
 0x103   : > { %v1386_v34 = vadd.f32 %v1385_v16, %v1297_v32  ;;  %v1035_v16 = vadd.f32 %v2477_v4, %v2552_v8  ;;  %v1037_v32 = vadd.f32 %v2477_v4, %v2564_v15  ;;  %v1857_v15 = vor.u32 %v2160_v39, %v1854_v43  ;;  %v1880_v39 = vld [vmem:[%s2317_s5 + $0x1f0] sm:$0xf]  ;;  %v2168_v43 = vld [vmem:[%s2317_s5 + $0x200] sm:$0xf0] }
 0x105   : > { %v1462_v56 = vmax.f32 %v1386_v34, 0.0  ;;  %v1846_v34 = vld [vmem:[%s2317_s5 + $0x1cc] sm:$0xf0] }
 0x106   : > { %v1209_v60 = vpop.f32.mrf.mxu2 }
 0x107   : > { %v1494_v26 = vpack.c.bf16 %v1462_v56, %v1462_v56  ;;  %v1210_v61 = vadd.f32 %v1209_v60, %v1121_v57  ;;  %v1298_v63 = vpop.f32.mrf.mxu3  ;;  %v1860_v56 = vld [vmem:[%s2317_s5 + $0x1c8] sm:$0xf]  ;;  %v2163_v57 = vld [vmem:[%s2317_s5 + $0x1d8] sm:$0xf0] }
 0x108   : > { %v1123_v5 = vpop.f32.mrf.mxu1 }
 0x109   : > { %1527 = vst.msk [vmem:[%s2628_s23 + $0x8] sm:$0xf] %vm1524_vm1, %v1494_v26  ;;  %v1299_v9 = vadd.f32 %v1298_v63, %v1210_v61  ;;  %v1124_v22 = vadd.f32 %v1123_v5, %v1035_v16  ;;  %v1849_v61 = vor.u32 %v2159_v19, %v1846_v34  ;;  %v1853_v63 = vor.u32 %v2162_v38, %v1852_v37  ;;  %v2165_v19 = vld [vmem:[%s2317_s5 + $0x1ec] sm:$0xf]  ;;  %v1874_v34 = vld [vmem:[%s2317_s5 + $0x1fc] sm:$0xf0] }
 0x10a   : > { %v1390_v13 = vpop.f32.mrf.mxu0 }
 0x10b   : > { %v1388_v17 = vadd.f32 %v1387_v33, %v1299_v9  ;;  %1162 = vmatmul.bf16.gmra.mxu1 %v1829_v0  ;;  %1251 = vmatmul.bf16.gmra.mxu2 %v1833_v1  ;;  %v1861_v1 = vor.u32 %v2163_v57, %v1860_v56 }
 0x10c   : > { %1340 = vmatmul.bf16.gmra.mxu3 %v1837_v52 }
 0x10d   : > { %2096 = vmatmul.msk.bf16.gmra.mxu0 %vm966_vm0, %v1841_v6  ;;  %v1463_v20 = vmax.f32 %v1388_v17, 0.0  ;;  %v1040_v6 = vadd.f32 %v2477_v4, %v2583_v42 }
 0x10e   : > { %v1212_v24 = vpop.f32.mrf.mxu2 }
 0x10f   : > { %v1495_v27 = vpack.c.bf16 %v1463_v20, %v1463_v20  ;;  %v1213_v28 = vadd.f32 %v1212_v24, %v1124_v22  ;;  %v1301_v29 = vpop.f32.mrf.mxu3 }
 0x110   : > { %v1125_v8 = vpop.f32.mrf.mxu1 }
 0x111   : > { %1528 = vst.msk [vmem:[%s2628_s23 + $0xc] sm:$0xf] %vm1524_vm1, %v1495_v27  ;;  %v1302_v30 = vadd.f32 %v1301_v29, %v1213_v28  ;;  %v1126_v53 = vadd.f32 %v1125_v8, %v1037_v32  ;;  %v1042_v29 = vadd.f32 %v2477_v4, %v2595_v55  ;;  %v1872_v32 = vld [vmem:[%s2317_s5 + $0x1e8] sm:$0xf]  ;;  %v1877_v4 = vor.u32 %v2165_v19, %v1874_v34 }
 0x112   : > { %v1392_v45 = vpop.f32.mrf.mxu0  ;;  %v1881_v55 = vor.u32 %v2168_v43, %v1880_v39 }
 0x113   : > { %v1391_v33 = vadd.f32 %v1390_v13, %v1302_v30  ;;  %v2164_v30 = vld [vmem:[%s2317_s5 + $0x1e4] sm:$0xf] }
 0x115   : > { %v1464_v48 = vmax.f32 %v1391_v33, 0.0  ;;  %v2167_v33 = vld [vmem:[%s2317_s5 + $0x1f8] sm:$0xf0] }
 0x116   : > { %v1214_v58 = vpop.f32.mrf.mxu2 }
 0x117   : > { %v1496_v59 = vpack.c.bf16 %v1464_v48, %v1464_v48  ;;  %v1215_v60 = vadd.f32 %v1214_v58, %v1126_v53  ;;  %v1303_v26 = vpop.f32.mrf.mxu3 }
 0x118   : > { %v1128_v0 = vpop.f32.mrf.mxu1 }
 0x119   : > { %1529 = vst.msk [vmem:[%s2628_s23 + $0x10] sm:$0xf] %vm1524_vm1, %v1496_v59  ;;  %v1304_v5 = vadd.f32 %v1303_v26, %v1215_v60  ;;  %v1129_v16 = vadd.f32 %v1128_v0, %v1040_v6  ;;  %v1873_v59 = vor.u32 %v2167_v33, %v1872_v32 }
 0x11a   : > { %v1395_v52 = vpop.f32.mrf.mxu0 }
 0x11b   : > { %v1393_v9 = vadd.f32 %v1392_v45, %v1304_v5  ;;  %1167 = vmatmul.bf16.gmra.mxu1 %v1849_v61  ;;  %1256 = vmatmul.bf16.gmra.mxu2 %v1853_v63  ;;  %v1866_v45 = vld [vmem:[%s2317_s5 + $0x1f4] sm:$0xf0] }
 0x11c   : > { %1345 = vmatmul.bf16.gmra.mxu3 %v1857_v15  ;;  %v1869_v58 = vor.u32 %v2164_v30, %v1866_v45  ;;  %v2173_v30 = vld [vmem:[%s2317_s5 + $0x228] sm:$0xf0] }
 0x11d   : > { %2097 = vmatmul.msk.bf16.gmra.mxu0 %vm966_vm0, %v1861_v1  ;;  %v1465_v13 = vmax.f32 %v1393_v9, 0.0 }
 0x11e   : > { %v1217_v17 = vpop.f32.mrf.mxu2 }
 0x11f   : > { %v1497_v20 = vpack.c.bf16 %v1465_v13, %v1465_v13  ;;  %v1218_v22 = vadd.f32 %v1217_v17, %v1129_v16  ;;  %v1306_v24 = vpop.f32.mrf.mxu3 }
 0x120   : > { %v1130_v42 = vpop.f32.mrf.mxu1 }
 0x121   : > { %1530 = vst.msk [vmem:[%s2628_s23 + $0x14] sm:$0xf] %vm1524_vm1, %v1497_v20  ;;  %v1307_v27 = vadd.f32 %v1306_v24, %v1218_v22  ;;  %v1131_v38 = vadd.f32 %v1130_v42, %v1042_v29  ;;  %v2169_v20 = vld [vmem:[%s2317_s5 + $0x20c] sm:$0xf]  ;;  %v1886_v22 = vld [vmem:[%s2317_s5 + $0x21c] sm:$0xf0] }
 0x122   : > { %v1397_v28 = vpop.f32.mrf.mxu0  ;;  %v1892_v24 = vld [vmem:[%s2317_s5 + $0x210] sm:$0xf]  ;;  %v2172_v42 = vld [vmem:[%s2317_s5 + $0x220] sm:$0xf0]  ;;  %v1889_v34 = vor.u32 %v2169_v20, %v1886_v22 }
 0x123   : > { %v1396_v8 = vadd.f32 %v1395_v52, %v1307_v27  ;;  %v2170_v27 = vld [vmem:[%s2317_s5 + $0x214] sm:$0xf] }
 0x125   : > { %v1466_v37 = vmax.f32 %v1396_v8, 0.0  ;;  %v1900_v8 = vld [vmem:[%s2317_s5 + $0x218] sm:$0xf] }
 0x126   : > { %v1219_v48 = vpop.f32.mrf.mxu2  ;;  %v1901_v43 = vor.u32 %v2173_v30, %v1900_v8 }
 0x127   : > { %v1498_v53 = vpack.c.bf16 %v1466_v37, %v1466_v37  ;;  %v1220_v56 = vadd.f32 %v1219_v48, %v1131_v38  ;;  %v1308_v57 = vpop.f32.mrf.mxu3  ;;  %v1893_v37 = vor.u32 %v2172_v42, %v1892_v24 }
 0x128   : > { %v1133_v60 = vpop.f32.mrf.mxu1 }
 0x129   : > { %1531 = vst.msk [vmem:[%s2628_s23 + $0x18] sm:$0xf] %vm1524_vm1, %v1498_v53  ;;  %v1309_v26 = vadd.f32 %v1308_v57, %v1220_v56  ;;  %v1134_v15 = vadd.f32 %v1133_v60, %v2488_v18 }
 0x12a   : > { %v1400_v61 = vpop.f32.mrf.mxu0 }
 0x12b   : > { %v1398_v63 = vadd.f32 %v1397_v28, %v1309_v26  ;;  %1172 = vmatmul.bf16.gmra.mxu1 %v1869_v58  ;;  %1261 = vmatmul.bf16.gmra.mxu2 %v1873_v59  ;;  %v1894_v28 = vld [vmem:[%s2317_s5 + $0x224] sm:$0xf0] }
 0x12c   : > { %1350 = vmatmul.bf16.gmra.mxu3 %v1877_v4  ;;  %v1897_v39 = vor.u32 %v2170_v27, %v1894_v28 }
 0x12d   : > { %2098 = vmatmul.msk.bf16.gmra.mxu0 %vm966_vm0, %v1881_v55  ;;  %v1467_v0 = vmax.f32 %v1398_v63, 0.0 }
 0x12e   : > { %v1222_v1 = vpop.f32.mrf.mxu2 }
 0x12f   : > { %v1499_v5 = vpack.c.bf16 %v1467_v0, %v1467_v0  ;;  %v1223_v52 = vadd.f32 %v1222_v1, %v1134_v15  ;;  %v1311_v6 = vpop.f32.mrf.mxu3  ;;  %v2174_v0 = vld [vmem:[%s2317_s5 + $0x234] sm:$0xf]  ;;  %v1906_v15 = vld [vmem:[%s2317_s5 + $0x244] sm:$0xf0]  ;;  %v1912_v1 = vld [vmem:[%s2317_s5 + $0x238] sm:$0xf] }
 0x130   : > { %v1135_v9 = vpop.f32.mrf.mxu1  ;;  %v1909_v42 = vor.u32 %v2174_v0, %v1906_v15 }
 0x131   : > { %1532 = vst.msk [vmem:[%s2628_s23 + $0x1c] sm:$0xf] %vm1524_vm1, %v1499_v5  ;;  %v1312_v13 = vadd.f32 %v1311_v6, %v1223_v52  ;;  %v1136_v29 = vadd.f32 %v1135_v9, %v2500_v25  ;;  %v2177_v5 = vld [vmem:[%s2317_s5 + $0x248] sm:$0xf0]  ;;  %v2175_v52 = vld [vmem:[%s2317_s5 + $0x23c] sm:$0xf] }
 0x132   : > { %v1402_v16 = vpop.f32.mrf.mxu0  ;;  %v1914_v6 = vld [vmem:[%s2317_s5 + $0x24c] sm:$0xf0]  ;;  %v1913_v27 = vor.u32 %v2177_v5, %v1912_v1 }
 0x133   : > { %v1401_v17 = vadd.f32 %v1400_v61, %v1312_v13  ;;  %v1920_v13 = vld [vmem:[%s2317_s5 + $0x240] sm:$0xf] }
 0x135   : > { %v1468_v18 = vmax.f32 %v1401_v17, 0.0 }
 0x136   : > { %v1224_v45 = vpop.f32.mrf.mxu2 }
 0x137   : > { %v1500_v32 = vpack.c.bf16 %v1468_v18, %v1468_v18  ;;  %v1225_v33 = vadd.f32 %v1224_v45, %v1136_v29  ;;  %v1313_v19 = vpop.f32.mrf.mxu3  ;;  %v1917_v18 = vor.u32 %v2175_v52, %v1914_v6 }
 0x138   : > { %v1138_v38 = vpop.f32.mrf.mxu1 }
 0x139   : > { %1533 = vst.msk [vmem:[%s2628_s23 + $0x20] sm:$0xf] %vm1524_vm1, %v1500_v32  ;;  %v1314_v48 = vadd.f32 %v1313_v19, %v1225_v33  ;;  %v1139_v57 = vadd.f32 %v1138_v38, %v2519_v44 }
 0x13a   : > { %v1405_v53 = vpop.f32.mrf.mxu0 }
 0x13b   : > { %v1403_v56 = vadd.f32 %v1402_v16, %v1314_v48  ;;  %1177 = vmatmul.bf16.gmra.mxu1 %v1889_v34  ;;  %1266 = vmatmul.bf16.gmra.mxu2 %v1893_v37  ;;  %v2178_v16 = vld [vmem:[%s2317_s5 + $0x250] sm:$0xf0] }
 0x13c   : > { %1355 = vmatmul.bf16.gmra.mxu3 %v1897_v39  ;;  %v1921_v29 = vor.u32 %v2178_v16, %v1920_v13 }
 0x13d   : > { %2099 = vmatmul.msk.bf16.gmra.mxu0 %vm966_vm0, %v1901_v43  ;;  %v1469_v25 = vmax.f32 %v1403_v56, 0.0  ;;  %v1926_v56 = vld [vmem:[%s2317_s5 + $0x26c] sm:$0xf0] }
 0x13e   : > { %v1227_v58 = vpop.f32.mrf.mxu2 }
 0x13f   : > { %v1501_v59 = vpack.c.bf16 %v1469_v25, %v1469_v25  ;;  %v1228_v60 = vadd.f32 %v1227_v58, %v1139_v57  ;;  %v1316_v4 = vpop.f32.mrf.mxu3  ;;  %v1932_v25 = vld [vmem:[%s2317_s5 + $0x260] sm:$0xf]  ;;  %v2182_v57 = vld [vmem:[%s2317_s5 + $0x270] sm:$0xf0]  ;;  %v2180_v58 = vld [vmem:[%s2317_s5 + $0x264] sm:$0xf] }
 0x140   : > { %v1140_v55 = vpop.f32.mrf.mxu1  ;;  %v1933_v1 = vor.u32 %v2182_v57, %v1932_v25 }
 0x141   : > { %1534 = vst.msk [vmem:[%s2628_s23 + $0x24] sm:$0xf] %vm1524_vm1, %v1501_v59  ;;  %v1317_v26 = vadd.f32 %v1316_v4, %v1228_v60  ;;  %v1141_v9 = vadd.f32 %v1140_v55, %v2531_v51  ;;  %v1934_v59 = vld [vmem:[%s2317_s5 + $0x274] sm:$0xf0]  ;;  %v1940_v4 = vld [vmem:[%s2317_s5 + $0x268] sm:$0xf] }
 0x142   : > { %v1407_v61 = vpop.f32.mrf.mxu0  ;;  %v2183_v55 = vld [vmem:[%s2317_s5 + $0x278] sm:$0xf0]  ;;  %v1937_v52 = vor.u32 %v2180_v58, %v1934_v59 }
 0x143   : > { %v1406_v63 = vadd.f32 %v1405_v53, %v1317_v26  ;;  %v2179_v53 = vld [vmem:[%s2317_s5 + $0x25c] sm:$0xf]  ;;  %v1941_v6 = vor.u32 %v2183_v55, %v1940_v4 }
 0x144   : > { %v1929_v15 = vor.u32 %v2179_v53, %v1926_v56 }
 0x145   : > { %v1470_v44 = vmax.f32 %v1406_v63, 0.0 }
 0x146   : > { %v1229_v17 = vpop.f32.mrf.mxu2 }
 0x147   : > { %v1502_v20 = vpack.c.bf16 %v1470_v44, %v1470_v44  ;;  %v1230_v22 = vadd.f32 %v1229_v17, %v1141_v9  ;;  %v1318_v24 = vpop.f32.mrf.mxu3 }
 0x148   : > { %v1143_v28 = vpop.f32.mrf.mxu1 }
 0x149   : > { %1535 = vst.msk [vmem:[%s2628_s23 + $0x28] sm:$0xf] %vm1524_vm1, %v1502_v20  ;;  %v1319_v8 = vadd.f32 %v1318_v24, %v1230_v22  ;;  %v1144_v32 = vadd.f32 %v1143_v28, %v2550_v7 }
 0x14a   : > { %v1410_v30 = vpop.f32.mrf.mxu0 }
 0x14b   : > { %v1408_v45 = vadd.f32 %v1407_v61, %v1319_v8  ;;  %1182 = vmatmul.bf16.gmra.mxu1 %v1909_v42  ;;  %1271 = vmatmul.bf16.gmra.mxu2 %v1913_v27 }
 0x14c   : > { %1360 = vmatmul.bf16.gmra.mxu3 %v1917_v18 }
 0x14d   : > { %2100 = vmatmul.msk.bf16.gmra.mxu0 %vm966_vm0, %v1921_v29  ;;  %v1471_v51 = vmax.f32 %v1408_v45, 0.0 }
 0x14e   : > { %v1232_v33 = vpop.f32.mrf.mxu2 }
 0x14f   : > { %v1503_v19 = vpack.c.bf16 %v1471_v51, %v1471_v51  ;;  %v1233_v34 = vadd.f32 %v1232_v33, %v1144_v32  ;;  %v1321_v37 = vpop.f32.mrf.mxu3 }
 0x150   : > { %v1145_v38 = vpop.f32.mrf.mxu1 }
 0x151   : > { %1536 = vst.msk [vmem:[%s2628_s23 + $0x2c] sm:$0xf] %vm1524_vm1, %v1503_v19  ;;  %v1322_v39 = vadd.f32 %v1321_v37, %v1233_v34  ;;  %v1146_v60 = vadd.f32 %v1145_v38, %v2562_v14 }
 0x152   : > { %v1412_v43 = vpop.f32.mrf.mxu0 }
 0x153   : > { %v1411_v48 = vadd.f32 %v1410_v30, %v1322_v39 }
 0x155   : > { %v1472_v7 = vmax.f32 %v1411_v48, 0.0 }
 0x156   : > { %v1234_v26 = vpop.f32.mrf.mxu2 }
 0x157   : > { %v1504_v61 = vpack.c.bf16 %v1472_v7, %v1472_v7  ;;  %v1235_v63 = vadd.f32 %v1234_v26, %v1146_v60  ;;  %v1323_v0 = vpop.f32.mrf.mxu3 }
 0x158   : > { %v1148_v5 = vpop.f32.mrf.mxu1 }
 0x159   : > { %1537 = vst.msk [vmem:[%s2628_s23 + $0x30] sm:$0xf] %vm1524_vm1, %v1504_v61  ;;  %v1324_v44 = vadd.f32 %v1323_v0, %v1235_v63  ;;  %v1149_v16 = vadd.f32 %v1148_v5, %v2581_v41 }
 0x15a   : > { %v1415_v9 = vpop.f32.mrf.mxu0 }
 0x15b   : > { %v1413_v13 = vadd.f32 %v1412_v43, %v1324_v44  ;;  %1187 = vmatmul.bf16.gmra.mxu1 %v1929_v15  ;;  %1276 = vmatmul.bf16.gmra.mxu2 %v1933_v1 }
 0x15c   : > { %1365 = vmatmul.bf16.gmra.mxu3 %v1937_v52 }
 0x15d   : > { %2101 = vmatmul.msk.bf16.gmra.mxu0 %vm966_vm0, %v1941_v6  ;;  %v1473_v14 = vmax.f32 %v1413_v13, 0.0 }
 0x15e   : > { %v1237_v17 = vpop.f32.mrf.mxu2 }
 0x15f   : > { %v1505_v20 = vpack.c.bf16 %v1473_v14, %v1473_v14  ;;  %v1238_v22 = vadd.f32 %v1237_v17, %v1149_v16  ;;  %v1326_v24 = vpop.f32.mrf.mxu3 }
 0x160   : > { %v1150_v42 = vpop.f32.mrf.mxu1 }
 0x161   : > { %1538 = vst.msk [vmem:[%s2628_s23 + $0x34] sm:$0xf] %vm1524_vm1, %v1505_v20  ;;  %v1327_v27 = vadd.f32 %v1326_v24, %v1238_v22  ;;  %v1151_v8 = vadd.f32 %v1150_v42, %v2593_v54 }
 0x162   : > { %v1417_v28 = vpop.f32.mrf.mxu0 }
 0x163   : > { %v1416_v18 = vadd.f32 %v1415_v9, %v1327_v27 }
 0x165   : > { %v1474_v29 = vmax.f32 %v1416_v18, 0.0 }
 0x166   : > { %v1239_v30 = vpop.f32.mrf.mxu2 }
 0x167   : > { %v1506_v45 = vpack.c.bf16 %v1474_v29, %v1474_v29  ;;  %v1240_v51 = vadd.f32 %v1239_v30, %v1151_v8  ;;  %v1328_v32 = vpop.f32.mrf.mxu3 }
 0x168   : > { %v1153_v41 = vpop.f32.mrf.mxu1 }
 0x169   : > { %1539 = vst.msk [vmem:[%s2628_s23 + $0x38] sm:$0xf] %vm1524_vm1, %v1506_v45  ;;  %v1329_v33 = vadd.f32 %v1328_v32, %v1240_v51  ;;  %v1154_v38 = vadd.f32 %v1153_v41, %v2494_v21 }
 0x16a   : > { %v1420_v19 = vpop.f32.mrf.mxu0 }
 0x16b   : > { %v1418_v34 = vadd.f32 %v1417_v28, %v1329_v33 }
 0x16d   : > { %v1475_v37 = vmax.f32 %v1418_v34, 0.0 }
 0x16e   : > { %v1242_v39 = vpop.f32.mrf.mxu2 }
 0x16f   : > { %v1507_v43 = vpack.c.bf16 %v1475_v37, %v1475_v37  ;;  %v1243_v48 = vadd.f32 %v1242_v39, %v1154_v38  ;;  %v1331_v53 = vpop.f32.mrf.mxu3 }
 0x170   : > { %v1155_v54 = vpop.f32.mrf.mxu1 }
 0x171   : > { %1540 = vst.msk [vmem:[%s2628_s23 + $0x3c] sm:$0xf] %vm1524_vm1, %v1507_v43  ;;  %v1332_v56 = vadd.f32 %v1331_v53, %v1243_v48  ;;  %v1156_v59 = vadd.f32 %v1155_v54, %v2513_v36 }
 0x172   : > { %v1422_v25 = vpop.f32.mrf.mxu0 }
 0x173   : > { %v1421_v57 = vadd.f32 %v1420_v19, %v1332_v56 }
 0x175   : > { %v1476_v58 = vmax.f32 %v1421_v57, 0.0 }
 0x176   : > { %v1244_v7 = vpop.f32.mrf.mxu2 }
 0x177   : > { %v1508_v60 = vpack.c.bf16 %v1476_v58, %v1476_v58  ;;  %v1245_v4 = vadd.f32 %v1244_v7, %v1156_v59  ;;  %v1333_v55 = vpop.f32.mrf.mxu3 }
 0x178   : > { %v1158_v21 = vpop.f32.mrf.mxu1 }
 0x179   : > { %1541 = vst.msk [vmem:[%s2628_s23 + $0x40] sm:$0xf] %vm1524_vm1, %v1508_v60  ;;  %v1334_v26 = vadd.f32 %v1333_v55, %v1245_v4  ;;  %v1159_v15 = vadd.f32 %v1158_v21, %v2525_v47 }
 0x17a   : > { %v1425_v61 = vpop.f32.mrf.mxu0 }
 0x17b   : > { %v1423_v63 = vadd.f32 %v1422_v25, %v1334_v26 }
 0x17d   : > { %v1477_v0 = vmax.f32 %v1423_v63, 0.0 }
 0x17e   : > { %v1247_v1 = vpop.f32.mrf.mxu2 }
 0x17f   : > { %v1509_v5 = vpack.c.bf16 %v1477_v0, %v1477_v0  ;;  %v1248_v52 = vadd.f32 %v1247_v1, %v1159_v15  ;;  %v1336_v6 = vpop.f32.mrf.mxu3 }
 0x180   : > { %v1160_v36 = vpop.f32.mrf.mxu1 }
 0x181   : > { %1542 = vst.msk [vmem:[%s2628_s23 + $0x44] sm:$0xf] %vm1524_vm1, %v1509_v5  ;;  %v1337_v44 = vadd.f32 %v1336_v6, %v1248_v52  ;;  %v1161_v16 = vadd.f32 %v1160_v36, %v2544_v62 }
 0x182   : > { %v1427_v9 = vpop.f32.mrf.mxu0 }
 0x183   : > { %v1426_v13 = vadd.f32 %v1425_v61, %v1337_v44 }
 0x185   : > { %v1478_v14 = vmax.f32 %v1426_v13, 0.0 }
 0x186   : > { %v1249_v17 = vpop.f32.mrf.mxu2 }
 0x187   : > { %v1510_v20 = vpack.c.bf16 %v1478_v14, %v1478_v14  ;;  %v1250_v22 = vadd.f32 %v1249_v17, %v1161_v16  ;;  %v1338_v24 = vpop.f32.mrf.mxu3 }
 0x188   : > { %v1163_v47 = vpop.f32.mrf.mxu1 }
 0x189   : > { %1543 = vst.msk [vmem:[%s2628_s23 + $0x48] sm:$0xf] %vm1524_vm1, %v1510_v20  ;;  %v1339_v42 = vadd.f32 %v1338_v24, %v1250_v22  ;;  %v1164_v29 = vadd.f32 %v1163_v47, %v2556_v10 }
 0x18a   : > { %v1430_v27 = vpop.f32.mrf.mxu0 }
 0x18b   : > { %v1428_v28 = vadd.f32 %v1427_v9, %v1339_v42 }
 0x18d   : > { %v1479_v18 = vmax.f32 %v1428_v28, 0.0 }
 0x18e   : > { %v1252_v8 = vpop.f32.mrf.mxu2 }
 0x18f   : > { %v1511_v30 = vpack.c.bf16 %v1479_v18, %v1479_v18  ;;  %v1253_v45 = vadd.f32 %v1252_v8, %v1164_v29  ;;  %v1341_v51 = vpop.f32.mrf.mxu3 }
 0x190   : > { %v1165_v62 = vpop.f32.mrf.mxu1 }
 0x191   : > { %1544 = vst.msk [vmem:[%s2628_s23 + $0x4c] sm:$0xf] %vm1524_vm1, %v1511_v30  ;;  %v1342_v32 = vadd.f32 %v1341_v51, %v1253_v45  ;;  %v1166_v34 = vadd.f32 %v1165_v62, %v2575_v31 }
 0x192   : > { %v1432_v41 = vpop.f32.mrf.mxu0 }
 0x193   : > { %v1431_v33 = vadd.f32 %v1430_v27, %v1342_v32 }
 0x195   : > { %v1480_v19 = vmax.f32 %v1431_v33, 0.0 }
 0x196   : > { %v1254_v37 = vpop.f32.mrf.mxu2 }
 0x197   : > { %v1512_v38 = vpack.c.bf16 %v1480_v19, %v1480_v19  ;;  %v1255_v39 = vadd.f32 %v1254_v37, %v1166_v34  ;;  %v1343_v43 = vpop.f32.mrf.mxu3 }
 0x198   : > { %v1168_v10 = vpop.f32.mrf.mxu1 }
 0x199   : > { %1545 = vst.msk [vmem:[%s2628_s23 + $0x50] sm:$0xf] %vm1524_vm1, %v1512_v38  ;;  %v1344_v48 = vadd.f32 %v1343_v43, %v1255_v39  ;;  %v1169_v25 = vadd.f32 %v1168_v10, %v2587_v46 }
 0x19a   : > { %v1435_v53 = vpop.f32.mrf.mxu0 }
 0x19b   : > { %v1433_v54 = vadd.f32 %v1432_v41, %v1344_v48 }
 0x19d   : > { %v1481_v56 = vmax.f32 %v1433_v54, 0.0 }
 0x19e   : > { %v1257_v57 = vpop.f32.mrf.mxu2 }
 0x19f   : > { %v1513_v58 = vpack.c.bf16 %v1481_v56, %v1481_v56  ;;  %v1258_v59 = vadd.f32 %v1257_v57, %v1169_v25  ;;  %v1346_v7 = vpop.f32.mrf.mxu3 }
 0x1a0   : > { %v1170_v31 = vpop.f32.mrf.mxu1 }
 0x1a1   : > { %1546 = vst.msk [vmem:[%s2628_s23 + $0x54] sm:$0xf] %vm1524_vm1, %v1513_v58  ;;  %v1347_v60 = vadd.f32 %v1346_v7, %v1258_v59  ;;  %v1171_v26 = vadd.f32 %v1170_v31, %v2606_v3 }
 0x1a2   : > { %v1437_v4 = vpop.f32.mrf.mxu0 }
 0x1a3   : > { %v1436_v55 = vadd.f32 %v1435_v53, %v1347_v60 }
 0x1a5   : > { %v1482_v21 = vmax.f32 %v1436_v55, 0.0 }
 0x1a6   : > { %v1259_v61 = vpop.f32.mrf.mxu2 }
 0x1a7   : > { %v1514_v63 = vpack.c.bf16 %v1482_v21, %v1482_v21  ;;  %v1260_v0 = vadd.f32 %v1259_v61, %v1171_v26  ;;  %v1348_v15 = vpop.f32.mrf.mxu3 }
 0x1a8   : > { %v1173_v46 = vpop.f32.mrf.mxu1 }
 0x1a9   : > { %1547 = vst.msk [vmem:[%s2628_s23 + $0x58] sm:$0xf] %vm1524_vm1, %v1514_v63  ;;  %v1349_v1 = vadd.f32 %v1348_v15, %v1260_v0  ;;  %v1174_v36 = vadd.f32 %v1173_v46, %v2497_v23 }
 0x1aa   : > { %v1440_v5 = vpop.f32.mrf.mxu0 }
 0x1ab   : > { %v1438_v52 = vadd.f32 %v1437_v4, %v1349_v1 }
 0x1ad   : > { %v1483_v6 = vmax.f32 %v1438_v52, 0.0 }
 0x1ae   : > { %v1262_v44 = vpop.f32.mrf.mxu2 }
 0x1af   : > { %v1515_v9 = vpack.c.bf16 %v1483_v6, %v1483_v6  ;;  %v1263_v13 = vadd.f32 %v1262_v44, %v1174_v36  ;;  %v1351_v14 = vpop.f32.mrf.mxu3 }
 0x1b0   : > { %v1175_v3 = vpop.f32.mrf.mxu1 }
 0x1b1   : > { %1548 = vst.msk [vmem:[%s2628_s23 + $0x5c] sm:$0xf] %vm1524_vm1, %v1515_v9  ;;  %v1352_v16 = vadd.f32 %v1351_v14, %v1263_v13  ;;  %v1176_v24 = vadd.f32 %v1175_v3, %v2516_v40 }
 0x1b2   : > { %v1442_v17 = vpop.f32.mrf.mxu0 }
 0x1b3   : > { %v1441_v20 = vadd.f32 %v1440_v5, %v1352_v16 }
 0x1b5   : > { %v1484_v22 = vmax.f32 %v1441_v20, 0.0 }
 0x1b6   : > { %v1264_v47 = vpop.f32.mrf.mxu2 }
 0x1b7   : > { %v1516_v42 = vpack.c.bf16 %v1484_v22, %v1484_v22  ;;  %v1265_v27 = vadd.f32 %v1264_v47, %v1176_v24  ;;  %v1353_v28 = vpop.f32.mrf.mxu3 }
 0x1b8   : > { %v1178_v23 = vpop.f32.mrf.mxu1 }
 0x1b9   : > { %1549 = vst.msk [vmem:[%s2628_s23 + $0x60] sm:$0xf] %vm1524_vm1, %v1516_v42  ;;  %v1354_v18 = vadd.f32 %v1353_v28, %v1265_v27  ;;  %v1179_v45 = vadd.f32 %v1178_v23, %v2528_v49 }
 0x1ba   : > { %v1445_v29 = vpop.f32.mrf.mxu0 }
 0x1bb   : > { %v1443_v8 = vadd.f32 %v1442_v17, %v1354_v18 }
 0x1bd   : > { %v1485_v30 = vmax.f32 %v1443_v8, 0.0 }
 0x1be   : > { %v1267_v51 = vpop.f32.mrf.mxu2 }
 0x1bf   : > { %v1517_v62 = vpack.c.bf16 %v1485_v30, %v1485_v30  ;;  %v1268_v32 = vadd.f32 %v1267_v51, %v1179_v45  ;;  %v1356_v41 = vpop.f32.mrf.mxu3 }
 0x1c0   : > { %v1180_v40 = vpop.f32.mrf.mxu1 }
 0x1c1   : > { %1550 = vst.msk [vmem:[%s2628_s23 + $0x64] sm:$0xf] %vm1524_vm1, %v1517_v62  ;;  %v1357_v33 = vadd.f32 %v1356_v41, %v1268_v32  ;;  %v1181_v38 = vadd.f32 %v1180_v40, %v2547_v2 }
 0x1c2   : > { %v1447_v19 = vpop.f32.mrf.mxu0 }
 0x1c3   : > { %v1446_v34 = vadd.f32 %v1445_v29, %v1357_v33 }
 0x1c5   : > { %v1486_v37 = vmax.f32 %v1446_v34, 0.0 }
 0x1c6   : > { %v1269_v39 = vpop.f32.mrf.mxu2 }
 0x1c7   : > { %v1518_v43 = vpack.c.bf16 %v1486_v37, %v1486_v37  ;;  %v1270_v10 = vadd.f32 %v1269_v39, %v1181_v38  ;;  %v1358_v48 = vpop.f32.mrf.mxu3 }
 0x1c8   : > { %v1183_v49 = vpop.f32.mrf.mxu1 }
 0x1c9   : > { %1551 = vst.msk [vmem:[%s2628_s23 + $0x68] sm:$0xf] %vm1524_vm1, %v1518_v43  ;;  %v1359_v53 = vadd.f32 %v1358_v48, %v1270_v10  ;;  %v1184_v57 = vadd.f32 %v1183_v49, %v2559_v12 }
 0x1ca   : > { %v1450_v56 = vpop.f32.mrf.mxu0 }
 0x1cb   : > { %v1448_v54 = vadd.f32 %v1447_v19, %v1359_v53 }
 0x1cd   : > { %v1487_v25 = vmax.f32 %v1448_v54, 0.0 }
 0x1ce   : > { %v1272_v58 = vpop.f32.mrf.mxu2 }
 0x1cf   : > { %v1519_v59 = vpack.c.bf16 %v1487_v25, %v1487_v25  ;;  %v1273_v7 = vadd.f32 %v1272_v58, %v1184_v57  ;;  %v1361_v31 = vpop.f32.mrf.mxu3 }
 0x1d0   : > { %v1185_v2 = vpop.f32.mrf.mxu1 }
 0x1d1   : > { %1552 = vst.msk [vmem:[%s2628_s23 + $0x6c] sm:$0xf] %vm1524_vm1, %v1519_v59  ;;  %v1362_v60 = vadd.f32 %v1361_v31, %v1273_v7  ;;  %v1186_v21 = vadd.f32 %v1185_v2, %v2578_v35 }
 0x1d2   : > { %v1452_v26 = vpop.f32.mrf.mxu0 }
 0x1d3   : > { %v1451_v4 = vadd.f32 %v1450_v56, %v1362_v60 }
 0x1d5   : > { %v1488_v55 = vmax.f32 %v1451_v4, 0.0 }
 0x1d6   : > { %v1274_v61 = vpop.f32.mrf.mxu2 }
 0x1d7   : > { %v1520_v63 = vpack.c.bf16 %v1488_v55, %v1488_v55  ;;  %v1275_v0 = vadd.f32 %v1274_v61, %v1186_v21  ;;  %v1363_v15 = vpop.f32.mrf.mxu3 }
 0x1d8   : > { %v1188_v12 = vpop.f32.mrf.mxu1 }
 0x1d9   : > { %1553 = vst.msk [vmem:[%s2628_s23 + $0x70] sm:$0xf] %vm1524_vm1, %v1520_v63  ;;  %v1364_v46 = vadd.f32 %v1363_v15, %v1275_v0  ;;  %v1189_v52 = vadd.f32 %v1188_v12, %v2590_v50 }
 0x1da   : > { %v1455_v35 = vpop.f32.mrf.mxu0 }
 0x1db   : > { %v1453_v1 = vadd.f32 %v1452_v26, %v1364_v46 }
 0x1dd   : > { %v1489_v5 = vmax.f32 %v1453_v1, 0.0 }
 0x1de   : > { %v1277_v6 = vpop.f32.mrf.mxu2 }
 0x1df   : > { %v1521_v36 = vpack.c.bf16 %v1489_v5, %v1489_v5  ;;  %v1278_v44 = vadd.f32 %v1277_v6, %v1189_v52  ;;  %v1366_v9 = vpop.f32.mrf.mxu3 }
 0x1e0   : > { %v1190_v14 = vpop.f32.mrf.mxu1 }
 0x1e1   : > { %1554 = vst.msk [vmem:[%s2628_s23 + $0x74] sm:$0xf] %vm1524_vm1, %v1521_v36  ;;  %v1367_v13 = vadd.f32 %v1366_v9, %v1278_v44  ;;  %v1191_v17 = vadd.f32 %v1190_v14, %v2609_v11 }
 0x1e2   : > { %v1457_v42 = vpop.f32.mrf.mxu0 }
 0x1e3   : > { %v1456_v3 = vadd.f32 %v1455_v35, %v1367_v13 }
 0x1e5   : > { %v1490_v16 = vmax.f32 %v1456_v3, 0.0 }
 0x1e6   : > { %v1279_v20 = vpop.f32.mrf.mxu2 }
 0x1e7   : > { %v1522_v22 = vpack.c.bf16 %v1490_v16, %v1490_v16  ;;  %v1280_v24 = vadd.f32 %v1279_v20, %v1191_v17  ;;  %v1368_v47 = vpop.f32.mrf.mxu3 }
 0x1e9   : > { %1555 = vst.msk [vmem:[%s2628_s23 + $0x78] sm:$0xf] %vm1524_vm1, %v1522_v22  ;;  %v1369_v50 = vadd.f32 %v1368_v47, %v1280_v24 }
 0x1eb   : > { %v1458_v27 = vadd.f32 %v1457_v42, %v1369_v50 }
 0x1ed   : > { %v1491_v28 = vmax.f32 %v1458_v27, 0.0 }
 0x1ef   : > { %v1523_v23 = vpack.c.bf16 %v1491_v28, %v1491_v28 }
 0x1f1   : > { %1556 = vst.msk [vmem:[%s2628_s23 + $0x7c] sm:$0xf] %vm1524_vm1, %v1523_v23 }
 0x1f2 PF: > { %s13_s12 = sadd.s32 1, %s2260_s12  }
 0x1f3   : > { %p10_p4 = scmp.ge.s32.totalorder %s13_s12, 10  }
 0x1f5   :  { %12 = sbr.rel (!%p10_p4) target bundleno = 1 (0x1), region = 62 }

// kernel: dmcs_forward.27
= control target key start
LH: loop header
LB: loop body
LE: loop exit
PB: predicated region body
PF: predicated region fallthrough
CT: control target
= control target key end

     0   :  { %s2282_s12 = smov 0   ;;  %s2788_s0 = inlined_call_operand.vmem [shape: bf16[512,576], index: 0, kind: input, shape index: {}]   ;;  %s2789_s1 = inlined_call_operand.vmem [shape: bf16[576,64], index: 1, kind: input, shape index: {}]   ;;  %s2790_s2 = inlined_call_operand.vmem [shape: f32[1,64], index: 2, kind: input, shape index: {}]   ;;  %s2791_s3 = inlined_call_operand.vmem [shape: bf16[512,64], index: 3, kind: output, shape index: {}]  }
   0x1 LB: > { %s1613_s13 = sadd.s32 4294967295, %s2260_s12   ;;  %p1617_p0 = scmp.ge.s32.totalorder %s2260_s12, 1  ;;  %s2260_s12 = sphi %s2282_s12, %s13_s12  }
   0x2   : > { %p139_p1 = scmp.lt.s32.totalorder %s2260_s12, 3 }
   0x4   : > { %p140_p2 = pnand %p1617_p0, %p139_p1 }
   0x5   : > { %s1618_s20 = sshll.u32 (!%p140_p2), %s1613_s13, 5 }
   0x6   : > { %143 = sbr.rel (%p140_p2) target bundleno = 498 (0x1f2), region = 32  ;;  %p165_p3 = scmp.lt.s32.totalorder (!%p140_p2), %s1618_s20, 63 }
   0xb   : > { %v2191_v0 = vld [vmem:[%s2789_s1 + $0x38] sm:$0xff]  ;;  %v2190_v1 = vld [vmem:[%s2789_s1 + $0x30] sm:$0xff]  ;;  %v2189_v2 = vld [vmem:[%s2789_s1 + $0x28] sm:$0xff]  ;;  %s2793_s20 = smov (!%p165_p3, %s1618_s20), 63  ;;  %vm966_vm0 = vcmask 523264   ;;  %vm1524_vm1 = vcmask 519168  }
   0xc   : > { %2220 = vmatpush.bf16.msra.mxu1 %v2191_v0  ;;  %2221 = vmatpush.bf16.msra.mxu2 %v2191_v0  ;;  %v2188_v3 = vld [vmem:[%s2789_s1 + $0x20] sm:$0xff]  ;;  %v2187_v4 = vld [vmem:[%s2789_s1 + $0x18] sm:$0xff]  ;;  %v2186_v5 = vld [vmem:[%s2789_s1 + $0x10] sm:$0xff]  ;;  %s2244_s27 = smul.u32 20, %s2793_s20  ;;  %s1621_s19 = sshll.u32 %s2793_s20, 2 }
   0xd   : > { %2222 = vmatpush.bf16.msra.mxu3 %v2191_v0  ;;  %1015 = vmatpush.bf16.msra.mxu0 %v2191_v0  ;;  %v2185_v6 = vld [vmem:[%s2789_s1 + $0x8] sm:$0xff]  ;;  %v2184_v7 = vld [vmem:[%s2789_s1] sm:$0xff]  ;;  %v2207_v16 = vld [vmem:[%s2789_s1 + $0xb8] sm:$0xff]  ;;  %s2628_s23 = scalar_lea.vmem %s2791_s3, %s1621_s19 }
   0xe   : > { %s2317_s5 = scalar_lea.vmem %s2788_s0, %s2244_s27  ;;  %v2215_v17 = vld [vmem:[%s2789_s1 + $0xf8] sm:$0xff]  ;;  %v2206_v24 = vld [vmem:[%s2789_s1 + $0xb0] sm:$0xff]  ;;  %v2205_v28 = vld [vmem:[%s2789_s1 + $0xa8] sm:$0xff] }
   0xf   : > { %v1704_v8 = vld [vmem:[%s2317_s5 + $0xa0] sm:$0xf]  ;;  %v2126_v9 = vld [vmem:[%s2317_s5 + $0xb0] sm:$0xf0]  ;;  %v2199_v22 = vld [vmem:[%s2789_s1 + $0x78] sm:$0xff] }
  0x10   : > { %2223 = vmatpush.bf16.msra.mxu1 %v2190_v1  ;;  %2224 = vmatpush.bf16.msra.mxu2 %v2190_v1  ;;  %v1784_v10 = vld [vmem:[%s2317_s5 + $0x140] sm:$0xf]  ;;  %v2146_v11 = vld [vmem:[%s2317_s5 + $0x150] sm:$0xf0]  ;;  %v1705_v18 = vor.u32 %v2126_v9, %v1704_v8  ;;  %v2219_v23 = vld [vmem:[%s2789_s1 + $0x118] sm:$0xff] }
  0x11   : > { %2225 = vmatpush.bf16.msra.mxu3 %v2190_v1  ;;  %1016 = vmatpush.bf16.msra.mxu0 %v2190_v1  ;;  %v1864_v12 = vld [vmem:[%s2317_s5 + $0x1e0] sm:$0xf]  ;;  %v2166_v13 = vld [vmem:[%s2317_s5 + $0x1f0] sm:$0xf0]  ;;  %v1785_v19 = vor.u32 %v2146_v11, %v1784_v10  ;;  %v2213_v29 = vld [vmem:[%s2789_s1 + $0xe8] sm:$0xff] }
  0x12   : > { %v1624_v14 = vld [vmem:[%s2317_s5] sm:$0xf]  ;;  %v2106_v15 = vld [vmem:[%s2317_s5 + $0x10] sm:$0xf0]  ;;  %v1865_v20 = vor.u32 %v2166_v13, %v1864_v12  ;;  %v2197_v30 = vld [vmem:[%s2789_s1 + $0x68] sm:$0xff] }
  0x13   : > { %v1625_v21 = vor.u32 %v2106_v15, %v1624_v14  ;;  %v2214_v25 = vld [vmem:[%s2789_s1 + $0xf0] sm:$0xff]  ;;  %v2217_v31 = vld [vmem:[%s2789_s1 + $0x108] sm:$0xff]  ;;  %v2204_v32 = vld [vmem:[%s2789_s1 + $0xa0] sm:$0xff] }
  0x14   : > { %2226 = vmatpush.bf16.msra.mxu1 %v2189_v2  ;;  %2227 = vmatpush.bf16.msra.mxu2 %v2189_v2  ;;  %v2198_v26 = vld [vmem:[%s2789_s1 + $0x70] sm:$0xff]  ;;  %v2212_v33 = vld [vmem:[%s2789_s1 + $0xe0] sm:$0xff]  ;;  %v1724_v34 = vld [vmem:[%s2317_s5 + $0xc8] sm:$0xf] }
  0x15   : > { %2228 = vmatpush.bf16.msra.mxu3 %v2189_v2  ;;  %1017 = vmatpush.bf16.msra.mxu0 %v2189_v2  ;;  %v2218_v27 = vld [vmem:[%s2789_s1 + $0x110] sm:$0xff]  ;;  %v2131_v35 = vld [vmem:[%s2317_s5 + $0xd8] sm:$0xf0]  ;;  %v1804_v36 = vld [vmem:[%s2317_s5 + $0x168] sm:$0xf] }
  0x16   : > { %v2151_v37 = vld [vmem:[%s2317_s5 + $0x178] sm:$0xf0]  ;;  %v1884_v38 = vld [vmem:[%s2317_s5 + $0x208] sm:$0xf]  ;;  %v2196_v42 = vld [vmem:[%s2789_s1 + $0x60] sm:$0xff]  ;;  %v1725_v45 = vor.u32 %v2131_v35, %v1724_v34 }
  0x17   : > { %v2171_v39 = vld [vmem:[%s2317_s5 + $0x218] sm:$0xf0]  ;;  %v1644_v40 = vld [vmem:[%s2317_s5 + $0x28] sm:$0xf]  ;;  %v1805_v46 = vor.u32 %v2151_v37, %v1804_v36  ;;  %v2202_v50 = vld [vmem:[%s2789_s1 + $0x90] sm:$0xff] }
  0x18   : > { %2229 = vmatpush.bf16.msra.mxu1 %v2188_v3  ;;  %2230 = vmatpush.bf16.msra.mxu2 %v2188_v3  ;;  %v2111_v41 = vld [vmem:[%s2317_s5 + $0x38] sm:$0xf0]  ;;  %v1885_v47 = vor.u32 %v2171_v39, %v1884_v38  ;;  %v2210_v51 = vld [vmem:[%s2789_s1 + $0xd0] sm:$0xff]  ;;  %v2216_v53 = vld [vmem:[%s2789_s1 + $0x100] sm:$0xff] }
  0x19   : > { %2231 = vmatpush.bf16.msra.mxu3 %v2188_v3  ;;  %1018 = vmatpush.bf16.msra.mxu0 %v2188_v3  ;;  %v2203_v43 = vld [vmem:[%s2789_s1 + $0x98] sm:$0xff]  ;;  %v1645_v48 = vor.u32 %v2111_v41, %v1644_v40  ;;  %v2194_v52 = vld [vmem:[%s2789_s1 + $0x50] sm:$0xff]  ;;  %v2201_v54 = vld [vmem:[%s2789_s1 + $0x88] sm:$0xff] }
  0x1a   : > { %v2211_v44 = vld [vmem:[%s2789_s1 + $0xd8] sm:$0xff]  ;;  %v2209_v55 = vld [vmem:[%s2789_s1 + $0xc8] sm:$0xff]  ;;  %v2200_v57 = vld [vmem:[%s2789_s1 + $0x80] sm:$0xff] }
  0x1b   : > { %v2195_v49 = vld [vmem:[%s2789_s1 + $0x58] sm:$0xff]  ;;  %v2193_v56 = vld [vmem:[%s2789_s1 + $0x48] sm:$0xff]  ;;  %v2208_v58 = vld [vmem:[%s2789_s1 + $0xc0] sm:$0xff] }
  0x1c   : > { %2232 = vmatpush.bf16.msra.mxu1 %v2187_v4  ;;  %2233 = vmatpush.bf16.msra.mxu2 %v2187_v4  ;;  %v1744_v59 = vld [vmem:[%s2317_s5 + $0xf0] sm:$0xf]  ;;  %v2136_v60 = vld [vmem:[%s2317_s5 + $0x100] sm:$0xf0]  ;;  %v1764_v8 = vld [vmem:[%s2317_s5 + $0x118] sm:$0xf] }
  0x1d   : > { %2234 = vmatpush.bf16.msra.mxu3 %v2187_v4  ;;  %1019 = vmatpush.bf16.msra.mxu0 %v2187_v4  ;;  %v1824_v61 = vld [vmem:[%s2317_s5 + $0x190] sm:$0xf]  ;;  %v2156_v62 = vld [vmem:[%s2317_s5 + $0x1a0] sm:$0xf0]  ;;  %v1745_v4 = vor.u32 %v2136_v60, %v1744_v59  ;;  %v2141_v9 = vld [vmem:[%s2317_s5 + $0x128] sm:$0xf0] }
  0x1e   : > { %v1904_v63 = vld [vmem:[%s2317_s5 + $0x230] sm:$0xf]  ;;  %v2176_v0 = vld [vmem:[%s2317_s5 + $0x240] sm:$0xf0]  ;;  %v1844_v10 = vld [vmem:[%s2317_s5 + $0x1b8] sm:$0xf] }
  0x1f   : > { %v1664_v1 = vld [vmem:[%s2317_s5 + $0x50] sm:$0xf]  ;;  %v2116_v2 = vld [vmem:[%s2317_s5 + $0x60] sm:$0xf0]  ;;  %v2161_v11 = vld [vmem:[%s2317_s5 + $0x1c8] sm:$0xf0] }
  0x20   : > { %2235 = vmatpush.bf16.msra.mxu1 %v2186_v5  ;;  %2236 = vmatpush.bf16.msra.mxu2 %v2186_v5  ;;  %v2192_v3 = vld [vmem:[%s2789_s1 + $0x40] sm:$0xff]  ;;  %v1924_v12 = vld [vmem:[%s2317_s5 + $0x258] sm:$0xf]  ;;  %v2181_v13 = vld [vmem:[%s2317_s5 + $0x268] sm:$0xf0] }
  0x21   : > { %2237 = vmatpush.bf16.msra.mxu3 %v2186_v5  ;;  %1020 = vmatpush.bf16.msra.mxu0 %v2186_v5  ;;  %v1825_v5 = vor.u32 %v2156_v62, %v1824_v61  ;;  %v1684_v14 = vld [vmem:[%s2317_s5 + $0x78] sm:$0xf]  ;;  %v2121_v15 = vld [vmem:[%s2317_s5 + $0x88] sm:$0xf0]  ;;  %v1652_v34 = vld [vmem:[%s2317_s5 + $0x30] sm:$0xf] }
  0x22   : > { %v2112_v35 = vld [vmem:[%s2317_s5 + $0x40] sm:$0xf0]  ;;  %v2110_v36 = vld [vmem:[%s2317_s5 + $0x34] sm:$0xf]  ;;  %v1654_v37 = vld [vmem:[%s2317_s5 + $0x44] sm:$0xf0] }
  0x23   : > { %v1660_v38 = vld [vmem:[%s2317_s5 + $0x38] sm:$0xf]  ;;  %v2113_v39 = vld [vmem:[%s2317_s5 + $0x48] sm:$0xf0]  ;;  %v1653_v41 = vor.u32 %v2112_v35, %v1652_v34  ;;  %v2122_v59 = vld [vmem:[%s2317_s5 + $0x90] sm:$0xf0] }
  0x24   : > { %2238 = vmatpush.bf16.msra.mxu1 %v2185_v6  ;;  %2239 = vmatpush.bf16.msra.mxu2 %v2185_v6  ;;  %v2120_v60 = vld [vmem:[%s2317_s5 + $0x84] sm:$0xf]  ;;  %v1694_v61 = vld [vmem:[%s2317_s5 + $0x94] sm:$0xf0]  ;;  %v1700_v62 = vld [vmem:[%s2317_s5 + $0x88] sm:$0xf] }
  0x25   : > { %2240 = vmatpush.bf16.msra.mxu3 %v2185_v6  ;;  %1021 = vmatpush.bf16.msra.mxu0 %v2185_v6  ;;  %v1905_v6 = vor.u32 %v2176_v0, %v1904_v63  ;;  %v2123_v63 = vld [vmem:[%s2317_s5 + $0x98] sm:$0xf0]  ;;  %v2133_v34 = vld [vmem:[%s2317_s5 + $0xe8] sm:$0xf0] }
  0x28   : > { %2241 = vmatpush.bf16.msra.mxu1 %v2184_v7  ;;  %2242 = vmatpush.bf16.msra.mxu2 %v2184_v7 }
  0x29   : > { %2243 = vmatpush.bf16.msra.mxu3 %v2184_v7  ;;  %1022 = vmatpush.bf16.msra.mxu0 %v2184_v7  ;;  %v1665_v7 = vor.u32 %v2116_v2, %v1664_v1  ;;  %v1697_v2 = vor.u32 %v2120_v60, %v1694_v61  ;;  %v2138_v60 = vld [vmem:[%s2317_s5 + $0x110] sm:$0xf0] }
  0x2b   : > { %1043 = vmatmul.bf16.vlgmr.msra.gmra.mxu1 %v1705_v18  ;;  %1063 = vmatmul.bf16.vlgmr.msra.gmra.mxu2 %v1785_v19  ;;  %v1925_v18 = vor.u32 %v2181_v13, %v1924_v12  ;;  %v1685_v19 = vor.u32 %v2121_v15, %v1684_v14  ;;  %v2128_v12 = vld [vmem:[%s2317_s5 + $0xc0] sm:$0xf0] }
  0x2c   : > { %1193 = vmatpush.bf16.msrb.mxu2 %v2207_v16  ;;  %1083 = vmatmul.bf16.vlgmr.msra.gmra.mxu3 %v1865_v20  ;;  %v1765_v16 = vor.u32 %v2141_v9, %v1764_v8  ;;  %v2104_v20 = vld [vmem:[%s2317_s5 + $0x4] sm:$0xf]  ;;  %v2127_v8 = vld [vmem:[%s2317_s5 + $0xb8] sm:$0xf0]  ;;  %v2125_v9 = vld [vmem:[%s2317_s5 + $0xac] sm:$0xf] }
  0x2d   : > { %1282 = vmatpush.bf16.msrb.mxu3 %v2215_v17  ;;  %1023 = vmatmul.bf16.vlgmr.msra.gmra.mxu0 %v1625_v21  ;;  %v1845_v17 = vor.u32 %v2161_v11, %v1844_v10  ;;  %v1626_v21 = vld [vmem:[%s2317_s5 + $0x14] sm:$0xf0]  ;;  %v1714_v10 = vld [vmem:[%s2317_s5 + $0xbc] sm:$0xf0]  ;;  %v1720_v11 = vld [vmem:[%s2317_s5 + $0xb0] sm:$0xf] }
  0x2e   : > { %1104 = vmatpush.bf16.msrb.mxu1 %v2199_v22  ;;  %1375 = vmatpush.bf16.msrb.mxu0 %v2219_v23  ;;  %v1632_v22 = vld [vmem:[%s2317_s5 + $0x8] sm:$0xf]  ;;  %v2107_v23 = vld [vmem:[%s2317_s5 + $0x18] sm:$0xf0] }
  0x30   : > { %1194 = vmatpush.bf16.msrb.mxu2 %v2206_v24  ;;  %v2105_v24 = vld [vmem:[%s2317_s5 + $0xc] sm:$0xf] }
  0x31   : > { %1283 = vmatpush.bf16.msrb.mxu3 %v2214_v25  ;;  %v1634_v25 = vld [vmem:[%s2317_s5 + $0x1c] sm:$0xf0] }
  0x32   : > { %1105 = vmatpush.bf16.msrb.mxu1 %v2198_v26  ;;  %1376 = vmatpush.bf16.msrb.mxu0 %v2218_v27  ;;  %v1640_v26 = vld [vmem:[%s2317_s5 + $0x10] sm:$0xf]  ;;  %v2108_v27 = vld [vmem:[%s2317_s5 + $0x20] sm:$0xf0] }
  0x34   : > { %1195 = vmatpush.bf16.msrb.mxu2 %v2205_v28  ;;  %v1629_v28 = vor.u32 %v2104_v20, %v1626_v21 }
  0x35   : > { %1284 = vmatpush.bf16.msrb.mxu3 %v2213_v29  ;;  %v1633_v29 = vor.u32 %v2107_v23, %v1632_v22 }
  0x36   : > { %1106 = vmatpush.bf16.msrb.mxu1 %v2197_v30  ;;  %1377 = vmatpush.bf16.msrb.mxu0 %v2217_v31  ;;  %v1637_v30 = vor.u32 %v2105_v24, %v1634_v25  ;;  %v1641_v31 = vor.u32 %v2108_v27, %v1640_v26  ;;  %v2129_v27 = vld [vmem:[%s2317_s5 + $0xcc] sm:$0xf] }
  0x38   : > { %1196 = vmatpush.bf16.msrb.mxu2 %v2204_v32  ;;  %v2109_v32 = vld [vmem:[%s2317_s5 + $0x2c] sm:$0xf] }
  0x39   : > { %1285 = vmatpush.bf16.msrb.mxu3 %v2212_v33  ;;  %v1646_v33 = vld [vmem:[%s2317_s5 + $0x3c] sm:$0xf0] }
  0x3a   : > { %1107 = vmatpush.bf16.msrb.mxu1 %v2196_v42  ;;  %1378 = vmatpush.bf16.msrb.mxu0 %v2216_v53  ;;  %v1649_v40 = vor.u32 %v2109_v32, %v1646_v33  ;;  %v1657_v42 = vor.u32 %v2110_v36, %v1654_v37  ;;  %v1734_v32 = vld [vmem:[%s2317_s5 + $0xe4] sm:$0xf0]  ;;  %v1740_v33 = vld [vmem:[%s2317_s5 + $0xd8] sm:$0xf] }
  0x3b   : > { %1048 = vmatmul.bf16.gmra.mxu1 %v1725_v45  ;;  %1068 = vmatmul.bf16.gmra.mxu2 %v1805_v46  ;;  %v1666_v45 = vld [vmem:[%s2317_s5 + $0x64] sm:$0xf0]  ;;  %v1672_v46 = vld [vmem:[%s2317_s5 + $0x58] sm:$0xf] }
  0x3c   : > { %1197 = vmatpush.bf16.msrb.mxu2 %v2203_v43  ;;  %1088 = vmatmul.bf16.gmra.mxu3 %v1885_v47  ;;  %v1661_v43 = vor.u32 %v2113_v39, %v1660_v38  ;;  %v2117_v47 = vld [vmem:[%s2317_s5 + $0x68] sm:$0xf0] }
  0x3d   : > { %1286 = vmatpush.bf16.msrb.mxu3 %v2211_v44  ;;  %1028 = vmatmul.bf16.gmra.mxu0 %v1645_v48  ;;  %v2114_v44 = vld [vmem:[%s2317_s5 + $0x54] sm:$0xf]  ;;  %v2115_v48 = vld [vmem:[%s2317_s5 + $0x5c] sm:$0xf]  ;;  %v1673_v53 = vor.u32 %v2117_v47, %v1672_v46 }
  0x3e   : > { %1108 = vmatpush.bf16.msrb.mxu1 %v2195_v49  ;;  %v1674_v49 = vld [vmem:[%s2317_s5 + $0x6c] sm:$0xf0] }
  0x40   : > { %1198 = vmatpush.bf16.msrb.mxu2 %v2202_v50  ;;  %v1680_v50 = vld [vmem:[%s2317_s5 + $0x60] sm:$0xf] }
  0x41   : > { %1287 = vmatpush.bf16.msrb.mxu3 %v2210_v51  ;;  %v2118_v51 = vld [vmem:[%s2317_s5 + $0x70] sm:$0xf0] }
  0x42   : > { %1109 = vmatpush.bf16.msrb.mxu1 %v2194_v52  ;;  %v1669_v52 = vor.u32 %v2114_v44, %v1666_v45 }
  0x44   : > { %1199 = vmatpush.bf16.msrb.mxu2 %v2201_v54  ;;  %v1677_v54 = vor.u32 %v2115_v48, %v1674_v49 }
  0x45   : > { %1288 = vmatpush.bf16.msrb.mxu3 %v2209_v55  ;;  %v1681_v55 = vor.u32 %v2118_v51, %v1680_v50 }
  0x46   : > { %1110 = vmatpush.bf16.msrb.mxu1 %v2193_v56  ;;  %v2119_v56 = vld [vmem:[%s2317_s5 + $0x7c] sm:$0xf] }
  0x48   : > { %1200 = vmatpush.bf16.msrb.mxu2 %v2200_v57  ;;  %v1686_v57 = vld [vmem:[%s2317_s5 + $0x8c] sm:$0xf0] }
  0x49   : > { %1289 = vmatpush.bf16.msrb.mxu3 %v2208_v58  ;;  %v1692_v58 = vld [vmem:[%s2317_s5 + $0x80] sm:$0xf]  ;;  %v1689_v0 = vor.u32 %v2119_v56, %v1686_v57  ;;  %v2137_v56 = vld [vmem:[%s2317_s5 + $0x108] sm:$0xf0]  ;;  %v2135_v57 = vld [vmem:[%s2317_s5 + $0xfc] sm:$0xf] }
  0x4a   : > { %1111 = vmatpush.bf16.msrb.mxu1 %v2192_v3  ;;  %v1693_v1 = vor.u32 %v2122_v59, %v1692_v58  ;;  %v1701_v3 = vor.u32 %v2123_v63, %v1700_v62  ;;  %v1754_v58 = vld [vmem:[%s2317_s5 + $0x10c] sm:$0xf0]  ;;  %v1760_v59 = vld [vmem:[%s2317_s5 + $0x100] sm:$0xf] }
  0x4b   : > { %1053 = vmatmul.bf16.gmra.mxu1 %v1745_v4  ;;  %1073 = vmatmul.bf16.gmra.mxu2 %v1825_v5  ;;  %v2477_v4 = vld [vmem:[%s2790_s2] ss:$0 sm:$0xff]  ;;  %v2124_v5 = vld [vmem:[%s2317_s5 + $0xa4] sm:$0xf] }
  0x4c   : > { %1093 = vmatmul.bf16.gmra.mxu3 %v1905_v6  ;;  %v1706_v6 = vld [vmem:[%s2317_s5 + $0xb4] sm:$0xf0] }
  0x4d   : > { %1033 = vmatmul.bf16.gmra.mxu0 %v1665_v7  ;;  %v1712_v7 = vld [vmem:[%s2317_s5 + $0xa8] sm:$0xf]  ;;  %v1709_v13 = vor.u32 %v2124_v5, %v1706_v6  ;;  %v1757_v5 = vor.u32 %v2135_v57, %v1754_v58  ;;  %v1761_v6 = vor.u32 %v2138_v60, %v1760_v59  ;;  %v1786_v57 = vld [vmem:[%s2317_s5 + $0x154] sm:$0xf0]  ;;  %v2147_v59 = vld [vmem:[%s2317_s5 + $0x158] sm:$0xf0] }
  0x4e   : > { %v1713_v14 = vor.u32 %v2127_v8, %v1712_v7  ;;  %v1792_v58 = vld [vmem:[%s2317_s5 + $0x148] sm:$0xf]  ;;  %v2145_v60 = vld [vmem:[%s2317_s5 + $0x14c] sm:$0xf] }
  0x5b   : > { %1058 = vmatmul.bf16.gmra.mxu1 %v1765_v16  ;;  %1078 = vmatmul.bf16.gmra.mxu2 %v1845_v17  ;;  %v1717_v16 = vor.u32 %v2125_v9, %v1714_v10  ;;  %v1721_v17 = vor.u32 %v2128_v12, %v1720_v11 }
  0x5c   : > { %1098 = vmatmul.bf16.gmra.mxu3 %v1925_v18 }
  0x5d   : > { %1038 = vmatmul.bf16.gmra.mxu0 %v1685_v19 }
  0x6b   : > { %1112 = vmatmul.bf16.vlgmr.msrb.gmra.mxu1 %v1629_v28  ;;  %1201 = vmatmul.bf16.vlgmr.msrb.gmra.mxu2 %v1633_v29  ;;  %v1726_v28 = vld [vmem:[%s2317_s5 + $0xdc] sm:$0xf0]  ;;  %v1732_v29 = vld [vmem:[%s2317_s5 + $0xd0] sm:$0xf] }
  0x6c   : > { %1290 = vmatmul.bf16.vlgmr.msrb.gmra.mxu3 %v1637_v30  ;;  %v2132_v30 = vld [vmem:[%s2317_s5 + $0xe0] sm:$0xf0]  ;;  %v1729_v38 = vor.u32 %v2129_v27, %v1726_v28  ;;  %v1774_v27 = vld [vmem:[%s2317_s5 + $0x134] sm:$0xf0]  ;;  %v1780_v28 = vld [vmem:[%s2317_s5 + $0x128] sm:$0xf] }
  0x6d   : > { %2086 = vmatmul.msk.bf16.vlgmr.msrb.gmra.mxu0 %vm966_vm0, %v1641_v31  ;;  %v2130_v31 = vld [vmem:[%s2317_s5 + $0xd4] sm:$0xf]  ;;  %v1733_v39 = vor.u32 %v2132_v30, %v1732_v29  ;;  %v2143_v29 = vld [vmem:[%s2317_s5 + $0x138] sm:$0xf0] }
  0x7b   : > { %1117 = vmatmul.bf16.gmra.mxu1 %v1649_v40  ;;  %1206 = vmatmul.bf16.gmra.mxu2 %v1653_v41 }
  0x7c   : > { %1295 = vmatmul.bf16.gmra.mxu3 %v1657_v42  ;;  %v1737_v42 = vor.u32 %v2130_v31, %v1734_v32 }
  0x7d   : > { %2087 = vmatmul.msk.bf16.gmra.mxu0 %vm966_vm0, %v1661_v43  ;;  %v1741_v43 = vor.u32 %v2133_v34, %v1740_v33 }
  0x8b   : > { %1122 = vmatmul.bf16.gmra.mxu1 %v1669_v52  ;;  %1211 = vmatmul.bf16.gmra.mxu2 %v1673_v53  ;;  %v2134_v53 = vld [vmem:[%s2317_s5 + $0xf4] sm:$0xf] }
  0x8c   : > { %1300 = vmatmul.bf16.gmra.mxu3 %v1677_v54  ;;  %v1746_v54 = vld [vmem:[%s2317_s5 + $0x104] sm:$0xf0] }
  0x8d   : > { %2088 = vmatmul.msk.bf16.gmra.mxu0 %vm966_vm0, %v1681_v55  ;;  %v1752_v55 = vld [vmem:[%s2317_s5 + $0xf8] sm:$0xf] }
  0x9b   : > { %1127 = vmatmul.bf16.gmra.mxu1 %v1689_v0  ;;  %1216 = vmatmul.bf16.gmra.mxu2 %v1693_v1  ;;  %v1749_v0 = vor.u32 %v2134_v53, %v1746_v54  ;;  %v1753_v1 = vor.u32 %v2137_v56, %v1752_v55  ;;  %v2144_v56 = vld [vmem:[%s2317_s5 + $0x144] sm:$0xf] }
  0x9c   : > { %1305 = vmatmul.bf16.gmra.mxu3 %v1697_v2 }
  0x9d   : > { %2089 = vmatmul.msk.bf16.gmra.mxu0 %vm966_vm0, %v1701_v3 }
  0xa8   : > { %v1044_v15 = vpop.f32.mrf.mxu1 }
  0xa9   : > { %v2488_v18 = vadd.f32 %v2477_v4, %v1044_v15 }
  0xaa   : > { %v2490_v19 = vpop.f32.mrf.mxu0 }
  0xab   : > { %1132 = vmatmul.bf16.gmra.mxu1 %v1709_v13  ;;  %1221 = vmatmul.bf16.gmra.mxu2 %v1713_v14 }
  0xac   : > { %1310 = vmatmul.bf16.gmra.mxu3 %v1717_v16  ;;  %v2139_v16 = vld [vmem:[%s2317_s5 + $0x11c] sm:$0xf] }
  0xad   : > { %2090 = vmatmul.msk.bf16.gmra.mxu0 %vm966_vm0, %v1721_v17  ;;  %v1766_v17 = vld [vmem:[%s2317_s5 + $0x12c] sm:$0xf0] }
  0xae   : > { %v1064_v20 = vpop.f32.mrf.mxu2  ;;  %v1769_v33 = vor.u32 %v2139_v16, %v1766_v17 }
  0xaf   : > { %v2494_v21 = vadd.f32 %v2477_v4, %v1064_v20  ;;  %v1084_v22 = vpop.f32.mrf.mxu3  ;;  %v1772_v20 = vld [vmem:[%s2317_s5 + $0x120] sm:$0xf] }
  0xb0   : > { %v2497_v23 = vadd.f32 %v2477_v4, %v1084_v22  ;;  %v1046_v24 = vpop.f32.mrf.mxu1  ;;  %v2142_v22 = vld [vmem:[%s2317_s5 + $0x130] sm:$0xf0] }
  0xb1   : > { %v2500_v25 = vadd.f32 %v2477_v4, %v1046_v24  ;;  %v2140_v24 = vld [vmem:[%s2317_s5 + $0x124] sm:$0xf]  ;;  %v1773_v34 = vor.u32 %v2142_v22, %v1772_v20  ;;  %v1025_v22 = vadd.f32 %v2477_v4, %v2490_v19 }
  0xb2   : > { %v2502_v26 = vpop.f32.mrf.mxu0 }
  0xb3   : > { %v1027_v19 = vadd.f32 %v2477_v4, %v2502_v26 }
  0xb6   : > { %v1066_v35 = vpop.f32.mrf.mxu2 }
  0xb7   : > { %v2513_v36 = vadd.f32 %v2477_v4, %v1066_v35  ;;  %v1086_v37 = vpop.f32.mrf.mxu3 }
  0xb8   : > { %v2516_v40 = vadd.f32 %v2477_v4, %v1086_v37  ;;  %v1049_v41 = vpop.f32.mrf.mxu1 }
  0xb9   : > { %v2519_v44 = vadd.f32 %v2477_v4, %v1049_v41 }
  0xba   : > { %v2521_v45 = vpop.f32.mrf.mxu0 }
  0xbb   : > { %1137 = vmatmul.bf16.gmra.mxu1 %v1729_v38  ;;  %1226 = vmatmul.bf16.gmra.mxu2 %v1733_v39  ;;  %v1777_v38 = vor.u32 %v2140_v24, %v1774_v27  ;;  %v1781_v39 = vor.u32 %v2143_v29, %v1780_v28 }
  0xbc   : > { %1315 = vmatmul.bf16.gmra.mxu3 %v1737_v42 }
  0xbd   : > { %2091 = vmatmul.msk.bf16.gmra.mxu0 %vm966_vm0, %v1741_v43 }
  0xbe   : > { %v1069_v46 = vpop.f32.mrf.mxu2 }
  0xbf   : > { %v2525_v47 = vadd.f32 %v2477_v4, %v1069_v46  ;;  %v1089_v48 = vpop.f32.mrf.mxu3 }
  0xc0   : > { %v2528_v49 = vadd.f32 %v2477_v4, %v1089_v48  ;;  %v1051_v50 = vpop.f32.mrf.mxu1 }
  0xc1   : > { %v2531_v51 = vadd.f32 %v2477_v4, %v1051_v50 }
  0xc2   : > { %v2533_v52 = vpop.f32.mrf.mxu0 }
  0xc6   : > { %v1071_v61 = vpop.f32.mrf.mxu2 }
  0xc7   : > { %v2544_v62 = vadd.f32 %v2477_v4, %v1071_v61  ;;  %v1091_v63 = vpop.f32.mrf.mxu3  ;;  %v1794_v61 = vld [vmem:[%s2317_s5 + $0x15c] sm:$0xf0] }
  0xc8   : > { %v2547_v2 = vadd.f32 %v2477_v4, %v1091_v63  ;;  %v1054_v3 = vpop.f32.mrf.mxu1  ;;  %v1800_v63 = vld [vmem:[%s2317_s5 + $0x150] sm:$0xf]  ;;  %v1797_v16 = vor.u32 %v2145_v60, %v1794_v61 }
  0xc9   : > { %v2550_v7 = vadd.f32 %v2477_v4, %v1054_v3 }
  0xca   : > { %v2552_v8 = vpop.f32.mrf.mxu0 }
  0xcb   : > { %1142 = vmatmul.bf16.gmra.mxu1 %v1749_v0  ;;  %1231 = vmatmul.bf16.gmra.mxu2 %v1753_v1  ;;  %v2148_v0 = vld [vmem:[%s2317_s5 + $0x160] sm:$0xf0] }
  0xcc   : > { %1320 = vmatmul.bf16.gmra.mxu3 %v1757_v5  ;;  %v1801_v17 = vor.u32 %v2148_v0, %v1800_v63 }
  0xcd   : > { %2092 = vmatmul.msk.bf16.gmra.mxu0 %vm966_vm0, %v1761_v6  ;;  %v1789_v6 = vor.u32 %v2144_v56, %v1786_v57 }
  0xce   : > { %v1074_v9 = vpop.f32.mrf.mxu2 }
  0xcf   : > { %v2556_v10 = vadd.f32 %v2477_v4, %v1074_v9  ;;  %v1094_v11 = vpop.f32.mrf.mxu3  ;;  %v1793_v9 = vor.u32 %v2147_v59, %v1792_v58  ;;  %v1820_v58 = vld [vmem:[%s2317_s5 + $0x178] sm:$0xf]  ;;  %v2153_v59 = vld [vmem:[%s2317_s5 + $0x188] sm:$0xf0] }
  0xd0   : > { %v2559_v12 = vadd.f32 %v2477_v4, %v1094_v11  ;;  %v1056_v13 = vpop.f32.mrf.mxu1 }
  0xd1   : > { %v2562_v14 = vadd.f32 %v2477_v4, %v1056_v13 }
  0xd2   : > { %v2564_v15 = vpop.f32.mrf.mxu0 }
  0xd6   : > { %v1076_v30 = vpop.f32.mrf.mxu2 }
  0xd7   : > { %v2575_v31 = vadd.f32 %v2477_v4, %v1076_v30  ;;  %v1096_v32 = vpop.f32.mrf.mxu3 }
  0xd8   : > { %v2578_v35 = vadd.f32 %v2477_v4, %v1096_v32  ;;  %v1059_v37 = vpop.f32.mrf.mxu1 }
  0xd9   : > { %v2581_v41 = vadd.f32 %v2477_v4, %v1059_v37  ;;  %v2149_v37 = vld [vmem:[%s2317_s5 + $0x16c] sm:$0xf] }
  0xda   : > { %v2583_v42 = vpop.f32.mrf.mxu0 }
  0xdb   : > { %1147 = vmatmul.bf16.gmra.mxu1 %v1769_v33  ;;  %1236 = vmatmul.bf16.gmra.mxu2 %v1773_v34 }
  0xdc   : > { %1325 = vmatmul.bf16.gmra.mxu3 %v1777_v38  ;;  %v1806_v38 = vld [vmem:[%s2317_s5 + $0x17c] sm:$0xf0] }
  0xdd   : > { %2093 = vmatmul.msk.bf16.gmra.mxu0 %vm966_vm0, %v1781_v39  ;;  %v1812_v39 = vld [vmem:[%s2317_s5 + $0x170] sm:$0xf]  ;;  %v1809_v0 = vor.u32 %v2149_v37, %v1806_v38  ;;  %v2154_v37 = vld [vmem:[%s2317_s5 + $0x194] sm:$0xf]  ;;  %v1826_v38 = vld [vmem:[%s2317_s5 + $0x1a4] sm:$0xf0] }
  0xde   : > { %v1079_v43 = vpop.f32.mrf.mxu2 }
  0xdf   : > { %v2587_v46 = vadd.f32 %v2477_v4, %v1079_v43  ;;  %v1099_v48 = vpop.f32.mrf.mxu3  ;;  %v2152_v43 = vld [vmem:[%s2317_s5 + $0x180] sm:$0xf0] }
  0xe0   : > { %v2590_v50 = vadd.f32 %v2477_v4, %v1099_v48  ;;  %v1061_v53 = vpop.f32.mrf.mxu1  ;;  %v2150_v48 = vld [vmem:[%s2317_s5 + $0x174] sm:$0xf] }
  0xe1   : > { %v2593_v54 = vadd.f32 %v2477_v4, %v1061_v53  ;;  %v1814_v53 = vld [vmem:[%s2317_s5 + $0x184] sm:$0xf0] }
  0xe2   : > { %v2595_v55 = vpop.f32.mrf.mxu0 }
  0xe6   : > { %v1081_v1 = vpop.f32.mrf.mxu2 }
  0xe7   : > { %v2606_v3 = vadd.f32 %v2477_v4, %v1081_v1  ;;  %v1101_v5 = vpop.f32.mrf.mxu3  ;;  %v1813_v1 = vor.u32 %v2152_v43, %v1812_v39  ;;  %v1832_v39 = vld [vmem:[%s2317_s5 + $0x198] sm:$0xf]  ;;  %v2157_v43 = vld [vmem:[%s2317_s5 + $0x1a8] sm:$0xf0] }
  0xe8   : > { %v2609_v11 = vadd.f32 %v2477_v4, %v1101_v5  ;;  %v1113_v13 = vpop.f32.mrf.mxu1 }
  0xe9   : > { %v1114_v24 = vadd.f32 %v1113_v13, %v1025_v22 }
  0xea   : > { %v1380_v20 = vpop.f32.mrf.mxu0 }
  0xeb   : > { %1152 = vmatmul.bf16.gmra.mxu1 %v1789_v6  ;;  %1241 = vmatmul.bf16.gmra.mxu2 %v1793_v9  ;;  %v1817_v6 = vor.u32 %v2150_v48, %v1814_v53  ;;  %v1821_v9 = vor.u32 %v2153_v59, %v1820_v58  ;;  %v2155_v48 = vld [vmem:[%s2317_s5 + $0x19c] sm:$0xf]  ;;  %v1834_v53 = vld [vmem:[%s2317_s5 + $0x1ac] sm:$0xf0]  ;;  %v1840_v58 = vld [vmem:[%s2317_s5 + $0x1a0] sm:$0xf] }
  0xec   : > { %1330 = vmatmul.bf16.gmra.mxu3 %v1797_v16  ;;  %v2158_v59 = vld [vmem:[%s2317_s5 + $0x1b0] sm:$0xf0] }
  0xed   : > { %2094 = vmatmul.msk.bf16.gmra.mxu0 %vm966_vm0, %v1801_v17  ;;  %v1030_v17 = vadd.f32 %v2477_v4, %v2521_v45 }
  0xee   : > { %v1202_v27 = vpop.f32.mrf.mxu2 }
  0xef   : > { %v1203_v28 = vadd.f32 %v1202_v27, %v1114_v24  ;;  %v1291_v29 = vpop.f32.mrf.mxu3 }
  0xf0   : > { %v1115_v30 = vpop.f32.mrf.mxu1 }
  0xf1   : > { %v1292_v32 = vadd.f32 %v1291_v29, %v1203_v28  ;;  %v1116_v57 = vadd.f32 %v1115_v30, %v1027_v19  ;;  %v1032_v19 = vadd.f32 %v2477_v4, %v2533_v52  ;;  %v1837_v52 = vor.u32 %v2155_v48, %v1834_v53 }
  0xf2   : > { %v1382_v33 = vpop.f32.mrf.mxu0 }
  0xf3   : > { %v1381_v34 = vadd.f32 %v1380_v20, %v1292_v32 }
  0xf5   : > { %v1460_v56 = vmax.f32 %v1381_v34, 0.0 }
  0xf6   : > { %v1204_v60 = vpop.f32.mrf.mxu2 }
  0xf7   : > { %v1492_v26 = vpack.c.bf16 %v1460_v56, %v1460_v56  ;;  %v1205_v61 = vadd.f32 %v1204_v60, %v1116_v57  ;;  %v1293_v63 = vpop.f32.mrf.mxu3 }
  0xf8   : > { %v1118_v5 = vpop.f32.mrf.mxu1 }
  0xf9   : > { %1525 = vst.msk [vmem:[%s2628_s23] sm:$0xf] %vm1524_vm1, %v1492_v26  ;;  %v1294_v13 = vadd.f32 %v1293_v63, %v1205_v61  ;;  %v1119_v24 = vadd.f32 %v1118_v5, %v1030_v17 }
  0xfa   : > { %v1385_v16 = vpop.f32.mrf.mxu0 }
  0xfb   : > { %v1383_v20 = vadd.f32 %v1382_v33, %v1294_v13  ;;  %1157 = vmatmul.bf16.gmra.mxu1 %v1809_v0  ;;  %1246 = vmatmul.bf16.gmra.mxu2 %v1813_v1  ;;  %v1829_v0 = vor.u32 %v2154_v37, %v1826_v38  ;;  %v1833_v1 = vor.u32 %v2157_v43, %v1832_v39  ;;  %v1852_v37 = vld [vmem:[%s2317_s5 + $0x1c0] sm:$0xf]  ;;  %v2162_v38 = vld [vmem:[%s2317_s5 + $0x1d0] sm:$0xf0]  ;;  %v2160_v39 = vld [vmem:[%s2317_s5 + $0x1c4] sm:$0xf] }
  0xfc   : > { %1335 = vmatmul.bf16.gmra.mxu3 %v1817_v6  ;;  %v1841_v6 = vor.u32 %v2158_v59, %v1840_v58  ;;  %v1854_v43 = vld [vmem:[%s2317_s5 + $0x1d4] sm:$0xf0] }
  0xfd   : > { %2095 = vmatmul.msk.bf16.gmra.mxu0 %vm966_vm0, %v1821_v9  ;;  %v1461_v22 = vmax.f32 %v1383_v20, 0.0 }
  0xfe   : > { %v1207_v27 = vpop.f32.mrf.mxu2 }
  0xff   : > { %v1493_v28 = vpack.c.bf16 %v1461_v22, %v1461_v22  ;;  %v1208_v29 = vadd.f32 %v1207_v27, %v1119_v24  ;;  %v1296_v30 = vpop.f32.mrf.mxu3 }
 0x100   : > { %v1120_v45 = vpop.f32.mrf.mxu1 }
 0x101   : > { %1526 = vst.msk [vmem:[%s2628_s23 + $0x4] sm:$0xf] %vm1524_vm1, %v1493_v28  ;;  %v1297_v32 = vadd.f32 %v1296_v30, %v1208_v29  ;;  %v1121_v57 = vadd.f32 %v1120_v45, %v1032_v19  ;;  %v2159_v19 = vld [vmem:[%s2317_s5 + $0x1bc] sm:$0xf] }
 0x102   : > { %v1387_v33 = vpop.f32.mrf.mxu0 }
 0x103   : > { %v1386_v34 = vadd.f32 %v1385_v16, %v1297_v32  ;;  %v1035_v16 = vadd.f32 %v2477_v4, %v2552_v8  ;;  %v1037_v32 = vadd.f32 %v2477_v4, %v2564_v15  ;;  %v1857_v15 = vor.u32 %v2160_v39, %v1854_v43  ;;  %v1880_v39 = vld [vmem:[%s2317_s5 + $0x1f0] sm:$0xf]  ;;  %v2168_v43 = vld [vmem:[%s2317_s5 + $0x200] sm:$0xf0] }
 0x105   : > { %v1462_v56 = vmax.f32 %v1386_v34, 0.0  ;;  %v1846_v34 = vld [vmem:[%s2317_s5 + $0x1cc] sm:$0xf0] }
 0x106   : > { %v1209_v60 = vpop.f32.mrf.mxu2 }
 0x107   : > { %v1494_v26 = vpack.c.bf16 %v1462_v56, %v1462_v56  ;;  %v1210_v61 = vadd.f32 %v1209_v60, %v1121_v57  ;;  %v1298_v63 = vpop.f32.mrf.mxu3  ;;  %v1860_v56 = vld [vmem:[%s2317_s5 + $0x1c8] sm:$0xf]  ;;  %v2163_v57 = vld [vmem:[%s2317_s5 + $0x1d8] sm:$0xf0] }
 0x108   : > { %v1123_v5 = vpop.f32.mrf.mxu1 }
 0x109   : > { %1527 = vst.msk [vmem:[%s2628_s23 + $0x8] sm:$0xf] %vm1524_vm1, %v1494_v26  ;;  %v1299_v9 = vadd.f32 %v1298_v63, %v1210_v61  ;;  %v1124_v22 = vadd.f32 %v1123_v5, %v1035_v16  ;;  %v1849_v61 = vor.u32 %v2159_v19, %v1846_v34  ;;  %v1853_v63 = vor.u32 %v2162_v38, %v1852_v37  ;;  %v2165_v19 = vld [vmem:[%s2317_s5 + $0x1ec] sm:$0xf]  ;;  %v1874_v34 = vld [vmem:[%s2317_s5 + $0x1fc] sm:$0xf0] }
 0x10a   : > { %v1390_v13 = vpop.f32.mrf.mxu0 }
 0x10b   : > { %v1388_v17 = vadd.f32 %v1387_v33, %v1299_v9  ;;  %1162 = vmatmul.bf16.gmra.mxu1 %v1829_v0  ;;  %1251 = vmatmul.bf16.gmra.mxu2 %v1833_v1  ;;  %v1861_v1 = vor.u32 %v2163_v57, %v1860_v56 }
 0x10c   : > { %1340 = vmatmul.bf16.gmra.mxu3 %v1837_v52 }
 0x10d   : > { %2096 = vmatmul.msk.bf16.gmra.mxu0 %vm966_vm0, %v1841_v6  ;;  %v1463_v20 = vmax.f32 %v1388_v17, 0.0  ;;  %v1040_v6 = vadd.f32 %v2477_v4, %v2583_v42 }
 0x10e   : > { %v1212_v24 = vpop.f32.mrf.mxu2 }
 0x10f   : > { %v1495_v27 = vpack.c.bf16 %v1463_v20, %v1463_v20  ;;  %v1213_v28 = vadd.f32 %v1212_v24, %v1124_v22  ;;  %v1301_v29 = vpop.f32.mrf.mxu3 }
 0x110   : > { %v1125_v8 = vpop.f32.mrf.mxu1 }
 0x111   : > { %1528 = vst.msk [vmem:[%s2628_s23 + $0xc] sm:$0xf] %vm1524_vm1, %v1495_v27  ;;  %v1302_v30 = vadd.f32 %v1301_v29, %v1213_v28  ;;  %v1126_v53 = vadd.f32 %v1125_v8, %v1037_v32  ;;  %v1042_v29 = vadd.f32 %v2477_v4, %v2595_v55  ;;  %v1872_v32 = vld [vmem:[%s2317_s5 + $0x1e8] sm:$0xf]  ;;  %v1877_v4 = vor.u32 %v2165_v19, %v1874_v34 }
 0x112   : > { %v1392_v45 = vpop.f32.mrf.mxu0  ;;  %v1881_v55 = vor.u32 %v2168_v43, %v1880_v39 }
 0x113   : > { %v1391_v33 = vadd.f32 %v1390_v13, %v1302_v30  ;;  %v2164_v30 = vld [vmem:[%s2317_s5 + $0x1e4] sm:$0xf] }
 0x115   : > { %v1464_v48 = vmax.f32 %v1391_v33, 0.0  ;;  %v2167_v33 = vld [vmem:[%s2317_s5 + $0x1f8] sm:$0xf0] }
 0x116   : > { %v1214_v58 = vpop.f32.mrf.mxu2 }
 0x117   : > { %v1496_v59 = vpack.c.bf16 %v1464_v48, %v1464_v48  ;;  %v1215_v60 = vadd.f32 %v1214_v58, %v1126_v53  ;;  %v1303_v26 = vpop.f32.mrf.mxu3 }
 0x118   : > { %v1128_v0 = vpop.f32.mrf.mxu1 }
 0x119   : > { %1529 = vst.msk [vmem:[%s2628_s23 + $0x10] sm:$0xf] %vm1524_vm1, %v1496_v59  ;;  %v1304_v5 = vadd.f32 %v1303_v26, %v1215_v60  ;;  %v1129_v16 = vadd.f32 %v1128_v0, %v1040_v6  ;;  %v1873_v59 = vor.u32 %v2167_v33, %v1872_v32 }
 0x11a   : > { %v1395_v52 = vpop.f32.mrf.mxu0 }
 0x11b   : > { %v1393_v9 = vadd.f32 %v1392_v45, %v1304_v5  ;;  %1167 = vmatmul.bf16.gmra.mxu1 %v1849_v61  ;;  %1256 = vmatmul.bf16.gmra.mxu2 %v1853_v63  ;;  %v1866_v45 = vld [vmem:[%s2317_s5 + $0x1f4] sm:$0xf0] }
 0x11c   : > { %1345 = vmatmul.bf16.gmra.mxu3 %v1857_v15  ;;  %v1869_v58 = vor.u32 %v2164_v30, %v1866_v45  ;;  %v2173_v30 = vld [vmem:[%s2317_s5 + $0x228] sm:$0xf0] }
 0x11d   : > { %2097 = vmatmul.msk.bf16.gmra.mxu0 %vm966_vm0, %v1861_v1  ;;  %v1465_v13 = vmax.f32 %v1393_v9, 0.0 }
 0x11e   : > { %v1217_v17 = vpop.f32.mrf.mxu2 }
 0x11f   : > { %v1497_v20 = vpack.c.bf16 %v1465_v13, %v1465_v13  ;;  %v1218_v22 = vadd.f32 %v1217_v17, %v1129_v16  ;;  %v1306_v24 = vpop.f32.mrf.mxu3 }
 0x120   : > { %v1130_v42 = vpop.f32.mrf.mxu1 }
 0x121   : > { %1530 = vst.msk [vmem:[%s2628_s23 + $0x14] sm:$0xf] %vm1524_vm1, %v1497_v20  ;;  %v1307_v27 = vadd.f32 %v1306_v24, %v1218_v22  ;;  %v1131_v38 = vadd.f32 %v1130_v42, %v1042_v29  ;;  %v2169_v20 = vld [vmem:[%s2317_s5 + $0x20c] sm:$0xf]  ;;  %v1886_v22 = vld [vmem:[%s2317_s5 + $0x21c] sm:$0xf0] }
 0x122   : > { %v1397_v28 = vpop.f32.mrf.mxu0  ;;  %v1892_v24 = vld [vmem:[%s2317_s5 + $0x210] sm:$0xf]  ;;  %v2172_v42 = vld [vmem:[%s2317_s5 + $0x220] sm:$0xf0]  ;;  %v1889_v34 = vor.u32 %v2169_v20, %v1886_v22 }
 0x123   : > { %v1396_v8 = vadd.f32 %v1395_v52, %v1307_v27  ;;  %v2170_v27 = vld [vmem:[%s2317_s5 + $0x214] sm:$0xf] }
 0x125   : > { %v1466_v37 = vmax.f32 %v1396_v8, 0.0  ;;  %v1900_v8 = vld [vmem:[%s2317_s5 + $0x218] sm:$0xf] }
 0x126   : > { %v1219_v48 = vpop.f32.mrf.mxu2  ;;  %v1901_v43 = vor.u32 %v2173_v30, %v1900_v8 }
 0x127   : > { %v1498_v53 = vpack.c.bf16 %v1466_v37, %v1466_v37  ;;  %v1220_v56 = vadd.f32 %v1219_v48, %v1131_v38  ;;  %v1308_v57 = vpop.f32.mrf.mxu3  ;;  %v1893_v37 = vor.u32 %v2172_v42, %v1892_v24 }
 0x128   : > { %v1133_v60 = vpop.f32.mrf.mxu1 }
 0x129   : > { %1531 = vst.msk [vmem:[%s2628_s23 + $0x18] sm:$0xf] %vm1524_vm1, %v1498_v53  ;;  %v1309_v26 = vadd.f32 %v1308_v57, %v1220_v56  ;;  %v1134_v15 = vadd.f32 %v1133_v60, %v2488_v18 }
 0x12a   : > { %v1400_v61 = vpop.f32.mrf.mxu0 }
 0x12b   : > { %v1398_v63 = vadd.f32 %v1397_v28, %v1309_v26  ;;  %1172 = vmatmul.bf16.gmra.mxu1 %v1869_v58  ;;  %1261 = vmatmul.bf16.gmra.mxu2 %v1873_v59  ;;  %v1894_v28 = vld [vmem:[%s2317_s5 + $0x224] sm:$0xf0] }
 0x12c   : > { %1350 = vmatmul.bf16.gmra.mxu3 %v1877_v4  ;;  %v1897_v39 = vor.u32 %v2170_v27, %v1894_v28 }
 0x12d   : > { %2098 = vmatmul.msk.bf16.gmra.mxu0 %vm966_vm0, %v1881_v55  ;;  %v1467_v0 = vmax.f32 %v1398_v63, 0.0 }
 0x12e   : > { %v1222_v1 = vpop.f32.mrf.mxu2 }
 0x12f   : > { %v1499_v5 = vpack.c.bf16 %v1467_v0, %v1467_v0  ;;  %v1223_v52 = vadd.f32 %v1222_v1, %v1134_v15  ;;  %v1311_v6 = vpop.f32.mrf.mxu3  ;;  %v2174_v0 = vld [vmem:[%s2317_s5 + $0x234] sm:$0xf]  ;;  %v1906_v15 = vld [vmem:[%s2317_s5 + $0x244] sm:$0xf0]  ;;  %v1912_v1 = vld [vmem:[%s2317_s5 + $0x238] sm:$0xf] }
 0x130   : > { %v1135_v9 = vpop.f32.mrf.mxu1  ;;  %v1909_v42 = vor.u32 %v2174_v0, %v1906_v15 }
 0x131   : > { %1532 = vst.msk [vmem:[%s2628_s23 + $0x1c] sm:$0xf] %vm1524_vm1, %v1499_v5  ;;  %v1312_v13 = vadd.f32 %v1311_v6, %v1223_v52  ;;  %v1136_v29 = vadd.f32 %v1135_v9, %v2500_v25  ;;  %v2177_v5 = vld [vmem:[%s2317_s5 + $0x248] sm:$0xf0]  ;;  %v2175_v52 = vld [vmem:[%s2317_s5 + $0x23c] sm:$0xf] }
 0x132   : > { %v1402_v16 = vpop.f32.mrf.mxu0  ;;  %v1914_v6 = vld [vmem:[%s2317_s5 + $0x24c] sm:$0xf0]  ;;  %v1913_v27 = vor.u32 %v2177_v5, %v1912_v1 }
 0x133   : > { %v1401_v17 = vadd.f32 %v1400_v61, %v1312_v13  ;;  %v1920_v13 = vld [vmem:[%s2317_s5 + $0x240] sm:$0xf] }
 0x135   : > { %v1468_v18 = vmax.f32 %v1401_v17, 0.0 }
 0x136   : > { %v1224_v45 = vpop.f32.mrf.mxu2 }
 0x137   : > { %v1500_v32 = vpack.c.bf16 %v1468_v18, %v1468_v18  ;;  %v1225_v33 = vadd.f32 %v1224_v45, %v1136_v29  ;;  %v1313_v19 = vpop.f32.mrf.mxu3  ;;  %v1917_v18 = vor.u32 %v2175_v52, %v1914_v6 }
 0x138   : > { %v1138_v38 = vpop.f32.mrf.mxu1 }
 0x139   : > { %1533 = vst.msk [vmem:[%s2628_s23 + $0x20] sm:$0xf] %vm1524_vm1, %v1500_v32  ;;  %v1314_v48 = vadd.f32 %v1313_v19, %v1225_v33  ;;  %v1139_v57 = vadd.f32 %v1138_v38, %v2519_v44 }
 0x13a   : > { %v1405_v53 = vpop.f32.mrf.mxu0 }
 0x13b   : > { %v1403_v56 = vadd.f32 %v1402_v16, %v1314_v48  ;;  %1177 = vmatmul.bf16.gmra.mxu1 %v1889_v34  ;;  %1266 = vmatmul.bf16.gmra.mxu2 %v1893_v37  ;;  %v2178_v16 = vld [vmem:[%s2317_s5 + $0x250] sm:$0xf0] }
 0x13c   : > { %1355 = vmatmul.bf16.gmra.mxu3 %v1897_v39  ;;  %v1921_v29 = vor.u32 %v2178_v16, %v1920_v13 }
 0x13d   : > { %2099 = vmatmul.msk.bf16.gmra.mxu0 %vm966_vm0, %v1901_v43  ;;  %v1469_v25 = vmax.f32 %v1403_v56, 0.0  ;;  %v1926_v56 = vld [vmem:[%s2317_s5 + $0x26c] sm:$0xf0] }
 0x13e   : > { %v1227_v58 = vpop.f32.mrf.mxu2 }
 0x13f   : > { %v1501_v59 = vpack.c.bf16 %v1469_v25, %v1469_v25  ;;  %v1228_v60 = vadd.f32 %v1227_v58, %v1139_v57  ;;  %v1316_v4 = vpop.f32.mrf.mxu3  ;;  %v1932_v25 = vld [vmem:[%s2317_s5 + $0x260] sm:$0xf]  ;;  %v2182_v57 = vld [vmem:[%s2317_s5 + $0x270] sm:$0xf0]  ;;  %v2180_v58 = vld [vmem:[%s2317_s5 + $0x264] sm:$0xf] }
 0x140   : > { %v1140_v55 = vpop.f32.mrf.mxu1  ;;  %v1933_v1 = vor.u32 %v2182_v57, %v1932_v25 }
 0x141   : > { %1534 = vst.msk [vmem:[%s2628_s23 + $0x24] sm:$0xf] %vm1524_vm1, %v1501_v59  ;;  %v1317_v26 = vadd.f32 %v1316_v4, %v1228_v60  ;;  %v1141_v9 = vadd.f32 %v1140_v55, %v2531_v51  ;;  %v1934_v59 = vld [vmem:[%s2317_s5 + $0x274] sm:$0xf0]  ;;  %v1940_v4 = vld [vmem:[%s2317_s5 + $0x268] sm:$0xf] }
 0x142   : > { %v1407_v61 = vpop.f32.mrf.mxu0  ;;  %v2183_v55 = vld [vmem:[%s2317_s5 + $0x278] sm:$0xf0]  ;;  %v1937_v52 = vor.u32 %v2180_v58, %v1934_v59 }
 0x143   : > { %v1406_v63 = vadd.f32 %v1405_v53, %v1317_v26  ;;  %v2179_v53 = vld [vmem:[%s2317_s5 + $0x25c] sm:$0xf]  ;;  %v1941_v6 = vor.u32 %v2183_v55, %v1940_v4 }
 0x144   : > { %v1929_v15 = vor.u32 %v2179_v53, %v1926_v56 }
 0x145   : > { %v1470_v44 = vmax.f32 %v1406_v63, 0.0 }
 0x146   : > { %v1229_v17 = vpop.f32.mrf.mxu2 }
 0x147   : > { %v1502_v20 = vpack.c.bf16 %v1470_v44, %v1470_v44  ;;  %v1230_v22 = vadd.f32 %v1229_v17, %v1141_v9  ;;  %v1318_v24 = vpop.f32.mrf.mxu3 }
 0x148   : > { %v1143_v28 = vpop.f32.mrf.mxu1 }
 0x149   : > { %1535 = vst.msk [vmem:[%s2628_s23 + $0x28] sm:$0xf] %vm1524_vm1, %v1502_v20  ;;  %v1319_v8 = vadd.f32 %v1318_v24, %v1230_v22  ;;  %v1144_v32 = vadd.f32 %v1143_v28, %v2550_v7 }
 0x14a   : > { %v1410_v30 = vpop.f32.mrf.mxu0 }
 0x14b   : > { %v1408_v45 = vadd.f32 %v1407_v61, %v1319_v8  ;;  %1182 = vmatmul.bf16.gmra.mxu1 %v1909_v42  ;;  %1271 = vmatmul.bf16.gmra.mxu2 %v1913_v27 }
 0x14c   : > { %1360 = vmatmul.bf16.gmra.mxu3 %v1917_v18 }
 0x14d   : > { %2100 = vmatmul.msk.bf16.gmra.mxu0 %vm966_vm0, %v1921_v29  ;;  %v1471_v51 = vmax.f32 %v1408_v45, 0.0 }
 0x14e   : > { %v1232_v33 = vpop.f32.mrf.mxu2 }
 0x14f   : > { %v1503_v19 = vpack.c.bf16 %v1471_v51, %v1471_v51  ;;  %v1233_v34 = vadd.f32 %v1232_v33, %v1144_v32  ;;  %v1321_v37 = vpop.f32.mrf.mxu3 }
 0x150   : > { %v1145_v38 = vpop.f32.mrf.mxu1 }
 0x151   : > { %1536 = vst.msk [vmem:[%s2628_s23 + $0x2c] sm:$0xf] %vm1524_vm1, %v1503_v19  ;;  %v1322_v39 = vadd.f32 %v1321_v37, %v1233_v34  ;;  %v1146_v60 = vadd.f32 %v1145_v38, %v2562_v14 }
 0x152   : > { %v1412_v43 = vpop.f32.mrf.mxu0 }
 0x153   : > { %v1411_v48 = vadd.f32 %v1410_v30, %v1322_v39 }
 0x155   : > { %v1472_v7 = vmax.f32 %v1411_v48, 0.0 }
 0x156   : > { %v1234_v26 = vpop.f32.mrf.mxu2 }
 0x157   : > { %v1504_v61 = vpack.c.bf16 %v1472_v7, %v1472_v7  ;;  %v1235_v63 = vadd.f32 %v1234_v26, %v1146_v60  ;;  %v1323_v0 = vpop.f32.mrf.mxu3 }
 0x158   : > { %v1148_v5 = vpop.f32.mrf.mxu1 }
 0x159   : > { %1537 = vst.msk [vmem:[%s2628_s23 + $0x30] sm:$0xf] %vm1524_vm1, %v1504_v61  ;;  %v1324_v44 = vadd.f32 %v1323_v0, %v1235_v63  ;;  %v1149_v16 = vadd.f32 %v1148_v5, %v2581_v41 }
 0x15a   : > { %v1415_v9 = vpop.f32.mrf.mxu0 }
 0x15b   : > { %v1413_v13 = vadd.f32 %v1412_v43, %v1324_v44  ;;  %1187 = vmatmul.bf16.gmra.mxu1 %v1929_v15  ;;  %1276 = vmatmul.bf16.gmra.mxu2 %v1933_v1 }
 0x15c   : > { %1365 = vmatmul.bf16.gmra.mxu3 %v1937_v52 }
 0x15d   : > { %2101 = vmatmul.msk.bf16.gmra.mxu0 %vm966_vm0, %v1941_v6  ;;  %v1473_v14 = vmax.f32 %v1413_v13, 0.0 }
 0x15e   : > { %v1237_v17 = vpop.f32.mrf.mxu2 }
 0x15f   : > { %v1505_v20 = vpack.c.bf16 %v1473_v14, %v1473_v14  ;;  %v1238_v22 = vadd.f32 %v1237_v17, %v1149_v16  ;;  %v1326_v24 = vpop.f32.mrf.mxu3 }
 0x160   : > { %v1150_v42 = vpop.f32.mrf.mxu1 }
 0x161   : > { %1538 = vst.msk [vmem:[%s2628_s23 + $0x34] sm:$0xf] %vm1524_vm1, %v1505_v20  ;;  %v1327_v27 = vadd.f32 %v1326_v24, %v1238_v22  ;;  %v1151_v8 = vadd.f32 %v1150_v42, %v2593_v54 }
 0x162   : > { %v1417_v28 = vpop.f32.mrf.mxu0 }
 0x163   : > { %v1416_v18 = vadd.f32 %v1415_v9, %v1327_v27 }
 0x165   : > { %v1474_v29 = vmax.f32 %v1416_v18, 0.0 }
 0x166   : > { %v1239_v30 = vpop.f32.mrf.mxu2 }
 0x167   : > { %v1506_v45 = vpack.c.bf16 %v1474_v29, %v1474_v29  ;;  %v1240_v51 = vadd.f32 %v1239_v30, %v1151_v8  ;;  %v1328_v32 = vpop.f32.mrf.mxu3 }
 0x168   : > { %v1153_v41 = vpop.f32.mrf.mxu1 }
 0x169   : > { %1539 = vst.msk [vmem:[%s2628_s23 + $0x38] sm:$0xf] %vm1524_vm1, %v1506_v45  ;;  %v1329_v33 = vadd.f32 %v1328_v32, %v1240_v51  ;;  %v1154_v38 = vadd.f32 %v1153_v41, %v2494_v21 }
 0x16a   : > { %v1420_v19 = vpop.f32.mrf.mxu0 }
 0x16b   : > { %v1418_v34 = vadd.f32 %v1417_v28, %v1329_v33 }
 0x16d   : > { %v1475_v37 = vmax.f32 %v1418_v34, 0.0 }
 0x16e   : > { %v1242_v39 = vpop.f32.mrf.mxu2 }
 0x16f   : > { %v1507_v43 = vpack.c.bf16 %v1475_v37, %v1475_v37  ;;  %v1243_v48 = vadd.f32 %v1242_v39, %v1154_v38  ;;  %v1331_v53 = vpop.f32.mrf.mxu3 }
 0x170   : > { %v1155_v54 = vpop.f32.mrf.mxu1 }
 0x171   : > { %1540 = vst.msk [vmem:[%s2628_s23 + $0x3c] sm:$0xf] %vm1524_vm1, %v1507_v43  ;;  %v1332_v56 = vadd.f32 %v1331_v53, %v1243_v48  ;;  %v1156_v59 = vadd.f32 %v1155_v54, %v2513_v36 }
 0x172   : > { %v1422_v25 = vpop.f32.mrf.mxu0 }
 0x173   : > { %v1421_v57 = vadd.f32 %v1420_v19, %v1332_v56 }
 0x175   : > { %v1476_v58 = vmax.f32 %v1421_v57, 0.0 }
 0x176   : > { %v1244_v7 = vpop.f32.mrf.mxu2 }
 0x177   : > { %v1508_v60 = vpack.c.bf16 %v1476_v58, %v1476_v58  ;;  %v1245_v4 = vadd.f32 %v1244_v7, %v1156_v59  ;;  %v1333_v55 = vpop.f32.mrf.mxu3 }
 0x178   : > { %v1158_v21 = vpop.f32.mrf.mxu1 }
 0x179   : > { %1541 = vst.msk [vmem:[%s2628_s23 + $0x40] sm:$0xf] %vm1524_vm1, %v1508_v60  ;;  %v1334_v26 = vadd.f32 %v1333_v55, %v1245_v4  ;;  %v1159_v15 = vadd.f32 %v1158_v21, %v2525_v47 }
 0x17a   : > { %v1425_v61 = vpop.f32.mrf.mxu0 }
 0x17b   : > { %v1423_v63 = vadd.f32 %v1422_v25, %v1334_v26 }
 0x17d   : > { %v1477_v0 = vmax.f32 %v1423_v63, 0.0 }
 0x17e   : > { %v1247_v1 = vpop.f32.mrf.mxu2 }
 0x17f   : > { %v1509_v5 = vpack.c.bf16 %v1477_v0, %v1477_v0  ;;  %v1248_v52 = vadd.f32 %v1247_v1, %v1159_v15  ;;  %v1336_v6 = vpop.f32.mrf.mxu3 }
 0x180   : > { %v1160_v36 = vpop.f32.mrf.mxu1 }
 0x181   : > { %1542 = vst.msk [vmem:[%s2628_s23 + $0x44] sm:$0xf] %vm1524_vm1, %v1509_v5  ;;  %v1337_v44 = vadd.f32 %v1336_v6, %v1248_v52  ;;  %v1161_v16 = vadd.f32 %v1160_v36, %v2544_v62 }
 0x182   : > { %v1427_v9 = vpop.f32.mrf.mxu0 }
 0x183   : > { %v1426_v13 = vadd.f32 %v1425_v61, %v1337_v44 }
 0x185   : > { %v1478_v14 = vmax.f32 %v1426_v13, 0.0 }
 0x186   : > { %v1249_v17 = vpop.f32.mrf.mxu2 }
 0x187   : > { %v1510_v20 = vpack.c.bf16 %v1478_v14, %v1478_v14  ;;  %v1250_v22 = vadd.f32 %v1249_v17, %v1161_v16  ;;  %v1338_v24 = vpop.f32.mrf.mxu3 }
 0x188   : > { %v1163_v47 = vpop.f32.mrf.mxu1 }
 0x189   : > { %1543 = vst.msk [vmem:[%s2628_s23 + $0x48] sm:$0xf] %vm1524_vm1, %v1510_v20  ;;  %v1339_v42 = vadd.f32 %v1338_v24, %v1250_v22  ;;  %v1164_v29 = vadd.f32 %v1163_v47, %v2556_v10 }
 0x18a   : > { %v1430_v27 = vpop.f32.mrf.mxu0 }
 0x18b   : > { %v1428_v28 = vadd.f32 %v1427_v9, %v1339_v42 }
 0x18d   : > { %v1479_v18 = vmax.f32 %v1428_v28, 0.0 }
 0x18e   : > { %v1252_v8 = vpop.f32.mrf.mxu2 }
 0x18f   : > { %v1511_v30 = vpack.c.bf16 %v1479_v18, %v1479_v18  ;;  %v1253_v45 = vadd.f32 %v1252_v8, %v1164_v29  ;;  %v1341_v51 = vpop.f32.mrf.mxu3 }
 0x190   : > { %v1165_v62 = vpop.f32.mrf.mxu1 }
 0x191   : > { %1544 = vst.msk [vmem:[%s2628_s23 + $0x4c] sm:$0xf] %vm1524_vm1, %v1511_v30  ;;  %v1342_v32 = vadd.f32 %v1341_v51, %v1253_v45  ;;  %v1166_v34 = vadd.f32 %v1165_v62, %v2575_v31 }
 0x192   : > { %v1432_v41 = vpop.f32.mrf.mxu0 }
 0x193   : > { %v1431_v33 = vadd.f32 %v1430_v27, %v1342_v32 }
 0x195   : > { %v1480_v19 = vmax.f32 %v1431_v33, 0.0 }
 0x196   : > { %v1254_v37 = vpop.f32.mrf.mxu2 }
 0x197   : > { %v1512_v38 = vpack.c.bf16 %v1480_v19, %v1480_v19  ;;  %v1255_v39 = vadd.f32 %v1254_v37, %v1166_v34  ;;  %v1343_v43 = vpop.f32.mrf.mxu3 }
 0x198   : > { %v1168_v10 = vpop.f32.mrf.mxu1 }
 0x199   : > { %1545 = vst.msk [vmem:[%s2628_s23 + $0x50] sm:$0xf] %vm1524_vm1, %v1512_v38  ;;  %v1344_v48 = vadd.f32 %v1343_v43, %v1255_v39  ;;  %v1169_v25 = vadd.f32 %v1168_v10, %v2587_v46 }
 0x19a   : > { %v1435_v53 = vpop.f32.mrf.mxu0 }
 0x19b   : > { %v1433_v54 = vadd.f32 %v1432_v41, %v1344_v48 }
 0x19d   : > { %v1481_v56 = vmax.f32 %v1433_v54, 0.0 }
 0x19e   : > { %v1257_v57 = vpop.f32.mrf.mxu2 }
 0x19f   : > { %v1513_v58 = vpack.c.bf16 %v1481_v56, %v1481_v56  ;;  %v1258_v59 = vadd.f32 %v1257_v57, %v1169_v25  ;;  %v1346_v7 = vpop.f32.mrf.mxu3 }
 0x1a0   : > { %v1170_v31 = vpop.f32.mrf.mxu1 }
 0x1a1   : > { %1546 = vst.msk [vmem:[%s2628_s23 + $0x54] sm:$0xf] %vm1524_vm1, %v1513_v58  ;;  %v1347_v60 = vadd.f32 %v1346_v7, %v1258_v59  ;;  %v1171_v26 = vadd.f32 %v1170_v31, %v2606_v3 }
 0x1a2   : > { %v1437_v4 = vpop.f32.mrf.mxu0 }
 0x1a3   : > { %v1436_v55 = vadd.f32 %v1435_v53, %v1347_v60 }
 0x1a5   : > { %v1482_v21 = vmax.f32 %v1436_v55, 0.0 }
 0x1a6   : > { %v1259_v61 = vpop.f32.mrf.mxu2 }
 0x1a7   : > { %v1514_v63 = vpack.c.bf16 %v1482_v21, %v1482_v21  ;;  %v1260_v0 = vadd.f32 %v1259_v61, %v1171_v26  ;;  %v1348_v15 = vpop.f32.mrf.mxu3 }
 0x1a8   : > { %v1173_v46 = vpop.f32.mrf.mxu1 }
 0x1a9   : > { %1547 = vst.msk [vmem:[%s2628_s23 + $0x58] sm:$0xf] %vm1524_vm1, %v1514_v63  ;;  %v1349_v1 = vadd.f32 %v1348_v15, %v1260_v0  ;;  %v1174_v36 = vadd.f32 %v1173_v46, %v2497_v23 }
 0x1aa   : > { %v1440_v5 = vpop.f32.mrf.mxu0 }
 0x1ab   : > { %v1438_v52 = vadd.f32 %v1437_v4, %v1349_v1 }
 0x1ad   : > { %v1483_v6 = vmax.f32 %v1438_v52, 0.0 }
 0x1ae   : > { %v1262_v44 = vpop.f32.mrf.mxu2 }
 0x1af   : > { %v1515_v9 = vpack.c.bf16 %v1483_v6, %v1483_v6  ;;  %v1263_v13 = vadd.f32 %v1262_v44, %v1174_v36  ;;  %v1351_v14 = vpop.f32.mrf.mxu3 }
 0x1b0   : > { %v1175_v3 = vpop.f32.mrf.mxu1 }
 0x1b1   : > { %1548 = vst.msk [vmem:[%s2628_s23 + $0x5c] sm:$0xf] %vm1524_vm1, %v1515_v9  ;;  %v1352_v16 = vadd.f32 %v1351_v14, %v1263_v13  ;;  %v1176_v24 = vadd.f32 %v1175_v3, %v2516_v40 }
 0x1b2   : > { %v1442_v17 = vpop.f32.mrf.mxu0 }
 0x1b3   : > { %v1441_v20 = vadd.f32 %v1440_v5, %v1352_v16 }
 0x1b5   : > { %v1484_v22 = vmax.f32 %v1441_v20, 0.0 }
 0x1b6   : > { %v1264_v47 = vpop.f32.mrf.mxu2 }
 0x1b7   : > { %v1516_v42 = vpack.c.bf16 %v1484_v22, %v1484_v22  ;;  %v1265_v27 = vadd.f32 %v1264_v47, %v1176_v24  ;;  %v1353_v28 = vpop.f32.mrf.mxu3 }
 0x1b8   : > { %v1178_v23 = vpop.f32.mrf.mxu1 }
 0x1b9   : > { %1549 = vst.msk [vmem:[%s2628_s23 + $0x60] sm:$0xf] %vm1524_vm1, %v1516_v42  ;;  %v1354_v18 = vadd.f32 %v1353_v28, %v1265_v27  ;;  %v1179_v45 = vadd.f32 %v1178_v23, %v2528_v49 }
 0x1ba   : > { %v1445_v29 = vpop.f32.mrf.mxu0 }
 0x1bb   : > { %v1443_v8 = vadd.f32 %v1442_v17, %v1354_v18 }
 0x1bd   : > { %v1485_v30 = vmax.f32 %v1443_v8, 0.0 }
 0x1be   : > { %v1267_v51 = vpop.f32.mrf.mxu2 }
 0x1bf   : > { %v1517_v62 = vpack.c.bf16 %v1485_v30, %v1485_v30  ;;  %v1268_v32 = vadd.f32 %v1267_v51, %v1179_v45  ;;  %v1356_v41 = vpop.f32.mrf.mxu3 }
 0x1c0   : > { %v1180_v40 = vpop.f32.mrf.mxu1 }
 0x1c1   : > { %1550 = vst.msk [vmem:[%s2628_s23 + $0x64] sm:$0xf] %vm1524_vm1, %v1517_v62  ;;  %v1357_v33 = vadd.f32 %v1356_v41, %v1268_v32  ;;  %v1181_v38 = vadd.f32 %v1180_v40, %v2547_v2 }
 0x1c2   : > { %v1447_v19 = vpop.f32.mrf.mxu0 }
 0x1c3   : > { %v1446_v34 = vadd.f32 %v1445_v29, %v1357_v33 }
 0x1c5   : > { %v1486_v37 = vmax.f32 %v1446_v34, 0.0 }
 0x1c6   : > { %v1269_v39 = vpop.f32.mrf.mxu2 }
 0x1c7   : > { %v1518_v43 = vpack.c.bf16 %v1486_v37, %v1486_v37  ;;  %v1270_v10 = vadd.f32 %v1269_v39, %v1181_v38  ;;  %v1358_v48 = vpop.f32.mrf.mxu3 }
 0x1c8   : > { %v1183_v49 = vpop.f32.mrf.mxu1 }
 0x1c9   : > { %1551 = vst.msk [vmem:[%s2628_s23 + $0x68] sm:$0xf] %vm1524_vm1, %v1518_v43  ;;  %v1359_v53 = vadd.f32 %v1358_v48, %v1270_v10  ;;  %v1184_v57 = vadd.f32 %v1183_v49, %v2559_v12 }
 0x1ca   : > { %v1450_v56 = vpop.f32.mrf.mxu0 }
 0x1cb   : > { %v1448_v54 = vadd.f32 %v1447_v19, %v1359_v53 }
 0x1cd   : > { %v1487_v25 = vmax.f32 %v1448_v54, 0.0 }
 0x1ce   : > { %v1272_v58 = vpop.f32.mrf.mxu2 }
 0x1cf   : > { %v1519_v59 = vpack.c.bf16 %v1487_v25, %v1487_v25  ;;  %v1273_v7 = vadd.f32 %v1272_v58, %v1184_v57  ;;  %v1361_v31 = vpop.f32.mrf.mxu3 }
 0x1d0   : > { %v1185_v2 = vpop.f32.mrf.mxu1 }
 0x1d1   : > { %1552 = vst.msk [vmem:[%s2628_s23 + $0x6c] sm:$0xf] %vm1524_vm1, %v1519_v59  ;;  %v1362_v60 = vadd.f32 %v1361_v31, %v1273_v7  ;;  %v1186_v21 = vadd.f32 %v1185_v2, %v2578_v35 }
 0x1d2   : > { %v1452_v26 = vpop.f32.mrf.mxu0 }
 0x1d3   : > { %v1451_v4 = vadd.f32 %v1450_v56, %v1362_v60 }
 0x1d5   : > { %v1488_v55 = vmax.f32 %v1451_v4, 0.0 }
 0x1d6   : > { %v1274_v61 = vpop.f32.mrf.mxu2 }
 0x1d7   : > { %v1520_v63 = vpack.c.bf16 %v1488_v55, %v1488_v55  ;;  %v1275_v0 = vadd.f32 %v1274_v61, %v1186_v21  ;;  %v1363_v15 = vpop.f32.mrf.mxu3 }
 0x1d8   : > { %v1188_v12 = vpop.f32.mrf.mxu1 }
 0x1d9   : > { %1553 = vst.msk [vmem:[%s2628_s23 + $0x70] sm:$0xf] %vm1524_vm1, %v1520_v63  ;;  %v1364_v46 = vadd.f32 %v1363_v15, %v1275_v0  ;;  %v1189_v52 = vadd.f32 %v1188_v12, %v2590_v50 }
 0x1da   : > { %v1455_v35 = vpop.f32.mrf.mxu0 }
 0x1db   : > { %v1453_v1 = vadd.f32 %v1452_v26, %v1364_v46 }
 0x1dd   : > { %v1489_v5 = vmax.f32 %v1453_v1, 0.0 }
 0x1de   : > { %v1277_v6 = vpop.f32.mrf.mxu2 }
 0x1df   : > { %v1521_v36 = vpack.c.bf16 %v1489_v5, %v1489_v5  ;;  %v1278_v44 = vadd.f32 %v1277_v6, %v1189_v52  ;;  %v1366_v9 = vpop.f32.mrf.mxu3 }
 0x1e0   : > { %v1190_v14 = vpop.f32.mrf.mxu1 }
 0x1e1   : > { %1554 = vst.msk [vmem:[%s2628_s23 + $0x74] sm:$0xf] %vm1524_vm1, %v1521_v36  ;;  %v1367_v13 = vadd.f32 %v1366_v9, %v1278_v44  ;;  %v1191_v17 = vadd.f32 %v1190_v14, %v2609_v11 }
 0x1e2   : > { %v1457_v42 = vpop.f32.mrf.mxu0 }
 0x1e3   : > { %v1456_v3 = vadd.f32 %v1455_v35, %v1367_v13 }
 0x1e5   : > { %v1490_v16 = vmax.f32 %v1456_v3, 0.0 }
 0x1e6   : > { %v1279_v20 = vpop.f32.mrf.mxu2 }
 0x1e7   : > { %v1522_v22 = vpack.c.bf16 %v1490_v16, %v1490_v16  ;;  %v1280_v24 = vadd.f32 %v1279_v20, %v1191_v17  ;;  %v1368_v47 = vpop.f32.mrf.mxu3 }
 0x1e9   : > { %1555 = vst.msk [vmem:[%s2628_s23 + $0x78] sm:$0xf] %vm1524_vm1, %v1522_v22  ;;  %v1369_v50 = vadd.f32 %v1368_v47, %v1280_v24 }
 0x1eb   : > { %v1458_v27 = vadd.f32 %v1457_v42, %v1369_v50 }
 0x1ed   : > { %v1491_v28 = vmax.f32 %v1458_v27, 0.0 }
 0x1ef   : > { %v1523_v23 = vpack.c.bf16 %v1491_v28, %v1491_v28 }
 0x1f1   : > { %1556 = vst.msk [vmem:[%s2628_s23 + $0x7c] sm:$0xf] %vm1524_vm1, %v1523_v23 }
 0x1f2 PF: > { %s13_s12 = sadd.s32 1, %s2260_s12  }
 0x1f3   : > { %p10_p4 = scmp.ge.s32.totalorder %s13_s12, 4  }
 0x1f5   :  { %12 = sbr.rel (!%p10_p4) target bundleno = 1 (0x1), region = 62 }

// kernel: dmcs_forward.29
= control target key start
LH: loop header
LB: loop body
LE: loop exit
PB: predicated region body
PF: predicated region fallthrough
CT: control target
= control target key end

     0   :  { %s1138_s12 = smov 0   ;;  %s1376_s0 = inlined_call_operand.vmem [shape: bf16[2304,256], index: 0, kind: input, shape index: {}]   ;;  %s1377_s1 = inlined_call_operand.vmem [shape: bf16[256,64], index: 1, kind: input, shape index: {}]   ;;  %s1378_s2 = inlined_call_operand.vmem [shape: f32[1,64], index: 2, kind: input, shape index: {}]   ;;  %s1379_s3 = inlined_call_operand.vmem [shape: bf16[2304,64], index: 3, kind: output, shape index: {}]  }
   0x1 LB: > { %s832_s13 = sadd.s32 4294967295, %s1116_s12   ;;  %p836_p0 = scmp.ge.s32.totalorder %s1116_s12, 1  ;;  %s1116_s12 = sphi %s1138_s12, %s13_s12  }
   0x2   : > { %p139_p1 = scmp.lt.s32.totalorder %s1116_s12, 10 }
   0x4   : > { %p140_p2 = pnand %p836_p0, %p139_p1 }
   0x5   : > { %s837_s26 = sshll.u32 (!%p140_p2), %s832_s13, 5 }
   0x6   : > { %143 = sbr.rel (%p140_p2) target bundleno = 304 (0x130), region = 32  ;;  %p165_p3 = scmp.lt.s32.totalorder (!%p140_p2), %s837_s26, 287 }
   0xb   : > { %v1076_v0 = vld [vmem:[%s1377_s1 + $0x38] sm:$0xff]  ;;  %v1075_v2 = vld [vmem:[%s1377_s1 + $0x30] sm:$0xff]  ;;  %v1074_v4 = vld [vmem:[%s1377_s1 + $0x28] sm:$0xff]  ;;  %s1381_s26 = smov (!%p165_p3, %s837_s26), 287  ;;  %vm743_vm0 = vcmask 519168  }
   0xc   : > { %v1084_v1 = vld [vmem:[%s1377_s1 + $0x78] sm:$0xff]  ;;  %501 = vmatpush.bf16.msra.mxu0 %v1076_v0  ;;  %1085 = vmatpush.bf16.msra.mxu2 %v1076_v0  ;;  %v1083_v3 = vld [vmem:[%s1377_s1 + $0x70] sm:$0xff]  ;;  %v1082_v5 = vld [vmem:[%s1377_s1 + $0x68] sm:$0xff]  ;;  %s1036_s13 = sshll.u32 %s1381_s26, 3  ;;  %s841_s28 = sshll.u32 %s1381_s26, 2 }
   0xd   : > { %590 = vmatpush.bf16.msra.mxu1 %v1084_v1  ;;  %1093 = vmatpush.bf16.msra.mxu3 %v1084_v1  ;;  %v1073_v6 = vld [vmem:[%s1377_s1 + $0x20] sm:$0xff]  ;;  %v1072_v8 = vld [vmem:[%s1377_s1 + $0x18] sm:$0xff]  ;;  %v1071_v10 = vld [vmem:[%s1377_s1 + $0x10] sm:$0xff]  ;;  %s1191_s18 = scalar_lea.vmem %s1376_s0, %s1036_s13  ;;  %s1276_s4 = scalar_lea.vmem %s1379_s3, %s841_s28 }
   0xe   : > { %v1081_v7 = vld [vmem:[%s1377_s1 + $0x60] sm:$0xff]  ;;  %v1080_v9 = vld [vmem:[%s1377_s1 + $0x58] sm:$0xff]  ;;  %v1079_v11 = vld [vmem:[%s1377_s1 + $0x50] sm:$0xff] }
   0xf   : > { %v1070_v12 = vld [vmem:[%s1377_s1 + $0x8] sm:$0xff]  ;;  %v1069_v14 = vld [vmem:[%s1377_s1] sm:$0xff]  ;;  %v852_v28 = vld [vmem:[%s1191_s18 + $0x10] sm:$0xf] }
  0x10   : > { %502 = vmatpush.bf16.msra.mxu0 %v1075_v2  ;;  %1086 = vmatpush.bf16.msra.mxu2 %v1075_v2  ;;  %v1078_v13 = vld [vmem:[%s1377_s1 + $0x48] sm:$0xff]  ;;  %v1077_v15 = vld [vmem:[%s1377_s1 + $0x40] sm:$0xff]  ;;  %v1040_v29 = vld [vmem:[%s1191_s18 + $0x14] sm:$0xf0] }
  0x11   : > { %591 = vmatpush.bf16.msra.mxu1 %v1083_v3  ;;  %1094 = vmatpush.bf16.msra.mxu3 %v1083_v3  ;;  %v844_v16 = vld [vmem:[%s1191_s18] sm:$0xf]  ;;  %v1038_v17 = vld [vmem:[%s1191_s18 + $0x4] sm:$0xf0]  ;;  %v1037_v20 = vld [vmem:[%s1191_s18 + $0x4] sm:$0xf]  ;;  %v853_v36 = vor.u32 %v1040_v29, %v852_v28 }
  0x12   : > { %v908_v18 = vld [vmem:[%s1191_s18 + $0x80] sm:$0xf]  ;;  %v1054_v19 = vld [vmem:[%s1191_s18 + $0x84] sm:$0xf0]  ;;  %v846_v21 = vld [vmem:[%s1191_s18 + $0x8] sm:$0xf0]  ;;  %v845_v24 = vor.u32 %v1038_v17, %v844_v16 }
  0x13   : > { %v1053_v22 = vld [vmem:[%s1191_s18 + $0x84] sm:$0xf]  ;;  %v910_v23 = vld [vmem:[%s1191_s18 + $0x88] sm:$0xf0]  ;;  %v909_v25 = vor.u32 %v1054_v19, %v908_v18  ;;  %v849_v26 = vor.u32 %v1037_v20, %v846_v21  ;;  %v916_v30 = vld [vmem:[%s1191_s18 + $0x90] sm:$0xf] }
  0x14   : > { %503 = vmatpush.bf16.msra.mxu0 %v1074_v4  ;;  %1087 = vmatpush.bf16.msra.mxu2 %v1074_v4  ;;  %v913_v27 = vor.u32 %v1053_v22, %v910_v23  ;;  %v1056_v31 = vld [vmem:[%s1191_s18 + $0x94] sm:$0xf0]  ;;  %v1039_v32 = vld [vmem:[%s1191_s18 + $0x14] sm:$0xf]  ;;  %v854_v33 = vld [vmem:[%s1191_s18 + $0x18] sm:$0xf0] }
  0x15   : > { %592 = vmatpush.bf16.msra.mxu1 %v1082_v5  ;;  %1095 = vmatpush.bf16.msra.mxu3 %v1082_v5  ;;  %v1055_v34 = vld [vmem:[%s1191_s18 + $0x94] sm:$0xf]  ;;  %v918_v35 = vld [vmem:[%s1191_s18 + $0x98] sm:$0xf0]  ;;  %v917_v37 = vor.u32 %v1056_v31, %v916_v30  ;;  %v857_v38 = vor.u32 %v1039_v32, %v854_v33  ;;  %v860_v40 = vld [vmem:[%s1191_s18 + $0x20] sm:$0xf] }
  0x16   : > { %v921_v39 = vor.u32 %v1055_v34, %v918_v35  ;;  %v1042_v41 = vld [vmem:[%s1191_s18 + $0x24] sm:$0xf0]  ;;  %v924_v42 = vld [vmem:[%s1191_s18 + $0xa0] sm:$0xf]  ;;  %v1041_v44 = vld [vmem:[%s1191_s18 + $0x24] sm:$0xf] }
  0x17   : > { %v1058_v43 = vld [vmem:[%s1191_s18 + $0xa4] sm:$0xf0]  ;;  %v862_v45 = vld [vmem:[%s1191_s18 + $0x28] sm:$0xf0]  ;;  %v1057_v46 = vld [vmem:[%s1191_s18 + $0xa4] sm:$0xf]  ;;  %v861_v48 = vor.u32 %v1042_v41, %v860_v40 }
  0x18   : > { %504 = vmatpush.bf16.msra.mxu0 %v1073_v6  ;;  %1088 = vmatpush.bf16.msra.mxu2 %v1073_v6  ;;  %v926_v47 = vld [vmem:[%s1191_s18 + $0xa8] sm:$0xf0]  ;;  %v925_v49 = vor.u32 %v1058_v43, %v924_v42  ;;  %v865_v50 = vor.u32 %v1041_v44, %v862_v45  ;;  %v868_v52 = vld [vmem:[%s1191_s18 + $0x30] sm:$0xf]  ;;  %v1044_v53 = vld [vmem:[%s1191_s18 + $0x34] sm:$0xf0] }
  0x19   : > { %593 = vmatpush.bf16.msra.mxu1 %v1081_v7  ;;  %1096 = vmatpush.bf16.msra.mxu3 %v1081_v7  ;;  %v929_v51 = vor.u32 %v1057_v46, %v926_v47  ;;  %v932_v54 = vld [vmem:[%s1191_s18 + $0xb0] sm:$0xf]  ;;  %v1060_v55 = vld [vmem:[%s1191_s18 + $0xb4] sm:$0xf0]  ;;  %v1043_v56 = vld [vmem:[%s1191_s18 + $0x34] sm:$0xf]  ;;  %v869_v60 = vor.u32 %v1044_v53, %v868_v52 }
  0x1a   : > { %v870_v57 = vld [vmem:[%s1191_s18 + $0x38] sm:$0xf0]  ;;  %v1059_v58 = vld [vmem:[%s1191_s18 + $0xb4] sm:$0xf]  ;;  %v933_v61 = vor.u32 %v1060_v55, %v932_v54  ;;  %v876_v0 = vld [vmem:[%s1191_s18 + $0x40] sm:$0xf] }
  0x1b   : > { %v934_v59 = vld [vmem:[%s1191_s18 + $0xb8] sm:$0xf0]  ;;  %v873_v62 = vor.u32 %v1043_v56, %v870_v57  ;;  %v1046_v1 = vld [vmem:[%s1191_s18 + $0x44] sm:$0xf0]  ;;  %v940_v2 = vld [vmem:[%s1191_s18 + $0xc0] sm:$0xf] }
  0x1c   : > { %505 = vmatpush.bf16.msra.mxu0 %v1072_v8  ;;  %1089 = vmatpush.bf16.msra.mxu2 %v1072_v8  ;;  %v937_v63 = vor.u32 %v1059_v58, %v934_v59  ;;  %v1062_v3 = vld [vmem:[%s1191_s18 + $0xc4] sm:$0xf0]  ;;  %v1045_v4 = vld [vmem:[%s1191_s18 + $0x44] sm:$0xf]  ;;  %v878_v5 = vld [vmem:[%s1191_s18 + $0x48] sm:$0xf0]  ;;  %v877_v8 = vor.u32 %v1046_v1, %v876_v0 }
  0x1d   : > { %594 = vmatpush.bf16.msra.mxu1 %v1080_v9  ;;  %1097 = vmatpush.bf16.msra.mxu3 %v1080_v9  ;;  %v1061_v6 = vld [vmem:[%s1191_s18 + $0xc4] sm:$0xf]  ;;  %v942_v7 = vld [vmem:[%s1191_s18 + $0xc8] sm:$0xf0]  ;;  %v941_v9 = vor.u32 %v1062_v3, %v940_v2  ;;  %v1047_v16 = vld [vmem:[%s1191_s18 + $0x54] sm:$0xf] }
  0x1e   : > { %v886_v17 = vld [vmem:[%s1191_s18 + $0x58] sm:$0xf0]  ;;  %v1063_v18 = vld [vmem:[%s1191_s18 + $0xd4] sm:$0xf]  ;;  %v1049_v28 = vld [vmem:[%s1191_s18 + $0x64] sm:$0xf] }
  0x1f   : > { %v950_v19 = vld [vmem:[%s1191_s18 + $0xd8] sm:$0xf0]  ;;  %v889_v22 = vor.u32 %v1047_v16, %v886_v17  ;;  %v894_v29 = vld [vmem:[%s1191_s18 + $0x68] sm:$0xf0]  ;;  %v1065_v30 = vld [vmem:[%s1191_s18 + $0xe4] sm:$0xf] }
  0x20   : > { %506 = vmatpush.bf16.msra.mxu0 %v1071_v10  ;;  %1090 = vmatpush.bf16.msra.mxu2 %v1071_v10  ;;  %v881_v10 = vor.u32 %v1045_v4, %v878_v5  ;;  %v953_v23 = vor.u32 %v1063_v18, %v950_v19  ;;  %v958_v31 = vld [vmem:[%s1191_s18 + $0xe8] sm:$0xf0]  ;;  %v897_v34 = vor.u32 %v1049_v28, %v894_v29  ;;  %v1051_v40 = vld [vmem:[%s1191_s18 + $0x74] sm:$0xf]  ;;  %v902_v41 = vld [vmem:[%s1191_s18 + $0x78] sm:$0xf0] }
  0x21   : > { %595 = vmatpush.bf16.msra.mxu1 %v1079_v11  ;;  %1098 = vmatpush.bf16.msra.mxu3 %v1079_v11  ;;  %v945_v11 = vor.u32 %v1061_v6, %v942_v7  ;;  %v961_v35 = vor.u32 %v1065_v30, %v958_v31  ;;  %v1067_v42 = vld [vmem:[%s1191_s18 + $0xf4] sm:$0xf]  ;;  %v966_v43 = vld [vmem:[%s1191_s18 + $0xf8] sm:$0xf0]  ;;  %v905_v46 = vor.u32 %v1051_v40, %v902_v41 }
  0x22   : > { %v969_v47 = vor.u32 %v1067_v42, %v966_v43 }
  0x24   : > { %507 = vmatpush.bf16.msra.mxu0 %v1070_v12  ;;  %1091 = vmatpush.bf16.msra.mxu2 %v1070_v12  ;;  %v884_v12 = vld [vmem:[%s1191_s18 + $0x50] sm:$0xf] }
  0x25   : > { %596 = vmatpush.bf16.msra.mxu1 %v1078_v13  ;;  %1099 = vmatpush.bf16.msra.mxu3 %v1078_v13  ;;  %v1048_v13 = vld [vmem:[%s1191_s18 + $0x54] sm:$0xf0] }
  0x26   : > { %v885_v20 = vor.u32 %v1048_v13, %v884_v12 }
  0x28   : > { %508 = vmatpush.bf16.msra.mxu0 %v1069_v14  ;;  %1092 = vmatpush.bf16.msra.mxu2 %v1069_v14  ;;  %v948_v14 = vld [vmem:[%s1191_s18 + $0xd0] sm:$0xf] }
  0x29   : > { %597 = vmatpush.bf16.msra.mxu1 %v1077_v15  ;;  %1100 = vmatpush.bf16.msra.mxu3 %v1077_v15  ;;  %v1064_v15 = vld [vmem:[%s1191_s18 + $0xd4] sm:$0xf0] }
  0x2a   : > { %v949_v21 = vor.u32 %v1064_v15, %v948_v14 }
  0x2b   : > { %509 = vmatmul.bf16.vlgmr.msra.gmra.mxu0 %v845_v24  ;;  %549 = vmatmul.bf16.vlgmr.msra.gmra.mxu2 %v909_v25  ;;  %v892_v24 = vld [vmem:[%s1191_s18 + $0x60] sm:$0xf]  ;;  %v1050_v25 = vld [vmem:[%s1191_s18 + $0x64] sm:$0xf0] }
  0x2c   : > { %598 = vmatmul.bf16.vlgmr.msra.gmra.mxu1 %v849_v26  ;;  %638 = vmatmul.bf16.vlgmr.msra.gmra.mxu3 %v913_v27  ;;  %v956_v26 = vld [vmem:[%s1191_s18 + $0xe0] sm:$0xf]  ;;  %v1066_v27 = vld [vmem:[%s1191_s18 + $0xe4] sm:$0xf0]  ;;  %v893_v32 = vor.u32 %v1050_v25, %v892_v24 }
  0x2d   : > { %v957_v33 = vor.u32 %v1066_v27, %v956_v26 }
  0x3b   : > { %514 = vmatmul.bf16.gmra.mxu0 %v853_v36  ;;  %554 = vmatmul.bf16.gmra.mxu2 %v917_v37  ;;  %v900_v36 = vld [vmem:[%s1191_s18 + $0x70] sm:$0xf]  ;;  %v1052_v37 = vld [vmem:[%s1191_s18 + $0x74] sm:$0xf0] }
  0x3c   : > { %603 = vmatmul.bf16.gmra.mxu1 %v857_v38  ;;  %643 = vmatmul.bf16.gmra.mxu3 %v921_v39  ;;  %v964_v38 = vld [vmem:[%s1191_s18 + $0xf0] sm:$0xf]  ;;  %v1068_v39 = vld [vmem:[%s1191_s18 + $0xf4] sm:$0xf0]  ;;  %v901_v44 = vor.u32 %v1052_v37, %v900_v36 }
  0x3d   : > { %v965_v45 = vor.u32 %v1068_v39, %v964_v38 }
  0x4b   : > { %519 = vmatmul.bf16.gmra.mxu0 %v861_v48  ;;  %559 = vmatmul.bf16.gmra.mxu2 %v925_v49  ;;  %v1269_v48 = vld [vmem:[%s1378_s2] ss:$0 sm:$0xff] }
  0x4c   : > { %608 = vmatmul.bf16.gmra.mxu1 %v865_v50  ;;  %648 = vmatmul.bf16.gmra.mxu3 %v929_v51 }
  0x5b   : > { %524 = vmatmul.bf16.gmra.mxu0 %v869_v60  ;;  %564 = vmatmul.bf16.gmra.mxu2 %v933_v61 }
  0x5c   : > { %613 = vmatmul.bf16.gmra.mxu1 %v873_v62  ;;  %653 = vmatmul.bf16.gmra.mxu3 %v937_v63 }
  0x6b   : > { %529 = vmatmul.bf16.gmra.mxu0 %v877_v8  ;;  %569 = vmatmul.bf16.gmra.mxu2 %v941_v9 }
  0x6c   : > { %618 = vmatmul.bf16.gmra.mxu1 %v881_v10  ;;  %658 = vmatmul.bf16.gmra.mxu3 %v945_v11 }
  0x7b   : > { %534 = vmatmul.bf16.gmra.mxu0 %v885_v20  ;;  %574 = vmatmul.bf16.gmra.mxu2 %v949_v21 }
  0x7c   : > { %623 = vmatmul.bf16.gmra.mxu1 %v889_v22  ;;  %663 = vmatmul.bf16.gmra.mxu3 %v953_v23 }
  0x8b   : > { %539 = vmatmul.bf16.gmra.mxu0 %v893_v32  ;;  %579 = vmatmul.bf16.gmra.mxu2 %v957_v33 }
  0x8c   : > { %628 = vmatmul.bf16.gmra.mxu1 %v897_v34  ;;  %668 = vmatmul.bf16.gmra.mxu3 %v961_v35 }
  0x9b   : > { %544 = vmatmul.bf16.gmra.mxu0 %v901_v44  ;;  %584 = vmatmul.bf16.gmra.mxu2 %v965_v45 }
  0x9c   : > { %633 = vmatmul.bf16.gmra.mxu1 %v905_v46  ;;  %673 = vmatmul.bf16.gmra.mxu3 %v969_v47 }
  0xa8   : > { %v510_v49 = vpop.f32.mrf.mxu0 }
  0xa9   : > { %v511_v50 = vadd.f32 %v1269_v48, %v510_v49  ;;  %v599_v51 = vpop.f32.mrf.mxu1 }
  0xab   : > { %v600_v52 = vadd.f32 %v599_v51, %v511_v50 }
  0xad   : > { %v679_v53 = vmax.f32 %v600_v52, 0.0 }
  0xae   : > { %v550_v54 = vpop.f32.mrf.mxu2 }
  0xaf   : > { %v711_v55 = vpack.c.bf16 %v679_v53, %v679_v53  ;;  %v551_v56 = vadd.f32 %v1269_v48, %v550_v54  ;;  %v639_v57 = vpop.f32.mrf.mxu3 }
  0xb0   : > { %v512_v58 = vpop.f32.mrf.mxu0 }
  0xb1   : > { %744 = vst.msk [vmem:[%s1276_s4] sm:$0xf] %vm743_vm0, %v711_v55  ;;  %v640_v59 = vadd.f32 %v639_v57, %v551_v56  ;;  %v513_v60 = vadd.f32 %v1269_v48, %v512_v58  ;;  %v601_v61 = vpop.f32.mrf.mxu1 }
  0xb3   : > { %v695_v62 = vmax.f32 %v640_v59, 0.0  ;;  %v602_v63 = vadd.f32 %v601_v61, %v513_v60 }
  0xb5   : > { %v727_v0 = vpack.c.bf16 %v695_v62, %v695_v62  ;;  %v680_v1 = vmax.f32 %v602_v63, 0.0 }
  0xb6   : > { %v552_v2 = vpop.f32.mrf.mxu2 }
  0xb7   : > { %760 = vst.msk [vmem:[%s1276_s4 + $0x40] sm:$0xf] %vm743_vm0, %v727_v0  ;;  %v712_v3 = vpack.c.bf16 %v680_v1, %v680_v1  ;;  %v553_v4 = vadd.f32 %v1269_v48, %v552_v2  ;;  %v641_v5 = vpop.f32.mrf.mxu3 }
  0xb8   : > { %v515_v6 = vpop.f32.mrf.mxu0 }
  0xb9   : > { %745 = vst.msk [vmem:[%s1276_s4 + $0x4] sm:$0xf] %vm743_vm0, %v712_v3  ;;  %v642_v7 = vadd.f32 %v641_v5, %v553_v4  ;;  %v516_v8 = vadd.f32 %v1269_v48, %v515_v6  ;;  %v604_v9 = vpop.f32.mrf.mxu1 }
  0xbb   : > { %v696_v10 = vmax.f32 %v642_v7, 0.0  ;;  %v605_v11 = vadd.f32 %v604_v9, %v516_v8 }
  0xbd   : > { %v728_v12 = vpack.c.bf16 %v696_v10, %v696_v10  ;;  %v681_v13 = vmax.f32 %v605_v11, 0.0 }
  0xbe   : > { %v555_v14 = vpop.f32.mrf.mxu2 }
  0xbf   : > { %761 = vst.msk [vmem:[%s1276_s4 + $0x44] sm:$0xf] %vm743_vm0, %v728_v12  ;;  %v713_v15 = vpack.c.bf16 %v681_v13, %v681_v13  ;;  %v556_v16 = vadd.f32 %v1269_v48, %v555_v14  ;;  %v644_v17 = vpop.f32.mrf.mxu3 }
  0xc0   : > { %v517_v18 = vpop.f32.mrf.mxu0 }
  0xc1   : > { %746 = vst.msk [vmem:[%s1276_s4 + $0x8] sm:$0xf] %vm743_vm0, %v713_v15  ;;  %v645_v19 = vadd.f32 %v644_v17, %v556_v16  ;;  %v518_v20 = vadd.f32 %v1269_v48, %v517_v18  ;;  %v606_v21 = vpop.f32.mrf.mxu1 }
  0xc3   : > { %v697_v22 = vmax.f32 %v645_v19, 0.0  ;;  %v607_v23 = vadd.f32 %v606_v21, %v518_v20 }
  0xc5   : > { %v729_v24 = vpack.c.bf16 %v697_v22, %v697_v22  ;;  %v682_v25 = vmax.f32 %v607_v23, 0.0 }
  0xc6   : > { %v557_v26 = vpop.f32.mrf.mxu2 }
  0xc7   : > { %762 = vst.msk [vmem:[%s1276_s4 + $0x48] sm:$0xf] %vm743_vm0, %v729_v24  ;;  %v714_v27 = vpack.c.bf16 %v682_v25, %v682_v25  ;;  %v558_v28 = vadd.f32 %v1269_v48, %v557_v26  ;;  %v646_v29 = vpop.f32.mrf.mxu3 }
  0xc8   : > { %v520_v30 = vpop.f32.mrf.mxu0 }
  0xc9   : > { %747 = vst.msk [vmem:[%s1276_s4 + $0xc] sm:$0xf] %vm743_vm0, %v714_v27  ;;  %v647_v31 = vadd.f32 %v646_v29, %v558_v28  ;;  %v521_v32 = vadd.f32 %v1269_v48, %v520_v30  ;;  %v609_v33 = vpop.f32.mrf.mxu1 }
  0xcb   : > { %v698_v34 = vmax.f32 %v647_v31, 0.0  ;;  %v610_v35 = vadd.f32 %v609_v33, %v521_v32 }
  0xcd   : > { %v730_v36 = vpack.c.bf16 %v698_v34, %v698_v34  ;;  %v683_v37 = vmax.f32 %v610_v35, 0.0 }
  0xce   : > { %v560_v38 = vpop.f32.mrf.mxu2 }
  0xcf   : > { %763 = vst.msk [vmem:[%s1276_s4 + $0x4c] sm:$0xf] %vm743_vm0, %v730_v36  ;;  %v715_v39 = vpack.c.bf16 %v683_v37, %v683_v37  ;;  %v561_v40 = vadd.f32 %v1269_v48, %v560_v38  ;;  %v649_v41 = vpop.f32.mrf.mxu3 }
  0xd0   : > { %v522_v42 = vpop.f32.mrf.mxu0 }
  0xd1   : > { %748 = vst.msk [vmem:[%s1276_s4 + $0x10] sm:$0xf] %vm743_vm0, %v715_v39  ;;  %v650_v43 = vadd.f32 %v649_v41, %v561_v40  ;;  %v523_v44 = vadd.f32 %v1269_v48, %v522_v42  ;;  %v611_v45 = vpop.f32.mrf.mxu1 }
  0xd3   : > { %v699_v46 = vmax.f32 %v650_v43, 0.0  ;;  %v612_v47 = vadd.f32 %v611_v45, %v523_v44 }
  0xd5   : > { %v731_v49 = vpack.c.bf16 %v699_v46, %v699_v46  ;;  %v684_v50 = vmax.f32 %v612_v47, 0.0 }
  0xd6   : > { %v562_v51 = vpop.f32.mrf.mxu2 }
  0xd7   : > { %764 = vst.msk [vmem:[%s1276_s4 + $0x50] sm:$0xf] %vm743_vm0, %v731_v49  ;;  %v716_v52 = vpack.c.bf16 %v684_v50, %v684_v50  ;;  %v563_v53 = vadd.f32 %v1269_v48, %v562_v51  ;;  %v651_v54 = vpop.f32.mrf.mxu3 }
  0xd8   : > { %v525_v55 = vpop.f32.mrf.mxu0 }
  0xd9   : > { %749 = vst.msk [vmem:[%s1276_s4 + $0x14] sm:$0xf] %vm743_vm0, %v716_v52  ;;  %v652_v56 = vadd.f32 %v651_v54, %v563_v53  ;;  %v526_v57 = vadd.f32 %v1269_v48, %v525_v55  ;;  %v614_v58 = vpop.f32.mrf.mxu1 }
  0xdb   : > { %v700_v59 = vmax.f32 %v652_v56, 0.0  ;;  %v615_v60 = vadd.f32 %v614_v58, %v526_v57 }
  0xdd   : > { %v732_v61 = vpack.c.bf16 %v700_v59, %v700_v59  ;;  %v685_v62 = vmax.f32 %v615_v60, 0.0 }
  0xde   : > { %v565_v63 = vpop.f32.mrf.mxu2 }
  0xdf   : > { %765 = vst.msk [vmem:[%s1276_s4 + $0x54] sm:$0xf] %vm743_vm0, %v732_v61  ;;  %v717_v0 = vpack.c.bf16 %v685_v62, %v685_v62  ;;  %v566_v1 = vadd.f32 %v1269_v48, %v565_v63  ;;  %v654_v2 = vpop.f32.mrf.mxu3 }
  0xe0   : > { %v527_v3 = vpop.f32.mrf.mxu0 }
  0xe1   : > { %750 = vst.msk [vmem:[%s1276_s4 + $0x18] sm:$0xf] %vm743_vm0, %v717_v0  ;;  %v655_v4 = vadd.f32 %v654_v2, %v566_v1  ;;  %v528_v5 = vadd.f32 %v1269_v48, %v527_v3  ;;  %v616_v6 = vpop.f32.mrf.mxu1 }
  0xe3   : > { %v701_v7 = vmax.f32 %v655_v4, 0.0  ;;  %v617_v8 = vadd.f32 %v616_v6, %v528_v5 }
  0xe5   : > { %v733_v9 = vpack.c.bf16 %v701_v7, %v701_v7  ;;  %v686_v10 = vmax.f32 %v617_v8, 0.0 }
  0xe6   : > { %v567_v11 = vpop.f32.mrf.mxu2 }
  0xe7   : > { %766 = vst.msk [vmem:[%s1276_s4 + $0x58] sm:$0xf] %vm743_vm0, %v733_v9  ;;  %v718_v12 = vpack.c.bf16 %v686_v10, %v686_v10  ;;  %v568_v13 = vadd.f32 %v1269_v48, %v567_v11  ;;  %v656_v14 = vpop.f32.mrf.mxu3 }
  0xe8   : > { %v530_v15 = vpop.f32.mrf.mxu0 }
  0xe9   : > { %751 = vst.msk [vmem:[%s1276_s4 + $0x1c] sm:$0xf] %vm743_vm0, %v718_v12  ;;  %v657_v16 = vadd.f32 %v656_v14, %v568_v13  ;;  %v531_v17 = vadd.f32 %v1269_v48, %v530_v15  ;;  %v619_v18 = vpop.f32.mrf.mxu1 }
  0xeb   : > { %v702_v19 = vmax.f32 %v657_v16, 0.0  ;;  %v620_v20 = vadd.f32 %v619_v18, %v531_v17 }
  0xed   : > { %v734_v21 = vpack.c.bf16 %v702_v19, %v702_v19  ;;  %v687_v22 = vmax.f32 %v620_v20, 0.0 }
  0xee   : > { %v570_v23 = vpop.f32.mrf.mxu2 }
  0xef   : > { %767 = vst.msk [vmem:[%s1276_s4 + $0x5c] sm:$0xf] %vm743_vm0, %v734_v21  ;;  %v719_v24 = vpack.c.bf16 %v687_v22, %v687_v22  ;;  %v571_v25 = vadd.f32 %v1269_v48, %v570_v23  ;;  %v659_v26 = vpop.f32.mrf.mxu3 }
  0xf0   : > { %v532_v27 = vpop.f32.mrf.mxu0 }
  0xf1   : > { %752 = vst.msk [vmem:[%s1276_s4 + $0x20] sm:$0xf] %vm743_vm0, %v719_v24  ;;  %v660_v28 = vadd.f32 %v659_v26, %v571_v25  ;;  %v533_v29 = vadd.f32 %v1269_v48, %v532_v27  ;;  %v621_v30 = vpop.f32.mrf.mxu1 }
  0xf3   : > { %v703_v31 = vmax.f32 %v660_v28, 0.0  ;;  %v622_v32 = vadd.f32 %v621_v30, %v533_v29 }
  0xf5   : > { %v735_v33 = vpack.c.bf16 %v703_v31, %v703_v31  ;;  %v688_v34 = vmax.f32 %v622_v32, 0.0 }
  0xf6   : > { %v572_v35 = vpop.f32.mrf.mxu2 }
  0xf7   : > { %768 = vst.msk [vmem:[%s1276_s4 + $0x60] sm:$0xf] %vm743_vm0, %v735_v33  ;;  %v720_v36 = vpack.c.bf16 %v688_v34, %v688_v34  ;;  %v573_v37 = vadd.f32 %v1269_v48, %v572_v35  ;;  %v661_v38 = vpop.f32.mrf.mxu3 }
  0xf8   : > { %v535_v39 = vpop.f32.mrf.mxu0 }
  0xf9   : > { %753 = vst.msk [vmem:[%s1276_s4 + $0x24] sm:$0xf] %vm743_vm0, %v720_v36  ;;  %v662_v40 = vadd.f32 %v661_v38, %v573_v37  ;;  %v536_v41 = vadd.f32 %v1269_v48, %v535_v39  ;;  %v624_v42 = vpop.f32.mrf.mxu1 }
  0xfb   : > { %v704_v43 = vmax.f32 %v662_v40, 0.0  ;;  %v625_v44 = vadd.f32 %v624_v42, %v536_v41 }
  0xfd   : > { %v736_v45 = vpack.c.bf16 %v704_v43, %v704_v43  ;;  %v689_v46 = vmax.f32 %v625_v44, 0.0 }
  0xfe   : > { %v575_v47 = vpop.f32.mrf.mxu2 }
  0xff   : > { %769 = vst.msk [vmem:[%s1276_s4 + $0x64] sm:$0xf] %vm743_vm0, %v736_v45  ;;  %v721_v49 = vpack.c.bf16 %v689_v46, %v689_v46  ;;  %v576_v50 = vadd.f32 %v1269_v48, %v575_v47  ;;  %v664_v51 = vpop.f32.mrf.mxu3 }
 0x100   : > { %v537_v52 = vpop.f32.mrf.mxu0 }
 0x101   : > { %754 = vst.msk [vmem:[%s1276_s4 + $0x28] sm:$0xf] %vm743_vm0, %v721_v49  ;;  %v665_v53 = vadd.f32 %v664_v51, %v576_v50  ;;  %v538_v54 = vadd.f32 %v1269_v48, %v537_v52  ;;  %v626_v55 = vpop.f32.mrf.mxu1 }
 0x103   : > { %v705_v56 = vmax.f32 %v665_v53, 0.0  ;;  %v627_v57 = vadd.f32 %v626_v55, %v538_v54 }
 0x105   : > { %v737_v58 = vpack.c.bf16 %v705_v56, %v705_v56  ;;  %v690_v59 = vmax.f32 %v627_v57, 0.0 }
 0x106   : > { %v577_v60 = vpop.f32.mrf.mxu2 }
 0x107   : > { %770 = vst.msk [vmem:[%s1276_s4 + $0x68] sm:$0xf] %vm743_vm0, %v737_v58  ;;  %v722_v61 = vpack.c.bf16 %v690_v59, %v690_v59  ;;  %v578_v62 = vadd.f32 %v1269_v48, %v577_v60  ;;  %v666_v63 = vpop.f32.mrf.mxu3 }
 0x108   : > { %v540_v0 = vpop.f32.mrf.mxu0 }
 0x109   : > { %755 = vst.msk [vmem:[%s1276_s4 + $0x2c] sm:$0xf] %vm743_vm0, %v722_v61  ;;  %v667_v1 = vadd.f32 %v666_v63, %v578_v62  ;;  %v541_v2 = vadd.f32 %v1269_v48, %v540_v0  ;;  %v629_v3 = vpop.f32.mrf.mxu1 }
 0x10b   : > { %v706_v4 = vmax.f32 %v667_v1, 0.0  ;;  %v630_v5 = vadd.f32 %v629_v3, %v541_v2 }
 0x10d   : > { %v738_v6 = vpack.c.bf16 %v706_v4, %v706_v4  ;;  %v691_v7 = vmax.f32 %v630_v5, 0.0 }
 0x10e   : > { %v580_v8 = vpop.f32.mrf.mxu2 }
 0x10f   : > { %771 = vst.msk [vmem:[%s1276_s4 + $0x6c] sm:$0xf] %vm743_vm0, %v738_v6  ;;  %v723_v9 = vpack.c.bf16 %v691_v7, %v691_v7  ;;  %v581_v10 = vadd.f32 %v1269_v48, %v580_v8  ;;  %v669_v11 = vpop.f32.mrf.mxu3 }
 0x110   : > { %v542_v12 = vpop.f32.mrf.mxu0 }
 0x111   : > { %756 = vst.msk [vmem:[%s1276_s4 + $0x30] sm:$0xf] %vm743_vm0, %v723_v9  ;;  %v670_v13 = vadd.f32 %v669_v11, %v581_v10  ;;  %v543_v14 = vadd.f32 %v1269_v48, %v542_v12  ;;  %v631_v15 = vpop.f32.mrf.mxu1 }
 0x113   : > { %v707_v16 = vmax.f32 %v670_v13, 0.0  ;;  %v632_v17 = vadd.f32 %v631_v15, %v543_v14 }
 0x115   : > { %v739_v18 = vpack.c.bf16 %v707_v16, %v707_v16  ;;  %v692_v19 = vmax.f32 %v632_v17, 0.0 }
 0x116   : > { %v582_v20 = vpop.f32.mrf.mxu2 }
 0x117   : > { %772 = vst.msk [vmem:[%s1276_s4 + $0x70] sm:$0xf] %vm743_vm0, %v739_v18  ;;  %v724_v21 = vpack.c.bf16 %v692_v19, %v692_v19  ;;  %v583_v22 = vadd.f32 %v1269_v48, %v582_v20  ;;  %v671_v23 = vpop.f32.mrf.mxu3 }
 0x118   : > { %v545_v24 = vpop.f32.mrf.mxu0 }
 0x119   : > { %757 = vst.msk [vmem:[%s1276_s4 + $0x34] sm:$0xf] %vm743_vm0, %v724_v21  ;;  %v672_v25 = vadd.f32 %v671_v23, %v583_v22  ;;  %v546_v26 = vadd.f32 %v1269_v48, %v545_v24  ;;  %v634_v27 = vpop.f32.mrf.mxu1 }
 0x11b   : > { %v708_v28 = vmax.f32 %v672_v25, 0.0  ;;  %v635_v29 = vadd.f32 %v634_v27, %v546_v26 }
 0x11d   : > { %v740_v30 = vpack.c.bf16 %v708_v28, %v708_v28  ;;  %v693_v31 = vmax.f32 %v635_v29, 0.0 }
 0x11e   : > { %v585_v32 = vpop.f32.mrf.mxu2 }
 0x11f   : > { %773 = vst.msk [vmem:[%s1276_s4 + $0x74] sm:$0xf] %vm743_vm0, %v740_v30  ;;  %v725_v33 = vpack.c.bf16 %v693_v31, %v693_v31  ;;  %v586_v34 = vadd.f32 %v1269_v48, %v585_v32  ;;  %v674_v35 = vpop.f32.mrf.mxu3 }
 0x120   : > { %v547_v36 = vpop.f32.mrf.mxu0 }
 0x121   : > { %758 = vst.msk [vmem:[%s1276_s4 + $0x38] sm:$0xf] %vm743_vm0, %v725_v33  ;;  %v675_v37 = vadd.f32 %v674_v35, %v586_v34  ;;  %v548_v38 = vadd.f32 %v1269_v48, %v547_v36  ;;  %v636_v39 = vpop.f32.mrf.mxu1 }
 0x123   : > { %v709_v40 = vmax.f32 %v675_v37, 0.0  ;;  %v637_v41 = vadd.f32 %v636_v39, %v548_v38 }
 0x125   : > { %v741_v42 = vpack.c.bf16 %v709_v40, %v709_v40  ;;  %v694_v43 = vmax.f32 %v637_v41, 0.0 }
 0x126   : > { %v587_v44 = vpop.f32.mrf.mxu2 }
 0x127   : > { %774 = vst.msk [vmem:[%s1276_s4 + $0x78] sm:$0xf] %vm743_vm0, %v741_v42  ;;  %v726_v45 = vpack.c.bf16 %v694_v43, %v694_v43  ;;  %v588_v46 = vadd.f32 %v1269_v48, %v587_v44  ;;  %v676_v47 = vpop.f32.mrf.mxu3 }
 0x129   : > { %759 = vst.msk [vmem:[%s1276_s4 + $0x3c] sm:$0xf] %vm743_vm0, %v726_v45  ;;  %v677_v49 = vadd.f32 %v676_v47, %v588_v46 }
 0x12b   : > { %v710_v50 = vmax.f32 %v677_v49, 0.0 }
 0x12d   : > { %v742_v51 = vpack.c.bf16 %v710_v50, %v710_v50 }
 0x12f   : > { %775 = vst.msk [vmem:[%s1276_s4 + $0x7c] sm:$0xf] %vm743_vm0, %v742_v51 }
 0x130 PF: > { %s13_s12 = sadd.s32 1, %s1116_s12  }
 0x131   : > { %p10_p4 = scmp.ge.s32.totalorder %s13_s12, 11  }
 0x133   :  { %12 = sbr.rel (!%p10_p4) target bundleno = 1 (0x1), region = 62 }

</bundles_post_ra>
